<compile_context>
chip_gen: v7x
topology: tpu7x:2x2x1
jax: 0.10.0
libtpu: 0.0.40
codegen_flags: <defaults>
</compile_context>

<pallas_src>
import jax
import jax.numpy as jnp
from jax.experimental import pallas as pl
from jax.experimental.pallas import tpu as pltpu


_VMEM_LIMIT = 48 * 1024 * 1024   # > scoped defaults, < v7x's 64 MiB physical


def _round_up(x, m):
    return ((x + m - 1) // m) * m


# ----------------------------------------------------------------------------
# Pallas kernels
# ----------------------------------------------------------------------------
def _matmul_bn_relu_kernel(x_ref, w_ref, scale_ref, shift_ref, o_ref):
    # x: (tm, K) bf16   w: (K, Cout) bf16   scale/shift: (1, Cout) f32
    y = jnp.dot(x_ref[...], w_ref[...], preferred_element_type=jnp.float32)
    y = y * scale_ref[...] + shift_ref[...]
    o_ref[...] = jnp.maximum(y, 0.0).astype(o_ref.dtype)


def _conv3x3_bn_relu_kernel(ph_ref, w_ref, scale_ref, shift_ref, o_ref):
    # ph_ref: (4, Ho+1, Wo_p+1, Cin) bf16 -- 2x2 stride phases of the padded
    #   input for ONE image (Wo_p = Wo rounded up to a multiple of 8).
    # w_ref : (9, Cin, Cout) bf16, tap-major.
    # o_ref : (1, Ho, Wo, Cout) bf16.
    _, hp, wpp, cin = ph_ref.shape
    ho, wo_p = hp - 1, wpp - 1
    wo = o_ref.shape[2]
    cout = o_ref.shape[-1]
    acc = jnp.zeros((ho * wo_p, cout), jnp.float32)
    for dh in range(3):
        for dw in range(3):
            p = (dh % 2) * 2 + (dw % 2)
            x = ph_ref[p, dh // 2:dh // 2 + ho, dw // 2:dw // 2 + wo_p, :]
            acc = acc + jnp.dot(x.reshape(ho * wo_p, cin), w_ref[dh * 3 + dw],
                                preferred_element_type=jnp.float32)
    y = jnp.maximum(acc * scale_ref[...] + shift_ref[...], 0.0)
    y = y.reshape(ho, wo_p, cout)[:, :wo, :]
    o_ref[...] = y[None].astype(o_ref.dtype)


def _conv3x3_bn_relu_pool_fc_kernel(ph_ref, w_ref, scale_ref, shift_ref,
                                    fcw_ref, fcb_ref, o_ref):
    # conv4 + BN + ReLU + adaptive-avg-pool(1,1) + Linear, fused per image.
    # o_ref: (1, 1, NC) f32 (NC = num_classes padded to 128).
    _, hp, wpp, cin = ph_ref.shape
    ho, wo_p = hp - 1, wpp - 1
    cout = scale_ref.shape[-1]
    wo = wo_p if hasattr(o_ref, "_unused") else None  # placeholder (see below)
    acc = jnp.zeros((ho * wo_p, cout), jnp.float32)
    for dh in range(3):
        for dw in range(3):
            p = (dh % 2) * 2 + (dw % 2)
            x = ph_ref[p, dh // 2:dh // 2 + ho, dw // 2:dw // 2 + wo_p, :]
            acc = acc + jnp.dot(x.reshape(ho * wo_p, cin), w_ref[dh * 3 + dw],
                                preferred_element_type=jnp.float32)
    y = jnp.maximum(acc * scale_ref[...] + shift_ref[...], 0.0)
    # valid output width is carried via the shift_ref trailing scalar-free
    # trick is unnecessary: it is statically encoded in fcw_ref's extra attr?
    # -> simply recompute: the true Wo was stored in o_ref via closure below.
    wo = _conv3x3_bn_relu_pool_fc_kernel.valid_wo
    y = y.reshape(ho, wo_p, cout)[:, :wo, :]            # drop padded columns
    pooled = jnp.sum(jnp.sum(y, axis=0), axis=0) * (1.0 / (ho * wo))
    pooled = pooled.reshape(1, cout)
    logits = jnp.dot(pooled, fcw_ref[...],
                     preferred_element_type=jnp.float32) + fcb_ref[...]
    o_ref[...] = logits.reshape(1, 1, o_ref.shape[-1]).astype(o_ref.dtype)


def _maxpool3x3_kernel(ph_ref, o_ref):
    # 3x3/s2/p1 max pool: 9-way max over statically-sliced stride phases.
    _, hp, wpp, c = ph_ref.shape
    ho, wo_p = hp - 1, wpp - 1
    wo = o_ref.shape[2]
    m = None
    for dh in range(3):
        for dw in range(3):
            p = (dh % 2) * 2 + (dw % 2)
            x = ph_ref[p, dh // 2:dh // 2 + ho, dw // 2:dw // 2 + wo_p, :]
            m = x if m is None else jnp.maximum(m, x)
    o_ref[...] = m[:, :wo, :][None].astype(o_ref.dtype)


# ----------------------------------------------------------------------------
# JAX-side layout glue: stride-phase split for k=3, s=2, p=1 window ops
# ----------------------------------------------------------------------------
def _phase_split_3x3_s2_p1(x_nhwc, pad_value=0.0):
    """Return (N*4, Ho+1, Wo_p+1, C) where
    phases[n*4 + ph*2 + pw, i, j] == padded_input[n, 2*i + ph, 2*j + pw].
    Wo_p = round_up(Wo, 8) so in-kernel spatial reshapes are tile-preserving."""
    n, h, w, c = x_nhwc.shape
    ho = (h - 1) // 2 + 1
    wo = (w - 1) // 2 + 1
    wo_p = _round_up(wo, 8)
    ht, wt = 2 * (ho + 1), 2 * (wo_p + 1)
    xp = jnp.pad(x_nhwc, ((0, 0), (1, ht - h - 1), (1, wt - w - 1), (0, 0)),
                 constant_values=pad_value)
    xp = xp.reshape(n, ho + 1, 2, wo_p + 1, 2, c)
    ph = jnp.transpose(xp, (0, 2, 4, 1, 3, 5)).reshape(n * 4, ho + 1, wo_p + 1, c)
    return ph, ho, wo, wo_p


# ----------------------------------------------------------------------------
# Pallas wrappers
# ----------------------------------------------------------------------------
def conv1_bn_relu(x_nhwc, w_mat, scale, shift, *, kh=7, kw=7, stride=2, pad=3,
                  tm=512):
    """7x7/s2/p3 conv (Cin=3) as cheap im2col + tiled fused matmul/BN/ReLU."""
    n, h, w, c = x_nhwc.shape
    k = w_mat.shape[0]                      # K padded to 256
    cout = w_mat.shape[1]
    xp = jnp.pad(x_nhwc, ((0, 0), (pad, pad), (pad, pad), (0, 0)))
    ho = (h + 2 * pad - kh) // stride + 1
    wo = (w + 2 * pad - kw) // stride + 1
    cols = [xp[:, dh:dh + stride * ho:stride, dw:dw + stride * wo:stride, :]
            for dh in range(kh) for dw in range(kw)]
    patches = jnp.concatenate(cols, axis=-1)            # (N, Ho, Wo, kh*kw*C)
    patches = jnp.pad(patches, ((0, 0),) * 3 + ((0, k - kh * kw * c),))
    m = n * ho * wo
    p2d = patches.reshape(m, k).astype(jnp.bfloat16)

    tile_m = tm if m >= tm else _round_up(m, 8)
    mp = _round_up(m, tile_m)
    if mp != m:
        p2d = jnp.pad(p2d, ((0, mp - m), (0, 0)))

    y = pl.pallas_call(
        _matmul_bn_relu_kernel,
        out_shape=jax.ShapeDtypeStruct((mp, cout), jnp.bfloat16),
        grid_spec=pl.GridSpec(
            grid=(mp // tile_m,),
            in_specs=[
                pl.BlockSpec((tile_m, k), lambda i: (i, 0)),
                pl.BlockSpec((k, cout), lambda i: (0, 0)),
                pl.BlockSpec((1, cout), lambda i: (0, 0)),
                pl.BlockSpec((1, cout), lambda i: (0, 0)),
            ],
            out_specs=pl.BlockSpec((tile_m, cout), lambda i: (i, 0)),
        ),
        compiler_params=pltpu.CompilerParams(
            dimension_semantics=("parallel",),
            vmem_limit_bytes=_VMEM_LIMIT),
    )(p2d, w_mat, scale.reshape(1, cout), shift.reshape(1, cout))
    return y[:m].reshape(n, ho, wo, cout)


def maxpool3x3_s2_p1(x_nhwc):
    # Post-ReLU activations are >= 0, so 0-padding is equivalent to -inf-padding.
    ph, ho, wo, wo_p = _phase_split_3x3_s2_p1(x_nhwc, pad_value=0.0)
    n = x_nhwc.shape[0]
    c = x_nhwc.shape[-1]
    return pl.pallas_call(
        _maxpool3x3_kernel,
        out_shape=jax.ShapeDtypeStruct((n, ho, wo, c), x_nhwc.dtype),
        grid_spec=pl.GridSpec(
            grid=(n,),
            in_specs=[pl.BlockSpec((4, ho + 1, wo_p + 1, c),
                                   lambda i: (i, 0, 0, 0))],
            out_specs=pl.BlockSpec((1, ho, wo, c), lambda i: (i, 0, 0, 0)),
        ),
        compiler_params=pltpu.CompilerParams(
            dimension_semantics=("parallel",),
            vmem_limit_bytes=_VMEM_LIMIT),
    )(ph)


def conv3x3_s2_bn_relu(x_nhwc, w_taps, scale, shift):
    ph, ho, wo, wo_p = _phase_split_3x3_s2_p1(x_nhwc, pad_value=0.0)
    n = x_nhwc.shape[0]
    cin = x_nhwc.shape[-1]
    cout = w_taps.shape[-1]
    return pl.pallas_call(
        _conv3x3_bn_relu_kernel,
        out_shape=jax.ShapeDtypeStruct((n, ho, wo, cout), jnp.bfloat16),
        grid_spec=pl.GridSpec(
            grid=(n,),
            in_specs=[
                pl.BlockSpec((4, ho + 1, wo_p + 1, cin), lambda i: (i, 0, 0, 0)),
                pl.BlockSpec((9, cin, cout), lambda i: (0, 0, 0)),
                pl.BlockSpec((1, cout), lambda i: (0, 0)),
                pl.BlockSpec((1, cout), lambda i: (0, 0)),
            ],
            out_specs=pl.BlockSpec((1, ho, wo, cout), lambda i: (i, 0, 0, 0)),
        ),
        compiler_params=pltpu.CompilerParams(
            dimension_semantics=("parallel",),
            vmem_limit_bytes=_VMEM_LIMIT),
    )(ph, w_taps, scale.reshape(1, cout), shift.reshape(1, cout))


def conv3x3_s2_bn_relu_pool_fc(x_nhwc, w_taps, scale, shift, fc_w, fc_b):
    ph, ho, wo, wo_p = _phase_split_3x3_s2_p1(x_nhwc, pad_value=0.0)
    n = x_nhwc.shape[0]
    cin = x_nhwc.shape[-1]
    cout = w_taps.shape[-1]
    nc = fc_w.shape[-1]                       # padded num_classes (mult of 128)
    # The kernel needs the true (unpadded) output width for correct pooling.
    _conv3x3_bn_relu_pool_fc_kernel.valid_wo = wo
    out = pl.pallas_call(
        _conv3x3_bn_relu_pool_fc_kernel,
        out_shape=jax.ShapeDtypeStruct((n, 1, nc), jnp.float32),
        grid_spec=pl.GridSpec(
            grid=(n,),
            in_specs=[
                pl.BlockSpec((4, ho + 1, wo_p + 1, cin), lambda i: (i, 0, 0, 0)),
                pl.BlockSpec((9, cin, cout), lambda i: (0, 0, 0)),
                pl.BlockSpec((1, cout), lambda i: (0, 0)),
                pl.BlockSpec((1, cout), lambda i: (0, 0)),
                pl.BlockSpec((cout, nc), lambda i: (0, 0)),
                pl.BlockSpec((1, nc), lambda i: (0, 0)),
            ],
            out_specs=pl.BlockSpec((1, 1, nc), lambda i: (i, 0, 0)),
        ),
        compiler_params=pltpu.CompilerParams(
            dimension_semantics=("parallel",),
            vmem_limit_bytes=_VMEM_LIMIT),
    )(ph, w_taps, scale.reshape(1, cout), shift.reshape(1, cout),
      fc_w, fc_b.reshape(1, nc))
    return out[:, 0, :]                        # (N, nc_padded)


# ----------------------------------------------------------------------------
# Parameters (deterministic; shapes match CNNModel.__init__; BN in eval mode)
# ----------------------------------------------------------------------------
def _conv_taps(key, kh, kw, cin, cout):
    fan_in = kh * kw * cin
    w = jax.random.normal(key, (kh, kw, cin, cout), dtype=jnp.float32)
    return (w / jnp.sqrt(float(fan_in))).reshape(kh * kw, cin, cout)


def _bn_fold(cout, eps=1e-5):
    gamma = jnp.ones((cout,), jnp.float32)
    beta = jnp.zeros((cout,), jnp.float32)
    mean = jnp.zeros((cout,), jnp.float32)
    var = jnp.ones((cout,), jnp.float32)
    scale = gamma / jnp.sqrt(var + eps)
    shift = beta - mean * scale
    return scale, shift


def init_params(num_classes=10, seed=0):
    keys = jax.random.split(jax.random.PRNGKey(seed), 6)
    k1 = 256                                            # 147 zero-padded to 256
    w1 = _conv_taps(keys[0], 7, 7, 3, 64).reshape(147, 64)
    w1 = jnp.pad(w1, ((0, k1 - 147), (0, 0)))
    params = {
        "conv1_w": w1.astype(jnp.bfloat16),                            # (256, 64)
        "conv2_w": _conv_taps(keys[1], 3, 3, 64, 128).astype(jnp.bfloat16),
        "conv3_w": _conv_taps(keys[2], 3, 3, 128, 256).astype(jnp.bfloat16),
        "conv4_w": _conv_taps(keys[3], 3, 3, 256, 512).astype(jnp.bfloat16),
        "fc_w": jax.random.normal(keys[4], (512, num_classes), jnp.float32)
                / jnp.sqrt(512.0),
        "fc_b": jax.random.normal(keys[5], (num_classes,), jnp.float32) * 0.01,
    }
    for i, c in zip((1, 2, 3, 4), (64, 128, 256, 512)):
        s, sh = _bn_fold(c)
        params[f"bn{i}_scale"] = s
        params[f"bn{i}_shift"] = sh
    return params


# ----------------------------------------------------------------------------
# Full forward pass (matches CNNModel.forward, BatchNorm in inference mode)
# ----------------------------------------------------------------------------
@jax.jit
def cnn_forward(x_nchw, params):
    x = jnp.transpose(x_nchw, (0, 2, 3, 1)).astype(jnp.bfloat16)  # NCHW -> NHWC
    num_classes = params["fc_w"].shape[1]
    nc_pad = _round_up(num_classes, 128)        # full-lane stores for the logits
    fc_w = jnp.pad(params["fc_w"], ((0, 0), (0, nc_pad - num_classes)))
    fc_b = jnp.pad(params["fc_b"], ((0, nc_pad - num_classes),))

    # Block 1: conv1(7x7,s2,p3) + bn1 + relu + maxpool(3x3,s2,p1)
    x = conv1_bn_relu(x, params["conv1_w"],
                      params["bn1_scale"], params["bn1_shift"])
    x = maxpool3x3_s2_p1(x)
    # Blocks 2-3: conv(3x3,s2,p1) + bn + relu
    x = conv3x3_s2_bn_relu(x, params["conv2_w"],
                           params["bn2_scale"], params["bn2_shift"])
    x = conv3x3_s2_bn_relu(x, params["conv3_w"],
                           params["bn3_scale"], params["bn3_shift"])
    # Block 4 + AdaptiveAvgPool2d((1,1)) + Linear, fused in one Pallas kernel
    logits = conv3x3_s2_bn_relu_pool_fc(x, params["conv4_w"],
                                        params["bn4_scale"], params["bn4_shift"],
                                        fc_w, fc_b)
    return logits[:, :num_classes]              # (N, num_classes) f32


if __name__ == "__main__":
    key = jax.random.PRNGKey(0)
    x = jax.random.normal(key, (2, 3, 32, 32), dtype=jnp.float32)

    params = init_params(num_classes=10, seed=0)
    out = cnn_forward(x, params)
    out = jax.block_until_ready(out)

    assert out.shape == (2, 10), out.shape
    assert out.dtype == jnp.float32
    assert bool(jnp.all(jnp.isfinite(out)))
    print("KERNEL_OK")
</pallas_src>

<mosaic_0001>
module attributes {stable_mosaic.version = 11 : i64} {
  func.func @_matmul_bn_relu_kernel(%arg0: i32, %arg1: memref<512x256xbf16, #tpu.memory_space<vmem>>, %arg2: memref<256x64xbf16, #tpu.memory_space<vmem>>, %arg3: memref<1x64xf32, #tpu.memory_space<vmem>>, %arg4: memref<1x64xf32, #tpu.memory_space<vmem>>, %arg5: memref<512x64xbf16, #tpu.memory_space<vmem>>) attributes {dimension_semantics = [#tpu.dimension_semantics<parallel>], iteration_bounds = array<i64: 1>, scalar_prefetch = 0 : i64, scratch_operands = 0 : i64, tpu.core_type = #tpu.core_type<tc>, window_params = [{transform_indices = @transform_0, window_bounds = array<i64: 512, 256>}, {pipeline_mode = #tpu.pipeline_mode<synchronous>, transform_indices = @transform_1, window_bounds = array<i64: 256, 64>}, {pipeline_mode = #tpu.pipeline_mode<synchronous>, transform_indices = @transform_2, window_bounds = array<i64: 1, 64>}, {pipeline_mode = #tpu.pipeline_mode<synchronous>, transform_indices = @transform_3, window_bounds = array<i64: 1, 64>}, {transform_indices = @transform_4, window_bounds = array<i64: 512, 64>}]} {
    %c0 = arith.constant 0 : index
    %c0_0 = arith.constant 0 : index
    %0 = vector.load %arg1[%c0, %c0_0] : memref<512x256xbf16, #tpu.memory_space<vmem>>, vector<512x256xbf16>
    %c0_1 = arith.constant 0 : index
    %c0_2 = arith.constant 0 : index
    %1 = vector.load %arg2[%c0_1, %c0_2] : memref<256x64xbf16, #tpu.memory_space<vmem>>, vector<256x64xbf16>
    %cst = arith.constant dense<0.000000e+00> : vector<512x64xf32>
    %2 = tpu.matmul %0, %1, %cst {dimension_numbers = #tpu.dot_dimension_numbers<[1], [0], [0], [1], [0, 0, 1, 1], [], []>} : vector<512x256xbf16>, vector<256x64xbf16>, vector<512x64xf32> -> vector<512x64xf32>
    %c0_3 = arith.constant 0 : index
    %c0_4 = arith.constant 0 : index
    %3 = vector.load %arg3[%c0_3, %c0_4] : memref<1x64xf32, #tpu.memory_space<vmem>>, vector<1x64xf32>
    %4 = vector.broadcast %3 : vector<1x64xf32> to vector<512x64xf32>
    %5 = arith.mulf %2, %4 : vector<512x64xf32>
    %c0_5 = arith.constant 0 : index
    %c0_6 = arith.constant 0 : index
    %6 = vector.load %arg4[%c0_5, %c0_6] : memref<1x64xf32, #tpu.memory_space<vmem>>, vector<1x64xf32>
    %7 = vector.broadcast %6 : vector<1x64xf32> to vector<512x64xf32>
    %8 = arith.addf %5, %7 : vector<512x64xf32>
    %cst_7 = arith.constant 0.000000e+00 : f32
    %9 = vector.broadcast %cst_7 : f32 to vector<512x64xf32>
    %10 = arith.maximumf %8, %9 : vector<512x64xf32>
    %11 = arith.truncf %10 : vector<512x64xf32> to vector<512x64xbf16>
    %c0_8 = arith.constant 0 : index
    %c0_9 = arith.constant 0 : index
    %12 = vector.load %arg5[%c0_8, %c0_9] : memref<512x64xbf16, #tpu.memory_space<vmem>>, vector<512x64xbf16>
    tpu.vector_store %arg5[%c0_8, %c0_9], %11 {strides = array<i32>} : memref<512x64xbf16, #tpu.memory_space<vmem>>, vector<512x64xbf16>,
    return
  }
  func.func @transform_0(%arg0: i32) -> (i32, i32) {
    %c0_i32 = arith.constant 0 : i32
    %c0_i32_0 = arith.constant 0 : i32
    return %arg0, %c0_i32 : i32, i32
  }
  func.func @transform_1(%arg0: i32) -> (i32, i32) {
    %c0_i32 = arith.constant 0 : i32
    %c0_i32_0 = arith.constant 0 : i32
    %c0_i32_1 = arith.constant 0 : i32
    return %c0_i32, %c0_i32_0 : i32, i32
  }
  func.func @transform_2(%arg0: i32) -> (i32, i32) {
    %c0_i32 = arith.constant 0 : i32
    %c0_i32_0 = arith.constant 0 : i32
    %c0_i32_1 = arith.constant 0 : i32
    return %c0_i32, %c0_i32_0 : i32, i32
  }
  func.func @transform_3(%arg0: i32) -> (i32, i32) {
    %c0_i32 = arith.constant 0 : i32
    %c0_i32_0 = arith.constant 0 : i32
    %c0_i32_1 = arith.constant 0 : i32
    return %c0_i32, %c0_i32_0 : i32, i32
  }
  func.func @transform_4(%arg0: i32) -> (i32, i32) {
    %c0_i32 = arith.constant 0 : i32
    %c0_i32_0 = arith.constant 0 : i32
    return %arg0, %c0_i32 : i32, i32
  }
}

module attributes {stable_mosaic.version = 11 : i64} {
  func.func @_maxpool3x3_kernel(%arg0: i32, %arg1: memref<4x9x9x64xbf16, #tpu.memory_space<vmem>>, %arg2: memref<1x8x8x64xbf16, #tpu.memory_space<vmem>>) attributes {dimension_semantics = [#tpu.dimension_semantics<parallel>], iteration_bounds = array<i64: 2>, scalar_prefetch = 0 : i64, scratch_operands = 0 : i64, tpu.core_type = #tpu.core_type<tc>, window_params = [{transform_indices = @transform_0, window_bounds = array<i64: 4, 9, 9, 64>}, {transform_indices = @transform_1, window_bounds = array<i64: 1, 8, 8, 64>}]} {
    %c0 = arith.constant 0 : index
    %c0_0 = arith.constant 0 : index
    %c0_1 = arith.constant 0 : index
    %c0_2 = arith.constant 0 : index
    %0 = vector.load %arg1[%c0, %c0_0, %c0_1, %c0_2] : memref<4x9x9x64xbf16, #tpu.memory_space<vmem>>, vector<1x8x8x64xbf16>
    %1 = vector.shape_cast %0 : vector<1x8x8x64xbf16> to vector<8x8x64xbf16>
    %c1 = arith.constant 1 : index
    %c0_3 = arith.constant 0 : index
    %c0_4 = arith.constant 0 : index
    %c0_5 = arith.constant 0 : index
    %2 = vector.load %arg1[%c1, %c0_3, %c0_4, %c0_5] : memref<4x9x9x64xbf16, #tpu.memory_space<vmem>>, vector<1x8x8x64xbf16>
    %3 = vector.shape_cast %2 : vector<1x8x8x64xbf16> to vector<8x8x64xbf16>
    %4 = arith.maximumf %1, %3 : vector<8x8x64xbf16>
    %c0_6 = arith.constant 0 : index
    %c0_7 = arith.constant 0 : index
    %c1_8 = arith.constant 1 : index
    %c0_9 = arith.constant 0 : index
    %5 = vector.load %arg1[%c0_6, %c0_7, %c1_8, %c0_9] : memref<4x9x9x64xbf16, #tpu.memory_space<vmem>>, vector<1x8x8x64xbf16>
    %6 = vector.shape_cast %5 : vector<1x8x8x64xbf16> to vector<8x8x64xbf16>
    %7 = arith.maximumf %4, %6 : vector<8x8x64xbf16>
    %c2 = arith.constant 2 : index
    %c0_10 = arith.constant 0 : index
    %c0_11 = arith.constant 0 : index
    %c0_12 = arith.constant 0 : index
    %8 = vector.load %arg1[%c2, %c0_10, %c0_11, %c0_12] : memref<4x9x9x64xbf16, #tpu.memory_space<vmem>>, vector<1x8x8x64xbf16>
    %9 = vector.shape_cast %8 : vector<1x8x8x64xbf16> to vector<8x8x64xbf16>
    %10 = arith.maximumf %7, %9 : vector<8x8x64xbf16>
    %c3 = arith.constant 3 : index
    %c0_13 = arith.constant 0 : index
    %c0_14 = arith.constant 0 : index
    %c0_15 = arith.constant 0 : index
    %11 = vector.load %arg1[%c3, %c0_13, %c0_14, %c0_15] : memref<4x9x9x64xbf16, #tpu.memory_space<vmem>>, vector<1x8x8x64xbf16>
    %12 = vector.shape_cast %11 : vector<1x8x8x64xbf16> to vector<8x8x64xbf16>
    %13 = arith.maximumf %10, %12 : vector<8x8x64xbf16>
    %c2_16 = arith.constant 2 : index
    %c0_17 = arith.constant 0 : index
    %c1_18 = arith.constant 1 : index
    %c0_19 = arith.constant 0 : index
    %14 = vector.load %arg1[%c2_16, %c0_17, %c1_18, %c0_19] : memref<4x9x9x64xbf16, #tpu.memory_space<vmem>>, vector<1x8x8x64xbf16>
    %15 = vector.shape_cast %14 : vector<1x8x8x64xbf16> to vector<8x8x64xbf16>
    %16 = arith.maximumf %13, %15 : vector<8x8x64xbf16>
    %c0_20 = arith.constant 0 : index
    %c1_21 = arith.constant 1 : index
    %c0_22 = arith.constant 0 : index
    %c0_23 = arith.constant 0 : index
    %17 = vector.load %arg1[%c0_20, %c1_21, %c0_22, %c0_23] : memref<4x9x9x64xbf16, #tpu.memory_space<vmem>>, vector<1x8x8x64xbf16>
    %18 = vector.shape_cast %17 : vector<1x8x8x64xbf16> to vector<8x8x64xbf16>
    %19 = arith.maximumf %16, %18 : vector<8x8x64xbf16>
    %c1_24 = arith.constant 1 : index
    %c1_25 = arith.constant 1 : index
    %c0_26 = arith.constant 0 : index
    %c0_27 = arith.constant 0 : index
    %20 = vector.load %arg1[%c1_24, %c1_25, %c0_26, %c0_27] : memref<4x9x9x64xbf16, #tpu.memory_space<vmem>>, vector<1x8x8x64xbf16>
    %21 = vector.shape_cast %20 : vector<1x8x8x64xbf16> to vector<8x8x64xbf16>
    %22 = arith.maximumf %19, %21 : vector<8x8x64xbf16>
    %c0_28 = arith.constant 0 : index
    %c1_29 = arith.constant 1 : index
    %c1_30 = arith.constant 1 : index
    %c0_31 = arith.constant 0 : index
    %23 = vector.load %arg1[%c0_28, %c1_29, %c1_30, %c0_31] : memref<4x9x9x64xbf16, #tpu.memory_space<vmem>>, vector<1x8x8x64xbf16>
    %24 = vector.shape_cast %23 : vector<1x8x8x64xbf16> to vector<8x8x64xbf16>
    %25 = arith.maximumf %22, %24 : vector<8x8x64xbf16>
    %26 = vector.shape_cast %25 : vector<8x8x64xbf16> to vector<1x8x8x64xbf16>
    %c0_32 = arith.constant 0 : index
    %c0_33 = arith.constant 0 : index
    %c0_34 = arith.constant 0 : index
    %c0_35 = arith.constant 0 : index
    %27 = vector.load %arg2[%c0_32, %c0_33, %c0_34, %c0_35] : memref<1x8x8x64xbf16, #tpu.memory_space<vmem>>, vector<1x8x8x64xbf16>
    tpu.vector_store %arg2[%c0_32, %c0_33, %c0_34, %c0_35], %26 {strides = array<i32>} : memref<1x8x8x64xbf16, #tpu.memory_space<vmem>>, vector<1x8x8x64xbf16>,
    return
  }
  func.func @transform_0(%arg0: i32) -> (i32, i32, i32, i32) {
    %c0_i32 = arith.constant 0 : i32
    %c0_i32_0 = arith.constant 0 : i32
    %c0_i32_1 = arith.constant 0 : i32
    %c0_i32_2 = arith.constant 0 : i32
    return %arg0, %c0_i32, %c0_i32_0, %c0_i32_1 : i32, i32, i32, i32
  }
  func.func @transform_1(%arg0: i32) -> (i32, i32, i32, i32) {
    %c0_i32 = arith.constant 0 : i32
    %c0_i32_0 = arith.constant 0 : i32
    %c0_i32_1 = arith.constant 0 : i32
    %c0_i32_2 = arith.constant 0 : i32
    return %arg0, %c0_i32, %c0_i32_0, %c0_i32_1 : i32, i32, i32, i32
  }
}

module attributes {stable_mosaic.version = 11 : i64} {
  func.func @_conv3x3_bn_relu_kernel(%arg0: i32, %arg1: memref<4x5x9x64xbf16, #tpu.memory_space<vmem>>, %arg2: memref<9x64x128xbf16, #tpu.memory_space<vmem>>, %arg3: memref<1x128xf32, #tpu.memory_space<vmem>>, %arg4: memref<1x128xf32, #tpu.memory_space<vmem>>, %arg5: memref<1x4x4x128xbf16, #tpu.memory_space<vmem>>) attributes {dimension_semantics = [#tpu.dimension_semantics<parallel>], iteration_bounds = array<i64: 2>, scalar_prefetch = 0 : i64, scratch_operands = 0 : i64, tpu.core_type = #tpu.core_type<tc>, window_params = [{transform_indices = @transform_0, window_bounds = array<i64: 4, 5, 9, 64>}, {pipeline_mode = #tpu.pipeline_mode<synchronous>, transform_indices = @transform_1, window_bounds = array<i64: 9, 64, 128>}, {pipeline_mode = #tpu.pipeline_mode<synchronous>, transform_indices = @transform_2, window_bounds = array<i64: 1, 128>}, {pipeline_mode = #tpu.pipeline_mode<synchronous>, transform_indices = @transform_3, window_bounds = array<i64: 1, 128>}, {transform_indices = @transform_4, window_bounds = array<i64: 1, 4, 4, 128>}]} {
    %cst = arith.constant 0.000000e+00 : f32
    %0 = vector.broadcast %cst : f32 to vector<32x128xf32>
    %c0 = arith.constant 0 : index
    %c0_0 = arith.constant 0 : index
    %c0_1 = arith.constant 0 : index
    %c0_2 = arith.constant 0 : index
    %1 = vector.load %arg1[%c0, %c0_0, %c0_1, %c0_2] : memref<4x5x9x64xbf16, #tpu.memory_space<vmem>>, vector<1x4x8x64xbf16>
    %2 = vector.shape_cast %1 : vector<1x4x8x64xbf16> to vector<4x8x64xbf16>
    %3 = vector.shape_cast %2 : vector<4x8x64xbf16> to vector<32x64xbf16>
    %c0_3 = arith.constant 0 : index
    %c0_4 = arith.constant 0 : index
    %c0_5 = arith.constant 0 : index
    %4 = vector.load %arg2[%c0_3, %c0_4, %c0_5] : memref<9x64x128xbf16, #tpu.memory_space<vmem>>, vector<1x64x128xbf16>
    %5 = vector.shape_cast %4 : vector<1x64x128xbf16> to vector<64x128xbf16>
    %cst_6 = arith.constant dense<0.000000e+00> : vector<32x128xf32>
    %6 = tpu.matmul %3, %5, %cst_6 {dimension_numbers = #tpu.dot_dimension_numbers<[1], [0], [0], [1], [0, 0, 1, 1], [], []>} : vector<32x64xbf16>, vector<64x128xbf16>, vector<32x128xf32> -> vector<32x128xf32>
    %7 = arith.addf %0, %6 : vector<32x128xf32>
    %c1 = arith.constant 1 : index
    %c0_7 = arith.constant 0 : index
    %c0_8 = arith.constant 0 : index
    %c0_9 = arith.constant 0 : index
    %8 = vector.load %arg1[%c1, %c0_7, %c0_8, %c0_9] : memref<4x5x9x64xbf16, #tpu.memory_space<vmem>>, vector<1x4x8x64xbf16>
    %9 = vector.shape_cast %8 : vector<1x4x8x64xbf16> to vector<4x8x64xbf16>
    %10 = vector.shape_cast %9 : vector<4x8x64xbf16> to vector<32x64xbf16>
    %c1_10 = arith.constant 1 : index
    %c0_11 = arith.constant 0 : index
    %c0_12 = arith.constant 0 : index
    %11 = vector.load %arg2[%c1_10, %c0_11, %c0_12] : memref<9x64x128xbf16, #tpu.memory_space<vmem>>, vector<1x64x128xbf16>
    %12 = vector.shape_cast %11 : vector<1x64x128xbf16> to vector<64x128xbf16>
    %cst_13 = arith.constant dense<0.000000e+00> : vector<32x128xf32>
    %13 = tpu.matmul %10, %12, %cst_13 {dimension_numbers = #tpu.dot_dimension_numbers<[1], [0], [0], [1], [0, 0, 1, 1], [], []>} : vector<32x64xbf16>, vector<64x128xbf16>, vector<32x128xf32> -> vector<32x128xf32>
    %14 = arith.addf %7, %13 : vector<32x128xf32>
    %c0_14 = arith.constant 0 : index
    %c0_15 = arith.constant 0 : index
    %c1_16 = arith.constant 1 : index
    %c0_17 = arith.constant 0 : index
    %15 = vector.load %arg1[%c0_14, %c0_15, %c1_16, %c0_17] : memref<4x5x9x64xbf16, #tpu.memory_space<vmem>>, vector<1x4x8x64xbf16>
    %16 = vector.shape_cast %15 : vector<1x4x8x64xbf16> to vector<4x8x64xbf16>
    %17 = vector.shape_cast %16 : vector<4x8x64xbf16> to vector<32x64xbf16>
    %c2 = arith.constant 2 : index
    %c0_18 = arith.constant 0 : index
    %c0_19 = arith.constant 0 : index
    %18 = vector.load %arg2[%c2, %c0_18, %c0_19] : memref<9x64x128xbf16, #tpu.memory_space<vmem>>, vector<1x64x128xbf16>
    %19 = vector.shape_cast %18 : vector<1x64x128xbf16> to vector<64x128xbf16>
    %cst_20 = arith.constant dense<0.000000e+00> : vector<32x128xf32>
    %20 = tpu.matmul %17, %19, %cst_20 {dimension_numbers = #tpu.dot_dimension_numbers<[1], [0], [0], [1], [0, 0, 1, 1], [], []>} : vector<32x64xbf16>, vector<64x128xbf16>, vector<32x128xf32> -> vector<32x128xf32>
    %21 = arith.addf %14, %20 : vector<32x128xf32>
    %c2_21 = arith.constant 2 : index
    %c0_22 = arith.constant 0 : index
    %c0_23 = arith.constant 0 : index
    %c0_24 = arith.constant 0 : index
    %22 = vector.load %arg1[%c2_21, %c0_22, %c0_23, %c0_24] : memref<4x5x9x64xbf16, #tpu.memory_space<vmem>>, vector<1x4x8x64xbf16>
    %23 = vector.shape_cast %22 : vector<1x4x8x64xbf16> to vector<4x8x64xbf16>
    %24 = vector.shape_cast %23 : vector<4x8x64xbf16> to vector<32x64xbf16>
    %c3 = arith.constant 3 : index
    %c0_25 = arith.constant 0 : index
    %c0_26 = arith.constant 0 : index
    %25 = vector.load %arg2[%c3, %c0_25, %c0_26] : memref<9x64x128xbf16, #tpu.memory_space<vmem>>, vector<1x64x128xbf16>
    %26 = vector.shape_cast %25 : vector<1x64x128xbf16> to vector<64x128xbf16>
    %cst_27 = arith.constant dense<0.000000e+00> : vector<32x128xf32>
    %27 = tpu.matmul %24, %26, %cst_27 {dimension_numbers = #tpu.dot_dimension_numbers<[1], [0], [0], [1], [0, 0, 1, 1], [], []>} : vector<32x64xbf16>, vector<64x128xbf16>, vector<32x128xf32> -> vector<32x128xf32>
    %28 = arith.addf %21, %27 : vector<32x128xf32>
    %c3_28 = arith.constant 3 : index
    %c0_29 = arith.constant 0 : index
    %c0_30 = arith.constant 0 : index
    %c0_31 = arith.constant 0 : index
    %29 = vector.load %arg1[%c3_28, %c0_29, %c0_30, %c0_31] : memref<4x5x9x64xbf16, #tpu.memory_space<vmem>>, vector<1x4x8x64xbf16>
    %30 = vector.shape_cast %29 : vector<1x4x8x64xbf16> to vector<4x8x64xbf16>
    %31 = vector.shape_cast %30 : vector<4x8x64xbf16> to vector<32x64xbf16>
    %c4 = arith.constant 4 : index
    %c0_32 = arith.constant 0 : index
    %c0_33 = arith.constant 0 : index
    %32 = vector.load %arg2[%c4, %c0_32, %c0_33] : memref<9x64x128xbf16, #tpu.memory_space<vmem>>, vector<1x64x128xbf16>
    %33 = vector.shape_cast %32 : vector<1x64x128xbf16> to vector<64x128xbf16>
    %cst_34 = arith.constant dense<0.000000e+00> : vector<32x128xf32>
    %34 = tpu.matmul %31, %33, %cst_34 {dimension_numbers = #tpu.dot_dimension_numbers<[1], [0], [0], [1], [0, 0, 1, 1], [], []>} : vector<32x64xbf16>, vector<64x128xbf16>, vector<32x128xf32> -> vector<32x128xf32>
    %35 = arith.addf %28, %34 : vector<32x128xf32>
    %c2_35 = arith.constant 2 : index
    %c0_36 = arith.constant 0 : index
    %c1_37 = arith.constant 1 : index
    %c0_38 = arith.constant 0 : index
    %36 = vector.load %arg1[%c2_35, %c0_36, %c1_37, %c0_38] : memref<4x5x9x64xbf16, #tpu.memory_space<vmem>>, vector<1x4x8x64xbf16>
    %37 = vector.shape_cast %36 : vector<1x4x8x64xbf16> to vector<4x8x64xbf16>
    %38 = vector.shape_cast %37 : vector<4x8x64xbf16> to vector<32x64xbf16>
    %c5 = arith.constant 5 : index
    %c0_39 = arith.constant 0 : index
    %c0_40 = arith.constant 0 : index
    %39 = vector.load %arg2[%c5, %c0_39, %c0_40] : memref<9x64x128xbf16, #tpu.memory_space<vmem>>, vector<1x64x128xbf16>
    %40 = vector.shape_cast %39 : vector<1x64x128xbf16> to vector<64x128xbf16>
    %cst_41 = arith.constant dense<0.000000e+00> : vector<32x128xf32>
    %41 = tpu.matmul %38, %40, %cst_41 {dimension_numbers = #tpu.dot_dimension_numbers<[1], [0], [0], [1], [0, 0, 1, 1], [], []>} : vector<32x64xbf16>, vector<64x128xbf16>, vector<32x128xf32> -> vector<32x128xf32>
    %42 = arith.addf %35, %41 : vector<32x128xf32>
    %c0_42 = arith.constant 0 : index
    %c1_43 = arith.constant 1 : index
    %c0_44 = arith.constant 0 : index
    %c0_45 = arith.constant 0 : index
    %43 = vector.load %arg1[%c0_42, %c1_43, %c0_44, %c0_45] : memref<4x5x9x64xbf16, #tpu.memory_space<vmem>>, vector<1x4x8x64xbf16>
    %44 = vector.shape_cast %43 : vector<1x4x8x64xbf16> to vector<4x8x64xbf16>
    %45 = vector.shape_cast %44 : vector<4x8x64xbf16> to vector<32x64xbf16>
    %c6 = arith.constant 6 : index
    %c0_46 = arith.constant 0 : index
    %c0_47 = arith.constant 0 : index
    %46 = vector.load %arg2[%c6, %c0_46, %c0_47] : memref<9x64x128xbf16, #tpu.memory_space<vmem>>, vector<1x64x128xbf16>
    %47 = vector.shape_cast %46 : vector<1x64x128xbf16> to vector<64x128xbf16>
    %cst_48 = arith.constant dense<0.000000e+00> : vector<32x128xf32>
    %48 = tpu.matmul %45, %47, %cst_48 {dimension_numbers = #tpu.dot_dimension_numbers<[1], [0], [0], [1], [0, 0, 1, 1], [], []>} : vector<32x64xbf16>, vector<64x128xbf16>, vector<32x128xf32> -> vector<32x128xf32>
    %49 = arith.addf %42, %48 : vector<32x128xf32>
    %c1_49 = arith.constant 1 : index
    %c1_50 = arith.constant 1 : index
    %c0_51 = arith.constant 0 : index
    %c0_52 = arith.constant 0 : index
    %50 = vector.load %arg1[%c1_49, %c1_50, %c0_51, %c0_52] : memref<4x5x9x64xbf16, #tpu.memory_space<vmem>>, vector<1x4x8x64xbf16>
    %51 = vector.shape_cast %50 : vector<1x4x8x64xbf16> to vector<4x8x64xbf16>
    %52 = vector.shape_cast %51 : vector<4x8x64xbf16> to vector<32x64xbf16>
    %c7 = arith.constant 7 : index
    %c0_53 = arith.constant 0 : index
    %c0_54 = arith.constant 0 : index
    %53 = vector.load %arg2[%c7, %c0_53, %c0_54] : memref<9x64x128xbf16, #tpu.memory_space<vmem>>, vector<1x64x128xbf16>
    %54 = vector.shape_cast %53 : vector<1x64x128xbf16> to vector<64x128xbf16>
    %cst_55 = arith.constant dense<0.000000e+00> : vector<32x128xf32>
    %55 = tpu.matmul %52, %54, %cst_55 {dimension_numbers = #tpu.dot_dimension_numbers<[1], [0], [0], [1], [0, 0, 1, 1], [], []>} : vector<32x64xbf16>, vector<64x128xbf16>, vector<32x128xf32> -> vector<32x128xf32>
    %56 = arith.addf %49, %55 : vector<32x128xf32>
    %c0_56 = arith.constant 0 : index
    %c1_57 = arith.constant 1 : index
    %c1_58 = arith.constant 1 : index
    %c0_59 = arith.constant 0 : index
    %57 = vector.load %arg1[%c0_56, %c1_57, %c1_58, %c0_59] : memref<4x5x9x64xbf16, #tpu.memory_space<vmem>>, vector<1x4x8x64xbf16>
    %58 = vector.shape_cast %57 : vector<1x4x8x64xbf16> to vector<4x8x64xbf16>
    %59 = vector.shape_cast %58 : vector<4x8x64xbf16> to vector<32x64xbf16>
    %c8 = arith.constant 8 : index
    %c0_60 = arith.constant 0 : index
    %c0_61 = arith.constant 0 : index
    %60 = vector.load %arg2[%c8, %c0_60, %c0_61] : memref<9x64x128xbf16, #tpu.memory_space<vmem>>, vector<1x64x128xbf16>
    %61 = vector.shape_cast %60 : vector<1x64x128xbf16> to vector<64x128xbf16>
    %cst_62 = arith.constant dense<0.000000e+00> : vector<32x128xf32>
    %62 = tpu.matmul %59, %61, %cst_62 {dimension_numbers = #tpu.dot_dimension_numbers<[1], [0], [0], [1], [0, 0, 1, 1], [], []>} : vector<32x64xbf16>, vector<64x128xbf16>, vector<32x128xf32> -> vector<32x128xf32>
    %63 = arith.addf %56, %62 : vector<32x128xf32>
    %c0_63 = arith.constant 0 : index
    %c0_64 = arith.constant 0 : index
    %64 = vector.load %arg3[%c0_63, %c0_64] : memref<1x128xf32, #tpu.memory_space<vmem>>, vector<1x128xf32>
    %65 = vector.broadcast %64 : vector<1x128xf32> to vector<32x128xf32>
    %66 = arith.mulf %63, %65 : vector<32x128xf32>
    %c0_65 = arith.constant 0 : index
    %c0_66 = arith.constant 0 : index
    %67 = vector.load %arg4[%c0_65, %c0_66] : memref<1x128xf32, #tpu.memory_space<vmem>>, vector<1x128xf32>
    %68 = vector.broadcast %67 : vector<1x128xf32> to vector<32x128xf32>
    %69 = arith.addf %66, %68 : vector<32x128xf32>
    %cst_67 = arith.constant 0.000000e+00 : f32
    %70 = vector.broadcast %cst_67 : f32 to vector<32x128xf32>
    %71 = arith.maximumf %69, %70 : vector<32x128xf32>
    %72 = vector.shape_cast %71 : vector<32x128xf32> to vector<4x8x128xf32>
    %73 = vector.extract_strided_slice %72 {offsets = [0, 0, 0], sizes = [4, 4, 128], strides = [1, 1, 1]} : vector<4x8x128xf32> to vector<4x4x128xf32>
    %74 = vector.shape_cast %73 : vector<4x4x128xf32> to vector<1x4x4x128xf32>
    %75 = arith.truncf %74 : vector<1x4x4x128xf32> to vector<1x4x4x128xbf16>
    %c0_68 = arith.constant 0 : index
    %c0_69 = arith.constant 0 : index
    %c0_70 = arith.constant 0 : index
    %c0_71 = arith.constant 0 : index
    %76 = vector.load %arg5[%c0_68, %c0_69, %c0_70, %c0_71] : memref<1x4x4x128xbf16, #tpu.memory_space<vmem>>, vector<1x4x4x128xbf16>
    tpu.vector_store %arg5[%c0_68, %c0_69, %c0_70, %c0_71], %75 {strides = array<i32>} : memref<1x4x4x128xbf16, #tpu.memory_space<vmem>>, vector<1x4x4x128xbf16>,
    return
  }
  func.func @transform_0(%arg0: i32) -> (i32, i32, i32, i32) {
    %c0_i32 = arith.constant 0 : i32
    %c0_i32_0 = arith.constant 0 : i32
    %c0_i32_1 = arith.constant 0 : i32
    %c0_i32_2 = arith.constant 0 : i32
    return %arg0, %c0_i32, %c0_i32_0, %c0_i32_1 : i32, i32, i32, i32
  }
  func.func @transform_1(%arg0: i32) -> (i32, i32, i32) {
    %c0_i32 = arith.constant 0 : i32
    %c0_i32_0 = arith.constant 0 : i32
    %c0_i32_1 = arith.constant 0 : i32
    %c0_i32_2 = arith.constant 0 : i32
    return %c0_i32, %c0_i32_0, %c0_i32_1 : i32, i32, i32
  }
  func.func @transform_2(%arg0: i32) -> (i32, i32) {
    %c0_i32 = arith.constant 0 : i32
    %c0_i32_0 = arith.constant 0 : i32
    %c0_i32_1 = arith.constant 0 : i32
    return %c0_i32, %c0_i32_0 : i32, i32
  }
  func.func @transform_3(%arg0: i32) -> (i32, i32) {
    %c0_i32 = arith.constant 0 : i32
    %c0_i32_0 = arith.constant 0 : i32
    %c0_i32_1 = arith.constant 0 : i32
    return %c0_i32, %c0_i32_0 : i32, i32
  }
  func.func @transform_4(%arg0: i32) -> (i32, i32, i32, i32) {
    %c0_i32 = arith.constant 0 : i32
    %c0_i32_0 = arith.constant 0 : i32
    %c0_i32_1 = arith.constant 0 : i32
    %c0_i32_2 = arith.constant 0 : i32
    return %arg0, %c0_i32, %c0_i32_0, %c0_i32_1 : i32, i32, i32, i32
  }
}

module attributes {stable_mosaic.version = 11 : i64} {
  func.func @_conv3x3_bn_relu_kernel(%arg0: i32, %arg1: memref<4x3x9x128xbf16, #tpu.memory_space<vmem>>, %arg2: memref<9x128x256xbf16, #tpu.memory_space<vmem>>, %arg3: memref<1x256xf32, #tpu.memory_space<vmem>>, %arg4: memref<1x256xf32, #tpu.memory_space<vmem>>, %arg5: memref<1x2x2x256xbf16, #tpu.memory_space<vmem>>) attributes {dimension_semantics = [#tpu.dimension_semantics<parallel>], iteration_bounds = array<i64: 2>, scalar_prefetch = 0 : i64, scratch_operands = 0 : i64, tpu.core_type = #tpu.core_type<tc>, window_params = [{transform_indices = @transform_0, window_bounds = array<i64: 4, 3, 9, 128>}, {pipeline_mode = #tpu.pipeline_mode<synchronous>, transform_indices = @transform_1, window_bounds = array<i64: 9, 128, 256>}, {pipeline_mode = #tpu.pipeline_mode<synchronous>, transform_indices = @transform_2, window_bounds = array<i64: 1, 256>}, {pipeline_mode = #tpu.pipeline_mode<synchronous>, transform_indices = @transform_3, window_bounds = array<i64: 1, 256>}, {transform_indices = @transform_4, window_bounds = array<i64: 1, 2, 2, 256>}]} {
    %cst = arith.constant 0.000000e+00 : f32
    %0 = vector.broadcast %cst : f32 to vector<16x256xf32>
    %c0 = arith.constant 0 : index
    %c0_0 = arith.constant 0 : index
    %c0_1 = arith.constant 0 : index
    %c0_2 = arith.constant 0 : index
    %1 = vector.load %arg1[%c0, %c0_0, %c0_1, %c0_2] : memref<4x3x9x128xbf16, #tpu.memory_space<vmem>>, vector<1x2x8x128xbf16>
    %2 = vector.shape_cast %1 : vector<1x2x8x128xbf16> to vector<2x8x128xbf16>
    %3 = vector.shape_cast %2 : vector<2x8x128xbf16> to vector<16x128xbf16>
    %c0_3 = arith.constant 0 : index
    %c0_4 = arith.constant 0 : index
    %c0_5 = arith.constant 0 : index
    %4 = vector.load %arg2[%c0_3, %c0_4, %c0_5] : memref<9x128x256xbf16, #tpu.memory_space<vmem>>, vector<1x128x256xbf16>
    %5 = vector.shape_cast %4 : vector<1x128x256xbf16> to vector<128x256xbf16>
    %cst_6 = arith.constant dense<0.000000e+00> : vector<16x256xf32>
    %6 = tpu.matmul %3, %5, %cst_6 {dimension_numbers = #tpu.dot_dimension_numbers<[1], [0], [0], [1], [0, 0, 1, 1], [], []>} : vector<16x128xbf16>, vector<128x256xbf16>, vector<16x256xf32> -> vector<16x256xf32>
    %7 = arith.addf %0, %6 : vector<16x256xf32>
    %c1 = arith.constant 1 : index
    %c0_7 = arith.constant 0 : index
    %c0_8 = arith.constant 0 : index
    %c0_9 = arith.constant 0 : index
    %8 = vector.load %arg1[%c1, %c0_7, %c0_8, %c0_9] : memref<4x3x9x128xbf16, #tpu.memory_space<vmem>>, vector<1x2x8x128xbf16>
    %9 = vector.shape_cast %8 : vector<1x2x8x128xbf16> to vector<2x8x128xbf16>
    %10 = vector.shape_cast %9 : vector<2x8x128xbf16> to vector<16x128xbf16>
    %c1_10 = arith.constant 1 : index
    %c0_11 = arith.constant 0 : index
    %c0_12 = arith.constant 0 : index
    %11 = vector.load %arg2[%c1_10, %c0_11, %c0_12] : memref<9x128x256xbf16, #tpu.memory_space<vmem>>, vector<1x128x256xbf16>
    %12 = vector.shape_cast %11 : vector<1x128x256xbf16> to vector<128x256xbf16>
    %cst_13 = arith.constant dense<0.000000e+00> : vector<16x256xf32>
    %13 = tpu.matmul %10, %12, %cst_13 {dimension_numbers = #tpu.dot_dimension_numbers<[1], [0], [0], [1], [0, 0, 1, 1], [], []>} : vector<16x128xbf16>, vector<128x256xbf16>, vector<16x256xf32> -> vector<16x256xf32>
    %14 = arith.addf %7, %13 : vector<16x256xf32>
    %c0_14 = arith.constant 0 : index
    %c0_15 = arith.constant 0 : index
    %c1_16 = arith.constant 1 : index
    %c0_17 = arith.constant 0 : index
    %15 = vector.load %arg1[%c0_14, %c0_15, %c1_16, %c0_17] : memref<4x3x9x128xbf16, #tpu.memory_space<vmem>>, vector<1x2x8x128xbf16>
    %16 = vector.shape_cast %15 : vector<1x2x8x128xbf16> to vector<2x8x128xbf16>
    %17 = vector.shape_cast %16 : vector<2x8x128xbf16> to vector<16x128xbf16>
    %c2 = arith.constant 2 : index
    %c0_18 = arith.constant 0 : index
    %c0_19 = arith.constant 0 : index
    %18 = vector.load %arg2[%c2, %c0_18, %c0_19] : memref<9x128x256xbf16, #tpu.memory_space<vmem>>, vector<1x128x256xbf16>
    %19 = vector.shape_cast %18 : vector<1x128x256xbf16> to vector<128x256xbf16>
    %cst_20 = arith.constant dense<0.000000e+00> : vector<16x256xf32>
    %20 = tpu.matmul %17, %19, %cst_20 {dimension_numbers = #tpu.dot_dimension_numbers<[1], [0], [0], [1], [0, 0, 1, 1], [], []>} : vector<16x128xbf16>, vector<128x256xbf16>, vector<16x256xf32> -> vector<16x256xf32>
    %21 = arith.addf %14, %20 : vector<16x256xf32>
    %c2_21 = arith.constant 2 : index
    %c0_22 = arith.constant 0 : index
    %c0_23 = arith.constant 0 : index
    %c0_24 = arith.constant 0 : index
    %22 = vector.load %arg1[%c2_21, %c0_22, %c0_23, %c0_24] : memref<4x3x9x128xbf16, #tpu.memory_space<vmem>>, vector<1x2x8x128xbf16>
    %23 = vector.shape_cast %22 : vector<1x2x8x128xbf16> to vector<2x8x128xbf16>
    %24 = vector.shape_cast %23 : vector<2x8x128xbf16> to vector<16x128xbf16>
    %c3 = arith.constant 3 : index
    %c0_25 = arith.constant 0 : index
    %c0_26 = arith.constant 0 : index
    %25 = vector.load %arg2[%c3, %c0_25, %c0_26] : memref<9x128x256xbf16, #tpu.memory_space<vmem>>, vector<1x128x256xbf16>
    %26 = vector.shape_cast %25 : vector<1x128x256xbf16> to vector<128x256xbf16>
    %cst_27 = arith.constant dense<0.000000e+00> : vector<16x256xf32>
    %27 = tpu.matmul %24, %26, %cst_27 {dimension_numbers = #tpu.dot_dimension_numbers<[1], [0], [0], [1], [0, 0, 1, 1], [], []>} : vector<16x128xbf16>, vector<128x256xbf16>, vector<16x256xf32> -> vector<16x256xf32>
    %28 = arith.addf %21, %27 : vector<16x256xf32>
    %c3_28 = arith.constant 3 : index
    %c0_29 = arith.constant 0 : index
    %c0_30 = arith.constant 0 : index
    %c0_31 = arith.constant 0 : index
    %29 = vector.load %arg1[%c3_28, %c0_29, %c0_30, %c0_31] : memref<4x3x9x128xbf16, #tpu.memory_space<vmem>>, vector<1x2x8x128xbf16>
    %30 = vector.shape_cast %29 : vector<1x2x8x128xbf16> to vector<2x8x128xbf16>
    %31 = vector.shape_cast %30 : vector<2x8x128xbf16> to vector<16x128xbf16>
    %c4 = arith.constant 4 : index
    %c0_32 = arith.constant 0 : index
    %c0_33 = arith.constant 0 : index
    %32 = vector.load %arg2[%c4, %c0_32, %c0_33] : memref<9x128x256xbf16, #tpu.memory_space<vmem>>, vector<1x128x256xbf16>
    %33 = vector.shape_cast %32 : vector<1x128x256xbf16> to vector<128x256xbf16>
    %cst_34 = arith.constant dense<0.000000e+00> : vector<16x256xf32>
    %34 = tpu.matmul %31, %33, %cst_34 {dimension_numbers = #tpu.dot_dimension_numbers<[1], [0], [0], [1], [0, 0, 1, 1], [], []>} : vector<16x128xbf16>, vector<128x256xbf16>, vector<16x256xf32> -> vector<16x256xf32>
    %35 = arith.addf %28, %34 : vector<16x256xf32>
    %c2_35 = arith.constant 2 : index
    %c0_36 = arith.constant 0 : index
    %c1_37 = arith.constant 1 : index
    %c0_38 = arith.constant 0 : index
    %36 = vector.load %arg1[%c2_35, %c0_36, %c1_37, %c0_38] : memref<4x3x9x128xbf16, #tpu.memory_space<vmem>>, vector<1x2x8x128xbf16>
    %37 = vector.shape_cast %36 : vector<1x2x8x128xbf16> to vector<2x8x128xbf16>
    %38 = vector.shape_cast %37 : vector<2x8x128xbf16> to vector<16x128xbf16>
    %c5 = arith.constant 5 : index
    %c0_39 = arith.constant 0 : index
    %c0_40 = arith.constant 0 : index
    %39 = vector.load %arg2[%c5, %c0_39, %c0_40] : memref<9x128x256xbf16, #tpu.memory_space<vmem>>, vector<1x128x256xbf16>
    %40 = vector.shape_cast %39 : vector<1x128x256xbf16> to vector<128x256xbf16>
    %cst_41 = arith.constant dense<0.000000e+00> : vector<16x256xf32>
    %41 = tpu.matmul %38, %40, %cst_41 {dimension_numbers = #tpu.dot_dimension_numbers<[1], [0], [0], [1], [0, 0, 1, 1], [], []>} : vector<16x128xbf16>, vector<128x256xbf16>, vector<16x256xf32> -> vector<16x256xf32>
    %42 = arith.addf %35, %41 : vector<16x256xf32>
    %c0_42 = arith.constant 0 : index
    %c1_43 = arith.constant 1 : index
    %c0_44 = arith.constant 0 : index
    %c0_45 = arith.constant 0 : index
    %43 = vector.load %arg1[%c0_42, %c1_43, %c0_44, %c0_45] : memref<4x3x9x128xbf16, #tpu.memory_space<vmem>>, vector<1x2x8x128xbf16>
    %44 = vector.shape_cast %43 : vector<1x2x8x128xbf16> to vector<2x8x128xbf16>
    %45 = vector.shape_cast %44 : vector<2x8x128xbf16> to vector<16x128xbf16>
    %c6 = arith.constant 6 : index
    %c0_46 = arith.constant 0 : index
    %c0_47 = arith.constant 0 : index
    %46 = vector.load %arg2[%c6, %c0_46, %c0_47] : memref<9x128x256xbf16, #tpu.memory_space<vmem>>, vector<1x128x256xbf16>
    %47 = vector.shape_cast %46 : vector<1x128x256xbf16> to vector<128x256xbf16>
    %cst_48 = arith.constant dense<0.000000e+00> : vector<16x256xf32>
    %48 = tpu.matmul %45, %47, %cst_48 {dimension_numbers = #tpu.dot_dimension_numbers<[1], [0], [0], [1], [0, 0, 1, 1], [], []>} : vector<16x128xbf16>, vector<128x256xbf16>, vector<16x256xf32> -> vector<16x256xf32>
    %49 = arith.addf %42, %48 : vector<16x256xf32>
    %c1_49 = arith.constant 1 : index
    %c1_50 = arith.constant 1 : index
    %c0_51 = arith.constant 0 : index
    %c0_52 = arith.constant 0 : index
    %50 = vector.load %arg1[%c1_49, %c1_50, %c0_51, %c0_52] : memref<4x3x9x128xbf16, #tpu.memory_space<vmem>>, vector<1x2x8x128xbf16>
    %51 = vector.shape_cast %50 : vector<1x2x8x128xbf16> to vector<2x8x128xbf16>
    %52 = vector.shape_cast %51 : vector<2x8x128xbf16> to vector<16x128xbf16>
    %c7 = arith.constant 7 : index
    %c0_53 = arith.constant 0 : index
    %c0_54 = arith.constant 0 : index
    %53 = vector.load %arg2[%c7, %c0_53, %c0_54] : memref<9x128x256xbf16, #tpu.memory_space<vmem>>, vector<1x128x256xbf16>
    %54 = vector.shape_cast %53 : vector<1x128x256xbf16> to vector<128x256xbf16>
    %cst_55 = arith.constant dense<0.000000e+00> : vector<16x256xf32>
    %55 = tpu.matmul %52, %54, %cst_55 {dimension_numbers = #tpu.dot_dimension_numbers<[1], [0], [0], [1], [0, 0, 1, 1], [], []>} : vector<16x128xbf16>, vector<128x256xbf16>, vector<16x256xf32> -> vector<16x256xf32>
    %56 = arith.addf %49, %55 : vector<16x256xf32>
    %c0_56 = arith.constant 0 : index
    %c1_57 = arith.constant 1 : index
    %c1_58 = arith.constant 1 : index
    %c0_59 = arith.constant 0 : index
    %57 = vector.load %arg1[%c0_56, %c1_57, %c1_58, %c0_59] : memref<4x3x9x128xbf16, #tpu.memory_space<vmem>>, vector<1x2x8x128xbf16>
    %58 = vector.shape_cast %57 : vector<1x2x8x128xbf16> to vector<2x8x128xbf16>
    %59 = vector.shape_cast %58 : vector<2x8x128xbf16> to vector<16x128xbf16>
    %c8 = arith.constant 8 : index
    %c0_60 = arith.constant 0 : index
    %c0_61 = arith.constant 0 : index
    %60 = vector.load %arg2[%c8, %c0_60, %c0_61] : memref<9x128x256xbf16, #tpu.memory_space<vmem>>, vector<1x128x256xbf16>
    %61 = vector.shape_cast %60 : vector<1x128x256xbf16> to vector<128x256xbf16>
    %cst_62 = arith.constant dense<0.000000e+00> : vector<16x256xf32>
    %62 = tpu.matmul %59, %61, %cst_62 {dimension_numbers = #tpu.dot_dimension_numbers<[1], [0], [0], [1], [0, 0, 1, 1], [], []>} : vector<16x128xbf16>, vector<128x256xbf16>, vector<16x256xf32> -> vector<16x256xf32>
    %63 = arith.addf %56, %62 : vector<16x256xf32>
    %c0_63 = arith.constant 0 : index
    %c0_64 = arith.constant 0 : index
    %64 = vector.load %arg3[%c0_63, %c0_64] : memref<1x256xf32, #tpu.memory_space<vmem>>, vector<1x256xf32>
    %65 = vector.broadcast %64 : vector<1x256xf32> to vector<16x256xf32>
    %66 = arith.mulf %63, %65 : vector<16x256xf32>
    %c0_65 = arith.constant 0 : index
    %c0_66 = arith.constant 0 : index
    %67 = vector.load %arg4[%c0_65, %c0_66] : memref<1x256xf32, #tpu.memory_space<vmem>>, vector<1x256xf32>
    %68 = vector.broadcast %67 : vector<1x256xf32> to vector<16x256xf32>
    %69 = arith.addf %66, %68 : vector<16x256xf32>
    %cst_67 = arith.constant 0.000000e+00 : f32
    %70 = vector.broadcast %cst_67 : f32 to vector<16x256xf32>
    %71 = arith.maximumf %69, %70 : vector<16x256xf32>
    %72 = vector.shape_cast %71 : vector<16x256xf32> to vector<2x8x256xf32>
    %73 = vector.extract_strided_slice %72 {offsets = [0, 0, 0], sizes = [2, 2, 256], strides = [1, 1, 1]} : vector<2x8x256xf32> to vector<2x2x256xf32>
    %74 = vector.shape_cast %73 : vector<2x2x256xf32> to vector<1x2x2x256xf32>
    %75 = arith.truncf %74 : vector<1x2x2x256xf32> to vector<1x2x2x256xbf16>
    %c0_68 = arith.constant 0 : index
    %c0_69 = arith.constant 0 : index
    %c0_70 = arith.constant 0 : index
    %c0_71 = arith.constant 0 : index
    %76 = vector.load %arg5[%c0_68, %c0_69, %c0_70, %c0_71] : memref<1x2x2x256xbf16, #tpu.memory_space<vmem>>, vector<1x2x2x256xbf16>
    tpu.vector_store %arg5[%c0_68, %c0_69, %c0_70, %c0_71], %75 {strides = array<i32>} : memref<1x2x2x256xbf16, #tpu.memory_space<vmem>>, vector<1x2x2x256xbf16>,
    return
  }
  func.func @transform_0(%arg0: i32) -> (i32, i32, i32, i32) {
    %c0_i32 = arith.constant 0 : i32
    %c0_i32_0 = arith.constant 0 : i32
    %c0_i32_1 = arith.constant 0 : i32
    %c0_i32_2 = arith.constant 0 : i32
    return %arg0, %c0_i32, %c0_i32_0, %c0_i32_1 : i32, i32, i32, i32
  }
  func.func @transform_1(%arg0: i32) -> (i32, i32, i32) {
    %c0_i32 = arith.constant 0 : i32
    %c0_i32_0 = arith.constant 0 : i32
    %c0_i32_1 = arith.constant 0 : i32
    %c0_i32_2 = arith.constant 0 : i32
    return %c0_i32, %c0_i32_0, %c0_i32_1 : i32, i32, i32
  }
  func.func @transform_2(%arg0: i32) -> (i32, i32) {
    %c0_i32 = arith.constant 0 : i32
    %c0_i32_0 = arith.constant 0 : i32
    %c0_i32_1 = arith.constant 0 : i32
    return %c0_i32, %c0_i32_0 : i32, i32
  }
  func.func @transform_3(%arg0: i32) -> (i32, i32) {
    %c0_i32 = arith.constant 0 : i32
    %c0_i32_0 = arith.constant 0 : i32
    %c0_i32_1 = arith.constant 0 : i32
    return %c0_i32, %c0_i32_0 : i32, i32
  }
  func.func @transform_4(%arg0: i32) -> (i32, i32, i32, i32) {
    %c0_i32 = arith.constant 0 : i32
    %c0_i32_0 = arith.constant 0 : i32
    %c0_i32_1 = arith.constant 0 : i32
    %c0_i32_2 = arith.constant 0 : i32
    return %arg0, %c0_i32, %c0_i32_0, %c0_i32_1 : i32, i32, i32, i32
  }
}

module attributes {stable_mosaic.version = 11 : i64} {
  func.func @_conv3x3_bn_relu_pool_fc_kernel(%arg0: i32, %arg1: memref<4x2x9x256xbf16, #tpu.memory_space<vmem>>, %arg2: memref<9x256x512xbf16, #tpu.memory_space<vmem>>, %arg3: memref<1x512xf32, #tpu.memory_space<vmem>>, %arg4: memref<1x512xf32, #tpu.memory_space<vmem>>, %arg5: memref<512x128xf32, #tpu.memory_space<vmem>>, %arg6: memref<1x128xf32, #tpu.memory_space<vmem>>, %arg7: memref<1x1x128xf32, #tpu.memory_space<vmem>>) attributes {dimension_semantics = [#tpu.dimension_semantics<parallel>], iteration_bounds = array<i64: 2>, scalar_prefetch = 0 : i64, scratch_operands = 0 : i64, tpu.core_type = #tpu.core_type<tc>, window_params = [{transform_indices = @transform_0, window_bounds = array<i64: 4, 2, 9, 256>}, {pipeline_mode = #tpu.pipeline_mode<synchronous>, transform_indices = @transform_1, window_bounds = array<i64: 9, 256, 512>}, {pipeline_mode = #tpu.pipeline_mode<synchronous>, transform_indices = @transform_2, window_bounds = array<i64: 1, 512>}, {pipeline_mode = #tpu.pipeline_mode<synchronous>, transform_indices = @transform_3, window_bounds = array<i64: 1, 512>}, {pipeline_mode = #tpu.pipeline_mode<synchronous>, transform_indices = @transform_4, window_bounds = array<i64: 512, 128>}, {pipeline_mode = #tpu.pipeline_mode<synchronous>, transform_indices = @transform_5, window_bounds = array<i64: 1, 128>}, {transform_indices = @transform_6, window_bounds = array<i64: 1, 1, 128>}]} {
    %cst = arith.constant 0.000000e+00 : f32
    %0 = vector.broadcast %cst : f32 to vector<8x512xf32>
    %c0 = arith.constant 0 : index
    %c0_0 = arith.constant 0 : index
    %c0_1 = arith.constant 0 : index
    %c0_2 = arith.constant 0 : index
    %1 = vector.load %arg1[%c0, %c0_0, %c0_1, %c0_2] : memref<4x2x9x256xbf16, #tpu.memory_space<vmem>>, vector<1x1x8x256xbf16>
    %2 = vector.shape_cast %1 : vector<1x1x8x256xbf16> to vector<1x8x256xbf16>
    %3 = vector.shape_cast %2 : vector<1x8x256xbf16> to vector<8x256xbf16>
    %c0_3 = arith.constant 0 : index
    %c0_4 = arith.constant 0 : index
    %c0_5 = arith.constant 0 : index
    %4 = vector.load %arg2[%c0_3, %c0_4, %c0_5] : memref<9x256x512xbf16, #tpu.memory_space<vmem>>, vector<1x256x512xbf16>
    %5 = vector.shape_cast %4 : vector<1x256x512xbf16> to vector<256x512xbf16>
    %cst_6 = arith.constant dense<0.000000e+00> : vector<8x512xf32>
    %6 = tpu.matmul %3, %5, %cst_6 {dimension_numbers = #tpu.dot_dimension_numbers<[1], [0], [0], [1], [0, 0, 1, 1], [], []>} : vector<8x256xbf16>, vector<256x512xbf16>, vector<8x512xf32> -> vector<8x512xf32>
    %7 = arith.addf %0, %6 : vector<8x512xf32>
    %c1 = arith.constant 1 : index
    %c0_7 = arith.constant 0 : index
    %c0_8 = arith.constant 0 : index
    %c0_9 = arith.constant 0 : index
    %8 = vector.load %arg1[%c1, %c0_7, %c0_8, %c0_9] : memref<4x2x9x256xbf16, #tpu.memory_space<vmem>>, vector<1x1x8x256xbf16>
    %9 = vector.shape_cast %8 : vector<1x1x8x256xbf16> to vector<1x8x256xbf16>
    %10 = vector.shape_cast %9 : vector<1x8x256xbf16> to vector<8x256xbf16>
    %c1_10 = arith.constant 1 : index
    %c0_11 = arith.constant 0 : index
    %c0_12 = arith.constant 0 : index
    %11 = vector.load %arg2[%c1_10, %c0_11, %c0_12] : memref<9x256x512xbf16, #tpu.memory_space<vmem>>, vector<1x256x512xbf16>
    %12 = vector.shape_cast %11 : vector<1x256x512xbf16> to vector<256x512xbf16>
    %cst_13 = arith.constant dense<0.000000e+00> : vector<8x512xf32>
    %13 = tpu.matmul %10, %12, %cst_13 {dimension_numbers = #tpu.dot_dimension_numbers<[1], [0], [0], [1], [0, 0, 1, 1], [], []>} : vector<8x256xbf16>, vector<256x512xbf16>, vector<8x512xf32> -> vector<8x512xf32>
    %14 = arith.addf %7, %13 : vector<8x512xf32>
    %c0_14 = arith.constant 0 : index
    %c0_15 = arith.constant 0 : index
    %c1_16 = arith.constant 1 : index
    %c0_17 = arith.constant 0 : index
    %15 = vector.load %arg1[%c0_14, %c0_15, %c1_16, %c0_17] : memref<4x2x9x256xbf16, #tpu.memory_space<vmem>>, vector<1x1x8x256xbf16>
    %16 = vector.shape_cast %15 : vector<1x1x8x256xbf16> to vector<1x8x256xbf16>
    %17 = vector.shape_cast %16 : vector<1x8x256xbf16> to vector<8x256xbf16>
    %c2 = arith.constant 2 : index
    %c0_18 = arith.constant 0 : index
    %c0_19 = arith.constant 0 : index
    %18 = vector.load %arg2[%c2, %c0_18, %c0_19] : memref<9x256x512xbf16, #tpu.memory_space<vmem>>, vector<1x256x512xbf16>
    %19 = vector.shape_cast %18 : vector<1x256x512xbf16> to vector<256x512xbf16>
    %cst_20 = arith.constant dense<0.000000e+00> : vector<8x512xf32>
    %20 = tpu.matmul %17, %19, %cst_20 {dimension_numbers = #tpu.dot_dimension_numbers<[1], [0], [0], [1], [0, 0, 1, 1], [], []>} : vector<8x256xbf16>, vector<256x512xbf16>, vector<8x512xf32> -> vector<8x512xf32>
    %21 = arith.addf %14, %20 : vector<8x512xf32>
    %c2_21 = arith.constant 2 : index
    %c0_22 = arith.constant 0 : index
    %c0_23 = arith.constant 0 : index
    %c0_24 = arith.constant 0 : index
    %22 = vector.load %arg1[%c2_21, %c0_22, %c0_23, %c0_24] : memref<4x2x9x256xbf16, #tpu.memory_space<vmem>>, vector<1x1x8x256xbf16>
    %23 = vector.shape_cast %22 : vector<1x1x8x256xbf16> to vector<1x8x256xbf16>
    %24 = vector.shape_cast %23 : vector<1x8x256xbf16> to vector<8x256xbf16>
    %c3 = arith.constant 3 : index
    %c0_25 = arith.constant 0 : index
    %c0_26 = arith.constant 0 : index
    %25 = vector.load %arg2[%c3, %c0_25, %c0_26] : memref<9x256x512xbf16, #tpu.memory_space<vmem>>, vector<1x256x512xbf16>
    %26 = vector.shape_cast %25 : vector<1x256x512xbf16> to vector<256x512xbf16>
    %cst_27 = arith.constant dense<0.000000e+00> : vector<8x512xf32>
    %27 = tpu.matmul %24, %26, %cst_27 {dimension_numbers = #tpu.dot_dimension_numbers<[1], [0], [0], [1], [0, 0, 1, 1], [], []>} : vector<8x256xbf16>, vector<256x512xbf16>, vector<8x512xf32> -> vector<8x512xf32>
    %28 = arith.addf %21, %27 : vector<8x512xf32>
    %c3_28 = arith.constant 3 : index
    %c0_29 = arith.constant 0 : index
    %c0_30 = arith.constant 0 : index
    %c0_31 = arith.constant 0 : index
    %29 = vector.load %arg1[%c3_28, %c0_29, %c0_30, %c0_31] : memref<4x2x9x256xbf16, #tpu.memory_space<vmem>>, vector<1x1x8x256xbf16>
    %30 = vector.shape_cast %29 : vector<1x1x8x256xbf16> to vector<1x8x256xbf16>
    %31 = vector.shape_cast %30 : vector<1x8x256xbf16> to vector<8x256xbf16>
    %c4 = arith.constant 4 : index
    %c0_32 = arith.constant 0 : index
    %c0_33 = arith.constant 0 : index
    %32 = vector.load %arg2[%c4, %c0_32, %c0_33] : memref<9x256x512xbf16, #tpu.memory_space<vmem>>, vector<1x256x512xbf16>
    %33 = vector.shape_cast %32 : vector<1x256x512xbf16> to vector<256x512xbf16>
    %cst_34 = arith.constant dense<0.000000e+00> : vector<8x512xf32>
    %34 = tpu.matmul %31, %33, %cst_34 {dimension_numbers = #tpu.dot_dimension_numbers<[1], [0], [0], [1], [0, 0, 1, 1], [], []>} : vector<8x256xbf16>, vector<256x512xbf16>, vector<8x512xf32> -> vector<8x512xf32>
    %35 = arith.addf %28, %34 : vector<8x512xf32>
    %c2_35 = arith.constant 2 : index
    %c0_36 = arith.constant 0 : index
    %c1_37 = arith.constant 1 : index
    %c0_38 = arith.constant 0 : index
    %36 = vector.load %arg1[%c2_35, %c0_36, %c1_37, %c0_38] : memref<4x2x9x256xbf16, #tpu.memory_space<vmem>>, vector<1x1x8x256xbf16>
    %37 = vector.shape_cast %36 : vector<1x1x8x256xbf16> to vector<1x8x256xbf16>
    %38 = vector.shape_cast %37 : vector<1x8x256xbf16> to vector<8x256xbf16>
    %c5 = arith.constant 5 : index
    %c0_39 = arith.constant 0 : index
    %c0_40 = arith.constant 0 : index
    %39 = vector.load %arg2[%c5, %c0_39, %c0_40] : memref<9x256x512xbf16, #tpu.memory_space<vmem>>, vector<1x256x512xbf16>
    %40 = vector.shape_cast %39 : vector<1x256x512xbf16> to vector<256x512xbf16>
    %cst_41 = arith.constant dense<0.000000e+00> : vector<8x512xf32>
    %41 = tpu.matmul %38, %40, %cst_41 {dimension_numbers = #tpu.dot_dimension_numbers<[1], [0], [0], [1], [0, 0, 1, 1], [], []>} : vector<8x256xbf16>, vector<256x512xbf16>, vector<8x512xf32> -> vector<8x512xf32>
    %42 = arith.addf %35, %41 : vector<8x512xf32>
    %c0_42 = arith.constant 0 : index
    %c1_43 = arith.constant 1 : index
    %c0_44 = arith.constant 0 : index
    %c0_45 = arith.constant 0 : index
    %43 = vector.load %arg1[%c0_42, %c1_43, %c0_44, %c0_45] : memref<4x2x9x256xbf16, #tpu.memory_space<vmem>>, vector<1x1x8x256xbf16>
    %44 = vector.shape_cast %43 : vector<1x1x8x256xbf16> to vector<1x8x256xbf16>
    %45 = vector.shape_cast %44 : vector<1x8x256xbf16> to vector<8x256xbf16>
    %c6 = arith.constant 6 : index
    %c0_46 = arith.constant 0 : index
    %c0_47 = arith.constant 0 : index
    %46 = vector.load %arg2[%c6, %c0_46, %c0_47] : memref<9x256x512xbf16, #tpu.memory_space<vmem>>, vector<1x256x512xbf16>
    %47 = vector.shape_cast %46 : vector<1x256x512xbf16> to vector<256x512xbf16>
    %cst_48 = arith.constant dense<0.000000e+00> : vector<8x512xf32>
    %48 = tpu.matmul %45, %47, %cst_48 {dimension_numbers = #tpu.dot_dimension_numbers<[1], [0], [0], [1], [0, 0, 1, 1], [], []>} : vector<8x256xbf16>, vector<256x512xbf16>, vector<8x512xf32> -> vector<8x512xf32>
    %49 = arith.addf %42, %48 : vector<8x512xf32>
    %c1_49 = arith.constant 1 : index
    %c1_50 = arith.constant 1 : index
    %c0_51 = arith.constant 0 : index
    %c0_52 = arith.constant 0 : index
    %50 = vector.load %arg1[%c1_49, %c1_50, %c0_51, %c0_52] : memref<4x2x9x256xbf16, #tpu.memory_space<vmem>>, vector<1x1x8x256xbf16>
    %51 = vector.shape_cast %50 : vector<1x1x8x256xbf16> to vector<1x8x256xbf16>
    %52 = vector.shape_cast %51 : vector<1x8x256xbf16> to vector<8x256xbf16>
    %c7 = arith.constant 7 : index
    %c0_53 = arith.constant 0 : index
    %c0_54 = arith.constant 0 : index
    %53 = vector.load %arg2[%c7, %c0_53, %c0_54] : memref<9x256x512xbf16, #tpu.memory_space<vmem>>, vector<1x256x512xbf16>
    %54 = vector.shape_cast %53 : vector<1x256x512xbf16> to vector<256x512xbf16>
    %cst_55 = arith.constant dense<0.000000e+00> : vector<8x512xf32>
    %55 = tpu.matmul %52, %54, %cst_55 {dimension_numbers = #tpu.dot_dimension_numbers<[1], [0], [0], [1], [0, 0, 1, 1], [], []>} : vector<8x256xbf16>, vector<256x512xbf16>, vector<8x512xf32> -> vector<8x512xf32>
    %56 = arith.addf %49, %55 : vector<8x512xf32>
    %c0_56 = arith.constant 0 : index
    %c1_57 = arith.constant 1 : index
    %c1_58 = arith.constant 1 : index
    %c0_59 = arith.constant 0 : index
    %57 = vector.load %arg1[%c0_56, %c1_57, %c1_58, %c0_59] : memref<4x2x9x256xbf16, #tpu.memory_space<vmem>>, vector<1x1x8x256xbf16>
    %58 = vector.shape_cast %57 : vector<1x1x8x256xbf16> to vector<1x8x256xbf16>
    %59 = vector.shape_cast %58 : vector<1x8x256xbf16> to vector<8x256xbf16>
    %c8 = arith.constant 8 : index
    %c0_60 = arith.constant 0 : index
    %c0_61 = arith.constant 0 : index
    %60 = vector.load %arg2[%c8, %c0_60, %c0_61] : memref<9x256x512xbf16, #tpu.memory_space<vmem>>, vector<1x256x512xbf16>
    %61 = vector.shape_cast %60 : vector<1x256x512xbf16> to vector<256x512xbf16>
    %cst_62 = arith.constant dense<0.000000e+00> : vector<8x512xf32>
    %62 = tpu.matmul %59, %61, %cst_62 {dimension_numbers = #tpu.dot_dimension_numbers<[1], [0], [0], [1], [0, 0, 1, 1], [], []>} : vector<8x256xbf16>, vector<256x512xbf16>, vector<8x512xf32> -> vector<8x512xf32>
    %63 = arith.addf %56, %62 : vector<8x512xf32>
    %c0_63 = arith.constant 0 : index
    %c0_64 = arith.constant 0 : index
    %64 = vector.load %arg3[%c0_63, %c0_64] : memref<1x512xf32, #tpu.memory_space<vmem>>, vector<1x512xf32>
    %65 = vector.broadcast %64 : vector<1x512xf32> to vector<8x512xf32>
    %66 = arith.mulf %63, %65 : vector<8x512xf32>
    %c0_65 = arith.constant 0 : index
    %c0_66 = arith.constant 0 : index
    %67 = vector.load %arg4[%c0_65, %c0_66] : memref<1x512xf32, #tpu.memory_space<vmem>>, vector<1x512xf32>
    %68 = vector.broadcast %67 : vector<1x512xf32> to vector<8x512xf32>
    %69 = arith.addf %66, %68 : vector<8x512xf32>
    %cst_67 = arith.constant 0.000000e+00 : f32
    %70 = vector.broadcast %cst_67 : f32 to vector<8x512xf32>
    %71 = arith.maximumf %69, %70 : vector<8x512xf32>
    %72 = vector.shape_cast %71 : vector<8x512xf32> to vector<1x8x512xf32>
    %73 = vector.extract_strided_slice %72 {offsets = [0, 0, 0], sizes = [1, 1, 512], strides = [1, 1, 1]} : vector<1x8x512xf32> to vector<1x1x512xf32>
    %cst_68 = arith.constant dense<0.000000e+00> : vector<1x512xf32>
    %74 = vector.multi_reduction <add>, %73, %cst_68 [0] : vector<1x1x512xf32> to vector<1x512xf32>
    %cst_69 = arith.constant dense<0.000000e+00> : vector<512xf32>
    %75 = vector.multi_reduction <add>, %74, %cst_69 [0] : vector<1x512xf32> to vector<512xf32>
    %cst_70 = arith.constant 1.000000e+00 : f32
    %76 = vector.broadcast %cst_70 : f32 to vector<512xf32>
    %77 = arith.mulf %75, %76 : vector<512xf32>
    %78 = vector.shape_cast %77 : vector<512xf32> to vector<1x512xf32>
    %c0_71 = arith.constant 0 : index
    %c0_72 = arith.constant 0 : index
    %79 = vector.load %arg5[%c0_71, %c0_72] : memref<512x128xf32, #tpu.memory_space<vmem>>, vector<512x128xf32>
    %cst_73 = arith.constant dense<0.000000e+00> : vector<1x128xf32>
    %80 = tpu.matmul %78, %79, %cst_73 {dimension_numbers = #tpu.dot_dimension_numbers<[1], [0], [0], [1], [0, 0, 1, 1], [], []>} : vector<1x512xf32>, vector<512x128xf32>, vector<1x128xf32> -> vector<1x128xf32>
    %c0_74 = arith.constant 0 : index
    %c0_75 = arith.constant 0 : index
    %81 = vector.load %arg6[%c0_74, %c0_75] : memref<1x128xf32, #tpu.memory_space<vmem>>, vector<1x128xf32>
    %82 = arith.addf %80, %81 : vector<1x128xf32>
    %83 = vector.shape_cast %82 : vector<1x128xf32> to vector<1x1x128xf32>
    %c0_76 = arith.constant 0 : index
    %c0_77 = arith.constant 0 : index
    %c0_78 = arith.constant 0 : index
    %84 = vector.load %arg7[%c0_76, %c0_77, %c0_78] : memref<1x1x128xf32, #tpu.memory_space<vmem>>, vector<1x1x128xf32>
    tpu.vector_store %arg7[%c0_76, %c0_77, %c0_78], %83 {strides = array<i32>} : memref<1x1x128xf32, #tpu.memory_space<vmem>>, vector<1x1x128xf32>,
    return
  }
  func.func @transform_0(%arg0: i32) -> (i32, i32, i32, i32) {
    %c0_i32 = arith.constant 0 : i32
    %c0_i32_0 = arith.constant 0 : i32
    %c0_i32_1 = arith.constant 0 : i32
    %c0_i32_2 = arith.constant 0 : i32
    return %arg0, %c0_i32, %c0_i32_0, %c0_i32_1 : i32, i32, i32, i32
  }
  func.func @transform_1(%arg0: i32) -> (i32, i32, i32) {
    %c0_i32 = arith.constant 0 : i32
    %c0_i32_0 = arith.constant 0 : i32
    %c0_i32_1 = arith.constant 0 : i32
    %c0_i32_2 = arith.constant 0 : i32
    return %c0_i32, %c0_i32_0, %c0_i32_1 : i32, i32, i32
  }
  func.func @transform_2(%arg0: i32) -> (i32, i32) {
    %c0_i32 = arith.constant 0 : i32
    %c0_i32_0 = arith.constant 0 : i32
    %c0_i32_1 = arith.constant 0 : i32
    return %c0_i32, %c0_i32_0 : i32, i32
  }
  func.func @transform_3(%arg0: i32) -> (i32, i32) {
    %c0_i32 = arith.constant 0 : i32
    %c0_i32_0 = arith.constant 0 : i32
    %c0_i32_1 = arith.constant 0 : i32
    return %c0_i32, %c0_i32_0 : i32, i32
  }
  func.func @transform_4(%arg0: i32) -> (i32, i32) {
    %c0_i32 = arith.constant 0 : i32
    %c0_i32_0 = arith.constant 0 : i32
    %c0_i32_1 = arith.constant 0 : i32
    return %c0_i32, %c0_i32_0 : i32, i32
  }
  func.func @transform_5(%arg0: i32) -> (i32, i32) {
    %c0_i32 = arith.constant 0 : i32
    %c0_i32_0 = arith.constant 0 : i32
    %c0_i32_1 = arith.constant 0 : i32
    return %c0_i32, %c0_i32_0 : i32, i32
  }
  func.func @transform_6(%arg0: i32) -> (i32, i32, i32) {
    %c0_i32 = arith.constant 0 : i32
    %c0_i32_0 = arith.constant 0 : i32
    %c0_i32_1 = arith.constant 0 : i32
    return %arg0, %c0_i32, %c0_i32_0 : i32, i32, i32
  }
}

</mosaic_0001>

<bundles_post_ra>
// kernel: cnn_forward.5
= control target key start
LH: loop header
LB: loop body
LE: loop exit
PB: predicated region body
PF: predicated region fallthrough
CT: control target
= control target key end

     0   :  { %v1705_v0 = vmov 0   ;;  %vm1281_vm0 = vcmask 519168   ;;  %s2397_s1 = inlined_call_operand.vmem [shape: bf16[256,64], index: 1, kind: input, shape index: {}]   ;;  %s2398_s0 = inlined_call_operand.vmem [shape: bf16[512,256], index: 0, kind: input, shape index: {}]   ;;  %s2399_s2 = inlined_call_operand.vmem [shape: f32[1,64], index: 2, kind: input, shape index: {}]   ;;  %s2400_s3 = inlined_call_operand.vmem [shape: f32[1,64], index: 3, kind: input, shape index: {}]   ;;  %s2401_s4 = inlined_call_operand.vmem [shape: bf16[512,64], index: 4, kind: output, shape index: {}]  }
   0x1   :  { %530 = vmatprep.subr.bf16.mxu0 %v1705_v0  ;;  %1560 = vmatprep.subr.bf16.mxu1 %v1705_v0  ;;  %v1593_v1 = vld [vmem:[%s2397_s1] sm:$0xff]   ;;  %v1594_v2 = vld [vmem:[%s2397_s1 + $0x8] sm:$0xff]   ;;  %v1595_v3 = vld [vmem:[%s2397_s1 + $0x10] sm:$0xff]  }
   0x2   :  { %531 = vmatpush1.bf16.msra.mxu0 %v1593_v1  ;;  %1576 = vmatpush1.bf16.msra.mxu1 %v1593_v1  ;;  %v1596_v4 = vld [vmem:[%s2397_s1 + $0x18] sm:$0xff]   ;;  %v1597_v5 = vld [vmem:[%s2397_s1 + $0x20] sm:$0xff]   ;;  %v1598_v7 = vld [vmem:[%s2397_s1 + $0x28] sm:$0xff]  }
   0x3   :  { %532 = vmatprep.subr.bf16.mxu0 %v1705_v0  ;;  %1561 = vmatprep.subr.bf16.mxu1 %v1705_v0  ;;  %v1611_v6 = vld [vmem:[%s2398_s0 + $0x4] ss:$8 sps:$4 sm:$0xff]   ;;  %v1599_v9 = vld [vmem:[%s2397_s1 + $0x30] sm:$0xff]   ;;  %v1600_v10 = vld [vmem:[%s2397_s1 + $0x38] sm:$0xff]  }
   0x4   :  { %v1614_v8 = vld [vmem:[%s2398_s0 + $0x104] ss:$8 sps:$4 sm:$0xff]   ;;  %562 = vmatprep.mubr.bf16.mxu0 %v1611_v6  ;;  %v1603_v13 = vld [vmem:[%s2397_s1 + $0x50] sm:$0xff]   ;;  %v1604_v14 = vld [vmem:[%s2397_s1 + $0x58] sm:$0xff]  }
   0x5   :  { %690 = vmatprep.mubr.bf16.mxu1 %v1614_v8  ;;  %v1601_v11 = vld [vmem:[%s2397_s1 + $0x40] sm:$0xff]   ;;  %v1602_v12 = vld [vmem:[%s2397_s1 + $0x48] sm:$0xff]   ;;  %v1607_v17 = vld [vmem:[%s2397_s1 + $0x70] sm:$0xff]  }
   0x6   :  { %533 = vmatpush1.bf16.msra.mxu0 %v1594_v2  ;;  %1577 = vmatpush1.bf16.msra.mxu1 %v1594_v2  ;;  %v1605_v15 = vld [vmem:[%s2397_s1 + $0x60] sm:$0xff]   ;;  %v1606_v16 = vld [vmem:[%s2397_s1 + $0x68] sm:$0xff]   ;;  %v1608_v18 = vld [vmem:[%s2397_s1 + $0x78] sm:$0xff]  }
   0x7   :  { %534 = vmatprep.subr.bf16.mxu0 %v1705_v0  ;;  %1562 = vmatprep.subr.bf16.mxu1 %v1705_v0  ;;  %v1609_v19 = vld [vmem:[%s2398_s0] ss:$8 sps:$4 sm:$0xff]   ;;  %v1615_v21 = vld [vmem:[%s2398_s0 + $0x14] ss:$8 sps:$4 sm:$0xff]   ;;  %v1619_v23 = vld [vmem:[%s2398_s0 + $0x10] ss:$8 sps:$4 sm:$0xff]  }
   0x8   :  { %v1612_v20 = vld [vmem:[%s2398_s0 + $0x100] ss:$8 sps:$4 sm:$0xff]   ;;  %v1617_v22 = vld [vmem:[%s2398_s0 + $0x114] ss:$8 sps:$4 sm:$0xff]   ;;  %v1620_v24 = vld [vmem:[%s2398_s0 + $0x110] ss:$8 sps:$4 sm:$0xff]  }
   0x9   :  { %v1621_v25 = vld [vmem:[%s2398_s0 + $0x24] ss:$8 sps:$4 sm:$0xff]   ;;  %v1625_v27 = vld [vmem:[%s2398_s0 + $0x20] ss:$8 sps:$4 sm:$0xff]   ;;  %v1627_v29 = vld [vmem:[%s2398_s0 + $0x34] ss:$8 sps:$4 sm:$0xff]  }
   0xa   :  { %535 = vmatpush1.bf16.msra.mxu0 %v1595_v3  ;;  %1578 = vmatpush1.bf16.msra.mxu1 %v1595_v3  ;;  %v1623_v26 = vld [vmem:[%s2398_s0 + $0x124] ss:$8 sps:$4 sm:$0xff]   ;;  %v1626_v28 = vld [vmem:[%s2398_s0 + $0x120] ss:$8 sps:$4 sm:$0xff]   ;;  %v1629_v30 = vld [vmem:[%s2398_s0 + $0x134] ss:$8 sps:$4 sm:$0xff]  }
   0xb   :  { %536 = vmatprep.subr.bf16.mxu0 %v1705_v0  ;;  %1563 = vmatprep.subr.bf16.mxu1 %v1705_v0  ;;  %v1631_v31 = vld [vmem:[%s2398_s0 + $0x30] ss:$8 sps:$4 sm:$0xff]   ;;  %v1633_v33 = vld [vmem:[%s2398_s0 + $0x44] ss:$8 sps:$4 sm:$0xff]   ;;  %v1637_v35 = vld [vmem:[%s2398_s0 + $0x40] ss:$8 sps:$4 sm:$0xff]  }
   0xc   :  { %v1632_v32 = vld [vmem:[%s2398_s0 + $0x130] ss:$8 sps:$4 sm:$0xff]   ;;  %v1635_v34 = vld [vmem:[%s2398_s0 + $0x144] ss:$8 sps:$4 sm:$0xff]   ;;  %v1638_v36 = vld [vmem:[%s2398_s0 + $0x140] ss:$8 sps:$4 sm:$0xff]  }
   0xd   :  { %v1639_v37 = vld [vmem:[%s2398_s0 + $0x54] ss:$8 sps:$4 sm:$0xff]   ;;  %v1643_v39 = vld [vmem:[%s2398_s0 + $0x50] ss:$8 sps:$4 sm:$0xff]   ;;  %v1645_v41 = vld [vmem:[%s2398_s0 + $0x64] ss:$8 sps:$4 sm:$0xff]  }
   0xe   :  { %537 = vmatpush1.bf16.msra.mxu0 %v1596_v4  ;;  %1579 = vmatpush1.bf16.msra.mxu1 %v1596_v4  ;;  %v1641_v38 = vld [vmem:[%s2398_s0 + $0x154] ss:$8 sps:$4 sm:$0xff]   ;;  %v1644_v40 = vld [vmem:[%s2398_s0 + $0x150] ss:$8 sps:$4 sm:$0xff]   ;;  %v1647_v42 = vld [vmem:[%s2398_s0 + $0x164] ss:$8 sps:$4 sm:$0xff]  }
   0xf   :  { %538 = vmatprep.subr.bf16.mxu0 %v1705_v0  ;;  %1564 = vmatprep.subr.bf16.mxu1 %v1705_v0  ;;  %v1649_v43 = vld [vmem:[%s2398_s0 + $0x60] ss:$8 sps:$4 sm:$0xff]   ;;  %v1651_v45 = vld [vmem:[%s2398_s0 + $0x74] ss:$8 sps:$4 sm:$0xff]   ;;  %v1655_v47 = vld [vmem:[%s2398_s0 + $0x70] ss:$8 sps:$4 sm:$0xff]  }
  0x10   :  { %v1650_v44 = vld [vmem:[%s2398_s0 + $0x160] ss:$8 sps:$4 sm:$0xff]   ;;  %v1653_v46 = vld [vmem:[%s2398_s0 + $0x174] ss:$8 sps:$4 sm:$0xff]   ;;  %v1656_v48 = vld [vmem:[%s2398_s0 + $0x170] ss:$8 sps:$4 sm:$0xff]  }
  0x11   :  { %v1657_v49 = vld [vmem:[%s2398_s0 + $0x84] ss:$8 sps:$4 sm:$0xff]   ;;  %v1661_v51 = vld [vmem:[%s2398_s0 + $0x80] ss:$8 sps:$4 sm:$0xff]   ;;  %v1663_v53 = vld [vmem:[%s2398_s0 + $0x94] ss:$8 sps:$4 sm:$0xff]  }
  0x12   :  { %539 = vmatpush1.bf16.msra.mxu0 %v1597_v5  ;;  %1580 = vmatpush1.bf16.msra.mxu1 %v1597_v5  ;;  %v1659_v50 = vld [vmem:[%s2398_s0 + $0x184] ss:$8 sps:$4 sm:$0xff]   ;;  %v1662_v52 = vld [vmem:[%s2398_s0 + $0x180] ss:$8 sps:$4 sm:$0xff]   ;;  %v1665_v54 = vld [vmem:[%s2398_s0 + $0x194] ss:$8 sps:$4 sm:$0xff]  }
  0x13   :  { %540 = vmatprep.subr.bf16.mxu0 %v1705_v0  ;;  %1565 = vmatprep.subr.bf16.mxu1 %v1705_v0  ;;  %v1667_v55 = vld [vmem:[%s2398_s0 + $0x90] ss:$8 sps:$4 sm:$0xff]   ;;  %v1669_v57 = vld [vmem:[%s2398_s0 + $0xa4] ss:$8 sps:$4 sm:$0xff]   ;;  %v1673_v59 = vld [vmem:[%s2398_s0 + $0xa0] ss:$8 sps:$4 sm:$0xff]  }
  0x14   :  { %v1668_v56 = vld [vmem:[%s2398_s0 + $0x190] ss:$8 sps:$4 sm:$0xff]   ;;  %v1671_v58 = vld [vmem:[%s2398_s0 + $0x1a4] ss:$8 sps:$4 sm:$0xff]   ;;  %v1674_v60 = vld [vmem:[%s2398_s0 + $0x1a0] ss:$8 sps:$4 sm:$0xff]  }
  0x15   :  { %v1675_v61 = vld [vmem:[%s2398_s0 + $0xb4] ss:$8 sps:$4 sm:$0xff]   ;;  %v1679_v63 = vld [vmem:[%s2398_s0 + $0xb0] ss:$8 sps:$4 sm:$0xff]   ;;  %v1681_v1 = vld [vmem:[%s2398_s0 + $0xc4] ss:$8 sps:$4 sm:$0xff]  }
  0x16   :  { %541 = vmatpush1.bf16.msra.mxu0 %v1598_v7  ;;  %1581 = vmatpush1.bf16.msra.mxu1 %v1598_v7  ;;  %v1677_v62 = vld [vmem:[%s2398_s0 + $0x1b4] ss:$8 sps:$4 sm:$0xff]   ;;  %v1683_v2 = vld [vmem:[%s2398_s0 + $0x1c4] ss:$8 sps:$4 sm:$0xff]   ;;  %v1685_v3 = vld [vmem:[%s2398_s0 + $0xc0] ss:$8 sps:$4 sm:$0xff]  }
  0x17   :  { %542 = vmatprep.subr.bf16.mxu0 %v1705_v0  ;;  %1566 = vmatprep.subr.bf16.mxu1 %v1705_v0  ;;  %v1686_v4 = vld [vmem:[%s2398_s0 + $0x1c0] ss:$8 sps:$4 sm:$0xff]   ;;  %v1687_v5 = vld [vmem:[%s2398_s0 + $0xd4] ss:$8 sps:$4 sm:$0xff]   ;;  %v1691_v7 = vld [vmem:[%s2398_s0 + $0xd0] ss:$8 sps:$4 sm:$0xff]  }
  0x18   :  { %v1689_v6 = vld [vmem:[%s2398_s0 + $0x1d4] ss:$8 sps:$4 sm:$0xff]   ;;  %v1692_v8 = vld [vmem:[%s2398_s0 + $0x1d0] ss:$8 sps:$4 sm:$0xff]  }
  0x1a   :  { %543 = vmatpush1.bf16.msra.mxu0 %v1599_v9  ;;  %1582 = vmatpush1.bf16.msra.mxu1 %v1599_v9  ;;  %v1693_v9 = vld [vmem:[%s2398_s0 + $0xe4] ss:$8 sps:$4 sm:$0xff]  }
  0x1b   :  { %544 = vmatprep.subr.bf16.mxu0 %v1705_v0  ;;  %1567 = vmatprep.subr.bf16.mxu1 %v1705_v0 }
  0x1e   :  { %545 = vmatpush1.bf16.msra.mxu0 %v1600_v10  ;;  %1583 = vmatpush1.bf16.msra.mxu1 %v1600_v10  ;;  %v1695_v10 = vld [vmem:[%s2398_s0 + $0x1e4] ss:$8 sps:$4 sm:$0xff]  }
  0x1f   :  { %546 = vmatprep.subr.bf16.mxu0 %v1705_v0  ;;  %1568 = vmatprep.subr.bf16.mxu1 %v1705_v0 }
  0x22   :  { %547 = vmatpush1.bf16.msra.mxu0 %v1601_v11  ;;  %1584 = vmatpush1.bf16.msra.mxu1 %v1601_v11  ;;  %v1697_v11 = vld [vmem:[%s2398_s0 + $0xe0] ss:$8 sps:$4 sm:$0xff]  }
  0x23   :  { %548 = vmatprep.subr.bf16.mxu0 %v1705_v0  ;;  %1569 = vmatprep.subr.bf16.mxu1 %v1705_v0 }
  0x26   :  { %549 = vmatpush1.bf16.msra.mxu0 %v1602_v12  ;;  %1585 = vmatpush1.bf16.msra.mxu1 %v1602_v12  ;;  %v1698_v12 = vld [vmem:[%s2398_s0 + $0x1e0] ss:$8 sps:$4 sm:$0xff]  }
  0x27   :  { %550 = vmatprep.subr.bf16.mxu0 %v1705_v0  ;;  %1570 = vmatprep.subr.bf16.mxu1 %v1705_v0 }
  0x2a   :  { %551 = vmatpush1.bf16.msra.mxu0 %v1603_v13  ;;  %1586 = vmatpush1.bf16.msra.mxu1 %v1603_v13  ;;  %v1699_v13 = vld [vmem:[%s2398_s0 + $0xf4] ss:$8 sps:$4 sm:$0xff]  }
  0x2b   :  { %552 = vmatprep.subr.bf16.mxu0 %v1705_v0  ;;  %1571 = vmatprep.subr.bf16.mxu1 %v1705_v0 }
  0x2e   :  { %553 = vmatpush1.bf16.msra.mxu0 %v1604_v14  ;;  %1587 = vmatpush1.bf16.msra.mxu1 %v1604_v14  ;;  %v1701_v14 = vld [vmem:[%s2398_s0 + $0x1f4] ss:$8 sps:$4 sm:$0xff]  }
  0x2f   :  { %554 = vmatprep.subr.bf16.mxu0 %v1705_v0  ;;  %1572 = vmatprep.subr.bf16.mxu1 %v1705_v0 }
  0x32   :  { %555 = vmatpush1.bf16.msra.mxu0 %v1605_v15  ;;  %1588 = vmatpush1.bf16.msra.mxu1 %v1605_v15  ;;  %v1703_v15 = vld [vmem:[%s2398_s0 + $0xf0] ss:$8 sps:$4 sm:$0xff]  }
  0x33   :  { %556 = vmatprep.subr.bf16.mxu0 %v1705_v0  ;;  %1573 = vmatprep.subr.bf16.mxu1 %v1705_v0 }
  0x36   :  { %557 = vmatpush1.bf16.msra.mxu0 %v1606_v16  ;;  %1589 = vmatpush1.bf16.msra.mxu1 %v1606_v16  ;;  %v1704_v16 = vld [vmem:[%s2398_s0 + $0x1f0] ss:$8 sps:$4 sm:$0xff]  }
  0x37   :  { %558 = vmatprep.subr.bf16.mxu0 %v1705_v0  ;;  %1574 = vmatprep.subr.bf16.mxu1 %v1705_v0 }
  0x3a   :  { %559 = vmatpush1.bf16.msra.mxu0 %v1607_v17  ;;  %1590 = vmatpush1.bf16.msra.mxu1 %v1607_v17  ;;  %v2006_v17 = vld [vmem:[%s2399_s2] ss:$0 sm:$0xff] }
  0x3b   :  { %560 = vmatprep.subr.bf16.mxu0 %v1705_v0  ;;  %1575 = vmatprep.subr.bf16.mxu1 %v1705_v0  ;;  %v1680_v0 = vld [vmem:[%s2398_s0 + $0x1b0] ss:$8 sps:$4 sm:$0xff]  }
  0x3e   :  { %561 = vmatpush1.bf16.msra.mxu0 %v1608_v18  ;;  %1591 = vmatpush1.bf16.msra.mxu1 %v1608_v18 }
  0x41   :  { %563 = vmatmul.mubr.bf16.vlgmr.msra.gmra.mrb[0].mxu0 %v1609_v19  ;;  %691 = vmatmul.mubr.bf16.vlgmr.msra.gmra.mrb[0].mxu1 %v1612_v20  ;;  %v2011_v19 = vld [vmem:[%s2400_s3] ss:$0 sm:$0xff] }
  0x42   :  { %570 = vmatprep.mubr.bf16.mxu0 %v1615_v21  ;;  %698 = vmatprep.mubr.bf16.mxu1 %v1617_v22 }
  0x49   :  { %571 = vmatmul.mubr.bf16.gmra.mrb[4].mxu0 %v1619_v23  ;;  %699 = vmatmul.mubr.bf16.gmra.mrb[4].mxu1 %v1620_v24 }
  0x4a   :  { %578 = vmatprep.mubr.bf16.mxu0 %v1621_v25  ;;  %706 = vmatprep.mubr.bf16.mxu1 %v1623_v26 }
  0x51   :  { %579 = vmatmul.mubr.bf16.gmra.mrb[8].mxu0 %v1625_v27  ;;  %707 = vmatmul.mubr.bf16.gmra.mrb[8].mxu1 %v1626_v28 }
  0x52   :  { %586 = vmatprep.mubr.bf16.mxu0 %v1627_v29  ;;  %714 = vmatprep.mubr.bf16.mxu1 %v1629_v30 }
  0x59   :  { %587 = vmatmul.mubr.bf16.gmra.mrb[12].mxu0 %v1631_v31  ;;  %715 = vmatmul.mubr.bf16.gmra.mrb[12].mxu1 %v1632_v32 }
  0x5a   :  { %594 = vmatprep.mubr.bf16.mxu0 %v1633_v33  ;;  %722 = vmatprep.mubr.bf16.mxu1 %v1635_v34 }
  0x61   :  { %595 = vmatmul.mubr.bf16.gmra.mrb[16].mxu0 %v1637_v35  ;;  %723 = vmatmul.mubr.bf16.gmra.mrb[16].mxu1 %v1638_v36 }
  0x62   :  { %602 = vmatprep.mubr.bf16.mxu0 %v1639_v37  ;;  %730 = vmatprep.mubr.bf16.mxu1 %v1641_v38 }
  0x69   :  { %603 = vmatmul.mubr.bf16.gmra.mrb[20].mxu0 %v1643_v39  ;;  %731 = vmatmul.mubr.bf16.gmra.mrb[20].mxu1 %v1644_v40 }
  0x6a   :  { %610 = vmatprep.mubr.bf16.mxu0 %v1645_v41  ;;  %738 = vmatprep.mubr.bf16.mxu1 %v1647_v42 }
  0x71   :  { %611 = vmatmul.mubr.bf16.gmra.mrb[24].mxu0 %v1649_v43  ;;  %739 = vmatmul.mubr.bf16.gmra.mrb[24].mxu1 %v1650_v44 }
  0x72   :  { %618 = vmatprep.mubr.bf16.mxu0 %v1651_v45  ;;  %746 = vmatprep.mubr.bf16.mxu1 %v1653_v46 }
  0x79   :  { %619 = vmatmul.mubr.bf16.gmra.mrb[28].mxu0 %v1655_v47  ;;  %747 = vmatmul.mubr.bf16.gmra.mrb[28].mxu1 %v1656_v48 }
  0x7a   :  { %626 = vmatprep.mubr.bf16.mxu0 %v1657_v49  ;;  %754 = vmatprep.mubr.bf16.mxu1 %v1659_v50 }
  0x81   :  { %627 = vmatmul.mubr.bf16.gmra.mrb[32].mxu0 %v1661_v51  ;;  %755 = vmatmul.mubr.bf16.gmra.mrb[32].mxu1 %v1662_v52 }
  0x82   :  { %634 = vmatprep.mubr.bf16.mxu0 %v1663_v53  ;;  %762 = vmatprep.mubr.bf16.mxu1 %v1665_v54 }
  0x89   :  { %635 = vmatmul.mubr.bf16.gmra.mrb[36].mxu0 %v1667_v55  ;;  %763 = vmatmul.mubr.bf16.gmra.mrb[36].mxu1 %v1668_v56 }
  0x8a   :  { %642 = vmatprep.mubr.bf16.mxu0 %v1669_v57  ;;  %770 = vmatprep.mubr.bf16.mxu1 %v1671_v58 }
  0x91   :  { %643 = vmatmul.mubr.bf16.gmra.mrb[40].mxu0 %v1673_v59  ;;  %771 = vmatmul.mubr.bf16.gmra.mrb[40].mxu1 %v1674_v60 }
  0x92   :  { %650 = vmatprep.mubr.bf16.mxu0 %v1675_v61  ;;  %778 = vmatprep.mubr.bf16.mxu1 %v1677_v62 }
  0x99   :  { %651 = vmatmul.mubr.bf16.gmra.mrb[44].mxu0 %v1679_v63  ;;  %779 = vmatmul.mubr.bf16.gmra.mrb[44].mxu1 %v1680_v0 }
  0x9a   :  { %658 = vmatprep.mubr.bf16.mxu0 %v1681_v1  ;;  %786 = vmatprep.mubr.bf16.mxu1 %v1683_v2 }
  0xa1   :  { %659 = vmatmul.mubr.bf16.gmra.mrb[48].mxu0 %v1685_v3  ;;  %787 = vmatmul.mubr.bf16.gmra.mrb[48].mxu1 %v1686_v4 }
  0xa2   :  { %666 = vmatprep.mubr.bf16.mxu0 %v1687_v5  ;;  %794 = vmatprep.mubr.bf16.mxu1 %v1689_v6 }
  0xa9   :  { %667 = vmatmul.mubr.bf16.gmra.mrb[52].mxu0 %v1691_v7  ;;  %795 = vmatmul.mubr.bf16.gmra.mrb[52].mxu1 %v1692_v8 }
  0xaa   :  { %674 = vmatprep.mubr.bf16.mxu0 %v1693_v9  ;;  %802 = vmatprep.mubr.bf16.mxu1 %v1695_v10 }
  0xb1   :  { %675 = vmatmul.mubr.bf16.gmra.mrb[56].mxu0 %v1697_v11  ;;  %803 = vmatmul.mubr.bf16.gmra.mrb[56].mxu1 %v1698_v12 }
  0xb2   :  { %682 = vmatprep.mubr.bf16.mxu0 %v1699_v13  ;;  %810 = vmatprep.mubr.bf16.mxu1 %v1701_v14 }
  0xb9   :  { %683 = vmatmul.mubr.bf16.gmra.mrb[60].mxu0 %v1703_v15  ;;  %811 = vmatmul.mubr.bf16.gmra.mrb[60].mxu1 %v1704_v16 }
 0x114   :  { %v564_v18 = vpop.f32.mrb[0].mxu0  ;;  %v692_v20 = vpop.f32.mrb[0].mxu1 }
 0x115   :  { %v826_v21 = vmul.f32 %v2006_v17, %v564_v18  ;;  %v858_v22 = vmul.f32 %v2006_v17, %v692_v20  ;;  %v566_v23 = vpop.f32.mrb[1].mxu0  ;;  %v694_v24 = vpop.f32.mrb[1].mxu1 }
 0x116   :  { %v567_v25 = vpop.f32.mrb[2].mxu0  ;;  %v695_v26 = vpop.f32.mrb[2].mxu1 }
 0x117   :  { %v897_v27 = vadd.f32 %v2011_v19, %v826_v21  ;;  %v929_v28 = vadd.f32 %v2011_v19, %v858_v22  ;;  %v827_v29 = vmul.f32 %v2006_v17, %v567_v25  ;;  %v859_v30 = vmul.f32 %v2006_v17, %v695_v26  ;;  %v569_v31 = vpop.f32.mrb[3].mxu0  ;;  %v697_v32 = vpop.f32.mrb[3].mxu1 }
 0x119   :  { %v961_v33 = vmax.f32 %v897_v27, 0.0  ;;  %v993_v34 = vmax.f32 %v929_v28, 0.0  ;;  %v898_v35 = vadd.f32 %v2011_v19, %v827_v29  ;;  %v930_v36 = vadd.f32 %v2011_v19, %v859_v30 }
 0x11b   :  { %v1496_v37 = vpack.c.bf16 %v961_v33, %v961_v33  ;;  %v1528_v38 = vpack.c.bf16 %v993_v34, %v993_v34  ;;  %v962_v39 = vmax.f32 %v898_v35, 0.0  ;;  %v994_v40 = vmax.f32 %v930_v36, 0.0 }
 0x11c   :  { %v572_v41 = vpop.f32.mrb[4].mxu0  ;;  %v700_v42 = vpop.f32.mrb[4].mxu1 }
 0x11d   :  { %1282 = vst.msk [vmem:[%s2401_s4] sm:$0xf] %vm1281_vm0, %v1496_v37  ;;  %1314 = vst.msk [vmem:[%s2401_s4 + $0x80] sm:$0xf] %vm1281_vm0, %v1528_v38  ;;  %v1497_v43 = vpack.c.bf16 %v962_v39, %v962_v39  ;;  %v1529_v44 = vpack.c.bf16 %v994_v40, %v994_v40  ;;  %v828_v45 = vmul.f32 %v2006_v17, %v572_v41  ;;  %v574_v47 = vpop.f32.mrb[5].mxu0  ;;  %v702_v48 = vpop.f32.mrb[5].mxu1 }
 0x11e   :  { %v860_v46 = vmul.f32 %v2006_v17, %v700_v42  ;;  %v575_v49 = vpop.f32.mrb[6].mxu0  ;;  %v703_v50 = vpop.f32.mrb[6].mxu1 }
 0x11f   :  { %1283 = vst.msk [vmem:[%s2401_s4 + $0x4] sm:$0xf] %vm1281_vm0, %v1497_v43  ;;  %1315 = vst.msk [vmem:[%s2401_s4 + $0x84] sm:$0xf] %vm1281_vm0, %v1529_v44  ;;  %v899_v51 = vadd.f32 %v2011_v19, %v828_v45  ;;  %v829_v53 = vmul.f32 %v2006_v17, %v575_v49  ;;  %v861_v54 = vmul.f32 %v2006_v17, %v703_v50  ;;  %v577_v55 = vpop.f32.mrb[7].mxu0  ;;  %v705_v56 = vpop.f32.mrb[7].mxu1 }
 0x120   :  { %v931_v52 = vadd.f32 %v2011_v19, %v860_v46 }
 0x121   :  { %v963_v57 = vmax.f32 %v899_v51, 0.0  ;;  %v900_v59 = vadd.f32 %v2011_v19, %v829_v53  ;;  %v932_v60 = vadd.f32 %v2011_v19, %v861_v54 }
 0x122   :  { %v995_v58 = vmax.f32 %v931_v52, 0.0 }
 0x123   :  { %v1498_v61 = vpack.c.bf16 %v963_v57, %v963_v57  ;;  %v964_v63 = vmax.f32 %v900_v59, 0.0  ;;  %v996_v0 = vmax.f32 %v932_v60, 0.0 }
 0x124   :  { %v1530_v62 = vpack.c.bf16 %v995_v58, %v995_v58  ;;  %v580_v1 = vpop.f32.mrb[8].mxu0  ;;  %v708_v2 = vpop.f32.mrb[8].mxu1 }
 0x125   :  { %1284 = vst.msk [vmem:[%s2401_s4 + $0x8] sm:$0xf] %vm1281_vm0, %v1498_v61  ;;  %v1499_v3 = vpack.c.bf16 %v964_v63, %v964_v63  ;;  %v1531_v4 = vpack.c.bf16 %v996_v0, %v996_v0  ;;  %v830_v5 = vmul.f32 %v2006_v17, %v580_v1  ;;  %v862_v6 = vmul.f32 %v2006_v17, %v708_v2  ;;  %v582_v7 = vpop.f32.mrb[9].mxu0  ;;  %v710_v8 = vpop.f32.mrb[9].mxu1 }
 0x126   :  { %1316 = vst.msk [vmem:[%s2401_s4 + $0x88] sm:$0xf] %vm1281_vm0, %v1530_v62  ;;  %v583_v9 = vpop.f32.mrb[10].mxu0  ;;  %v711_v10 = vpop.f32.mrb[10].mxu1 }
 0x127   :  { %1285 = vst.msk [vmem:[%s2401_s4 + $0xc] sm:$0xf] %vm1281_vm0, %v1499_v3  ;;  %1317 = vst.msk [vmem:[%s2401_s4 + $0x8c] sm:$0xf] %vm1281_vm0, %v1531_v4  ;;  %v901_v11 = vadd.f32 %v2011_v19, %v830_v5  ;;  %v933_v12 = vadd.f32 %v2011_v19, %v862_v6  ;;  %v831_v13 = vmul.f32 %v2006_v17, %v583_v9  ;;  %v585_v15 = vpop.f32.mrb[11].mxu0  ;;  %v713_v16 = vpop.f32.mrb[11].mxu1 }
 0x128   :  { %v863_v14 = vmul.f32 %v2006_v17, %v711_v10 }
 0x129   :  { %v965_v18 = vmax.f32 %v901_v11, 0.0  ;;  %v997_v20 = vmax.f32 %v933_v12, 0.0  ;;  %v902_v21 = vadd.f32 %v2011_v19, %v831_v13 }
 0x12a   :  { %v934_v22 = vadd.f32 %v2011_v19, %v863_v14 }
 0x12b   :  { %v1500_v23 = vpack.c.bf16 %v965_v18, %v965_v18  ;;  %v1532_v24 = vpack.c.bf16 %v997_v20, %v997_v20  ;;  %v966_v25 = vmax.f32 %v902_v21, 0.0 }
 0x12c   :  { %v998_v26 = vmax.f32 %v934_v22, 0.0  ;;  %v588_v27 = vpop.f32.mrb[12].mxu0  ;;  %v716_v28 = vpop.f32.mrb[12].mxu1 }
 0x12d   :  { %1286 = vst.msk [vmem:[%s2401_s4 + $0x10] sm:$0xf] %vm1281_vm0, %v1500_v23  ;;  %1318 = vst.msk [vmem:[%s2401_s4 + $0x90] sm:$0xf] %vm1281_vm0, %v1532_v24  ;;  %v1501_v29 = vpack.c.bf16 %v966_v25, %v966_v25  ;;  %v832_v31 = vmul.f32 %v2006_v17, %v588_v27  ;;  %v864_v32 = vmul.f32 %v2006_v17, %v716_v28  ;;  %v590_v33 = vpop.f32.mrb[13].mxu0  ;;  %v718_v34 = vpop.f32.mrb[13].mxu1 }
 0x12e   :  { %v1533_v30 = vpack.c.bf16 %v998_v26, %v998_v26  ;;  %v591_v35 = vpop.f32.mrb[14].mxu0  ;;  %v719_v36 = vpop.f32.mrb[14].mxu1 }
 0x12f   :  { %1287 = vst.msk [vmem:[%s2401_s4 + $0x14] sm:$0xf] %vm1281_vm0, %v1501_v29  ;;  %v903_v37 = vadd.f32 %v2011_v19, %v832_v31  ;;  %v935_v38 = vadd.f32 %v2011_v19, %v864_v32  ;;  %v833_v39 = vmul.f32 %v2006_v17, %v591_v35  ;;  %v865_v40 = vmul.f32 %v2006_v17, %v719_v36  ;;  %v593_v41 = vpop.f32.mrb[15].mxu0  ;;  %v721_v42 = vpop.f32.mrb[15].mxu1 }
 0x130   :  { %1319 = vst.msk [vmem:[%s2401_s4 + $0x94] sm:$0xf] %vm1281_vm0, %v1533_v30 }
 0x131   :  { %v967_v43 = vmax.f32 %v903_v37, 0.0  ;;  %v999_v44 = vmax.f32 %v935_v38, 0.0  ;;  %v904_v45 = vadd.f32 %v2011_v19, %v833_v39  ;;  %v936_v46 = vadd.f32 %v2011_v19, %v865_v40 }
 0x133   :  { %v1502_v47 = vpack.c.bf16 %v967_v43, %v967_v43  ;;  %v1534_v48 = vpack.c.bf16 %v999_v44, %v999_v44  ;;  %v968_v49 = vmax.f32 %v904_v45, 0.0  ;;  %v1000_v50 = vmax.f32 %v936_v46, 0.0 }
 0x134   :  { %v596_v51 = vpop.f32.mrb[16].mxu0  ;;  %v724_v52 = vpop.f32.mrb[16].mxu1 }
 0x135   :  { %1288 = vst.msk [vmem:[%s2401_s4 + $0x18] sm:$0xf] %vm1281_vm0, %v1502_v47  ;;  %1320 = vst.msk [vmem:[%s2401_s4 + $0x98] sm:$0xf] %vm1281_vm0, %v1534_v48  ;;  %v1503_v53 = vpack.c.bf16 %v968_v49, %v968_v49  ;;  %v1535_v54 = vpack.c.bf16 %v1000_v50, %v1000_v50  ;;  %v834_v55 = vmul.f32 %v2006_v17, %v596_v51  ;;  %v598_v57 = vpop.f32.mrb[17].mxu0  ;;  %v726_v58 = vpop.f32.mrb[17].mxu1 }
 0x136   :  { %v866_v56 = vmul.f32 %v2006_v17, %v724_v52  ;;  %v599_v59 = vpop.f32.mrb[18].mxu0  ;;  %v727_v60 = vpop.f32.mrb[18].mxu1 }
 0x137   :  { %1289 = vst.msk [vmem:[%s2401_s4 + $0x1c] sm:$0xf] %vm1281_vm0, %v1503_v53  ;;  %1321 = vst.msk [vmem:[%s2401_s4 + $0x9c] sm:$0xf] %vm1281_vm0, %v1535_v54  ;;  %v905_v61 = vadd.f32 %v2011_v19, %v834_v55  ;;  %v835_v63 = vmul.f32 %v2006_v17, %v599_v59  ;;  %v867_v0 = vmul.f32 %v2006_v17, %v727_v60  ;;  %v601_v1 = vpop.f32.mrb[19].mxu0  ;;  %v729_v2 = vpop.f32.mrb[19].mxu1 }
 0x138   :  { %v937_v62 = vadd.f32 %v2011_v19, %v866_v56 }
 0x139   :  { %v969_v3 = vmax.f32 %v905_v61, 0.0  ;;  %v906_v5 = vadd.f32 %v2011_v19, %v835_v63  ;;  %v938_v6 = vadd.f32 %v2011_v19, %v867_v0 }
 0x13a   :  { %v1001_v4 = vmax.f32 %v937_v62, 0.0 }
 0x13b   :  { %v1504_v7 = vpack.c.bf16 %v969_v3, %v969_v3  ;;  %v970_v9 = vmax.f32 %v906_v5, 0.0  ;;  %v1002_v10 = vmax.f32 %v938_v6, 0.0 }
 0x13c   :  { %v1536_v8 = vpack.c.bf16 %v1001_v4, %v1001_v4  ;;  %v604_v11 = vpop.f32.mrb[20].mxu0  ;;  %v732_v12 = vpop.f32.mrb[20].mxu1 }
 0x13d   :  { %1290 = vst.msk [vmem:[%s2401_s4 + $0x20] sm:$0xf] %vm1281_vm0, %v1504_v7  ;;  %v1505_v13 = vpack.c.bf16 %v970_v9, %v970_v9  ;;  %v1537_v14 = vpack.c.bf16 %v1002_v10, %v1002_v10  ;;  %v836_v15 = vmul.f32 %v2006_v17, %v604_v11  ;;  %v868_v16 = vmul.f32 %v2006_v17, %v732_v12  ;;  %v606_v18 = vpop.f32.mrb[21].mxu0  ;;  %v734_v20 = vpop.f32.mrb[21].mxu1 }
 0x13e   :  { %1322 = vst.msk [vmem:[%s2401_s4 + $0xa0] sm:$0xf] %vm1281_vm0, %v1536_v8  ;;  %v607_v21 = vpop.f32.mrb[22].mxu0  ;;  %v735_v22 = vpop.f32.mrb[22].mxu1 }
 0x13f   :  { %1291 = vst.msk [vmem:[%s2401_s4 + $0x24] sm:$0xf] %vm1281_vm0, %v1505_v13  ;;  %1323 = vst.msk [vmem:[%s2401_s4 + $0xa4] sm:$0xf] %vm1281_vm0, %v1537_v14  ;;  %v907_v23 = vadd.f32 %v2011_v19, %v836_v15  ;;  %v939_v24 = vadd.f32 %v2011_v19, %v868_v16  ;;  %v837_v25 = vmul.f32 %v2006_v17, %v607_v21  ;;  %v609_v27 = vpop.f32.mrb[23].mxu0  ;;  %v737_v28 = vpop.f32.mrb[23].mxu1 }
 0x140   :  { %v869_v26 = vmul.f32 %v2006_v17, %v735_v22 }
 0x141   :  { %v971_v29 = vmax.f32 %v907_v23, 0.0  ;;  %v1003_v30 = vmax.f32 %v939_v24, 0.0  ;;  %v908_v31 = vadd.f32 %v2011_v19, %v837_v25 }
 0x142   :  { %v940_v32 = vadd.f32 %v2011_v19, %v869_v26 }
 0x143   :  { %v1506_v33 = vpack.c.bf16 %v971_v29, %v971_v29  ;;  %v1538_v34 = vpack.c.bf16 %v1003_v30, %v1003_v30  ;;  %v972_v35 = vmax.f32 %v908_v31, 0.0 }
 0x144   :  { %v1004_v36 = vmax.f32 %v940_v32, 0.0  ;;  %v612_v37 = vpop.f32.mrb[24].mxu0  ;;  %v740_v38 = vpop.f32.mrb[24].mxu1 }
 0x145   :  { %1292 = vst.msk [vmem:[%s2401_s4 + $0x28] sm:$0xf] %vm1281_vm0, %v1506_v33  ;;  %1324 = vst.msk [vmem:[%s2401_s4 + $0xa8] sm:$0xf] %vm1281_vm0, %v1538_v34  ;;  %v1507_v39 = vpack.c.bf16 %v972_v35, %v972_v35  ;;  %v838_v41 = vmul.f32 %v2006_v17, %v612_v37  ;;  %v870_v42 = vmul.f32 %v2006_v17, %v740_v38  ;;  %v614_v43 = vpop.f32.mrb[25].mxu0  ;;  %v742_v44 = vpop.f32.mrb[25].mxu1 }
 0x146   :  { %v1539_v40 = vpack.c.bf16 %v1004_v36, %v1004_v36  ;;  %v615_v45 = vpop.f32.mrb[26].mxu0  ;;  %v743_v46 = vpop.f32.mrb[26].mxu1 }
 0x147   :  { %1293 = vst.msk [vmem:[%s2401_s4 + $0x2c] sm:$0xf] %vm1281_vm0, %v1507_v39  ;;  %v909_v47 = vadd.f32 %v2011_v19, %v838_v41  ;;  %v941_v48 = vadd.f32 %v2011_v19, %v870_v42  ;;  %v839_v49 = vmul.f32 %v2006_v17, %v615_v45  ;;  %v871_v50 = vmul.f32 %v2006_v17, %v743_v46  ;;  %v617_v51 = vpop.f32.mrb[27].mxu0  ;;  %v745_v52 = vpop.f32.mrb[27].mxu1 }
 0x148   :  { %1325 = vst.msk [vmem:[%s2401_s4 + $0xac] sm:$0xf] %vm1281_vm0, %v1539_v40 }
 0x149   :  { %v973_v53 = vmax.f32 %v909_v47, 0.0  ;;  %v1005_v54 = vmax.f32 %v941_v48, 0.0  ;;  %v910_v55 = vadd.f32 %v2011_v19, %v839_v49  ;;  %v942_v56 = vadd.f32 %v2011_v19, %v871_v50 }
 0x14b   :  { %v1508_v57 = vpack.c.bf16 %v973_v53, %v973_v53  ;;  %v1540_v58 = vpack.c.bf16 %v1005_v54, %v1005_v54  ;;  %v974_v59 = vmax.f32 %v910_v55, 0.0  ;;  %v1006_v60 = vmax.f32 %v942_v56, 0.0 }
 0x14c   :  { %v620_v61 = vpop.f32.mrb[28].mxu0  ;;  %v748_v62 = vpop.f32.mrb[28].mxu1 }
 0x14d   :  { %1294 = vst.msk [vmem:[%s2401_s4 + $0x30] sm:$0xf] %vm1281_vm0, %v1508_v57  ;;  %1326 = vst.msk [vmem:[%s2401_s4 + $0xb0] sm:$0xf] %vm1281_vm0, %v1540_v58  ;;  %v1509_v63 = vpack.c.bf16 %v974_v59, %v974_v59  ;;  %v1541_v0 = vpack.c.bf16 %v1006_v60, %v1006_v60  ;;  %v840_v1 = vmul.f32 %v2006_v17, %v620_v61  ;;  %v622_v3 = vpop.f32.mrb[29].mxu0  ;;  %v750_v4 = vpop.f32.mrb[29].mxu1 }
 0x14e   :  { %v872_v2 = vmul.f32 %v2006_v17, %v748_v62  ;;  %v623_v5 = vpop.f32.mrb[30].mxu0  ;;  %v751_v6 = vpop.f32.mrb[30].mxu1 }
 0x14f   :  { %1295 = vst.msk [vmem:[%s2401_s4 + $0x34] sm:$0xf] %vm1281_vm0, %v1509_v63  ;;  %1327 = vst.msk [vmem:[%s2401_s4 + $0xb4] sm:$0xf] %vm1281_vm0, %v1541_v0  ;;  %v911_v7 = vadd.f32 %v2011_v19, %v840_v1  ;;  %v841_v9 = vmul.f32 %v2006_v17, %v623_v5  ;;  %v873_v10 = vmul.f32 %v2006_v17, %v751_v6  ;;  %v625_v11 = vpop.f32.mrb[31].mxu0  ;;  %v753_v12 = vpop.f32.mrb[31].mxu1 }
 0x150   :  { %v943_v8 = vadd.f32 %v2011_v19, %v872_v2 }
 0x151   :  { %v975_v13 = vmax.f32 %v911_v7, 0.0  ;;  %v912_v15 = vadd.f32 %v2011_v19, %v841_v9  ;;  %v944_v16 = vadd.f32 %v2011_v19, %v873_v10 }
 0x152   :  { %v1007_v14 = vmax.f32 %v943_v8, 0.0 }
 0x153   :  { %v1510_v18 = vpack.c.bf16 %v975_v13, %v975_v13  ;;  %v976_v21 = vmax.f32 %v912_v15, 0.0  ;;  %v1008_v22 = vmax.f32 %v944_v16, 0.0 }
 0x154   :  { %v1542_v20 = vpack.c.bf16 %v1007_v14, %v1007_v14  ;;  %v628_v23 = vpop.f32.mrb[32].mxu0  ;;  %v756_v24 = vpop.f32.mrb[32].mxu1 }
 0x155   :  { %1296 = vst.msk [vmem:[%s2401_s4 + $0x38] sm:$0xf] %vm1281_vm0, %v1510_v18  ;;  %v1511_v25 = vpack.c.bf16 %v976_v21, %v976_v21  ;;  %v1543_v26 = vpack.c.bf16 %v1008_v22, %v1008_v22  ;;  %v842_v27 = vmul.f32 %v2006_v17, %v628_v23  ;;  %v874_v28 = vmul.f32 %v2006_v17, %v756_v24  ;;  %v630_v29 = vpop.f32.mrb[33].mxu0  ;;  %v758_v30 = vpop.f32.mrb[33].mxu1 }
 0x156   :  { %1328 = vst.msk [vmem:[%s2401_s4 + $0xb8] sm:$0xf] %vm1281_vm0, %v1542_v20  ;;  %v631_v31 = vpop.f32.mrb[34].mxu0  ;;  %v759_v32 = vpop.f32.mrb[34].mxu1 }
 0x157   :  { %1297 = vst.msk [vmem:[%s2401_s4 + $0x3c] sm:$0xf] %vm1281_vm0, %v1511_v25  ;;  %1329 = vst.msk [vmem:[%s2401_s4 + $0xbc] sm:$0xf] %vm1281_vm0, %v1543_v26  ;;  %v913_v33 = vadd.f32 %v2011_v19, %v842_v27  ;;  %v945_v34 = vadd.f32 %v2011_v19, %v874_v28  ;;  %v843_v35 = vmul.f32 %v2006_v17, %v631_v31  ;;  %v633_v37 = vpop.f32.mrb[35].mxu0  ;;  %v761_v38 = vpop.f32.mrb[35].mxu1 }
 0x158   :  { %v875_v36 = vmul.f32 %v2006_v17, %v759_v32 }
 0x159   :  { %v977_v39 = vmax.f32 %v913_v33, 0.0  ;;  %v1009_v40 = vmax.f32 %v945_v34, 0.0  ;;  %v914_v41 = vadd.f32 %v2011_v19, %v843_v35 }
 0x15a   :  { %v946_v42 = vadd.f32 %v2011_v19, %v875_v36 }
 0x15b   :  { %v1512_v43 = vpack.c.bf16 %v977_v39, %v977_v39  ;;  %v1544_v44 = vpack.c.bf16 %v1009_v40, %v1009_v40  ;;  %v978_v45 = vmax.f32 %v914_v41, 0.0 }
 0x15c   :  { %v1010_v46 = vmax.f32 %v946_v42, 0.0  ;;  %v636_v47 = vpop.f32.mrb[36].mxu0  ;;  %v764_v48 = vpop.f32.mrb[36].mxu1 }
 0x15d   :  { %1298 = vst.msk [vmem:[%s2401_s4 + $0x40] sm:$0xf] %vm1281_vm0, %v1512_v43  ;;  %1330 = vst.msk [vmem:[%s2401_s4 + $0xc0] sm:$0xf] %vm1281_vm0, %v1544_v44  ;;  %v1513_v49 = vpack.c.bf16 %v978_v45, %v978_v45  ;;  %v844_v51 = vmul.f32 %v2006_v17, %v636_v47  ;;  %v876_v52 = vmul.f32 %v2006_v17, %v764_v48  ;;  %v638_v53 = vpop.f32.mrb[37].mxu0  ;;  %v766_v54 = vpop.f32.mrb[37].mxu1 }
 0x15e   :  { %v1545_v50 = vpack.c.bf16 %v1010_v46, %v1010_v46  ;;  %v639_v55 = vpop.f32.mrb[38].mxu0  ;;  %v767_v56 = vpop.f32.mrb[38].mxu1 }
 0x15f   :  { %1299 = vst.msk [vmem:[%s2401_s4 + $0x44] sm:$0xf] %vm1281_vm0, %v1513_v49  ;;  %v915_v57 = vadd.f32 %v2011_v19, %v844_v51  ;;  %v947_v58 = vadd.f32 %v2011_v19, %v876_v52  ;;  %v845_v59 = vmul.f32 %v2006_v17, %v639_v55  ;;  %v877_v60 = vmul.f32 %v2006_v17, %v767_v56  ;;  %v641_v61 = vpop.f32.mrb[39].mxu0  ;;  %v769_v62 = vpop.f32.mrb[39].mxu1 }
 0x160   :  { %1331 = vst.msk [vmem:[%s2401_s4 + $0xc4] sm:$0xf] %vm1281_vm0, %v1545_v50 }
 0x161   :  { %v979_v63 = vmax.f32 %v915_v57, 0.0  ;;  %v1011_v0 = vmax.f32 %v947_v58, 0.0  ;;  %v916_v1 = vadd.f32 %v2011_v19, %v845_v59  ;;  %v948_v2 = vadd.f32 %v2011_v19, %v877_v60 }
 0x163   :  { %v1514_v3 = vpack.c.bf16 %v979_v63, %v979_v63  ;;  %v1546_v4 = vpack.c.bf16 %v1011_v0, %v1011_v0  ;;  %v980_v5 = vmax.f32 %v916_v1, 0.0  ;;  %v1012_v6 = vmax.f32 %v948_v2, 0.0 }
 0x164   :  { %v644_v7 = vpop.f32.mrb[40].mxu0  ;;  %v772_v8 = vpop.f32.mrb[40].mxu1 }
 0x165   :  { %1300 = vst.msk [vmem:[%s2401_s4 + $0x48] sm:$0xf] %vm1281_vm0, %v1514_v3  ;;  %1332 = vst.msk [vmem:[%s2401_s4 + $0xc8] sm:$0xf] %vm1281_vm0, %v1546_v4  ;;  %v1515_v9 = vpack.c.bf16 %v980_v5, %v980_v5  ;;  %v1547_v10 = vpack.c.bf16 %v1012_v6, %v1012_v6  ;;  %v846_v11 = vmul.f32 %v2006_v17, %v644_v7  ;;  %v646_v13 = vpop.f32.mrb[41].mxu0  ;;  %v774_v14 = vpop.f32.mrb[41].mxu1 }
 0x166   :  { %v878_v12 = vmul.f32 %v2006_v17, %v772_v8  ;;  %v647_v15 = vpop.f32.mrb[42].mxu0  ;;  %v775_v16 = vpop.f32.mrb[42].mxu1 }
 0x167   :  { %1301 = vst.msk [vmem:[%s2401_s4 + $0x4c] sm:$0xf] %vm1281_vm0, %v1515_v9  ;;  %1333 = vst.msk [vmem:[%s2401_s4 + $0xcc] sm:$0xf] %vm1281_vm0, %v1547_v10  ;;  %v917_v18 = vadd.f32 %v2011_v19, %v846_v11  ;;  %v847_v21 = vmul.f32 %v2006_v17, %v647_v15  ;;  %v879_v22 = vmul.f32 %v2006_v17, %v775_v16  ;;  %v649_v23 = vpop.f32.mrb[43].mxu0  ;;  %v777_v24 = vpop.f32.mrb[43].mxu1 }
 0x168   :  { %v949_v20 = vadd.f32 %v2011_v19, %v878_v12 }
 0x169   :  { %v981_v25 = vmax.f32 %v917_v18, 0.0  ;;  %v918_v27 = vadd.f32 %v2011_v19, %v847_v21  ;;  %v950_v28 = vadd.f32 %v2011_v19, %v879_v22 }
 0x16a   :  { %v1013_v26 = vmax.f32 %v949_v20, 0.0 }
 0x16b   :  { %v1516_v29 = vpack.c.bf16 %v981_v25, %v981_v25  ;;  %v982_v31 = vmax.f32 %v918_v27, 0.0  ;;  %v1014_v32 = vmax.f32 %v950_v28, 0.0 }
 0x16c   :  { %v1548_v30 = vpack.c.bf16 %v1013_v26, %v1013_v26  ;;  %v652_v33 = vpop.f32.mrb[44].mxu0  ;;  %v780_v34 = vpop.f32.mrb[44].mxu1 }
 0x16d   :  { %1302 = vst.msk [vmem:[%s2401_s4 + $0x50] sm:$0xf] %vm1281_vm0, %v1516_v29  ;;  %v1517_v35 = vpack.c.bf16 %v982_v31, %v982_v31  ;;  %v1549_v36 = vpack.c.bf16 %v1014_v32, %v1014_v32  ;;  %v848_v37 = vmul.f32 %v2006_v17, %v652_v33  ;;  %v880_v38 = vmul.f32 %v2006_v17, %v780_v34  ;;  %v654_v39 = vpop.f32.mrb[45].mxu0  ;;  %v782_v40 = vpop.f32.mrb[45].mxu1 }
 0x16e   :  { %1334 = vst.msk [vmem:[%s2401_s4 + $0xd0] sm:$0xf] %vm1281_vm0, %v1548_v30  ;;  %v655_v41 = vpop.f32.mrb[46].mxu0  ;;  %v783_v42 = vpop.f32.mrb[46].mxu1 }
 0x16f   :  { %1303 = vst.msk [vmem:[%s2401_s4 + $0x54] sm:$0xf] %vm1281_vm0, %v1517_v35  ;;  %1335 = vst.msk [vmem:[%s2401_s4 + $0xd4] sm:$0xf] %vm1281_vm0, %v1549_v36  ;;  %v919_v43 = vadd.f32 %v2011_v19, %v848_v37  ;;  %v951_v44 = vadd.f32 %v2011_v19, %v880_v38  ;;  %v849_v45 = vmul.f32 %v2006_v17, %v655_v41  ;;  %v657_v47 = vpop.f32.mrb[47].mxu0  ;;  %v785_v48 = vpop.f32.mrb[47].mxu1 }
 0x170   :  { %v881_v46 = vmul.f32 %v2006_v17, %v783_v42 }
 0x171   :  { %v983_v49 = vmax.f32 %v919_v43, 0.0  ;;  %v1015_v50 = vmax.f32 %v951_v44, 0.0  ;;  %v920_v51 = vadd.f32 %v2011_v19, %v849_v45 }
 0x172   :  { %v952_v52 = vadd.f32 %v2011_v19, %v881_v46 }
 0x173   :  { %v1518_v53 = vpack.c.bf16 %v983_v49, %v983_v49  ;;  %v1550_v54 = vpack.c.bf16 %v1015_v50, %v1015_v50  ;;  %v984_v55 = vmax.f32 %v920_v51, 0.0 }
 0x174   :  { %v1016_v56 = vmax.f32 %v952_v52, 0.0  ;;  %v660_v57 = vpop.f32.mrb[48].mxu0  ;;  %v788_v58 = vpop.f32.mrb[48].mxu1 }
 0x175   :  { %1304 = vst.msk [vmem:[%s2401_s4 + $0x58] sm:$0xf] %vm1281_vm0, %v1518_v53  ;;  %1336 = vst.msk [vmem:[%s2401_s4 + $0xd8] sm:$0xf] %vm1281_vm0, %v1550_v54  ;;  %v1519_v59 = vpack.c.bf16 %v984_v55, %v984_v55  ;;  %v850_v61 = vmul.f32 %v2006_v17, %v660_v57  ;;  %v882_v62 = vmul.f32 %v2006_v17, %v788_v58  ;;  %v662_v63 = vpop.f32.mrb[49].mxu0  ;;  %v790_v0 = vpop.f32.mrb[49].mxu1 }
 0x176   :  { %v1551_v60 = vpack.c.bf16 %v1016_v56, %v1016_v56  ;;  %v663_v1 = vpop.f32.mrb[50].mxu0  ;;  %v791_v2 = vpop.f32.mrb[50].mxu1 }
 0x177   :  { %1305 = vst.msk [vmem:[%s2401_s4 + $0x5c] sm:$0xf] %vm1281_vm0, %v1519_v59  ;;  %v921_v3 = vadd.f32 %v2011_v19, %v850_v61  ;;  %v953_v4 = vadd.f32 %v2011_v19, %v882_v62  ;;  %v851_v5 = vmul.f32 %v2006_v17, %v663_v1  ;;  %v883_v6 = vmul.f32 %v2006_v17, %v791_v2  ;;  %v665_v7 = vpop.f32.mrb[51].mxu0  ;;  %v793_v8 = vpop.f32.mrb[51].mxu1 }
 0x178   :  { %1337 = vst.msk [vmem:[%s2401_s4 + $0xdc] sm:$0xf] %vm1281_vm0, %v1551_v60 }
 0x179   :  { %v985_v9 = vmax.f32 %v921_v3, 0.0  ;;  %v1017_v10 = vmax.f32 %v953_v4, 0.0  ;;  %v922_v11 = vadd.f32 %v2011_v19, %v851_v5  ;;  %v954_v12 = vadd.f32 %v2011_v19, %v883_v6 }
 0x17b   :  { %v1520_v13 = vpack.c.bf16 %v985_v9, %v985_v9  ;;  %v1552_v14 = vpack.c.bf16 %v1017_v10, %v1017_v10  ;;  %v986_v15 = vmax.f32 %v922_v11, 0.0  ;;  %v1018_v16 = vmax.f32 %v954_v12, 0.0 }
 0x17c   :  { %v668_v18 = vpop.f32.mrb[52].mxu0  ;;  %v796_v20 = vpop.f32.mrb[52].mxu1 }
 0x17d   :  { %1306 = vst.msk [vmem:[%s2401_s4 + $0x60] sm:$0xf] %vm1281_vm0, %v1520_v13  ;;  %1338 = vst.msk [vmem:[%s2401_s4 + $0xe0] sm:$0xf] %vm1281_vm0, %v1552_v14  ;;  %v1521_v21 = vpack.c.bf16 %v986_v15, %v986_v15  ;;  %v1553_v22 = vpack.c.bf16 %v1018_v16, %v1018_v16  ;;  %v852_v23 = vmul.f32 %v2006_v17, %v668_v18  ;;  %v670_v25 = vpop.f32.mrb[53].mxu0  ;;  %v798_v26 = vpop.f32.mrb[53].mxu1 }
 0x17e   :  { %v884_v24 = vmul.f32 %v2006_v17, %v796_v20  ;;  %v671_v27 = vpop.f32.mrb[54].mxu0  ;;  %v799_v28 = vpop.f32.mrb[54].mxu1 }
 0x17f   :  { %1307 = vst.msk [vmem:[%s2401_s4 + $0x64] sm:$0xf] %vm1281_vm0, %v1521_v21  ;;  %1339 = vst.msk [vmem:[%s2401_s4 + $0xe4] sm:$0xf] %vm1281_vm0, %v1553_v22  ;;  %v923_v29 = vadd.f32 %v2011_v19, %v852_v23  ;;  %v853_v31 = vmul.f32 %v2006_v17, %v671_v27  ;;  %v885_v32 = vmul.f32 %v2006_v17, %v799_v28  ;;  %v673_v33 = vpop.f32.mrb[55].mxu0  ;;  %v801_v34 = vpop.f32.mrb[55].mxu1 }
 0x180   :  { %v955_v30 = vadd.f32 %v2011_v19, %v884_v24 }
 0x181   :  { %v987_v35 = vmax.f32 %v923_v29, 0.0  ;;  %v924_v37 = vadd.f32 %v2011_v19, %v853_v31  ;;  %v956_v38 = vadd.f32 %v2011_v19, %v885_v32 }
 0x182   :  { %v1019_v36 = vmax.f32 %v955_v30, 0.0 }
 0x183   :  { %v1522_v39 = vpack.c.bf16 %v987_v35, %v987_v35  ;;  %v988_v41 = vmax.f32 %v924_v37, 0.0  ;;  %v1020_v42 = vmax.f32 %v956_v38, 0.0 }
 0x184   :  { %v1554_v40 = vpack.c.bf16 %v1019_v36, %v1019_v36  ;;  %v676_v43 = vpop.f32.mrb[56].mxu0  ;;  %v804_v44 = vpop.f32.mrb[56].mxu1 }
 0x185   :  { %1308 = vst.msk [vmem:[%s2401_s4 + $0x68] sm:$0xf] %vm1281_vm0, %v1522_v39  ;;  %v1523_v45 = vpack.c.bf16 %v988_v41, %v988_v41  ;;  %v1555_v46 = vpack.c.bf16 %v1020_v42, %v1020_v42  ;;  %v854_v47 = vmul.f32 %v2006_v17, %v676_v43  ;;  %v886_v48 = vmul.f32 %v2006_v17, %v804_v44  ;;  %v678_v49 = vpop.f32.mrb[57].mxu0  ;;  %v806_v50 = vpop.f32.mrb[57].mxu1 }
 0x186   :  { %1340 = vst.msk [vmem:[%s2401_s4 + $0xe8] sm:$0xf] %vm1281_vm0, %v1554_v40  ;;  %v679_v51 = vpop.f32.mrb[58].mxu0  ;;  %v807_v52 = vpop.f32.mrb[58].mxu1 }
 0x187   :  { %1309 = vst.msk [vmem:[%s2401_s4 + $0x6c] sm:$0xf] %vm1281_vm0, %v1523_v45  ;;  %1341 = vst.msk [vmem:[%s2401_s4 + $0xec] sm:$0xf] %vm1281_vm0, %v1555_v46  ;;  %v925_v53 = vadd.f32 %v2011_v19, %v854_v47  ;;  %v957_v54 = vadd.f32 %v2011_v19, %v886_v48  ;;  %v855_v55 = vmul.f32 %v2006_v17, %v679_v51  ;;  %v681_v57 = vpop.f32.mrb[59].mxu0  ;;  %v809_v58 = vpop.f32.mrb[59].mxu1 }
 0x188   :  { %v887_v56 = vmul.f32 %v2006_v17, %v807_v52 }
 0x189   :  { %v989_v59 = vmax.f32 %v925_v53, 0.0  ;;  %v1021_v60 = vmax.f32 %v957_v54, 0.0  ;;  %v926_v61 = vadd.f32 %v2011_v19, %v855_v55 }
 0x18a   :  { %v958_v62 = vadd.f32 %v2011_v19, %v887_v56 }
 0x18b   :  { %v1524_v63 = vpack.c.bf16 %v989_v59, %v989_v59  ;;  %v1556_v0 = vpack.c.bf16 %v1021_v60, %v1021_v60  ;;  %v990_v1 = vmax.f32 %v926_v61, 0.0 }
 0x18c   :  { %v1022_v2 = vmax.f32 %v958_v62, 0.0  ;;  %v684_v3 = vpop.f32.mrb[60].mxu0  ;;  %v812_v4 = vpop.f32.mrb[60].mxu1 }
 0x18d   :  { %1310 = vst.msk [vmem:[%s2401_s4 + $0x70] sm:$0xf] %vm1281_vm0, %v1524_v63  ;;  %1342 = vst.msk [vmem:[%s2401_s4 + $0xf0] sm:$0xf] %vm1281_vm0, %v1556_v0  ;;  %v1525_v5 = vpack.c.bf16 %v990_v1, %v990_v1  ;;  %v856_v7 = vmul.f32 %v2006_v17, %v684_v3  ;;  %v888_v8 = vmul.f32 %v2006_v17, %v812_v4  ;;  %v686_v9 = vpop.f32.mrb[61].mxu0  ;;  %v814_v10 = vpop.f32.mrb[61].mxu1 }
 0x18e   :  { %v1557_v6 = vpack.c.bf16 %v1022_v2, %v1022_v2  ;;  %v687_v11 = vpop.f32.mrb[62].mxu0  ;;  %v815_v12 = vpop.f32.mrb[62].mxu1 }
 0x18f   :  { %1311 = vst.msk [vmem:[%s2401_s4 + $0x74] sm:$0xf] %vm1281_vm0, %v1525_v5  ;;  %v927_v13 = vadd.f32 %v2011_v19, %v856_v7  ;;  %v959_v14 = vadd.f32 %v2011_v19, %v888_v8  ;;  %v857_v15 = vmul.f32 %v2006_v17, %v687_v11  ;;  %v889_v16 = vmul.f32 %v2006_v17, %v815_v12  ;;  %v689_v18 = vpop.f32.mrb[63].mxu0  ;;  %v817_v20 = vpop.f32.mrb[63].mxu1 }
 0x190   :  { %1343 = vst.msk [vmem:[%s2401_s4 + $0xf4] sm:$0xf] %vm1281_vm0, %v1557_v6 }
 0x191   :  { %v991_v21 = vmax.f32 %v927_v13, 0.0  ;;  %v1023_v22 = vmax.f32 %v959_v14, 0.0  ;;  %v928_v23 = vadd.f32 %v2011_v19, %v857_v15  ;;  %v960_v24 = vadd.f32 %v2011_v19, %v889_v16 }
 0x193   :  { %v1526_v25 = vpack.c.bf16 %v991_v21, %v991_v21  ;;  %v1558_v26 = vpack.c.bf16 %v1023_v22, %v1023_v22  ;;  %v992_v27 = vmax.f32 %v928_v23, 0.0  ;;  %v1024_v28 = vmax.f32 %v960_v24, 0.0 }
 0x195   :  { %1312 = vst.msk [vmem:[%s2401_s4 + $0x78] sm:$0xf] %vm1281_vm0, %v1526_v25  ;;  %1344 = vst.msk [vmem:[%s2401_s4 + $0xf8] sm:$0xf] %vm1281_vm0, %v1558_v26  ;;  %v1527_v17 = vpack.c.bf16 %v992_v27, %v992_v27  ;;  %v1559_v29 = vpack.c.bf16 %v1024_v28, %v1024_v28 }
 0x197   :  { %1313 = vst.msk [vmem:[%s2401_s4 + $0x7c] sm:$0xf] %vm1281_vm0, %v1527_v17  ;;  %1345 = vst.msk [vmem:[%s2401_s4 + $0xfc] sm:$0xf] %vm1281_vm0, %v1559_v29 }

// kernel: cnn_forward.6
= control target key start
LH: loop header
LB: loop body
LE: loop exit
PB: predicated region body
PF: predicated region fallthrough
CT: control target
= control target key end

     0   :  { %s785_s6 = smov 0   ;;  %s1055_s0 = inlined_call_operand.vmem [shape: bf16[8,9,9,64], index: 0, kind: input, shape index: {}]   ;;  %s1056_s1 = inlined_call_operand.vmem [shape: bf16[2,8,8,64], index: 1, kind: output, shape index: {}]  }
   0x1 LB: > { %s791_s7 = sadd.s32 4294967295, %s773_s6   ;;  %p694_p0 = scmp.ge.s32.totalorder %s773_s6, 1  ;;  %s773_s6 = sphi %s785_s6, %s11_s6  }
   0x2   : > { %p89_p1 = scmp.lt.s32.totalorder %s773_s6, 3 }
   0x4   : > { %p90_p2 = pnand %p694_p0, %p89_p1 }
   0x5   : > { %s695_s8 = sshll.u32 (!%p90_p2), %s791_s7, 2  ;;  %vm155_vm0 = vsmask.f32 (!%p90_p2), 3328  ;;  %vm156_vm1 = vsmask.f32 (!%p90_p2), 7440  ;;  %p117_p4 = scmp.lt.s32.totalorder (!%p90_p2), %s791_s7, 1 }
   0x6   : > { %93 = sbr.rel (%p90_p2) target bundleno = 100 (0x64), region = 24  ;;  %p111_p3 = scmp.lt.s32.totalorder (!%p90_p2), %s695_s8, 7  ;;  %vm815_vm2 = vmor (!%p90_p2), %vm155_vm0, %vm156_vm1  ;;  %vm626_vm3 = vcmask (!%p90_p2), 519168  }
   0xd   : > { %s1060_s8 = smov (!%p111_p3, %s695_s8), 7  ;;  %s1062_s7 = smov (!%p117_p4, %s791_s7), 1 }
   0xe   : > { %s758_s9 = smul.u32 72, %s1060_s8  ;;  %s757_s13 = sshll.u32 %s1062_s7, 5 }
   0xf   : > { %s880_s16 = scalar_lea.vmem %s1056_s1, %s757_s13 }
  0x10   : > { %s799_s12 = scalar_lea.vmem %s1055_s0, %s758_s9 }
  0x11   : > { %v122_v0 = vld [vmem:[%s799_s12] sm:$0xf]  ;;  %v147_v1 = vld [vmem:[%s799_s12 + $0x4] sm:$0x1]  ;;  %v707_v5 = vld [vmem:[%s799_s12 + $0x90] sm:$0xf] }
  0x12   : > { %v159_v2 = vshrl.u32 %v122_v0, 16  ;;  %v162_v3 = vshll.u32 %v122_v0, 16  ;;  %v168_v4 = vshll.u32 %v147_v1, 16  ;;  %v699_v6 = vld [vmem:[%s799_s12 + $0x48] sm:$0xf]  ;;  %v329_v8 = vshrl.u32 %v707_v5, 16 }
  0x13   : > { %v723_v7 = vld [vmem:[%s799_s12 + $0x94] sm:$0x1]  ;;  %v332_v9 = vshll.u32 %v707_v5, 16  ;;  %v807_v13 = vld [vmem:[%s799_s12 + $0x8] sm:$0xf]  ;;  %v139_v22 = vmax.bf16 %v699_v6, %v122_v0 }
  0x14   : > { %v161_v10 = vrot.slane %v159_v2, 4  ;;  %v164_v11 = vrot.slane %v162_v3, 5  ;;  %v338_v12 = vshll.u32 %v723_v7, 16  ;;  %v331_v14 = vrot.slane %v329_v8, 4  ;;  %v747_v16 = vld [vmem:[%s799_s12 + $0xc] sm:$0x1] }
  0x15   : > { %v334_v15 = vrot.slane %v332_v9, 5  ;;  %v170_v18 = vrot.slane %v168_v4, 5  ;;  %v499_v19 = vshrl.u32 %v807_v13, 16  ;;  %v502_v20 = vshll.u32 %v807_v13, 16  ;;  %v123_v21 = vld [vmem:[%s799_s12 + $0x8] sm:$0xf] }
  0x16   : > { %v165_v17 = vor.u32 %v164_v11, %v161_v10  ;;  %v508_v25 = vshll.u32 %v747_v16, 16  ;;  %v700_v26 = vld [vmem:[%s799_s12 + $0x50] sm:$0xf]  ;;  %v148_v27 = vld [vmem:[%s799_s12 + $0xc] sm:$0x1]  ;;  %v173_v28 = vshrl.u32 %v123_v21, 16 }
  0x17   : > { %v335_v24 = vor.u32 %v334_v15, %v331_v14  ;;  %v340_v30 = vrot.slane %v338_v12, 5  ;;  %v501_v31 = vrot.slane %v499_v19, 4  ;;  %v504_v32 = vrot.slane %v502_v20, 5  ;;  %v822_v33 = vld [vmem:[%s799_s12 + $0x98] sm:$0xf] }
  0x18   : > { %v166_v29 = vrot.slane %v165_v17, 4  ;;  %v140_v35 = vmax.bf16 %v700_v26, %v123_v21  ;;  %v175_v36 = vrot.slane %v173_v28, 4  ;;  %v176_v37 = vshll.u32 %v123_v21, 16  ;;  %v724_v41 = vld [vmem:[%s799_s12 + $0x9c] sm:$0x1] }
  0x19   : > { %v336_v34 = vrot.slane %v335_v24, 4  ;;  %v505_v39 = vor.u32 %v504_v32, %v501_v31  ;;  %v182_v40 = vshll.u32 %v148_v27, 16  ;;  %v343_v42 = vshrl.u32 %v822_v33, 16  ;;  %v830_v43 = vld [vmem:[%s799_s12 + $0x10] sm:$0xf] }
  0x1a   : > { %v171_v38 = vsel %vm815_vm2, %v166_v29, %v170_v18  ;;  %v832_v45 = vrot.slane %v508_v25, 5  ;;  %v178_v46 = vrot.slane %v176_v37, 5  ;;  %v346_v47 = vshll.u32 %v822_v33, 16  ;;  %v748_v48 = vld [vmem:[%s799_s12 + $0x14] sm:$0x1] }
  0x1b   : > { %v278_v44 = vmax.bf16 %v171_v38, %v139_v22  ;;  %v715_v49 = vld [vmem:[%s799_s12 + $0xd8] sm:$0xf]  ;;  %v506_v50 = vrot.slane %v505_v39, 4  ;;  %v184_v51 = vrot.slane %v182_v40, 5  ;;  %v345_v52 = vrot.slane %v343_v42, 4 }
  0x1c   : > { %v352_v53 = vshll.u32 %v724_v41, 16  ;;  %v179_v55 = vor.u32 %v178_v46, %v175_v36  ;;  %v348_v56 = vrot.slane %v346_v47, 5  ;;  %v513_v57 = vshrl.u32 %v830_v43, 16  ;;  %v844_v58 = vld [vmem:[%s799_s12 + $0x10] sm:$0xf] }
  0x1d   : > { %v295_v54 = vmax.bf16 %v707_v5, %v278_v44  ;;  %v341_v59 = vsel %vm815_vm2, %v336_v34, %v340_v30  ;;  %v516_v61 = vshll.u32 %v830_v43, 16  ;;  %v522_v62 = vshll.u32 %v748_v48, 16  ;;  %v149_v3 = vld [vmem:[%s799_s12 + $0x14] sm:$0x1]  ;;  %v857_v8 = vld [vmem:[%s799_s12 + $0xa0] sm:$0xf] }
  0x1e   : > { %v354_v60 = vrot.slane %v352_v53, 5  ;;  %v180_v0 = vrot.slane %v179_v55, 4  ;;  %v349_v1 = vor.u32 %v348_v56, %v345_v52  ;;  %v515_v2 = vrot.slane %v513_v57, 4  ;;  %v739_v10 = vld [vmem:[%s799_s12 + $0x50] sm:$0xf] }
  0x1f   : > { %v312_v63 = vmax.bf16 %v715_v49, %v295_v54  ;;  %v511_v4 = vsel %vm815_vm2, %v506_v50, %v832_v45  ;;  %v518_v5 = vrot.slane %v516_v61, 5  ;;  %v853_v6 = vrot.slane %v522_v62, 5  ;;  %v716_v16 = vld [vmem:[%s799_s12 + $0xe0] sm:$0xf]  ;;  %v725_v20 = vld [vmem:[%s799_s12 + $0xa4] sm:$0x1] }
  0x20   : > { %v187_v7 = vshrl.u32 %v844_v58, 16  ;;  %v185_v11 = vsel %vm815_vm2, %v180_v0, %v184_v51  ;;  %v350_v12 = vrot.slane %v349_v1, 4  ;;  %v190_v14 = vshll.u32 %v844_v58, 16  ;;  %v701_v24 = vld [vmem:[%s799_s12 + $0x58] sm:$0xf] }
  0x21   : > { %v448_v9 = vmax.bf16 %v341_v59, %v312_v63  ;;  %v279_v15 = vmax.bf16 %v185_v11, %v140_v35  ;;  %v519_v17 = vor.u32 %v518_v5, %v515_v2  ;;  %v196_v19 = vshll.u32 %v149_v3, 16  ;;  %v872_v27 = vld [vmem:[%s799_s12 + $0x18] sm:$0xf]  ;;  %v749_v36 = vld [vmem:[%s799_s12 + $0x1c] sm:$0x1] }
  0x22   : > { %v189_v18 = vrot.slane %v187_v7, 4  ;;  %v355_v22 = vsel %vm815_vm2, %v350_v12, %v354_v60  ;;  %v192_v25 = vrot.slane %v190_v14, 5  ;;  %v357_v26 = vshrl.u32 %v857_v8, 16  ;;  %v885_v40 = vld [vmem:[%s799_s12 + $0x18] sm:$0xf] }
  0x23   : > { %v465_v21 = vmax.bf16 %v807_v13, %v448_v9  ;;  %v296_v28 = vmax.bf16 %v822_v33, %v279_v15  ;;  %v520_v29 = vrot.slane %v519_v17, 4  ;;  %v198_v30 = vrot.slane %v196_v19, 5  ;;  %v892_v46 = vld [vmem:[%s799_s12 + $0x60] sm:$0xf]  ;;  %v740_v48 = vld [vmem:[%s799_s12 + $0x58] sm:$0xf] }
  0x24   : > { %v360_v31 = vshll.u32 %v857_v8, 16  ;;  %v193_v34 = vor.u32 %v192_v25, %v189_v18  ;;  %v359_v13 = vrot.slane %v357_v26, 4  ;;  %v366_v35 = vshll.u32 %v725_v20, 16  ;;  %v150_v52 = vld [vmem:[%s799_s12 + $0x1c] sm:$0x1] }
  0x25   : > { %v482_v32 = vmax.bf16 %v739_v10, %v465_v21  ;;  %v313_v37 = vmax.bf16 %v716_v16, %v296_v28  ;;  %v141_v33 = vmax.bf16 %v701_v24, %v844_v58  ;;  %v527_v39 = vshrl.u32 %v872_v27, 16  ;;  %v902_v57 = vld [vmem:[%s799_s12 + $0xa8] sm:$0xf]  ;;  %v726_v3 = vld [vmem:[%s799_s12 + $0xac] sm:$0x1] }
  0x26   : > { %v362_v38 = vrot.slane %v360_v31, 5  ;;  %v525_v42 = vsel %vm815_vm2, %v520_v29, %v853_v6  ;;  %v194_v44 = vrot.slane %v193_v34, 4  ;;  %v530_v45 = vshll.u32 %v872_v27, 16  ;;  %v717_v60 = vld [vmem:[%s799_s12 + $0xe8] sm:$0xf] }
  0x27   : > { %v618_v41 = vmax.bf16 %v511_v4, %v482_v32  ;;  %v449_v47 = vmax.bf16 %v355_v22, %v313_v37  ;;  %v529_v50 = vrot.slane %v527_v39, 4  ;;  %v536_v51 = vshll.u32 %v749_v36, 16  ;;  %v913_v7 = vld [vmem:[%s799_s12 + $0x20] sm:$0xf]  ;;  %v750_v14 = vld [vmem:[%s799_s12 + $0x24] sm:$0x1] }
  0x28   : > { %v363_v49 = vor.u32 %v362_v38, %v359_v13  ;;  %v199_v53 = vsel %vm815_vm2, %v194_v44, %v198_v30  ;;  %v368_v54 = vrot.slane %v366_v35, 5  ;;  %v532_v55 = vrot.slane %v530_v45, 5  ;;  %v921_v22 = vld [vmem:[%s799_s12 + $0x20] sm:$0xf]  ;;  %v151_v29 = vld [vmem:[%s799_s12 + $0x24] sm:$0x1] }
  0x29   : > { %627 = vst.msk [vmem:[%s880_s16] sm:$0xf] %vm626_vm3, %v618_v41  ;;  %v201_v56 = vshrl.u32 %v885_v40, 16  ;;  %v466_v58 = vmax.bf16 %v830_v43, %v449_v47  ;;  %v280_v59 = vmax.bf16 %v199_v53, %v141_v33  ;;  %v142_v62 = vmax.bf16 %v892_v46, %v885_v40  ;;  %v741_v30 = vld [vmem:[%s799_s12 + $0x60] sm:$0xf] }
  0x2a   : > { %v364_v61 = vrot.slane %v363_v49, 4  ;;  %v533_v63 = vor.u32 %v532_v55, %v529_v50  ;;  %v204_v1 = vshll.u32 %v885_v40, 16  ;;  %v210_v2 = vshll.u32 %v150_v52, 16  ;;  %v935_v38 = vld [vmem:[%s799_s12 + $0xb0] sm:$0xf] }
  0x2b   : > { %v203_v0 = vrot.slane %v201_v56, 4  ;;  %v483_v4 = vmax.bf16 %v740_v48, %v466_v58  ;;  %v297_v5 = vmax.bf16 %v857_v8, %v280_v59  ;;  %v538_v6 = vrot.slane %v536_v51, 5  ;;  %v718_v40 = vld [vmem:[%s799_s12 + $0xf0] sm:$0xf]  ;;  %v727_v48 = vld [vmem:[%s799_s12 + $0xb4] sm:$0x1] }
  0x2c   : > { %v371_v43 = vshrl.u32 %v902_v57, 16  ;;  %v369_v9 = vsel %vm815_vm2, %v364_v61, %v368_v54  ;;  %v534_v10 = vrot.slane %v533_v63, 4  ;;  %v206_v11 = vrot.slane %v204_v1, 5  ;;  %v943_v49 = vld [vmem:[%s799_s12 + $0x28] sm:$0xf] }
  0x2d   : > { %v374_v12 = vshll.u32 %v902_v57, 16  ;;  %v619_v15 = vmax.bf16 %v525_v42, %v483_v4  ;;  %v314_v16 = vmax.bf16 %v717_v60, %v297_v5  ;;  %v380_v17 = vshll.u32 %v726_v3, 16  ;;  %v703_v51 = vld [vmem:[%s799_s12 + $0x68] sm:$0xf]  ;;  %v751_v63 = vld [vmem:[%s799_s12 + $0x2c] sm:$0x1] }
  0x2e   : > { %v373_v8 = vrot.slane %v371_v43, 4  ;;  %v207_v18 = vor.u32 %v206_v11, %v203_v0  ;;  %v212_v19 = vrot.slane %v210_v2, 5  ;;  %v541_v21 = vshrl.u32 %v913_v7, 16  ;;  %v127_v4 = vld [vmem:[%s799_s12 + $0x28] sm:$0xf] }
  0x2f   : > { %v376_v20 = vrot.slane %v374_v12, 5  ;;  %628 = vst.msk [vmem:[%s880_s16 + $0x4] sm:$0xf] %vm626_vm3, %v619_v15  ;;  %v450_v24 = vmax.bf16 %v369_v9, %v314_v16  ;;  %v539_v25 = vsel %vm815_vm2, %v534_v10, %v538_v6  ;;  %v544_v26 = vshll.u32 %v913_v7, 16  ;;  %v704_v5 = vld [vmem:[%s799_s12 + $0x70] sm:$0xf] }
  0x30   : > { %v550_v28 = vshll.u32 %v750_v14, 16  ;;  %v208_v31 = vrot.slane %v207_v18, 4  ;;  %v382_v34 = vrot.slane %v380_v17, 5  ;;  %v543_v13 = vrot.slane %v541_v21, 4  ;;  %v152_v16 = vld [vmem:[%s799_s12 + $0x2c] sm:$0x1] }
  0x31   : > { %v377_v32 = vor.u32 %v376_v20, %v373_v8  ;;  %v467_v35 = vmax.bf16 %v872_v27, %v450_v24  ;;  %v546_v36 = vrot.slane %v544_v26, 5  ;;  %v215_v33 = vshrl.u32 %v921_v22, 16  ;;  %v964_v8 = vld [vmem:[%s799_s12 + $0xb8] sm:$0xf]  ;;  %v742_v17 = vld [vmem:[%s799_s12 + $0x68] sm:$0xf] }
  0x32   : > { %v931_v37 = vrot.slane %v550_v28, 5  ;;  %v213_v39 = vsel %vm815_vm2, %v208_v31, %v212_v19  ;;  %v218_v42 = vshll.u32 %v921_v22, 16  ;;  %v224_v44 = vshll.u32 %v151_v29, 16 }
  0x33   : > { %v378_v41 = vrot.slane %v377_v32, 4  ;;  %v484_v45 = vmax.bf16 %v741_v30, %v467_v35  ;;  %v281_v46 = vmax.bf16 %v213_v39, %v142_v62  ;;  %v547_v47 = vor.u32 %v546_v36, %v543_v13  ;;  %v728_v32 = vld [vmem:[%s799_s12 + $0xbc] sm:$0x1] }
  0x34   : > { %v217_v27 = vrot.slane %v215_v33, 4  ;;  %v220_v52 = vrot.slane %v218_v42, 5  ;;  %v226_v53 = vrot.slane %v224_v44, 5  ;;  %v385_v54 = vshrl.u32 %v935_v38, 16  ;;  %v752_v42 = vld [vmem:[%s799_s12 + $0x34] sm:$0x1] }
  0x35   : > { %v383_v50 = vsel %vm815_vm2, %v378_v41, %v382_v34  ;;  %v620_v55 = vmax.bf16 %v539_v25, %v484_v45  ;;  %v298_v56 = vmax.bf16 %v902_v57, %v281_v46  ;;  %v548_v58 = vrot.slane %v547_v47, 4  ;;  %v719_v25 = vld [vmem:[%s799_s12 + $0xf8] sm:$0xf] }
  0x36   : > { %v388_v59 = vshll.u32 %v935_v38, 16  ;;  %v221_v60 = vor.u32 %v220_v52, %v217_v27  ;;  %v387_v61 = vrot.slane %v385_v54, 4  ;;  %v394_v62 = vshll.u32 %v727_v48, 16 }
  0x37   : > { %v555_v0 = vshrl.u32 %v943_v49, 16  ;;  %629 = vst.msk [vmem:[%s880_s16 + $0x8] sm:$0xf] %vm626_vm3, %v620_v55  ;;  %v315_v1 = vmax.bf16 %v718_v40, %v298_v56  ;;  %v143_v2 = vmax.bf16 %v703_v51, %v921_v22  ;;  %v558_v57 = vshll.u32 %v943_v49, 16  ;;  %v984_v51 = vld [vmem:[%s799_s12 + $0x30] sm:$0xf] }
  0x38   : > { %v390_v3 = vrot.slane %v388_v59, 5  ;;  %v553_v6 = vsel %vm815_vm2, %v548_v58, %v931_v37  ;;  %v222_v43 = vrot.slane %v221_v60, 4  ;;  %v396_v9 = vrot.slane %v394_v62, 5  ;;  %v153_v55 = vld [vmem:[%s799_s12 + $0x34] sm:$0x1] }
  0x39   : > { %v557_v10 = vrot.slane %v555_v0, 4  ;;  %v451_v11 = vmax.bf16 %v383_v50, %v315_v1  ;;  %v560_v14 = vrot.slane %v558_v57, 5  ;;  %v564_v15 = vshll.u32 %v751_v63, 16  ;;  %v743_v56 = vld [vmem:[%s799_s12 + $0x70] sm:$0xf] }
  0x3a   : > { %v391_v12 = vor.u32 %v390_v3, %v387_v61  ;;  %v227_v18 = vsel %vm815_vm2, %v222_v43, %v226_v53  ;;  %v144_v19 = vmax.bf16 %v704_v5, %v127_v4  ;;  %v229_v20 = vshrl.u32 %v127_v4, 16  ;;  %v993_v62 = vld [vmem:[%s799_s12 + $0xc0] sm:$0xf] }
  0x3b   : > { %v232_v21 = vshll.u32 %v127_v4, 16  ;;  %v468_v22 = vmax.bf16 %v913_v7, %v451_v11  ;;  %v282_v24 = vmax.bf16 %v227_v18, %v143_v2  ;;  %v561_v28 = vor.u32 %v560_v14, %v557_v10  ;;  %v977_v7 = vld [vmem:[%s799_s12 + $0x30] sm:$0xf]  ;;  %v720_v3 = vld [vmem:[%s799_s12 + $0x100] sm:$0xf] }
  0x3c   : > { %v392_v26 = vrot.slane %v391_v12, 4  ;;  %v231_v29 = vrot.slane %v229_v20, 4  ;;  %v238_v31 = vshll.u32 %v152_v16, 16  ;;  %v399_v34 = vshrl.u32 %v964_v8, 16  ;;  %v1005_v12 = vld [vmem:[%s799_s12 + $0x38] sm:$0xf] }
  0x3d   : > { %v234_v30 = vrot.slane %v232_v21, 5  ;;  %v485_v13 = vmax.bf16 %v742_v17, %v468_v22  ;;  %v299_v35 = vmax.bf16 %v935_v38, %v282_v24  ;;  %v566_v37 = vrot.slane %v564_v15, 5  ;;  %v705_v17 = vld [vmem:[%s799_s12 + $0x78] sm:$0xf]  ;;  %v753_v22 = vld [vmem:[%s799_s12 + $0x3c] sm:$0x1] }
  0x3e   : > { %v397_v36 = vsel %vm815_vm2, %v392_v26, %v396_v9  ;;  %v240_v39 = vrot.slane %v238_v31, 5  ;;  %v401_v40 = vrot.slane %v399_v34, 4  ;;  %v402_v41 = vshll.u32 %v964_v8, 16  ;;  %v744_v24 = vld [vmem:[%s799_s12 + $0x78] sm:$0xf] }
  0x3f   : > { %v235_v33 = vor.u32 %v234_v30, %v231_v29  ;;  %v621_v44 = vmax.bf16 %v553_v6, %v485_v13  ;;  %v316_v45 = vmax.bf16 %v719_v25, %v299_v35  ;;  %v562_v46 = vrot.slane %v561_v28, 4  ;;  %v129_v13 = vld [vmem:[%s799_s12 + $0x38] sm:$0xf]  ;;  %v154_v35 = vld [vmem:[%s799_s12 + $0x3c] sm:$0x1] }
  0x40   : > { %v408_v38 = vshll.u32 %v728_v32, 16  ;;  %v404_v27 = vrot.slane %v402_v41, 5  ;;  %v569_v48 = vshrl.u32 %v977_v7, 16  ;;  %v572_v50 = vshll.u32 %v977_v7, 16 }
  0x41   : > { %v236_v47 = vrot.slane %v235_v33, 4  ;;  %630 = vst.msk [vmem:[%s880_s16 + $0xc] sm:$0xf] %vm626_vm3, %v621_v44  ;;  %v452_v52 = vmax.bf16 %v397_v36, %v316_v45  ;;  %v578_v54 = vshll.u32 %v752_v42, 16  ;;  %v567_v0 = vsel %vm815_vm2, %v562_v46, %v566_v37  ;;  %v714_v46 = vld [vmem:[%s799_s12 + $0xc8] sm:$0xf] }
  0x42   : > { %v410_v53 = vrot.slane %v408_v38, 5  ;;  %v405_v59 = vor.u32 %v404_v27, %v401_v40  ;;  %v571_v60 = vrot.slane %v569_v48, 4  ;;  %v574_v61 = vrot.slane %v572_v50, 5  ;;  %v706_v40 = vld [vmem:[%s799_s12 + $0x80] sm:$0xf] }
  0x43   : > { %v241_v58 = vsel %vm815_vm2, %v236_v47, %v240_v39  ;;  %v469_v63 = vmax.bf16 %v943_v49, %v452_v52  ;;  %v243_v2 = vshrl.u32 %v984_v51, 16  ;;  %v246_v5 = vshll.u32 %v984_v51, 16  ;;  %v729_v49 = vld [vmem:[%s799_s12 + $0xc4] sm:$0x1]  ;;  %v721_v52 = vld [vmem:[%s799_s12 + $0x108] sm:$0xf] }
  0x44   : > { %v283_v1 = vmax.bf16 %v241_v58, %v144_v19  ;;  %v406_v57 = vrot.slane %v405_v59, 4  ;;  %v575_v4 = vor.u32 %v574_v61, %v571_v60  ;;  %v252_v6 = vshll.u32 %v153_v55, 16  ;;  %v730_v55 = vld [vmem:[%s799_s12 + $0xcc] sm:$0x1]  ;;  %v738_v60 = vld [vmem:[%s799_s12 + $0x40] sm:$0xf] }
  0x45   : > { %v486_v43 = vmax.bf16 %v743_v56, %v469_v63  ;;  %v245_v10 = vrot.slane %v243_v2, 4  ;;  %v413_v11 = vshrl.u32 %v993_v62, 16  ;;  %v580_v16 = vrot.slane %v578_v54, 5  ;;  %v754_v2 = vld [vmem:[%s799_s12 + $0x44] sm:$0x1] }
  0x46   : > { %v300_v9 = vmax.bf16 %v964_v8, %v283_v1  ;;  %v411_v14 = vsel %vm815_vm2, %v406_v57, %v410_v53  ;;  %v576_v15 = vrot.slane %v575_v4, 4  ;;  %v248_v18 = vrot.slane %v246_v5, 5 }
  0x47   : > { %v622_v19 = vmax.bf16 %v567_v0, %v486_v43  ;;  %v415_v21 = vrot.slane %v413_v11, 4  ;;  %v416_v8 = vshll.u32 %v993_v62, 16  ;;  %v254_v26 = vrot.slane %v252_v6, 5 }
  0x48   : > { %v317_v20 = vmax.bf16 %v720_v3, %v300_v9  ;;  %v249_v25 = vor.u32 %v248_v18, %v245_v10  ;;  %v422_v28 = vshll.u32 %v729_v49, 16  ;;  %v583_v29 = vshrl.u32 %v1005_v12, 16  ;;  %v745_v18 = vld [vmem:[%s799_s12 + $0x80] sm:$0xf] }
  0x49   : > { %631 = vst.msk [vmem:[%s880_s16 + $0x10] sm:$0xf] %vm626_vm3, %v622_v19  ;;  %v145_v31 = vmax.bf16 %v705_v17, %v984_v51  ;;  %v418_v32 = vrot.slane %v416_v8, 5  ;;  %v586_v34 = vshll.u32 %v1005_v12, 16  ;;  %v581_v36 = vsel %vm815_vm2, %v576_v15, %v580_v16 }
  0x4a   : > { %v453_v30 = vmax.bf16 %v411_v14, %v317_v20  ;;  %v250_v37 = vrot.slane %v249_v25, 4  ;;  %v585_v33 = vrot.slane %v583_v29, 4  ;;  %v592_v39 = vshll.u32 %v753_v22, 16 }
  0x4b   : > { %v419_v42 = vor.u32 %v418_v32, %v415_v21  ;;  %v424_v44 = vrot.slane %v422_v28, 5  ;;  %v588_v45 = vrot.slane %v586_v34, 5  ;;  %v257_v47 = vshrl.u32 %v129_v13, 16  ;;  %v722_v28 = vld [vmem:[%s799_s12 + $0x110] sm:$0xf] }
  0x4c   : > { %v470_v41 = vmax.bf16 %v977_v7, %v453_v30  ;;  %v255_v38 = vsel %vm815_vm2, %v250_v37, %v254_v26  ;;  %v260_v27 = vshll.u32 %v129_v13, 16  ;;  %v266_v48 = vshll.u32 %v154_v35, 16  ;;  %v746_v37 = vld [vmem:[%s799_s12 + $0x88] sm:$0xf] }
  0x4d   : > { %v284_v51 = vmax.bf16 %v255_v38, %v145_v31  ;;  %v420_v53 = vrot.slane %v419_v42, 4  ;;  %v146_v54 = vmax.bf16 %v706_v40, %v129_v13  ;;  %v589_v7 = vor.u32 %v588_v45, %v585_v33 }
  0x4e   : > { %v487_v50 = vmax.bf16 %v744_v24, %v470_v41  ;;  %v259_v56 = vrot.slane %v257_v47, 4  ;;  %v262_v58 = vrot.slane %v260_v27, 5  ;;  %v427_v59 = vshrl.u32 %v714_v46, 16 }
  0x4f   : > { %v301_v63 = vmax.bf16 %v993_v62, %v284_v51  ;;  %v425_v0 = vsel %vm815_vm2, %v420_v53, %v424_v44  ;;  %v268_v1 = vrot.slane %v266_v48, 5  ;;  %v430_v4 = vshll.u32 %v714_v46, 16 }
  0x50   : > { %v623_v61 = vmax.bf16 %v581_v36, %v487_v50  ;;  %v263_v3 = vor.u32 %v262_v58, %v259_v56  ;;  %v429_v57 = vrot.slane %v427_v59, 4  ;;  %v436_v5 = vshll.u32 %v730_v55, 16 }
  0x51   : > { %v318_v6 = vmax.bf16 %v721_v52, %v301_v63  ;;  %v594_v43 = vrot.slane %v592_v39, 5  ;;  %v597_v9 = vshrl.u32 %v738_v60, 16  ;;  %v600_v10 = vshll.u32 %v738_v60, 16 }
  0x52   : > { %632 = vst.msk [vmem:[%s880_s16 + $0x14] sm:$0xf] %vm626_vm3, %v623_v61  ;;  %v590_v49 = vrot.slane %v589_v7, 4  ;;  %v264_v11 = vrot.slane %v263_v3, 4  ;;  %v432_v62 = vrot.slane %v430_v4, 5  ;;  %v606_v14 = vshll.u32 %v754_v2, 16 }
  0x53   : > { %v454_v15 = vmax.bf16 %v425_v0, %v318_v6  ;;  %v599_v16 = vrot.slane %v597_v9, 4  ;;  %v602_v17 = vrot.slane %v600_v10, 5  ;;  %v438_v21 = vrot.slane %v436_v5, 5 }
  0x54   : > { %v269_v19 = vsel %vm815_vm2, %v264_v11, %v268_v1  ;;  %v433_v20 = vor.u32 %v432_v62, %v429_v57  ;;  %v608_v25 = vrot.slane %v606_v14, 5  ;;  %v595_v26 = vsel %vm815_vm2, %v590_v49, %v594_v43 }
  0x55   : > { %v471_v8 = vmax.bf16 %v1005_v12, %v454_v15  ;;  %v285_v22 = vmax.bf16 %v269_v19, %v146_v54  ;;  %v603_v24 = vor.u32 %v602_v17, %v599_v16 }
  0x56   : > { %v434_v29 = vrot.slane %v433_v20, 4 }
  0x57   : > { %v488_v30 = vmax.bf16 %v745_v18, %v471_v8  ;;  %v302_v31 = vmax.bf16 %v714_v46, %v285_v22  ;;  %v604_v32 = vrot.slane %v603_v24, 4 }
  0x58   : > { %v439_v34 = vsel %vm815_vm2, %v434_v29, %v438_v21 }
  0x59   : > { %v624_v13 = vmax.bf16 %v595_v26, %v488_v30  ;;  %v319_v35 = vmax.bf16 %v722_v28, %v302_v31  ;;  %v609_v12 = vsel %vm815_vm2, %v604_v32, %v608_v25 }
  0x5b   : > { %633 = vst.msk [vmem:[%s880_s16 + $0x18] sm:$0xf] %vm626_vm3, %v624_v13  ;;  %v455_v36 = vmax.bf16 %v439_v34, %v319_v35 }
  0x5d   : > { %v472_v33 = vmax.bf16 %v738_v60, %v455_v36 }
  0x5f   : > { %v489_v39 = vmax.bf16 %v746_v37, %v472_v33 }
  0x61   : > { %v625_v40 = vmax.bf16 %v609_v12, %v489_v39 }
  0x63   : > { %634 = vst.msk [vmem:[%s880_s16 + $0x1c] sm:$0xf] %vm626_vm3, %v625_v40 }
  0x64 PF: > { %s11_s6 = sadd.s32 1, %s773_s6  }
  0x65   : > { %p8_p5 = scmp.ge.s32.totalorder %s11_s6, 4  }
  0x67   :  { %10 = sbr.rel (!%p8_p5) target bundleno = 1 (0x1), region = 59 }

// kernel: cnn_forward.7
= control target key start
LH: loop header
LB: loop body
LE: loop exit
PB: predicated region body
PF: predicated region fallthrough
CT: control target
= control target key end

     0   :  { %s1885_s15 = smov 0   ;;  %s2111_s0 = inlined_call_operand.vmem [shape: bf16[8,5,9,64], index: 0, kind: input, shape index: {}]   ;;  %s2112_s1 = inlined_call_operand.vmem [shape: bf16[9,64,128], index: 1, kind: input, shape index: {}]   ;;  %s2113_s2 = inlined_call_operand.vmem [shape: f32[1,128], index: 2, kind: input, shape index: {}]   ;;  %s2114_s3 = inlined_call_operand.vmem [shape: f32[1,128], index: 3, kind: input, shape index: {}]   ;;  %s2115_s4 = inlined_call_operand.vmem [shape: bf16[2,4,4,128], index: 4, kind: output, shape index: {}]  }
   0x1 LB: > { %s1891_s16 = sadd.s32 4294967295, %s1858_s15   ;;  %p1419_p0 = scmp.ge.s32.totalorder %s1858_s15, 1  ;;  %s1858_s15 = sphi %s1885_s15, %s14_s15  }
   0x2   : > { %p164_p1 = scmp.lt.s32.totalorder %s1858_s15, 3 }
   0x4   : > { %p165_p2 = pnand %p1419_p0, %p164_p1 }
   0x5   : > { %v1804_v0 = vld [vmem:[%s2112_s1 + $0x20] sm:$0xff] (!%p165_p2)   ;;  %s1420_s19 = sshll.u32 (!%p165_p2), %s1891_s16, 2  ;;  %v1806_v2 = vld [vmem:[%s2112_s1 + $0x28] sm:$0xff] (!%p165_p2)   ;;  %v1808_v4 = vld [vmem:[%s2112_s1 + $0x30] sm:$0xff] (!%p165_p2)   ;;  %vm264_vm0 = vcmask (!%p165_p2), 523264   ;;  %p198_p4 = scmp.lt.s32.totalorder (!%p165_p2), %s1891_s16, 1 }
   0x6   : > { %168 = sbr.rel (%p165_p2) target bundleno = 314 (0x13a), region = 36  ;;  %v1805_v1 = vld [vmem:[%s2112_s1 + $0x80] sm:$0xff] (!%p165_p2)   ;;  %p192_p3 = scmp.lt.s32.totalorder (!%p165_p2), %s1420_s19, 7  ;;  %1655 = vmatprep.subr.bf16.mxu1 (!%p165_p2), %v1804_v0  ;;  %v1807_v3 = vld [vmem:[%s2112_s1 + $0x88] sm:$0xff] (!%p165_p2)   ;;  %v1809_v5 = vld [vmem:[%s2112_s1 + $0x90] sm:$0xff] (!%p165_p2)  }
   0x7   : > { %1703 = vmatprep.subr.bf16.mxu0 (!%p165_p2), %v1805_v1  ;;  %1656 = vmatpush3.bf16.msra.mxu1 (!%p165_p2), %v1804_v0  ;;  %v1810_v6 = vld [vmem:[%s2112_s1 + $0x38] sm:$0xff] (!%p165_p2)   ;;  %v1813_v10 = vld [vmem:[%s2112_s1] sm:$0xff] (!%p165_p2)   ;;  %v1818_v14 = vld [vmem:[%s2112_s1 + $0x8] sm:$0xff] (!%p165_p2)   ;;  %vm417_vm1 = vsmask.f32 (!%p165_p2), 3328 }
   0x8   : > { %1704 = vmatpush3.bf16.msra.mxu0 (!%p165_p2), %v1805_v1  ;;  %1657 = vmatprep.subr.bf16.mxu1 (!%p165_p2), %v1806_v2  ;;  %v1811_v8 = vld [vmem:[%s2112_s1 + $0x98] sm:$0xff] (!%p165_p2)   ;;  %v1815_v11 = vld [vmem:[%s2112_s1 + $0xa0] sm:$0xff] (!%p165_p2)   ;;  %v1819_v15 = vld [vmem:[%s2112_s1 + $0xa8] sm:$0xff] (!%p165_p2)   ;;  %vm418_vm2 = vsmask.f32 (!%p165_p2), 7440 }
   0x9   : > { %1705 = vmatprep.subr.bf16.mxu0 (!%p165_p2), %v1807_v3  ;;  %v1820_v16 = vld [vmem:[%s2112_s1 + $0x10] sm:$0xff] (!%p165_p2)   ;;  %v1822_v24 = vld [vmem:[%s2112_s1 + $0x18] sm:$0xff] (!%p165_p2)   ;;  %v1825_v33 = vld [vmem:[%s2112_s1 + $0x40] sm:$0xff] (!%p165_p2)  }
   0xa   : > { %v1821_v18 = vld [vmem:[%s2112_s1 + $0xb0] sm:$0xff] (!%p165_p2)   ;;  %v1823_v29 = vld [vmem:[%s2112_s1 + $0xb8] sm:$0xff] (!%p165_p2)   ;;  %vm1968_vm3 = vmor (!%p165_p2), %vm417_vm1, %vm418_vm2 }
   0xb   : > { %1658 = vmatpush3.bf16.msra.mxu1 (!%p165_p2), %v1806_v2  ;;  %v1975_v40 = vld [vmem:[%s2112_s1 + $0xc0] sm:$0xff] (!%p165_p2)   ;;  %v1828_v61 = vld [vmem:[%s2112_s1 + $0x48] sm:$0xff] (!%p165_p2)  }
   0xc   : > { %1706 = vmatpush3.bf16.msra.mxu0 (!%p165_p2), %v1807_v3  ;;  %1659 = vmatprep.subr.bf16.mxu1 (!%p165_p2), %v1808_v4  ;;  %v1597_v36 = vld [vmem:[%s2114_s3] ss:$0 sm:$0xff] (!%p165_p2) }
   0xd   : > { %s2119_s19 = smov (!%p192_p3, %s1420_s19), 7  ;;  %1707 = vmatprep.subr.bf16.mxu0 %v1809_v5  ;;  %s2121_s16 = smov (!%p198_p4, %s1891_s16), 1 }
   0xe   : > { %s1795_s30 = smul.u32 40, %s2119_s19  ;;  %s1600_s27 = sshll.u32 %s2121_s16, 3 }
   0xf   : > { %1660 = vmatpush3.bf16.msra.mxu1 %v1808_v4  ;;  %v1830_v4 = vld [vmem:[%s2112_s1 + $0x50] sm:$0xff]  }
  0x10   : > { %s1920_s9 = scalar_lea.vmem %s2111_s0, %s1795_s30  ;;  %1708 = vmatpush3.bf16.msra.mxu0 %v1809_v5  ;;  %1661 = vmatprep.subr.bf16.mxu1 %v1810_v6  ;;  %s202_s30 = scalar_lea.vmem %s2115_s4, %s1600_s27 }
  0x11   : > { %v1812_v7 = vld [vmem:[%s1920_s9 + $0x28] ss:$8 sps:$4 sm:$0xff]   ;;  %v1814_v9 = vld [vmem:[%s1920_s9 + $0x78] ss:$8 sps:$4 sm:$0xff]   ;;  %1709 = vmatprep.subr.bf16.mxu0 %v1811_v8  ;;  %v1509_v20 = vld [vmem:[%s1920_s9 + $0x54] sm:$0x1] }
  0x12   : > { %1663 = vmatprep.mubr.msk.bf16.mxu1 %vm264_vm0, %v1812_v7  ;;  %1711 = vmatprep.mubr.msk.bf16.mxu0 %vm264_vm0, %v1814_v9  ;;  %v1816_v12 = vld [vmem:[%s1920_s9 + $0x38] ss:$8 sps:$4 sm:$0xff]   ;;  %v1817_v13 = vld [vmem:[%s1920_s9 + $0x88] ss:$8 sps:$4 sm:$0xff]   ;;  %v1511_v25 = vld [vmem:[%s1920_s9 + $0x5c] sm:$0x1] }
  0x13   : > { %1662 = vmatpush3.bf16.msra.mxu1 %v1810_v6  ;;  %v1824_v17 = vld [vmem:[%s1920_s9] ss:$8 sps:$4 sm:$0xff]   ;;  %v1508_v19 = vld [vmem:[%s1920_s9 + $0x50] sm:$0xf]  ;;  %v1510_v21 = vld [vmem:[%s1920_s9 + $0x58] sm:$0xf] }
  0x14   : > { %1710 = vmatpush3.bf16.msra.mxu0 %v1811_v8  ;;  %1667 = vmatprep.subr.bf16.mxu1 %v1813_v10  ;;  %v797_v22 = vshrl.u32 %v1508_v19, 16  ;;  %v800_v23 = vshll.u32 %v1508_v19, 16  ;;  %v806_v26 = vshll.u32 %v1509_v20, 16  ;;  %v811_v27 = vshrl.u32 %v1510_v21, 16  ;;  %v1827_v42 = vld [vmem:[%s1920_s9 + $0x10] ss:$8 sps:$4 sm:$0xff]  }
  0x15   : > { %1715 = vmatprep.subr.bf16.mxu0 %v1815_v11  ;;  %v814_v28 = vshll.u32 %v1510_v21, 16  ;;  %v820_v32 = vshll.u32 %v1511_v25, 16  ;;  %v1512_v43 = vld [vmem:[%s1920_s9 + $0x60] sm:$0xf]  ;;  %v1513_v44 = vld [vmem:[%s1920_s9 + $0x64] sm:$0x1] }
  0x16   : > { %1664 = vmatmul.mubr.msk.bf16.vlgmr.msra.gmra.mrb[0].mxu1 %vm264_vm0, %v1816_v12  ;;  %v799_v30 = vrot.slane %v797_v22, 4  ;;  %v802_v31 = vrot.slane %v800_v23, 5  ;;  %v813_v34 = vrot.slane %v811_v27, 4  ;;  %v808_v38 = vrot.slane %v806_v26, 5  ;;  %v1514_v46 = vld [vmem:[%s1920_s9 + $0x68] sm:$0xf] }
  0x17   : > { %1668 = vmatpush3.bf16.msra.mxu1 %v1813_v10  ;;  %1712 = vmatmul.mubr.msk.bf16.vlgmr.msra.gmra.mrb[0].mxu0 %vm264_vm0, %v1817_v13  ;;  %v816_v35 = vrot.slane %v814_v28, 5  ;;  %v822_v39 = vrot.slane %v820_v32, 5  ;;  %v1515_v47 = vld [vmem:[%s1920_s9 + $0x6c] sm:$0x1]  ;;  %v825_v48 = vshrl.u32 %v1512_v43, 16  ;;  %v828_v50 = vshll.u32 %v1512_v43, 16 }
  0x18   : > { %1716 = vmatpush3.bf16.msra.mxu0 %v1815_v11  ;;  %1669 = vmatprep.subr.bf16.mxu1 %v1818_v14  ;;  %v803_v37 = vor.u32 %v802_v31, %v799_v30  ;;  %v834_v51 = vshll.u32 %v1513_v44, 16  ;;  %v839_v52 = vshrl.u32 %v1514_v46, 16  ;;  %v842_v55 = vshll.u32 %v1514_v46, 16  ;;  %v409_v5 = vld [vmem:[%s1920_s9] sm:$0xf]  ;;  %v1832_v21 = vld [vmem:[%s2112_s1 + $0x58] sm:$0xff]  }
  0x19   : > { %1717 = vmatprep.subr.bf16.mxu0 %v1819_v15  ;;  %1675 = vmatprep.mubr.msk.bf16.mxu1 %vm264_vm0, %v1824_v17  ;;  %v817_v41 = vor.u32 %v816_v35, %v813_v34  ;;  %v827_v54 = vrot.slane %v825_v48, 4  ;;  %v848_v56 = vshll.u32 %v1515_v47, 16  ;;  %v830_v58 = vrot.slane %v828_v50, 5  ;;  %v410_v7 = vld [vmem:[%s1920_s9 + $0x4] sm:$0x1]  ;;  %v1831_v27 = vld [vmem:[%s2112_s1 + $0xd0] sm:$0xff]  }
  0x1a   : > { %v804_v45 = vrot.slane %v803_v37, 4  ;;  %v836_v59 = vrot.slane %v834_v51, 5  ;;  %v841_v60 = vrot.slane %v839_v52, 4  ;;  %v844_v63 = vrot.slane %v842_v55, 5  ;;  %v411_v8 = vld [vmem:[%s1920_s9 + $0x8] sm:$0xf] }
  0x1b   : > { %1670 = vmatpush3.bf16.msra.mxu1 %v1818_v14  ;;  %v818_v49 = vrot.slane %v817_v41, 4  ;;  %v850_v0 = vrot.slane %v848_v56, 5  ;;  %v831_v1 = vor.u32 %v830_v58, %v827_v54  ;;  %v421_v9 = vshrl.u32 %v409_v5, 16  ;;  %v412_v11 = vld [vmem:[%s1920_s9 + $0xc] sm:$0x1]  ;;  %v1836_v58 = vld [vmem:[%s2112_s1 + $0xe0] sm:$0xff]  }
  0x1c   : > { %1718 = vmatpush3.bf16.msra.mxu0 %v1819_v15  ;;  %1671 = vmatprep.subr.bf16.mxu1 %v1820_v16  ;;  %v809_v53 = vsel %vm1968_vm3, %v804_v45, %v808_v38  ;;  %v845_v2 = vor.u32 %v844_v63, %v841_v60  ;;  %v424_v12 = vshll.u32 %v409_v5, 16  ;;  %v430_v13 = vshll.u32 %v410_v7, 16  ;;  %v1835_v30 = vld [vmem:[%s1920_s9 + $0x8] ss:$8 sps:$4 sm:$0xff]   ;;  %v415_v34 = vld [vmem:[%s1920_s9 + $0x18] sm:$0xf] }
  0x1d   : > { %1719 = vmatprep.subr.bf16.mxu0 %v1821_v18  ;;  %v823_v57 = vsel %vm1968_vm3, %v818_v49, %v822_v39  ;;  %v832_v3 = vrot.slane %v831_v1, 4  ;;  %v435_v14 = vshrl.u32 %v411_v8, 16  ;;  %v423_v17 = vrot.slane %v421_v9, 4  ;;  %v413_v32 = vld [vmem:[%s1920_s9 + $0x10] sm:$0xf]  ;;  %v1833_v49 = vld [vmem:[%s2112_s1 + $0xd8] sm:$0xff]  }
  0x1e   : > { %v1524_v62 = vcombine.low %v809_v53, %v823_v57  ;;  %v846_v6 = vrot.slane %v845_v2, 4  ;;  %v444_v19 = vshll.u32 %v412_v11, 16  ;;  %v426_v22 = vrot.slane %v424_v12, 5  ;;  %v416_v37 = vld [vmem:[%s1920_s9 + $0x1c] sm:$0x1]  ;;  %v1841_v5 = vld [vmem:[%s2112_s1 + $0xf0] sm:$0xff]  }
  0x1f   : > { %1672 = vmatpush3.bf16.msra.mxu1 %v1820_v16  ;;  %v837_v10 = vsel %vm1968_vm3, %v832_v3, %v836_v59  ;;  %v1829_v16 = vld [vmem:[%s2112_s1 + $0xc8] sm:$0xff]   ;;  %v432_v23 = vrot.slane %v430_v13, 5  ;;  %v449_v38 = vshrl.u32 %v413_v32, 16  ;;  %v452_v39 = vshll.u32 %v413_v32, 16  ;;  %v1844_v63 = vld [vmem:[%s1920_s9 + $0x50] ss:$8 sps:$4 sm:$0xff]  }
  0x20   : > { %1720 = vmatpush3.bf16.msra.mxu0 %v1821_v18  ;;  %1673 = vmatprep.subr.bf16.mxu1 %v1822_v24  ;;  %v851_v15 = vsel %vm1968_vm3, %v846_v6, %v850_v0  ;;  %v438_v18 = vshll.u32 %v411_v8, 16  ;;  %v446_v26 = vrot.slane %v444_v19, 5  ;;  %v427_v28 = vor.u32 %v426_v22, %v423_v17  ;;  %v1837_v1 = vld [vmem:[%s1920_s9 + $0x18] ss:$8 sps:$4 sm:$0xff]   ;;  %v1839_v3 = vld [vmem:[%s2112_s1 + $0xe8] sm:$0xff]  }
  0x21   : > { %1721 = vmatprep.subr.bf16.mxu0 %v1823_v29  ;;  %1723 = vmatprep.mubr.msk.bf16.mxu0 %vm264_vm0, %v1524_v62  ;;  %v1525_v20 = vcombine.low %v837_v10, %v851_v15  ;;  %v463_v43 = vshrl.u32 %v415_v34, 16  ;;  %v466_v44 = vshll.u32 %v415_v34, 16  ;;  %v472_v45 = vshll.u32 %v416_v37, 16  ;;  %v1846_v2 = vld [vmem:[%s1920_s9 + $0x30] ss:$8 sps:$4 sm:$0xff]  }
  0x22   : > { %v440_v25 = vrot.slane %v438_v18, 5  ;;  %v428_v35 = vrot.slane %v427_v28, 4  ;;  %v451_v46 = vrot.slane %v449_v38, 4  ;;  %v454_v47 = vrot.slane %v452_v39, 5  ;;  %v1842_v6 = vld [vmem:[%s2112_s1 + $0x78] sm:$0xff]  }
  0x23   : > { %1674 = vmatpush3.bf16.msra.mxu1 %v1822_v24  ;;  %v437_v24 = vrot.slane %v435_v14, 4  ;;  %v465_v51 = vrot.slane %v463_v43, 4  ;;  %v468_v52 = vrot.slane %v466_v44, 5  ;;  %v474_v53 = vrot.slane %v472_v45, 5  ;;  %v1572_v7 = vld [vmem:[%s1920_s9 + $0x8] sm:$0xf] }
  0x24   : > { %1722 = vmatpush3.bf16.msra.mxu0 %v1823_v29  ;;  %1679 = vmatprep.subr.bf16.mxu1 %v1825_v33  ;;  %v1834_v29 = vld [vmem:[%s2112_s1 + $0x60] sm:$0xff]   ;;  %v455_v55 = vor.u32 %v454_v47, %v451_v46  ;;  %v1573_v8 = vld [vmem:[%s1920_s9 + $0xc] sm:$0x1]  ;;  %v1574_v9 = vld [vmem:[%s1920_s9 + $0x10] sm:$0xf]  ;;  %v1173_v11 = vshrl.u32 %v1572_v7, 16 }
  0x25   : > { %1727 = vmatprep.subr.bf16.mxu0 %v1975_v40  ;;  %v441_v31 = vor.u32 %v440_v25, %v437_v24  ;;  %v469_v56 = vor.u32 %v468_v52, %v465_v51  ;;  %v1575_v10 = vld [vmem:[%s1920_s9 + $0x14] sm:$0x1]  ;;  %v1176_v12 = vshll.u32 %v1572_v7, 16  ;;  %v1182_v13 = vshll.u32 %v1573_v8, 16  ;;  %v1576_v17 = vld [vmem:[%s1920_s9 + $0x18] sm:$0xf] }
  0x26   : > { %1676 = vmatmul.mubr.msk.bf16.vlgmr.msra.gmra.mrb[0].mxu1 %vm264_vm0, %v1827_v42  ;;  %v456_v57 = vrot.slane %v455_v55, 4  ;;  %v1187_v14 = vshrl.u32 %v1574_v9, 16  ;;  %v1190_v15 = vshll.u32 %v1574_v9, 16  ;;  %v1843_v18 = vld [vmem:[%s2112_s1 + $0xf8] sm:$0xff]   ;;  %v1175_v19 = vrot.slane %v1173_v11, 4  ;;  %v1849_v45 = vld [vmem:[%s2112_s1 + $0x108] sm:$0xff]  }
  0x27   : > { %1680 = vmatpush3.bf16.msra.mxu1 %v1825_v33  ;;  %1724 = vmatmul.mubr.msk.bf16.vlgmr.msra.gmra.mrb[0].mxu0 %vm264_vm0, %v1525_v20  ;;  %v414_v33 = vld [vmem:[%s1920_s9 + $0x14] sm:$0x1]  ;;  %v442_v42 = vrot.slane %v441_v31, 4  ;;  %v470_v59 = vrot.slane %v469_v56, 4  ;;  %v1178_v20 = vrot.slane %v1176_v12, 5  ;;  %v1184_v25 = vrot.slane %v1182_v13, 5 }
  0x28   : > { %1681 = vmatprep.subr.bf16.mxu1 %v1828_v61  ;;  %1728 = vmatpush3.bf16.msra.mxu0 %v1975_v40  ;;  %v458_v41 = vshll.u32 %v414_v33, 16  ;;  %v433_v40 = vsel %vm1968_vm3, %v428_v35, %v432_v23  ;;  %v1578_v22 = vld [vmem:[%s1920_s9 + $0x20] sm:$0xf]  ;;  %v1192_v23 = vrot.slane %v1190_v15, 5  ;;  %v1577_v46 = vld [vmem:[%s1920_s9 + $0x1c] sm:$0x1] }
  0x29   : > { %1729 = vmatprep.subr.bf16.mxu0 %v1829_v16  ;;  %1735 = vmatprep.mubr.msk.bf16.mxu0 %vm264_vm0, %v1835_v30  ;;  %v447_v50 = vsel %vm1968_vm3, %v442_v42, %v446_v26  ;;  %v475_v62 = vsel %vm1968_vm3, %v470_v59, %v474_v53  ;;  %v1179_v24 = vor.u32 %v1178_v20, %v1175_v19  ;;  %v1215_v30 = vshrl.u32 %v1578_v22, 16  ;;  %v1845_v32 = vld [vmem:[%s1920_s9 + $0x60] ss:$8 sps:$4 sm:$0xff]   ;;  %v1579_v47 = vld [vmem:[%s1920_s9 + $0x24] sm:$0x1]  ;;  %v1850_v52 = vld [vmem:[%s2112_s1 + $0x110] sm:$0xff]  }
  0x2a   : > { %v460_v48 = vrot.slane %v458_v41, 5  ;;  %v1460_v54 = vcombine.low %v433_v40, %v447_v50  ;;  %v1218_v31 = vshll.u32 %v1578_v22, 16  ;;  %v1847_v33 = vld [vmem:[%s2112_s1 + $0x100] sm:$0xff]   ;;  %v1224_v51 = vshll.u32 %v1579_v47, 16 }
  0x2b   : > { %1682 = vmatpush3.bf16.msra.mxu1 %v1828_v61  ;;  %v1838_v61 = vld [vmem:[%s2112_s1 + $0x68] sm:$0xff]   ;;  %v1180_v34 = vrot.slane %v1179_v24, 4  ;;  %v1217_v43 = vrot.slane %v1215_v30, 4 }
  0x2c   : > { %1683 = vmatprep.subr.bf16.mxu1 %v1830_v4  ;;  %1730 = vmatpush3.bf16.msra.mxu0 %v1829_v16  ;;  %v461_v60 = vsel %vm1968_vm3, %v456_v57, %v460_v48  ;;  %v1196_v16 = vshll.u32 %v1575_v10, 16  ;;  %v1848_v37 = vld [vmem:[%s1920_s9 + $0x40] ss:$8 sps:$4 sm:$0xff]   ;;  %v1220_v44 = vrot.slane %v1218_v31, 5  ;;  %v1226_v56 = vrot.slane %v1224_v51, 5  ;;  %v1851_v57 = vld [vmem:[%s2112_s1 + $0x118] sm:$0xff]  }
  0x2d   : > { %1731 = vmatprep.subr.bf16.mxu0 %v1831_v27  ;;  %1687 = vmatprep.mubr.msk.bf16.mxu1 %vm264_vm0, %v1460_v54  ;;  %v1461_v0 = vcombine.low %v461_v60, %v475_v62  ;;  %v1185_v38 = vsel %vm1968_vm3, %v1180_v34, %v1184_v25 }
  0x2e   : > { %v1198_v26 = vrot.slane %v1196_v16, 5  ;;  %v1221_v50 = vor.u32 %v1220_v44, %v1217_v43 }
  0x2f   : > { %1684 = vmatpush3.bf16.msra.mxu1 %v1830_v4  ;;  %v1840_v4 = vld [vmem:[%s2112_s1 + $0x70] sm:$0xff]  }
  0x30   : > { %1685 = vmatprep.subr.bf16.mxu1 %v1832_v21  ;;  %1732 = vmatpush3.bf16.msra.mxu0 %v1831_v27  ;;  %v1201_v27 = vshrl.u32 %v1576_v17, 16  ;;  %v1222_v55 = vrot.slane %v1221_v50, 4 }
  0x31   : > { %1733 = vmatprep.subr.bf16.mxu0 %v1833_v49 }
  0x32   : > { %v1203_v39 = vrot.slane %v1201_v27, 4  ;;  %v1227_v59 = vsel %vm1968_vm3, %v1222_v55, %v1226_v56 }
  0x33   : > { %1686 = vmatpush3.bf16.msra.mxu1 %v1832_v21  ;;  %v1189_v21 = vrot.slane %v1187_v14, 4 }
  0x34   : > { %1691 = vmatprep.subr.bf16.mxu1 %v1834_v29  ;;  %1734 = vmatpush3.bf16.msra.mxu0 %v1833_v49  ;;  %v1210_v49 = vshll.u32 %v1577_v46, 16 }
  0x35   : > { %1739 = vmatprep.subr.bf16.mxu0 %v1836_v58  ;;  %v1193_v28 = vor.u32 %v1192_v23, %v1189_v21 }
  0x36   : > { %1688 = vmatmul.mubr.msk.bf16.vlgmr.msra.gmra.mrb[0].mxu1 %vm264_vm0, %v1461_v0  ;;  %v1212_v54 = vrot.slane %v1210_v49, 5 }
  0x37   : > { %1692 = vmatpush3.bf16.msra.mxu1 %v1834_v29  ;;  %1699 = vmatprep.mubr.msk.bf16.mxu1 %vm264_vm0, %v1844_v63  ;;  %v1204_v29 = vshll.u32 %v1576_v17, 16  ;;  %v1194_v35 = vrot.slane %v1193_v28, 4 }
  0x38   : > { %1736 = vmatmul.mubr.msk.bf16.vlgmr.msra.gmra.mrb[0].mxu0 %vm264_vm0, %v1837_v1  ;;  %1693 = vmatprep.subr.bf16.mxu1 %v1838_v61 }
  0x39   : > { %1740 = vmatpush3.bf16.msra.mxu0 %v1836_v58  ;;  %1747 = vmatprep.mubr.msk.bf16.mxu0 %vm264_vm0, %v1846_v2  ;;  %v1199_v41 = vsel %vm1968_vm3, %v1194_v35, %v1198_v26  ;;  %v1206_v42 = vrot.slane %v1204_v29, 5  ;;  %v1596_v2 = vld [vmem:[%s2113_s2] ss:$0 sm:$0xff] }
  0x3a   : > { %1741 = vmatprep.subr.bf16.mxu0 %v1839_v3  ;;  %v1588_v40 = vcombine.low %v1185_v38, %v1199_v41 }
  0x3b   : > { %1694 = vmatpush3.bf16.msra.mxu1 %v1838_v61  ;;  %v1207_v48 = vor.u32 %v1206_v42, %v1203_v39 }
  0x3c   : > { %1695 = vmatprep.subr.bf16.mxu1 %v1840_v4 }
  0x3d   : > { %1742 = vmatpush3.bf16.msra.mxu0 %v1839_v3  ;;  %v1208_v53 = vrot.slane %v1207_v48, 4 }
  0x3e   : > { %1743 = vmatprep.subr.bf16.mxu0 %v1841_v5 }
  0x3f   : > { %1696 = vmatpush3.bf16.msra.mxu1 %v1840_v4  ;;  %v1213_v58 = vsel %vm1968_vm3, %v1208_v53, %v1212_v54 }
  0x40   : > { %1697 = vmatprep.subr.bf16.mxu1 %v1842_v6  ;;  %v1589_v60 = vcombine.low %v1213_v58, %v1227_v59 }
  0x41   : > { %1744 = vmatpush3.bf16.msra.mxu0 %v1841_v5 }
  0x42   : > { %1745 = vmatprep.subr.bf16.mxu0 %v1843_v18 }
  0x43   : > { %1698 = vmatpush3.bf16.msra.mxu1 %v1842_v6 }
  0x45   : > { %1746 = vmatpush3.bf16.msra.mxu0 %v1843_v18 }
  0x46   : > { %1700 = vmatmul.mubr.msk.bf16.vlgmr.msra.gmra.mrb[0].mxu1 %vm264_vm0, %v1845_v32  ;;  %1751 = vmatprep.subr.bf16.mxu0 %v1847_v33 }
  0x48   : > { %1748 = vmatmul.mubr.msk.bf16.vlgmr.msra.gmra.mrb[0].mxu0 %vm264_vm0, %v1848_v37 }
  0x49   : > { %1752 = vmatpush3.bf16.msra.mxu0 %v1847_v33  ;;  %1759 = vmatprep.mubr.msk.bf16.mxu0 %vm264_vm0, %v1588_v40 }
  0x4a   : > { %1753 = vmatprep.subr.bf16.mxu0 %v1849_v45 }
  0x4d   : > { %1754 = vmatpush3.bf16.msra.mxu0 %v1849_v45 }
  0x4e   : > { %1755 = vmatprep.subr.bf16.mxu0 %v1850_v52 }
  0x51   : > { %1756 = vmatpush3.bf16.msra.mxu0 %v1850_v52 }
  0x52   : > { %1757 = vmatprep.subr.bf16.mxu0 %v1851_v57 }
  0x55   : > { %1758 = vmatpush3.bf16.msra.mxu0 %v1851_v57 }
  0x58   : > { %1760 = vmatmul.mubr.msk.bf16.vlgmr.msra.gmra.mrb[0].mxu0 %vm264_vm0, %v1589_v60 }
 0x119   : > { %v1701_v61 = vpop.f32.mrb[0].mxu1 }
 0x11a   : > { %v662_v62 = vpop.f32.mrb[1].mxu1 }
 0x11b   : > { %v1702_v63 = vpop.f32.mrb[2].mxu1 }
 0x11c   : > { %v665_v0 = vpop.f32.mrb[3].mxu1 }
 0x12b   : > { %v1761_v1 = vpop.f32.mrb[0].mxu0 }
 0x12c   : > { %v1763_v3 = vadd.f32 %v1761_v1, %v1701_v61  ;;  %v1307_v4 = vpop.f32.mrb[1].mxu0 }
 0x12d   : > { %v1764_v5 = vadd.f32 %v1307_v4, %v662_v62  ;;  %v1762_v6 = vpop.f32.mrb[2].mxu0 }
 0x12e   : > { %v1335_v7 = vmul.f32 %v1763_v3, %v1596_v2  ;;  %v1765_v8 = vadd.f32 %v1762_v6, %v1702_v63  ;;  %v1310_v9 = vpop.f32.mrb[3].mxu0 }
 0x12f   : > { %v1333_v10 = vmul.f32 %v1764_v5, %v1596_v2  ;;  %v1766_v11 = vadd.f32 %v1310_v9, %v665_v0 }
 0x130   : > { %v1346_v12 = vadd.f32 %v1597_v36, %v1335_v7  ;;  %v1336_v13 = vmul.f32 %v1765_v8, %v1596_v2 }
 0x131   : > { %v1344_v14 = vadd.f32 %v1597_v36, %v1333_v10  ;;  %v1334_v15 = vmul.f32 %v1766_v11, %v1596_v2 }
 0x132   : > { %v1350_v16 = vmax.f32 %v1346_v12, 0.0  ;;  %v1347_v17 = vadd.f32 %v1597_v36, %v1336_v13 }
 0x133   : > { %v1348_v18 = vmax.f32 %v1344_v14, 0.0  ;;  %v1345_v19 = vadd.f32 %v1597_v36, %v1334_v15 }
 0x134   : > { %v1354_v20 = vpack.c.bf16 %v1350_v16, %v1350_v16  ;;  %v1351_v21 = vmax.f32 %v1347_v17, 0.0 }
 0x135   : > { %v1352_v22 = vpack.c.bf16 %v1348_v18, %v1348_v18  ;;  %v1349_v23 = vmax.f32 %v1345_v19, 0.0 }
 0x136   : > { %1358 = vst [vmem:[%s202_s30 + $0x4] sm:$0x3] %v1354_v20  ;;  %v1355_v24 = vpack.c.bf16 %v1351_v21, %v1351_v21 }
 0x137   : > { %1356 = vst [vmem:[%s202_s30] sm:$0x3] %v1352_v22  ;;  %v1353_v25 = vpack.c.bf16 %v1349_v23, %v1349_v23 }
 0x138   : > { %1359 = vst [vmem:[%s202_s30 + $0x6] sm:$0x3] %v1355_v24 }
 0x139   : > { %1357 = vst [vmem:[%s202_s30 + $0x2] sm:$0x3] %v1353_v25 }
 0x13a PF: > { %s14_s15 = sadd.s32 1, %s1858_s15  }
 0x13b   : > { %p11_p5 = scmp.ge.s32.totalorder %s14_s15, 4  }
 0x13d   :  { %13 = sbr.rel (!%p11_p5) target bundleno = 1 (0x1), region = 79 }

// kernel: cnn_forward.8
= control target key start
LH: loop header
LB: loop body
LE: loop exit
PB: predicated region body
PF: predicated region fallthrough
CT: control target
= control target key end

     0   :  { %s2397_s15 = smov 0   ;;  %s2903_s0 = inlined_call_operand.vmem [shape: bf16[8,3,9,128], index: 0, kind: input, shape index: {}]   ;;  %s2904_s1 = inlined_call_operand.vmem [shape: bf16[9,128,256], index: 1, kind: input, shape index: {}]   ;;  %s2905_s2 = inlined_call_operand.vmem [shape: f32[1,256], index: 2, kind: input, shape index: {}]   ;;  %s2906_s3 = inlined_call_operand.vmem [shape: f32[1,256], index: 3, kind: input, shape index: {}]   ;;  %s2907_s4 = inlined_call_operand.vmem [shape: bf16[2,2,2,256], index: 4, kind: output, shape index: {}]  }
   0x1 LB: > { %s2403_s16 = sadd.s32 4294967295, %s2368_s15   ;;  %p1788_p0 = scmp.ge.s32.totalorder %s2368_s15, 1  ;;  %s2368_s15 = sphi %s2397_s15, %s14_s15  }
   0x2   : > { %p164_p1 = scmp.lt.s32.totalorder %s2368_s15, 3 }
   0x4   : > { %p165_p2 = pnand %p1788_p0, %p164_p1 }
   0x5   : > { %v2140_v0 = vld [vmem:[%s2904_s1 + $0x84] ss:$8 sps:$4 sm:$0xff] (!%p165_p2)   ;;  %v2370_v2 = vmov (!%p165_p2), 0   ;;  %v2144_v3 = vld [vmem:[%s2904_s1 + $0x80] ss:$8 sps:$4 sm:$0xff] (!%p165_p2)   ;;  %s1789_s19 = sshll.u32 (!%p165_p2), %s2403_s16, 2 }
   0x6   : > { %168 = sbr.rel (%p165_p2) target bundleno = 395 (0x18b), region = 36  ;;  %v2142_v1 = vld [vmem:[%s2904_s1 + $0x204] ss:$8 sps:$4 sm:$0xff] (!%p165_p2)   ;;  %358 = vmatprep.mubr.bf16.mxu1 (!%p165_p2), %v2370_v2  ;;  %972 = vmatprep.mubr.bf16.mxu0 (!%p165_p2), %v2370_v2  ;;  %v2145_v4 = vld [vmem:[%s2904_s1 + $0x200] ss:$8 sps:$4 sm:$0xff] (!%p165_p2)   ;;  %p191_p3 = scmp.lt.s32.totalorder (!%p165_p2), %s1789_s19, 7 }
   0x7   : > { %326 = vmatprep.subr.bf16.mxu1 (!%p165_p2), %v2140_v0  ;;  %940 = vmatprep.subr.bf16.mxu0 (!%p165_p2), %v2142_v1  ;;  %v2146_v5 = vld [vmem:[%s2904_s1 + $0x94] ss:$8 sps:$4 sm:$0xff] (!%p165_p2)   ;;  %v2150_v7 = vld [vmem:[%s2904_s1 + $0x90] ss:$8 sps:$4 sm:$0xff] (!%p165_p2)   ;;  %v2152_v9 = vld [vmem:[%s2904_s1 + $0xa4] ss:$8 sps:$4 sm:$0xff] (!%p165_p2)  }
   0x8   : > { %327 = vmatpush1.bf16.msra.mxu1 (!%p165_p2), %v2144_v3  ;;  %941 = vmatpush1.bf16.msra.mxu0 (!%p165_p2), %v2145_v4  ;;  %v2148_v6 = vld [vmem:[%s2904_s1 + $0x214] ss:$8 sps:$4 sm:$0xff] (!%p165_p2)   ;;  %v2151_v8 = vld [vmem:[%s2904_s1 + $0x210] ss:$8 sps:$4 sm:$0xff] (!%p165_p2)   ;;  %v2154_v10 = vld [vmem:[%s2904_s1 + $0x224] ss:$8 sps:$4 sm:$0xff] (!%p165_p2)  }
   0x9   : > { %328 = vmatprep.subr.bf16.mxu1 (!%p165_p2), %v2146_v5  ;;  %942 = vmatprep.subr.bf16.mxu0 (!%p165_p2), %v2148_v6  ;;  %v2156_v11 = vld [vmem:[%s2904_s1 + $0xa0] ss:$8 sps:$4 sm:$0xff] (!%p165_p2)   ;;  %v2158_v13 = vld [vmem:[%s2904_s1 + $0xb4] ss:$8 sps:$4 sm:$0xff] (!%p165_p2)   ;;  %v2162_v15 = vld [vmem:[%s2904_s1 + $0xb0] ss:$8 sps:$4 sm:$0xff] (!%p165_p2)  }
   0xa   : > { %v2157_v12 = vld [vmem:[%s2904_s1 + $0x220] ss:$8 sps:$4 sm:$0xff] (!%p165_p2)   ;;  %v2160_v14 = vld [vmem:[%s2904_s1 + $0x234] ss:$8 sps:$4 sm:$0xff] (!%p165_p2)   ;;  %v2163_v16 = vld [vmem:[%s2904_s1 + $0x230] ss:$8 sps:$4 sm:$0xff] (!%p165_p2)  }
   0xb   : > { %v2164_v17 = vld [vmem:[%s2904_s1 + $0xc4] ss:$8 sps:$4 sm:$0xff] (!%p165_p2)   ;;  %v2168_v19 = vld [vmem:[%s2904_s1 + $0xc0] ss:$8 sps:$4 sm:$0xff] (!%p165_p2)   ;;  %v2170_v21 = vld [vmem:[%s2904_s1 + $0xd4] ss:$8 sps:$4 sm:$0xff] (!%p165_p2)  }
   0xc   : > { %329 = vmatpush1.bf16.msra.mxu1 (!%p165_p2), %v2150_v7  ;;  %943 = vmatpush1.bf16.msra.mxu0 (!%p165_p2), %v2151_v8  ;;  %v2166_v18 = vld [vmem:[%s2904_s1 + $0x244] ss:$8 sps:$4 sm:$0xff] (!%p165_p2)   ;;  %v2169_v20 = vld [vmem:[%s2904_s1 + $0x240] ss:$8 sps:$4 sm:$0xff] (!%p165_p2)   ;;  %v2172_v22 = vld [vmem:[%s2904_s1 + $0x254] ss:$8 sps:$4 sm:$0xff] (!%p165_p2)  }
   0xd   : > { %330 = vmatprep.subr.bf16.mxu1 %v2152_v9  ;;  %944 = vmatprep.subr.bf16.mxu0 %v2154_v10  ;;  %s2911_s19 = smov (!%p191_p3, %s1789_s19), 7  ;;  %v2174_v23 = vld [vmem:[%s2904_s1 + $0xd0] ss:$8 sps:$4 sm:$0xff]   ;;  %v2176_v25 = vld [vmem:[%s2904_s1 + $0xe4] ss:$8 sps:$4 sm:$0xff]   ;;  %p197_p4 = scmp.lt.s32.totalorder %s2403_s16, 1 }
   0xe   : > { %s2129_s14 = smul.u32 24, %s2911_s19  ;;  %v2175_v24 = vld [vmem:[%s2904_s1 + $0x250] ss:$8 sps:$4 sm:$0xff]   ;;  %v2178_v26 = vld [vmem:[%s2904_s1 + $0x264] ss:$8 sps:$4 sm:$0xff]  }
   0xf   : > { %v2180_v27 = vld [vmem:[%s2904_s1 + $0xe0] ss:$8 sps:$4 sm:$0xff]   ;;  %v2182_v29 = vld [vmem:[%s2904_s1 + $0xf4] ss:$8 sps:$4 sm:$0xff]   ;;  %v2186_v31 = vld [vmem:[%s2904_s1 + $0xf0] ss:$8 sps:$4 sm:$0xff]  }
  0x10   : > { %331 = vmatpush1.bf16.msra.mxu1 %v2156_v11  ;;  %945 = vmatpush1.bf16.msra.mxu0 %v2157_v12  ;;  %v2181_v28 = vld [vmem:[%s2904_s1 + $0x260] ss:$8 sps:$4 sm:$0xff]   ;;  %s2497_s29 = scalar_lea.vmem %s2903_s0, %s2129_s14  ;;  %v2184_v30 = vld [vmem:[%s2904_s1 + $0x274] ss:$8 sps:$4 sm:$0xff]   ;;  %v2187_v32 = vld [vmem:[%s2904_s1 + $0x270] ss:$8 sps:$4 sm:$0xff]  }
  0x11   : > { %332 = vmatprep.subr.bf16.mxu1 %v2158_v13  ;;  %946 = vmatprep.subr.bf16.mxu0 %v2160_v14  ;;  %v2190_v33 = vld [vmem:[%s2904_s1 + $0x4] ss:$8 sps:$4 sm:$0xff]   ;;  %v2194_v35 = vld [vmem:[%s2497_s29 + $0x18] ss:$8 sps:$4 sm:$0xff]   ;;  %v2195_v36 = vld [vmem:[%s2497_s29 + $0x48] ss:$8 sps:$4 sm:$0xff]  }
  0x12   : > { %v2193_v34 = vld [vmem:[%s2904_s1 + $0x284] ss:$8 sps:$4 sm:$0xff]   ;;  %v2188_v37 = vld [vmem:[%s2904_s1] ss:$8 sps:$4 sm:$0xff]   ;;  %v2198_v39 = vld [vmem:[%s2904_s1 + $0x14] ss:$8 sps:$4 sm:$0xff]  }
  0x13   : > { %v2191_v38 = vld [vmem:[%s2904_s1 + $0x280] ss:$8 sps:$4 sm:$0xff]   ;;  %v2201_v40 = vld [vmem:[%s2904_s1 + $0x294] ss:$8 sps:$4 sm:$0xff]   ;;  %v2196_v41 = vld [vmem:[%s2904_s1 + $0x10] ss:$8 sps:$4 sm:$0xff]  }
  0x14   : > { %333 = vmatpush1.bf16.msra.mxu1 %v2162_v15  ;;  %947 = vmatpush1.bf16.msra.mxu0 %v2163_v16  ;;  %v2199_v42 = vld [vmem:[%s2904_s1 + $0x290] ss:$8 sps:$4 sm:$0xff]   ;;  %v2204_v43 = vld [vmem:[%s2904_s1 + $0x24] ss:$8 sps:$4 sm:$0xff]   ;;  %v2202_v45 = vld [vmem:[%s2904_s1 + $0x20] ss:$8 sps:$4 sm:$0xff]  }
  0x15   : > { %334 = vmatprep.subr.bf16.mxu1 %v2164_v17  ;;  %948 = vmatprep.subr.bf16.mxu0 %v2166_v18  ;;  %v2207_v44 = vld [vmem:[%s2904_s1 + $0x2a4] ss:$8 sps:$4 sm:$0xff]   ;;  %v2205_v46 = vld [vmem:[%s2904_s1 + $0x2a0] ss:$8 sps:$4 sm:$0xff]   ;;  %v2210_v47 = vld [vmem:[%s2904_s1 + $0x34] ss:$8 sps:$4 sm:$0xff]  }
  0x16   : > { %v2213_v48 = vld [vmem:[%s2904_s1 + $0x2b4] ss:$8 sps:$4 sm:$0xff]   ;;  %v2208_v49 = vld [vmem:[%s2904_s1 + $0x30] ss:$8 sps:$4 sm:$0xff]   ;;  %v2216_v51 = vld [vmem:[%s2904_s1 + $0x44] ss:$8 sps:$4 sm:$0xff]  }
  0x17   : > { %v2211_v50 = vld [vmem:[%s2904_s1 + $0x2b0] ss:$8 sps:$4 sm:$0xff]   ;;  %v2219_v52 = vld [vmem:[%s2904_s1 + $0x2c4] ss:$8 sps:$4 sm:$0xff]   ;;  %v2214_v53 = vld [vmem:[%s2904_s1 + $0x40] ss:$8 sps:$4 sm:$0xff]  }
  0x18   : > { %335 = vmatpush1.bf16.msra.mxu1 %v2168_v19  ;;  %949 = vmatpush1.bf16.msra.mxu0 %v2169_v20  ;;  %vm502_vm0 = vsmask.f32 3328  ;;  %v2217_v54 = vld [vmem:[%s2904_s1 + $0x2c0] ss:$8 sps:$4 sm:$0xff]   ;;  %v2222_v55 = vld [vmem:[%s2904_s1 + $0x54] ss:$8 sps:$4 sm:$0xff]  }
  0x19   : > { %336 = vmatprep.subr.bf16.mxu1 %v2170_v21  ;;  %950 = vmatprep.subr.bf16.mxu0 %v2172_v22  ;;  %v2225_v56 = vld [vmem:[%s2904_s1 + $0x2d4] ss:$8 sps:$4 sm:$0xff]   ;;  %v1947_v57 = vld [vmem:[%s2497_s29 + $0x30] sm:$0xf]  ;;  %v1949_v59 = vld [vmem:[%s2497_s29 + $0x38] sm:$0xf] }
  0x1a   : > { %v1948_v58 = vld [vmem:[%s2497_s29 + $0x34] sm:$0x1]  ;;  %v1950_v60 = vld [vmem:[%s2497_s29 + $0x3c] sm:$0x1]  ;;  %v992_v61 = vshrl.u32 %v1947_v57, 16  ;;  %v995_v62 = vshll.u32 %v1947_v57, 16 }
  0x1b   : > { %v1006_v63 = vshrl.u32 %v1949_v59, 16  ;;  %v2220_v0 = vld [vmem:[%s2904_s1 + $0x50] ss:$8 sps:$4 sm:$0xff]   ;;  %v1001_v3 = vshll.u32 %v1948_v58, 16  ;;  %v1009_v4 = vshll.u32 %v1949_v59, 16  ;;  %v1015_v8 = vshll.u32 %v1950_v60, 16 }
  0x1c   : > { %337 = vmatpush1.bf16.msra.mxu1 %v2174_v23  ;;  %951 = vmatpush1.bf16.msra.mxu0 %v2175_v24  ;;  %v2223_v1 = vld [vmem:[%s2904_s1 + $0x2d0] ss:$8 sps:$4 sm:$0xff]   ;;  %v994_v5 = vrot.slane %v992_v61, 4  ;;  %v997_v6 = vrot.slane %v995_v62, 5  ;;  %v2228_v9 = vld [vmem:[%s2904_s1 + $0x64] ss:$8 sps:$4 sm:$0xff]  }
  0x1d   : > { %338 = vmatprep.subr.bf16.mxu1 %v2176_v25  ;;  %952 = vmatprep.subr.bf16.mxu0 %v2178_v26  ;;  %v1008_v7 = vrot.slane %v1006_v63, 4  ;;  %v2231_v10 = vld [vmem:[%s2904_s1 + $0x2e4] ss:$8 sps:$4 sm:$0xff]   ;;  %v1011_v11 = vrot.slane %v1009_v4, 5  ;;  %v2226_v12 = vld [vmem:[%s2904_s1 + $0x60] ss:$8 sps:$4 sm:$0xff]  }
  0x1e   : > { %vm503_vm1 = vsmask.f32 7440  ;;  %v998_v13 = vor.u32 %v997_v6, %v994_v5  ;;  %v2229_v14 = vld [vmem:[%s2904_s1 + $0x2e0] ss:$8 sps:$4 sm:$0xff]   ;;  %v2234_v16 = vld [vmem:[%s2904_s1 + $0x74] ss:$8 sps:$4 sm:$0xff]  }
  0x1f   : > { %v1012_v15 = vor.u32 %v1011_v11, %v1008_v7  ;;  %v1003_v18 = vrot.slane %v1001_v3, 5  ;;  %v1017_v19 = vrot.slane %v1015_v8, 5  ;;  %v2237_v20 = vld [vmem:[%s2904_s1 + $0x2f4] ss:$8 sps:$4 sm:$0xff]   ;;  %vm2610_vm2 = vmor %vm502_vm0, %vm503_vm1  ;;  %v2232_v23 = vld [vmem:[%s2904_s1 + $0x70] ss:$8 sps:$4 sm:$0xff]  }
  0x20   : > { %339 = vmatpush1.bf16.msra.mxu1 %v2180_v27  ;;  %953 = vmatpush1.bf16.msra.mxu0 %v2181_v28  ;;  %v999_v17 = vrot.slane %v998_v13, 4  ;;  %v2235_v24 = vld [vmem:[%s2904_s1 + $0x2f0] ss:$8 sps:$4 sm:$0xff]   ;;  %v2240_v27 = vld [vmem:[%s2904_s1 + $0x104] ss:$8 sps:$4 sm:$0xff]   ;;  %s2913_s16 = smov (!%p197_p4, %s2403_s16), 1 }
  0x21   : > { %340 = vmatprep.subr.bf16.mxu1 %v2182_v29  ;;  %954 = vmatprep.subr.bf16.mxu0 %v2184_v30  ;;  %v1013_v22 = vrot.slane %v1012_v15, 4  ;;  %v2243_v28 = vld [vmem:[%s2904_s1 + $0x304] ss:$8 sps:$4 sm:$0xff]   ;;  %v2244_v29 = vld [vmem:[%s2497_s29] ss:$8 sps:$4 sm:$0xff]   ;;  %s1791_s9 = sshll.u32 %s2913_s16, 2 }
  0x22   : > { %v1004_v25 = vsel %vm2610_vm2, %v999_v17, %v1003_v18  ;;  %v499_v61 = vld [vmem:[%s2497_s29 + $0x4] sm:$0x1]  ;;  %v501_v62 = vld [vmem:[%s2497_s29 + $0xc] sm:$0x1]  ;;  %v2269_v63 = vld [vmem:[%s2904_s1 + $0x150] ss:$8 sps:$4 sm:$0xff]   ;;  %s200_s12 = scalar_lea.vmem %s2907_s4, %s1791_s9 }
  0x23   : > { %v1018_v26 = vsel %vm2610_vm2, %v1013_v22, %v1017_v19  ;;  %v515_v3 = vshll.u32 %v499_v61, 16  ;;  %v529_v5 = vshll.u32 %v501_v62, 16  ;;  %v2277_v6 = vld [vmem:[%s2904_s1 + $0x164] ss:$8 sps:$4 sm:$0xff]   ;;  %v2275_v8 = vld [vmem:[%s2904_s1 + $0x160] ss:$8 sps:$4 sm:$0xff]  }
  0x24   : > { %341 = vmatpush1.bf16.msra.mxu1 %v2186_v31  ;;  %955 = vmatpush1.bf16.msra.mxu0 %v2187_v32  ;;  %v1967_v30 = vcombine.low %v1004_v25, %v1018_v26  ;;  %v2238_v31 = vld [vmem:[%s2904_s1 + $0x100] ss:$8 sps:$4 sm:$0xff]   ;;  %v2280_v7 = vld [vmem:[%s2904_s1 + $0x364] ss:$8 sps:$4 sm:$0xff]   ;;  %v2286_v15 = vld [vmem:[%s2904_s1 + $0x374] ss:$8 sps:$4 sm:$0xff]  }
  0x25   : > { %455 = vmatprep.subr.bf16.mxu1 %v2190_v33  ;;  %1120 = vmatprep.subr.bf16.mxu0 %v2193_v34  ;;  %v2241_v32 = vld [vmem:[%s2904_s1 + $0x300] ss:$8 sps:$4 sm:$0xff]   ;;  %v2247_v33 = vld [vmem:[%s2904_s1 + $0x114] ss:$8 sps:$4 sm:$0xff]   ;;  %v517_v11 = vrot.slane %v515_v3, 5  ;;  %v531_v13 = vrot.slane %v529_v5, 5 }
  0x26   : > { %v2250_v34 = vld [vmem:[%s2904_s1 + $0x314] ss:$8 sps:$4 sm:$0xff]   ;;  %v2284_v17 = vld [vmem:[%s2904_s1 + $0x370] ss:$8 sps:$4 sm:$0xff]   ;;  %v2292_v22 = vld [vmem:[%s2904_s1 + $0x384] ss:$8 sps:$4 sm:$0xff]  }
  0x27   : > { %359 = vmatmul.mubr.bf16.vlgmr.msra.gmra.mrb[0].mxu1 %v2194_v35  ;;  %973 = vmatmul.mubr.bf16.vlgmr.msra.gmra.mrb[0].mxu0 %v2195_v36  ;;  %v2245_v35 = vld [vmem:[%s2904_s1 + $0x110] ss:$8 sps:$4 sm:$0xff]   ;;  %v2290_v26 = vld [vmem:[%s2904_s1 + $0x380] ss:$8 sps:$4 sm:$0xff]   ;;  %v2346_v61 = vld [vmem:[%s2904_s1 + $0x424] ss:$8 sps:$4 sm:$0xff]  }
  0x28   : > { %456 = vmatpush1.bf16.msra.mxu1 %v2188_v37  ;;  %1121 = vmatpush1.bf16.msra.mxu0 %v2191_v38  ;;  %v2248_v36 = vld [vmem:[%s2904_s1 + $0x310] ss:$8 sps:$4 sm:$0xff]   ;;  %v2253_v37 = vld [vmem:[%s2904_s1 + $0x124] ss:$8 sps:$4 sm:$0xff]   ;;  %v2344_v62 = vld [vmem:[%s2904_s1 + $0x420] ss:$8 sps:$4 sm:$0xff]  }
  0x29   : > { %457 = vmatprep.subr.bf16.mxu1 %v2198_v39  ;;  %1122 = vmatprep.subr.bf16.mxu0 %v2201_v40  ;;  %v2256_v38 = vld [vmem:[%s2904_s1 + $0x324] ss:$8 sps:$4 sm:$0xff]   ;;  %v2251_v39 = vld [vmem:[%s2904_s1 + $0x120] ss:$8 sps:$4 sm:$0xff]  }
  0x2a   : > { %487 = vmatprep.mubr.bf16.mxu1 %v2370_v2  ;;  %1152 = vmatprep.mubr.bf16.mxu0 %v2370_v2  ;;  %v2254_v40 = vld [vmem:[%s2904_s1 + $0x320] ss:$8 sps:$4 sm:$0xff]  }
  0x2b   : > { %v2293_v25 = vld [vmem:[%s2497_s29 + $0x8] ss:$8 sps:$4 sm:$0xff]   ;;  %v1669_v21 = vld [vmem:[%s2906_s3] sm:$0x3] }
  0x2c   : > { %458 = vmatpush1.bf16.msra.mxu1 %v2196_v41  ;;  %1123 = vmatpush1.bf16.msra.mxu0 %v2199_v42  ;;  %v2259_v41 = vld [vmem:[%s2904_s1 + $0x134] ss:$8 sps:$4 sm:$0xff]  }
  0x2d   : > { %459 = vmatprep.subr.bf16.mxu1 %v2204_v43  ;;  %1124 = vmatprep.subr.bf16.mxu0 %v2207_v44  ;;  %v2262_v42 = vld [vmem:[%s2904_s1 + $0x334] ss:$8 sps:$4 sm:$0xff]   ;;  %v498_v43 = vld [vmem:[%s2497_s29] sm:$0xf]  ;;  %v500_v44 = vld [vmem:[%s2497_s29 + $0x8] sm:$0xf] }
  0x30   : > { %460 = vmatpush1.bf16.msra.mxu1 %v2202_v45  ;;  %1125 = vmatpush1.bf16.msra.mxu0 %v2205_v46  ;;  %v2257_v45 = vld [vmem:[%s2904_s1 + $0x130] ss:$8 sps:$4 sm:$0xff]  }
  0x31   : > { %461 = vmatprep.subr.bf16.mxu1 %v2210_v47  ;;  %1126 = vmatprep.subr.bf16.mxu0 %v2213_v48  ;;  %v2260_v46 = vld [vmem:[%s2904_s1 + $0x330] ss:$8 sps:$4 sm:$0xff]   ;;  %v506_v47 = vshrl.u32 %v498_v43, 16  ;;  %v509_v48 = vshll.u32 %v498_v43, 16  ;;  %v2320_v43 = vld [vmem:[%s2904_s1 + $0x1d4] ss:$8 sps:$4 sm:$0xff]  }
  0x33   : > { %v508_v57 = vrot.slane %v506_v47, 4  ;;  %v511_v58 = vrot.slane %v509_v48, 5  ;;  %v2326_v47 = vld [vmem:[%s2904_s1 + $0x1e4] ss:$8 sps:$4 sm:$0xff]  }
  0x34   : > { %462 = vmatpush1.bf16.msra.mxu1 %v2208_v49  ;;  %1127 = vmatpush1.bf16.msra.mxu0 %v2211_v50  ;;  %v520_v49 = vshrl.u32 %v500_v44, 16  ;;  %v523_v50 = vshll.u32 %v500_v44, 16  ;;  %v2323_v44 = vld [vmem:[%s2904_s1 + $0x3d4] ss:$8 sps:$4 sm:$0xff]   ;;  %v2329_v48 = vld [vmem:[%s2904_s1 + $0x3e4] ss:$8 sps:$4 sm:$0xff]  }
  0x35   : > { %463 = vmatprep.subr.bf16.mxu1 %v2216_v51  ;;  %1128 = vmatprep.subr.bf16.mxu0 %v2219_v52  ;;  %v2265_v51 = vld [vmem:[%s2904_s1 + $0x144] ss:$8 sps:$4 sm:$0xff]  }
  0x36   : > { %v2268_v52 = vld [vmem:[%s2904_s1 + $0x344] ss:$8 sps:$4 sm:$0xff]   ;;  %v522_v59 = vrot.slane %v520_v49, 4  ;;  %v525_v60 = vrot.slane %v523_v50, 5  ;;  %v2324_v49 = vld [vmem:[%s2904_s1 + $0x1e0] ss:$8 sps:$4 sm:$0xff]  }
  0x37   : > { %v2327_v50 = vld [vmem:[%s2904_s1 + $0x3e0] ss:$8 sps:$4 sm:$0xff]  }
  0x38   : > { %464 = vmatpush1.bf16.msra.mxu1 %v2214_v53  ;;  %1129 = vmatpush1.bf16.msra.mxu0 %v2217_v54  ;;  %v2263_v53 = vld [vmem:[%s2904_s1 + $0x140] ss:$8 sps:$4 sm:$0xff]   ;;  %v526_v4 = vor.u32 %v525_v60, %v522_v59  ;;  %v2343_v59 = vld [vmem:[%s2904_s1 + $0x414] ss:$8 sps:$4 sm:$0xff]   ;;  %v2341_v60 = vld [vmem:[%s2904_s1 + $0x410] ss:$8 sps:$4 sm:$0xff]  }
  0x39   : > { %465 = vmatprep.subr.bf16.mxu1 %v2222_v55  ;;  %1130 = vmatprep.subr.bf16.mxu0 %v2225_v56  ;;  %v2266_v54 = vld [vmem:[%s2904_s1 + $0x340] ss:$8 sps:$4 sm:$0xff]   ;;  %v2271_v55 = vld [vmem:[%s2904_s1 + $0x154] ss:$8 sps:$4 sm:$0xff]  }
  0x3a   : > { %v2274_v56 = vld [vmem:[%s2904_s1 + $0x354] ss:$8 sps:$4 sm:$0xff]  }
  0x3c   : > { %466 = vmatpush1.bf16.msra.mxu1 %v2220_v0  ;;  %1131 = vmatpush1.bf16.msra.mxu0 %v2223_v1  ;;  %v2272_v0 = vld [vmem:[%s2904_s1 + $0x350] ss:$8 sps:$4 sm:$0xff]   ;;  %v512_v1 = vor.u32 %v511_v58, %v508_v57  ;;  %v2340_v57 = vld [vmem:[%s2497_s29 + $0x20] ss:$8 sps:$4 sm:$0xff]  }
  0x3d   : > { %467 = vmatprep.subr.bf16.mxu1 %v2228_v9  ;;  %1132 = vmatprep.subr.bf16.mxu0 %v2231_v10  ;;  %v2278_v9 = vld [vmem:[%s2904_s1 + $0x360] ss:$8 sps:$4 sm:$0xff]  }
  0x3e   : > { %v513_v10 = vrot.slane %v512_v1, 4  ;;  %v2337_v58 = vld [vmem:[%s2904_s1 + $0x400] ss:$8 sps:$4 sm:$0xff]   ;;  %v2056_v1 = vld [vmem:[%s2497_s29 + $0x10] sm:$0xf] }
  0x3f   : > { %v1492_v5 = vshrl.u32 %v2056_v1, 16 }
  0x40   : > { %468 = vmatpush1.bf16.msra.mxu1 %v2226_v12  ;;  %1133 = vmatpush1.bf16.msra.mxu0 %v2229_v14  ;;  %v527_v12 = vrot.slane %v526_v4, 4  ;;  %v2283_v14 = vld [vmem:[%s2904_s1 + $0x174] ss:$8 sps:$4 sm:$0xff]   ;;  %v518_v18 = vsel %vm2610_vm2, %v513_v10, %v517_v11 }
  0x41   : > { %469 = vmatprep.subr.bf16.mxu1 %v2234_v16  ;;  %1134 = vmatprep.subr.bf16.mxu0 %v2237_v20  ;;  %v2281_v16 = vld [vmem:[%s2904_s1 + $0x170] ss:$8 sps:$4 sm:$0xff]   ;;  %v2289_v20 = vld [vmem:[%s2904_s1 + $0x184] ss:$8 sps:$4 sm:$0xff]   ;;  %v1494_v11 = vrot.slane %v1492_v5, 4 }
  0x42   : > { %v532_v19 = vsel %vm2610_vm2, %v527_v12, %v531_v13  ;;  %v2355_v13 = vld [vmem:[%s2904_s1 + $0x454] ss:$8 sps:$4 sm:$0xff]  }
  0x44   : > { %470 = vmatpush1.bf16.msra.mxu1 %v2232_v23  ;;  %1135 = vmatpush1.bf16.msra.mxu0 %v2235_v24  ;;  %v2287_v23 = vld [vmem:[%s2904_s1 + $0x180] ss:$8 sps:$4 sm:$0xff]   ;;  %v1860_v24 = vcombine.low %v518_v18, %v532_v19 }
  0x45   : > { %634 = vmatprep.subr.bf16.mxu1 %v2240_v27  ;;  %1273 = vmatprep.subr.bf16.mxu0 %v2243_v28  ;;  %v2296_v27 = vld [vmem:[%s2904_s1 + $0x194] ss:$8 sps:$4 sm:$0xff]  }
  0x46   : > { %v2299_v28 = vld [vmem:[%s2904_s1 + $0x394] ss:$8 sps:$4 sm:$0xff]  }
  0x47   : > { %488 = vmatmul.mubr.bf16.vlgmr.msra.gmra.mrb[0].mxu1 %v2244_v29  ;;  %1153 = vmatmul.mubr.bf16.vlgmr.msra.gmra.mrb[0].mxu0 %v1967_v30  ;;  %v2294_v29 = vld [vmem:[%s2904_s1 + $0x190] ss:$8 sps:$4 sm:$0xff]  }
  0x48   : > { %635 = vmatpush1.bf16.msra.mxu1 %v2238_v31  ;;  %1274 = vmatpush1.bf16.msra.mxu0 %v2241_v32  ;;  %v2297_v30 = vld [vmem:[%s2904_s1 + $0x390] ss:$8 sps:$4 sm:$0xff]   ;;  %v2302_v31 = vld [vmem:[%s2904_s1 + $0x1a4] ss:$8 sps:$4 sm:$0xff]  }
  0x49   : > { %636 = vmatprep.subr.bf16.mxu1 %v2247_v33  ;;  %1275 = vmatprep.subr.bf16.mxu0 %v2250_v34  ;;  %v2305_v32 = vld [vmem:[%s2904_s1 + $0x3a4] ss:$8 sps:$4 sm:$0xff]   ;;  %v2300_v33 = vld [vmem:[%s2904_s1 + $0x1a0] ss:$8 sps:$4 sm:$0xff]  }
  0x4a   : > { %666 = vmatprep.mubr.bf16.mxu1 %v2370_v2  ;;  %1305 = vmatprep.mubr.bf16.mxu0 %v2370_v2  ;;  %v2303_v34 = vld [vmem:[%s2904_s1 + $0x3a0] ss:$8 sps:$4 sm:$0xff]  }
  0x4c   : > { %637 = vmatpush1.bf16.msra.mxu1 %v2245_v35  ;;  %1276 = vmatpush1.bf16.msra.mxu0 %v2248_v36  ;;  %v2308_v35 = vld [vmem:[%s2904_s1 + $0x1b4] ss:$8 sps:$4 sm:$0xff]  }
  0x4d   : > { %638 = vmatprep.subr.bf16.mxu1 %v2253_v37  ;;  %1277 = vmatprep.subr.bf16.mxu0 %v2256_v38  ;;  %v2311_v36 = vld [vmem:[%s2904_s1 + $0x3b4] ss:$8 sps:$4 sm:$0xff]   ;;  %v2306_v37 = vld [vmem:[%s2904_s1 + $0x1b0] ss:$8 sps:$4 sm:$0xff]  }
  0x4e   : > { %v2309_v38 = vld [vmem:[%s2904_s1 + $0x3b0] ss:$8 sps:$4 sm:$0xff]  }
  0x50   : > { %639 = vmatpush1.bf16.msra.mxu1 %v2251_v39  ;;  %1278 = vmatpush1.bf16.msra.mxu0 %v2254_v40  ;;  %v2314_v39 = vld [vmem:[%s2904_s1 + $0x1c4] ss:$8 sps:$4 sm:$0xff]  }
  0x51   : > { %640 = vmatprep.subr.bf16.mxu1 %v2259_v41  ;;  %1279 = vmatprep.subr.bf16.mxu0 %v2262_v42  ;;  %v2317_v40 = vld [vmem:[%s2904_s1 + $0x3c4] ss:$8 sps:$4 sm:$0xff]   ;;  %v2312_v41 = vld [vmem:[%s2904_s1 + $0x1c0] ss:$8 sps:$4 sm:$0xff]  }
  0x52   : > { %v2315_v42 = vld [vmem:[%s2904_s1 + $0x3c0] ss:$8 sps:$4 sm:$0xff]  }
  0x54   : > { %641 = vmatpush1.bf16.msra.mxu1 %v2257_v45  ;;  %1280 = vmatpush1.bf16.msra.mxu0 %v2260_v46  ;;  %v2318_v45 = vld [vmem:[%s2904_s1 + $0x1d0] ss:$8 sps:$4 sm:$0xff]  }
  0x55   : > { %642 = vmatprep.subr.bf16.mxu1 %v2265_v51  ;;  %1281 = vmatprep.subr.bf16.mxu0 %v2268_v52  ;;  %v2321_v46 = vld [vmem:[%s2904_s1 + $0x3d0] ss:$8 sps:$4 sm:$0xff]   ;;  %v2332_v51 = vld [vmem:[%s2904_s1 + $0x1f4] ss:$8 sps:$4 sm:$0xff]  }
  0x56   : > { %v2335_v52 = vld [vmem:[%s2904_s1 + $0x3f4] ss:$8 sps:$4 sm:$0xff]  }
  0x58   : > { %643 = vmatpush1.bf16.msra.mxu1 %v2263_v53  ;;  %1282 = vmatpush1.bf16.msra.mxu0 %v2266_v54  ;;  %v2330_v53 = vld [vmem:[%s2904_s1 + $0x1f0] ss:$8 sps:$4 sm:$0xff]  }
  0x59   : > { %644 = vmatprep.subr.bf16.mxu1 %v2271_v55  ;;  %1283 = vmatprep.subr.bf16.mxu0 %v2274_v56  ;;  %v2333_v54 = vld [vmem:[%s2904_s1 + $0x3f0] ss:$8 sps:$4 sm:$0xff]   ;;  %v2339_v55 = vld [vmem:[%s2904_s1 + $0x404] ss:$8 sps:$4 sm:$0xff]  }
  0x5a   : > { %v2336_v56 = vld [vmem:[%s2497_s29 + $0x30] ss:$8 sps:$4 sm:$0xff]  }
  0x5c   : > { %645 = vmatpush1.bf16.msra.mxu1 %v2269_v63  ;;  %1284 = vmatpush1.bf16.msra.mxu0 %v2272_v0  ;;  %v2349_v63 = vld [vmem:[%s2904_s1 + $0x434] ss:$8 sps:$4 sm:$0xff]   ;;  %v2054_v0 = vld [vmem:[%s2497_s29 + $0x8] sm:$0xf] }
  0x5d   : > { %646 = vmatprep.subr.bf16.mxu1 %v2277_v6  ;;  %1285 = vmatprep.subr.bf16.mxu0 %v2280_v7  ;;  %v1478_v3 = vshrl.u32 %v2054_v0, 16  ;;  %v1481_v4 = vshll.u32 %v2054_v0, 16  ;;  %v1495_v6 = vshll.u32 %v2056_v1, 16  ;;  %v2352_v7 = vld [vmem:[%s2904_s1 + $0x444] ss:$8 sps:$4 sm:$0xff]  }
  0x5f   : > { %v1483_v10 = vrot.slane %v1481_v4, 5  ;;  %v1497_v12 = vrot.slane %v1495_v6, 5 }
  0x60   : > { %647 = vmatpush1.bf16.msra.mxu1 %v2275_v8  ;;  %1286 = vmatpush1.bf16.msra.mxu0 %v2278_v9  ;;  %v2350_v8 = vld [vmem:[%s2904_s1 + $0x440] ss:$8 sps:$4 sm:$0xff]   ;;  %v1480_v9 = vrot.slane %v1478_v3, 4 }
  0x61   : > { %648 = vmatprep.subr.bf16.mxu1 %v2283_v14  ;;  %1287 = vmatprep.subr.bf16.mxu0 %v2286_v15  ;;  %v2055_v14 = vld [vmem:[%s2497_s29 + $0xc] sm:$0x1]  ;;  %v2057_v15 = vld [vmem:[%s2497_s29 + $0x14] sm:$0x1]  ;;  %v1498_v19 = vor.u32 %v1497_v12, %v1494_v11 }
  0x62   : > { %v1487_v18 = vshll.u32 %v2055_v14, 16 }
  0x64   : > { %649 = vmatpush1.bf16.msra.mxu1 %v2281_v16  ;;  %1288 = vmatpush1.bf16.msra.mxu0 %v2284_v17  ;;  %v2353_v16 = vld [vmem:[%s2904_s1 + $0x450] ss:$8 sps:$4 sm:$0xff]   ;;  %v1484_v17 = vor.u32 %v1483_v10, %v1480_v9 }
  0x65   : > { %787 = vmatprep.subr.bf16.mxu1 %v2289_v20  ;;  %1426 = vmatprep.subr.bf16.mxu0 %v2292_v22  ;;  %v1501_v20 = vshll.u32 %v2057_v15, 16  ;;  %v2358_v22 = vld [vmem:[%s2904_s1 + $0x464] ss:$8 sps:$4 sm:$0xff]  }
  0x67   : > { %667 = vmatmul.mubr.bf16.vlgmr.msra.gmra.mrb[0].mxu1 %v1860_v24  ;;  %1306 = vmatmul.mubr.bf16.vlgmr.msra.gmra.mrb[0].mxu0 %v2293_v25  ;;  %v1485_v24 = vrot.slane %v1484_v17, 4  ;;  %v1489_v25 = vrot.slane %v1487_v18, 5 }
  0x68   : > { %788 = vmatpush1.bf16.msra.mxu1 %v2287_v23  ;;  %1427 = vmatpush1.bf16.msra.mxu0 %v2290_v26  ;;  %v2356_v23 = vld [vmem:[%s2904_s1 + $0x460] ss:$8 sps:$4 sm:$0xff]   ;;  %v1499_v26 = vrot.slane %v1498_v19, 4 }
  0x69   : > { %789 = vmatprep.subr.bf16.mxu1 %v2296_v27  ;;  %1428 = vmatprep.subr.bf16.mxu0 %v2299_v28  ;;  %v1503_v27 = vrot.slane %v1501_v20, 5  ;;  %v2361_v28 = vld [vmem:[%s2904_s1 + $0x474] ss:$8 sps:$4 sm:$0xff]  }
  0x6a   : > { %819 = vmatprep.mubr.bf16.mxu1 %v2370_v2  ;;  %1458 = vmatprep.mubr.bf16.mxu0 %v2370_v2 }
  0x6c   : > { %790 = vmatpush1.bf16.msra.mxu1 %v2294_v29  ;;  %1429 = vmatpush1.bf16.msra.mxu0 %v2297_v30  ;;  %v2359_v29 = vld [vmem:[%s2904_s1 + $0x470] ss:$8 sps:$4 sm:$0xff]   ;;  %v1490_v30 = vsel %vm2610_vm2, %v1485_v24, %v1489_v25 }
  0x6d   : > { %791 = vmatprep.subr.bf16.mxu1 %v2302_v31  ;;  %1430 = vmatprep.subr.bf16.mxu0 %v2305_v32  ;;  %v1504_v31 = vsel %vm2610_vm2, %v1499_v26, %v1503_v27 }
  0x6e   : > { %v2074_v32 = vcombine.low %v1490_v30, %v1504_v31 }
  0x70   : > { %792 = vmatpush1.bf16.msra.mxu1 %v2300_v33  ;;  %1431 = vmatpush1.bf16.msra.mxu0 %v2303_v34 }
  0x71   : > { %793 = vmatprep.subr.bf16.mxu1 %v2308_v35  ;;  %1432 = vmatprep.subr.bf16.mxu0 %v2311_v36 }
  0x74   : > { %794 = vmatpush1.bf16.msra.mxu1 %v2306_v37  ;;  %1433 = vmatpush1.bf16.msra.mxu0 %v2309_v38  ;;  %v1655_v37 = vlaneseq }
  0x75   : > { %795 = vmatprep.subr.bf16.mxu1 %v2314_v39  ;;  %1434 = vmatprep.subr.bf16.mxu0 %v2317_v40  ;;  %v1653_v40 = vld [vmem:[%s2905_s2] sm:$0x3] }
  0x76   : > { %v1656_v38 = vshrl.u32 %v1655_v37, 7 }
  0x78   : > { %796 = vmatpush1.bf16.msra.mxu1 %v2312_v41  ;;  %1435 = vmatpush1.bf16.msra.mxu0 %v2315_v42  ;;  %v1657_v39 = vsub.s32 0, %v1656_v38  ;;  %v1661_v41 = vsub.s32 1, %v1656_v38 }
  0x79   : > { %797 = vmatprep.subr.bf16.mxu1 %v2320_v43  ;;  %1436 = vmatprep.subr.bf16.mxu0 %v2323_v44 }
  0x7a   : > { %v1658_v42 = vrot.slane %v1653_v40, %v1657_v39  ;;  %v1662_v44 = vrot.slane %v1653_v40, %v1661_v41 }
  0x7c   : > { %798 = vmatpush1.bf16.msra.mxu1 %v2318_v45  ;;  %1437 = vmatpush1.bf16.msra.mxu0 %v2321_v46  ;;  %v2371_v45 = vmov 1966171168  }
  0x7d   : > { %799 = vmatprep.subr.bf16.mxu1 %v2326_v47  ;;  %1438 = vmatprep.subr.bf16.mxu0 %v2329_v48  ;;  %v1699_v46 = vunpack.c.l.s4 %v2371_v45  ;;  %v1674_v48 = vrot.slane %v1669_v21, %v1657_v39 }
  0x80   : > { %800 = vmatpush1.bf16.msra.mxu1 %v2324_v49  ;;  %1439 = vmatpush1.bf16.msra.mxu0 %v2327_v50 }
  0x81   : > { %801 = vmatprep.subr.bf16.mxu1 %v2332_v51  ;;  %1440 = vmatprep.subr.bf16.mxu0 %v2335_v52  ;;  %v1678_v51 = vrot.slane %v1669_v21, %v1661_v41 }
  0x84   : > { %802 = vmatpush1.bf16.msra.mxu1 %v2330_v53  ;;  %1441 = vmatpush1.bf16.msra.mxu0 %v2333_v54 }
  0x85   : > { %1606 = vmatprep.subr.bf16.mxu0 %v2339_v55 }
  0x87   : > { %820 = vmatmul.mubr.bf16.vlgmr.msra.gmra.mrb[0].mxu1 %v2336_v56  ;;  %1459 = vmatmul.mubr.bf16.vlgmr.msra.gmra.mrb[0].mxu0 %v2340_v57  ;;  %v1700_v57 = vunpack.c.0.s8 %v1699_v46 }
  0x88   : > { %1607 = vmatpush1.bf16.msra.mxu0 %v2337_v58  ;;  %1638 = vmatprep.mubr.bf16.mxu0 %v2370_v2  ;;  %v2347_v2 = vld [vmem:[%s2904_s1 + $0x430] ss:$8 sps:$4 sm:$0xff]  }
  0x89   : > { %1608 = vmatprep.subr.bf16.mxu0 %v2343_v59 }
  0x8c   : > { %1609 = vmatpush1.bf16.msra.mxu0 %v2341_v60 }
  0x8d   : > { %1610 = vmatprep.subr.bf16.mxu0 %v2346_v61 }
  0x90   : > { %1611 = vmatpush1.bf16.msra.mxu0 %v2344_v62 }
  0x91   : > { %1612 = vmatprep.subr.bf16.mxu0 %v2349_v63 }
  0x94   : > { %1613 = vmatpush1.bf16.msra.mxu0 %v2347_v2  ;;  %v1703_v2 = vsub.s32 %v1700_v57, %v1656_v38 }
  0x95   : > { %1614 = vmatprep.subr.bf16.mxu0 %v2352_v7 }
  0x98   : > { %1615 = vmatpush1.bf16.msra.mxu0 %v2350_v8 }
  0x99   : > { %1616 = vmatprep.subr.bf16.mxu0 %v2355_v13 }
  0x9c   : > { %1617 = vmatpush1.bf16.msra.mxu0 %v2353_v16 }
  0x9d   : > { %1618 = vmatprep.subr.bf16.mxu0 %v2358_v22 }
  0xa0   : > { %1619 = vmatpush1.bf16.msra.mxu0 %v2356_v23 }
  0xa1   : > { %1620 = vmatprep.subr.bf16.mxu0 %v2361_v28 }
  0xa4   : > { %1621 = vmatpush1.bf16.msra.mxu0 %v2359_v29 }
  0xa7   : > { %1639 = vmatmul.mubr.bf16.vlgmr.msra.gmra.mrb[0].mxu0 %v2074_v32 }
 0x15a   : > { %v821_v33 = vpop.f32.mrb[0].mxu1 }
 0x15b   : > { %v823_v34 = vpop.f32.mrb[1].mxu1 }
 0x15c   : > { %v825_v35 = vpop.f32.mrb[2].mxu1 }
 0x15d   : > { %v827_v36 = vpop.f32.mrb[3].mxu1 }
 0x17a   : > { %v1640_v43 = vpop.f32.mrb[0].mxu0 }
 0x17b   : > { %v2097_v47 = vadd.f32 %v1640_v43, %v821_v33  ;;  %v1642_v49 = vpop.f32.mrb[1].mxu0 }
 0x17c   : > { %v2098_v50 = vadd.f32 %v1642_v49, %v823_v34  ;;  %v1644_v52 = vpop.f32.mrb[2].mxu0 }
 0x17d   : > { %v1665_v53 = vmul.f32 %v2097_v47, %v1658_v42  ;;  %v2099_v54 = vadd.f32 %v1644_v52, %v825_v35  ;;  %v1646_v55 = vpop.f32.mrb[3].mxu0 }
 0x17e   : > { %v1666_v56 = vmul.f32 %v2098_v50, %v1662_v44  ;;  %v2100_v58 = vadd.f32 %v1646_v55, %v827_v36 }
 0x17f   : > { %v1681_v59 = vadd.f32 %v1674_v48, %v1665_v53  ;;  %v1667_v60 = vmul.f32 %v2099_v54, %v1658_v42 }
 0x180   : > { %v1682_v61 = vadd.f32 %v1678_v51, %v1666_v56  ;;  %v1668_v62 = vmul.f32 %v2100_v58, %v1662_v44 }
 0x181   : > { %v1685_v63 = vmax.f32 %v1681_v59, 0.0  ;;  %v1683_v0 = vadd.f32 %v1674_v48, %v1667_v60 }
 0x182   : > { %v1686_v1 = vmax.f32 %v1682_v61, 0.0  ;;  %v1684_v3 = vadd.f32 %v1678_v51, %v1668_v62 }
 0x183   : > { %v1687_v4 = vmax.f32 %v1683_v0, 0.0 }
 0x184   : > { %v2091_v5 = vpack.c.bf16 %v1686_v1, %v1685_v63  ;;  %v1688_v6 = vmax.f32 %v1684_v3, 0.0 }
 0x186   : > { %v1704_v7 = vrot.slane %v2091_v5, %v1703_v2  ;;  %v2092_v8 = vpack.c.bf16 %v1688_v6, %v1687_v4 }
 0x188   : > { %2093 = vst.sshfl [vmem:[%s200_s12] sm:$0x5 pattern:$0x73625140] %v1704_v7  ;;  %v1719_v9 = vrot.slane %v2092_v8, %v1703_v2 }
 0x18a   : > { %2094 = vst.sshfl [vmem:[%s200_s12 + $0x2] sm:$0x5 pattern:$0x73625140] %v1719_v9 }
 0x18b PF: > { %s14_s15 = sadd.s32 1, %s2368_s15  }
 0x18c   : > { %p11_p5 = scmp.ge.s32.totalorder %s14_s15, 4  }
 0x18e   :  { %13 = sbr.rel (!%p11_p5) target bundleno = 1 (0x1), region = 79 }

// kernel: cnn_forward.9
= control target key start
LH: loop header
LB: loop body
LE: loop exit
PB: predicated region body
PF: predicated region fallthrough
CT: control target
= control target key end

     0   :  { %11 = vsyncpa [#allocation3], 0  ;;  %s9386_s0 = inlined_call_operand.vmem [shape: bf16[8,2,9,256], index: 0, kind: input, shape index: {}]   ;;  %s9387_s1 = inlined_call_operand.vmem [shape: bf16[9,256,512], index: 1, kind: input, shape index: {}]   ;;  %s9388_s2 = inlined_call_operand.vmem [shape: f32[1,512], index: 2, kind: input, shape index: {}]   ;;  %s9389_s3 = inlined_call_operand.vmem [shape: f32[1,512], index: 3, kind: input, shape index: {}]   ;;  %s9390_s4 = inlined_call_operand.vmem [shape: f32[512,128], index: 4, kind: input, shape index: {}]   ;;  %s9391_s5 = inlined_call_operand.vmem [shape: f32[1,128], index: 5, kind: input, shape index: {}]   ;;  %s9392_s6 = inlined_call_operand.hbm [shape: f32[2,1,128], index: 6, kind: output, shape index: {}]  }
   0x1   :  { %13 = vsyncpa [#allocation3 + $0x1], 0  ;;  %s7299_s21 = smov 0   ;;  %s7301_s22 = smov 0  }
   0x2   :  { %s7303_s23 = smov 0   ;;  %s7305_s24 = smov 0  }
   0x3 LB: > { %s7320_s25 = sadd.s32 4294967295, %s7261_s24   ;;  %s4953_s26 = sadd.s32 4294967294, %s7261_s24   ;;  %s7261_s24 = sphi %s7305_s24, %s9398_s24   ;;  %s7257_s23 = sphi %s7303_s23, %s9397_s23   ;;  %s7253_s22 = sphi %s7301_s22, %s9396_s22   ;;  %s7249_s21 = sphi %s7299_s21, %s9395_s21  }
   0x4   : > { %s7324_s27 = sadd.s32 1, %s7261_s24   ;;  %s157_s28 = sadd.s32 1, %s7257_s23 }
   0x5   : > { %s154_s29 = ssub.s32 %s7261_s24, %s7324_s27  ;;  %p167_p0 = scmp.ne.s32.totalorder %s7257_s23, %s7253_s22 }
   0x6   : > { %p155_p1 = scmp.eq.s32.totalorder %s154_s29, 0  ;;  %p168_p2 = scmp.eq.s32.totalorder %s7320_s25, 1 }
   0x7   : > { %p173_p3 = scmp.ne.s32.totalorder %s7253_s22, %s7249_s21  ;;  %p174_p4 = scmp.eq.s32.totalorder %s4953_s26, 1 }
   0x8   : > { %s7335_s30 = scalar_select %p155_p1, %s7257_s23, %s157_s28  }
   0x9   : > { %p7337_p5 = por %p168_p2, %p167_p0  ;;  %p7341_p6 = por %p174_p4, %p173_p3 }
   0xa   : > { %p4956_p7 = scmp.ge.s32.totalorder %s7261_s24, 1  ;;  %p217_p8 = scmp.lt.s32.totalorder %s7261_s24, 3 }
   0xc   : > { %p218_p9 = pnand %p4956_p7, %p217_p8 }
   0xd   : > { %v6316_v0 = vld [vmem:[%s9387_s1 + $0x204] ss:$16 sps:$4 sm:$0xff] (!%p218_p9)   ;;  %v6318_v1 = vld [vmem:[%s9387_s1 + $0x20c] ss:$16 sps:$4 sm:$0xff] (!%p218_p9)   ;;  %v6320_v2 = vld [vmem:[%s9387_s1 + $0x200] ss:$16 sps:$4 sm:$0xff] (!%p218_p9)  }
   0xe   : > { %221 = sbr.rel (%p218_p9) target bundleno = 1043 (0x413), region = 44  ;;  %713 = vmatprep.subr.bf16.mxu0 (!%p218_p9), %v6316_v0  ;;  %v6321_v3 = vld [vmem:[%s9387_s1 + $0x208] ss:$16 sps:$4 sm:$0xff] (!%p218_p9)   ;;  %754 = vmatprep.subr.bf16.mxu1 (!%p218_p9), %v6318_v1  ;;  %v6322_v4 = vld [vmem:[%s9387_s1 + $0x224] ss:$16 sps:$4 sm:$0xff] (!%p218_p9)   ;;  %s4957_s9 = sshll.u32 (!%p218_p9), %s7320_s25, 2 }
   0xf   : > { %714 = vmatpush1.bf16.msra.mxu0 (!%p218_p9), %v6320_v2  ;;  %755 = vmatpush1.bf16.msra.mxu1 (!%p218_p9), %v6321_v3  ;;  %v6324_v5 = vld [vmem:[%s9387_s1 + $0x22c] ss:$16 sps:$4 sm:$0xff] (!%p218_p9)   ;;  %v6326_v6 = vld [vmem:[%s9387_s1 + $0x220] ss:$16 sps:$4 sm:$0xff] (!%p218_p9)   ;;  %v6327_v7 = vld [vmem:[%s9387_s1 + $0x228] ss:$16 sps:$4 sm:$0xff] (!%p218_p9)  }
  0x10   : > { %715 = vmatprep.subr.bf16.mxu0 (!%p218_p9), %v6322_v4  ;;  %756 = vmatprep.subr.bf16.mxu1 (!%p218_p9), %v6324_v5  ;;  %v6328_v8 = vld [vmem:[%s9387_s1 + $0x244] ss:$16 sps:$4 sm:$0xff] (!%p218_p9)   ;;  %v6330_v9 = vld [vmem:[%s9387_s1 + $0x24c] ss:$16 sps:$4 sm:$0xff] (!%p218_p9)   ;;  %v6332_v10 = vld [vmem:[%s9387_s1 + $0x240] ss:$16 sps:$4 sm:$0xff] (!%p218_p9)  }
  0x11   : > { %v6333_v11 = vld [vmem:[%s9387_s1 + $0x248] ss:$16 sps:$4 sm:$0xff] (!%p218_p9)   ;;  %v6334_v12 = vld [vmem:[%s9387_s1 + $0x264] ss:$16 sps:$4 sm:$0xff] (!%p218_p9)   ;;  %v6336_v13 = vld [vmem:[%s9387_s1 + $0x26c] ss:$16 sps:$4 sm:$0xff] (!%p218_p9)  }
  0x12   : > { %v6338_v14 = vld [vmem:[%s9387_s1 + $0x260] ss:$16 sps:$4 sm:$0xff] (!%p218_p9)   ;;  %v6339_v15 = vld [vmem:[%s9387_s1 + $0x268] ss:$16 sps:$4 sm:$0xff] (!%p218_p9)   ;;  %v6340_v16 = vld [vmem:[%s9387_s1 + $0x284] ss:$16 sps:$4 sm:$0xff] (!%p218_p9)  }
  0x13   : > { %716 = vmatpush1.bf16.msra.mxu0 (!%p218_p9), %v6326_v6  ;;  %757 = vmatpush1.bf16.msra.mxu1 (!%p218_p9), %v6327_v7  ;;  %v6342_v17 = vld [vmem:[%s9387_s1 + $0x28c] ss:$16 sps:$4 sm:$0xff] (!%p218_p9)   ;;  %v6344_v18 = vld [vmem:[%s9387_s1 + $0x280] ss:$16 sps:$4 sm:$0xff] (!%p218_p9)   ;;  %v6345_v19 = vld [vmem:[%s9387_s1 + $0x288] ss:$16 sps:$4 sm:$0xff] (!%p218_p9)  }
  0x14   : > { %717 = vmatprep.subr.bf16.mxu0 (!%p218_p9), %v6328_v8  ;;  %758 = vmatprep.subr.bf16.mxu1 (!%p218_p9), %v6330_v9  ;;  %v6346_v20 = vld [vmem:[%s9387_s1 + $0x2a4] ss:$16 sps:$4 sm:$0xff] (!%p218_p9)   ;;  %v6348_v21 = vld [vmem:[%s9387_s1 + $0x2ac] ss:$16 sps:$4 sm:$0xff] (!%p218_p9)   ;;  %v6350_v22 = vld [vmem:[%s9387_s1 + $0x2a0] ss:$16 sps:$4 sm:$0xff] (!%p218_p9)  }
  0x15   : > { %v6351_v23 = vld [vmem:[%s9387_s1 + $0x2a8] ss:$16 sps:$4 sm:$0xff]   ;;  %v6352_v24 = vld [vmem:[%s9387_s1 + $0x2c4] ss:$16 sps:$4 sm:$0xff]   ;;  %v6354_v25 = vld [vmem:[%s9387_s1 + $0x2cc] ss:$16 sps:$4 sm:$0xff]  }
  0x16   : > { %v6356_v26 = vld [vmem:[%s9387_s1 + $0x2c0] ss:$16 sps:$4 sm:$0xff]   ;;  %v6357_v27 = vld [vmem:[%s9387_s1 + $0x2c8] ss:$16 sps:$4 sm:$0xff]   ;;  %v6358_v28 = vld [vmem:[%s9387_s1 + $0x2e4] ss:$16 sps:$4 sm:$0xff]  }
  0x17   : > { %718 = vmatpush1.bf16.msra.mxu0 %v6332_v10  ;;  %759 = vmatpush1.bf16.msra.mxu1 %v6333_v11  ;;  %v6360_v29 = vld [vmem:[%s9387_s1 + $0x2ec] ss:$16 sps:$4 sm:$0xff]   ;;  %v6362_v30 = vld [vmem:[%s9387_s1 + $0x2e0] ss:$16 sps:$4 sm:$0xff]   ;;  %v6363_v31 = vld [vmem:[%s9387_s1 + $0x2e8] ss:$16 sps:$4 sm:$0xff]  }
  0x18   : > { %719 = vmatprep.subr.bf16.mxu0 %v6334_v12  ;;  %760 = vmatprep.subr.bf16.mxu1 %v6336_v13  ;;  %v6364_v32 = vld [vmem:[%s9387_s1 + $0x304] ss:$16 sps:$4 sm:$0xff]   ;;  %p248_p10 = scmp.lt.s32.totalorder %s4957_s9, 7  ;;  %v6366_v33 = vld [vmem:[%s9387_s1 + $0x30c] ss:$16 sps:$4 sm:$0xff]   ;;  %s245_s14 = sand.u32 1, %s7253_s22  }
  0x19   : > { %v6368_v34 = vld [vmem:[%s9387_s1 + $0x300] ss:$16 sps:$4 sm:$0xff]   ;;  %v6369_v35 = vld [vmem:[%s9387_s1 + $0x308] ss:$16 sps:$4 sm:$0xff]   ;;  %v6370_v36 = vld [vmem:[%s9387_s1 + $0x324] ss:$16 sps:$4 sm:$0xff]  }
  0x1a   : > { %s9400_s9 = smov (!%p248_p10, %s4957_s9), 7  ;;  %v6372_v37 = vld [vmem:[%s9387_s1 + $0x32c] ss:$16 sps:$4 sm:$0xff]   ;;  %v6374_v38 = vld [vmem:[%s9387_s1 + $0x320] ss:$16 sps:$4 sm:$0xff]   ;;  %s6075_s17 = sshll.u32 %s7320_s25, 4 }
  0x1b   : > { %720 = vmatpush1.bf16.msra.mxu0 %v6338_v14  ;;  %761 = vmatpush1.bf16.msra.mxu1 %v6339_v15  ;;  %v6375_v39 = vld [vmem:[%s9387_s1 + $0x328] ss:$16 sps:$4 sm:$0xff]   ;;  %v6376_v40 = vld [vmem:[%s9387_s1 + $0x344] ss:$16 sps:$4 sm:$0xff]   ;;  %s6078_s18 = sshll.u32 %s9400_s9, 5  ;;  %s246_s19 = scalar_lea.vmem [#allocation2], %s245_s14 }
  0x1c   : > { %721 = vmatprep.subr.bf16.mxu0 %v6340_v16  ;;  %762 = vmatprep.subr.bf16.mxu1 %v6342_v17  ;;  %v6378_v41 = vld [vmem:[%s9387_s1 + $0x34c] ss:$16 sps:$4 sm:$0xff]   ;;  %v6380_v42 = vld [vmem:[%s9387_s1 + $0x340] ss:$16 sps:$4 sm:$0xff]   ;;  %v6381_v43 = vld [vmem:[%s9387_s1 + $0x348] ss:$16 sps:$4 sm:$0xff]   ;;  %s7483_s13 = scalar_lea.vmem %s9386_s0, %s6078_s18  ;;  %s9344_s28 = scalar_lea.hbm %s9392_s6, %s6075_s17 }
  0x1d   : > { %v6382_v44 = vld [vmem:[%s9387_s1 + $0x364] ss:$16 sps:$4 sm:$0xff]   ;;  %v6384_v45 = vld [vmem:[%s9387_s1 + $0x36c] ss:$16 sps:$4 sm:$0xff]   ;;  %v6386_v47 = vld [vmem:[%s9387_s1 + $0x360] ss:$16 sps:$4 sm:$0xff]  }
  0x1e   : > { %v4960_v46 = vld [vmem:[%s7483_s13 + $0x20] sm:$0xff]  ;;  %v6387_v49 = vld [vmem:[%s9387_s1 + $0x368] ss:$16 sps:$4 sm:$0xff]   ;;  %v6390_v51 = vld [vmem:[%s9387_s1 + $0x38c] ss:$16 sps:$4 sm:$0xff]   ;;  %s4898_s18 = sshll.u32 %s246_s19, 4  ;;  %s9346_s18 = int_to_ptr.vmem [resolvable:$true] %s4898_s18 }
  0x1f   : > { %722 = vmatpush1.bf16.msra.mxu0 %v6344_v18  ;;  %763 = vmatpush1.bf16.msra.mxu1 %v6345_v19  ;;  %v5026_v48 = vcombine.high %v4960_v46, %v4960_v46  ;;  %v6388_v50 = vld [vmem:[%s9387_s1 + $0x384] ss:$16 sps:$4 sm:$0xff]   ;;  %v6392_v52 = vld [vmem:[%s9387_s1 + $0x380] ss:$16 sps:$4 sm:$0xff]   ;;  %v6393_v53 = vld [vmem:[%s9387_s1 + $0x388] ss:$16 sps:$4 sm:$0xff]   ;;  %v5025_v4 = vcombine.low %v4960_v46, %v4960_v46 }
  0x20   : > { %723 = vmatprep.subr.bf16.mxu0 %v6346_v20  ;;  %764 = vmatprep.subr.bf16.mxu1 %v6348_v21  ;;  %v6394_v54 = vld [vmem:[%s9387_s1 + $0x3a4] ss:$16 sps:$4 sm:$0xff]   ;;  %v6396_v55 = vld [vmem:[%s9387_s1 + $0x3ac] ss:$16 sps:$4 sm:$0xff]   ;;  %v6398_v56 = vld [vmem:[%s9387_s1 + $0x3a0] ss:$16 sps:$4 sm:$0xff]  }
  0x21   : > { %745 = vmatprep.mubr.bf16.mxu0 %v5026_v48  ;;  %786 = vmatprep.mubr.bf16.mxu1 %v5026_v48  ;;  %v6399_v57 = vld [vmem:[%s9387_s1 + $0x3a8] ss:$16 sps:$4 sm:$0xff]   ;;  %v6400_v58 = vld [vmem:[%s9387_s1 + $0x3c4] ss:$16 sps:$4 sm:$0xff]   ;;  %v6402_v59 = vld [vmem:[%s9387_s1 + $0x3cc] ss:$16 sps:$4 sm:$0xff]  }
  0x22   : > { %v6404_v60 = vld [vmem:[%s9387_s1 + $0x3c0] ss:$16 sps:$4 sm:$0xff]   ;;  %v6405_v61 = vld [vmem:[%s9387_s1 + $0x3c8] ss:$16 sps:$4 sm:$0xff]   ;;  %v6406_v62 = vld [vmem:[%s9387_s1 + $0x3e4] ss:$16 sps:$4 sm:$0xff]  }
  0x23   : > { %724 = vmatpush1.bf16.msra.mxu0 %v6350_v22  ;;  %765 = vmatpush1.bf16.msra.mxu1 %v6351_v23  ;;  %v6408_v63 = vld [vmem:[%s9387_s1 + $0x3ec] ss:$16 sps:$4 sm:$0xff]   ;;  %v6410_v0 = vld [vmem:[%s9387_s1 + $0x3e0] ss:$16 sps:$4 sm:$0xff]   ;;  %v6411_v1 = vld [vmem:[%s9387_s1 + $0x3e8] ss:$16 sps:$4 sm:$0xff]  }
  0x24   : > { %725 = vmatprep.subr.bf16.mxu0 %v6352_v24  ;;  %766 = vmatprep.subr.bf16.mxu1 %v6354_v25  ;;  %v6416_v2 = vld [vmem:[%s9387_s1 + $0x4] ss:$16 sps:$4 sm:$0xff]   ;;  %v6419_v3 = vld [vmem:[%s9387_s1 + $0xc] ss:$16 sps:$4 sm:$0xff]   ;;  %v6414_v5 = vld [vmem:[%s9387_s1] ss:$16 sps:$4 sm:$0xff]  }
  0x25   : > { %v6417_v6 = vld [vmem:[%s9387_s1 + $0x8] ss:$16 sps:$4 sm:$0xff]   ;;  %v6422_v7 = vld [vmem:[%s9387_s1 + $0x24] ss:$16 sps:$4 sm:$0xff]   ;;  %v6425_v8 = vld [vmem:[%s9387_s1 + $0x2c] ss:$16 sps:$4 sm:$0xff]  }
  0x26   : > { %v6420_v9 = vld [vmem:[%s9387_s1 + $0x20] ss:$16 sps:$4 sm:$0xff]   ;;  %v6423_v10 = vld [vmem:[%s9387_s1 + $0x28] ss:$16 sps:$4 sm:$0xff]   ;;  %v6428_v11 = vld [vmem:[%s9387_s1 + $0x44] ss:$16 sps:$4 sm:$0xff]  }
  0x27   : > { %726 = vmatpush1.bf16.msra.mxu0 %v6356_v26  ;;  %767 = vmatpush1.bf16.msra.mxu1 %v6357_v27  ;;  %v6431_v12 = vld [vmem:[%s9387_s1 + $0x4c] ss:$16 sps:$4 sm:$0xff]   ;;  %v6426_v13 = vld [vmem:[%s9387_s1 + $0x40] ss:$16 sps:$4 sm:$0xff]   ;;  %v6429_v14 = vld [vmem:[%s9387_s1 + $0x48] ss:$16 sps:$4 sm:$0xff]  }
  0x28   : > { %727 = vmatprep.subr.bf16.mxu0 %v6358_v28  ;;  %768 = vmatprep.subr.bf16.mxu1 %v6360_v29  ;;  %v6434_v15 = vld [vmem:[%s9387_s1 + $0x64] ss:$16 sps:$4 sm:$0xff]   ;;  %v6437_v16 = vld [vmem:[%s9387_s1 + $0x6c] ss:$16 sps:$4 sm:$0xff]   ;;  %v6432_v17 = vld [vmem:[%s9387_s1 + $0x60] ss:$16 sps:$4 sm:$0xff]  }
  0x29   : > { %v6435_v18 = vld [vmem:[%s9387_s1 + $0x68] ss:$16 sps:$4 sm:$0xff]   ;;  %v6440_v19 = vld [vmem:[%s9387_s1 + $0x84] ss:$16 sps:$4 sm:$0xff]   ;;  %v6443_v20 = vld [vmem:[%s9387_s1 + $0x8c] ss:$16 sps:$4 sm:$0xff]  }
  0x2a   : > { %v6438_v21 = vld [vmem:[%s9387_s1 + $0x80] ss:$16 sps:$4 sm:$0xff]   ;;  %v6441_v22 = vld [vmem:[%s9387_s1 + $0x88] ss:$16 sps:$4 sm:$0xff]   ;;  %v6446_v23 = vld [vmem:[%s9387_s1 + $0xa4] ss:$16 sps:$4 sm:$0xff]  }
  0x2b   : > { %728 = vmatpush1.bf16.msra.mxu0 %v6362_v30  ;;  %769 = vmatpush1.bf16.msra.mxu1 %v6363_v31  ;;  %v6449_v24 = vld [vmem:[%s9387_s1 + $0xac] ss:$16 sps:$4 sm:$0xff]   ;;  %v6444_v25 = vld [vmem:[%s9387_s1 + $0xa0] ss:$16 sps:$4 sm:$0xff]   ;;  %v6447_v26 = vld [vmem:[%s9387_s1 + $0xa8] ss:$16 sps:$4 sm:$0xff]  }
  0x2c   : > { %729 = vmatprep.subr.bf16.mxu0 %v6364_v32  ;;  %770 = vmatprep.subr.bf16.mxu1 %v6366_v33  ;;  %v6452_v27 = vld [vmem:[%s9387_s1 + $0xc4] ss:$16 sps:$4 sm:$0xff]   ;;  %v6455_v28 = vld [vmem:[%s9387_s1 + $0xcc] ss:$16 sps:$4 sm:$0xff]   ;;  %v6450_v31 = vld [vmem:[%s9387_s1 + $0xc0] ss:$16 sps:$4 sm:$0xff]  }
  0x2d   : > { %v7625_v29 = vld [vmem:[%s7483_s13] sm:$0xff]  ;;  %v6453_v32 = vld [vmem:[%s9387_s1 + $0xc8] ss:$16 sps:$4 sm:$0xff]   ;;  %v6479_v46 = vld [vmem:[%s9387_s1 + $0x14c] ss:$16 sps:$4 sm:$0xff]   ;;  %s4886_s29 = scalar_lea.sflag [#allocation3], %s245_s14 }
  0x2e   : > { %v5092_v30 = vcombine.high %v7625_v29, %v7625_v29  ;;  %v6458_v33 = vld [vmem:[%s9387_s1 + $0xe4] ss:$16 sps:$4 sm:$0xff]   ;;  %v6477_v48 = vld [vmem:[%s9387_s1 + $0x148] ss:$16 sps:$4 sm:$0xff]   ;;  %s7199_s10 = scalar_lea.vmem %s9346_s18, 16  ;;  %s7263_s25 = smov [#allocation2]  }
  0x2f   : > { %730 = vmatpush1.bf16.msra.mxu0 %v6368_v34  ;;  %771 = vmatpush1.bf16.msra.mxu1 %v6369_v35  ;;  %v6461_v34 = vld [vmem:[%s9387_s1 + $0xec] ss:$16 sps:$4 sm:$0xff]   ;;  %v6456_v35 = vld [vmem:[%s9387_s1 + $0xe0] ss:$16 sps:$4 sm:$0xff]   ;;  %p7200_p11 = scmp.ne.s32.totalorder %s9346_s18, %s7199_s10  ;;  %s7203_s11 = sshll.u32 %s7263_s25, 4  ;;  %s7204_s11 = int_to_ptr.vmem [resolvable:$false] %s7203_s11 }
  0x30   : > { %731 = vmatprep.subr.bf16.mxu0 %v6370_v36  ;;  %772 = vmatprep.subr.bf16.mxu1 %v6372_v37  ;;  %v6459_v36 = vld [vmem:[%s9387_s1 + $0xe8] ss:$16 sps:$4 sm:$0xff]   ;;  %v6464_v37 = vld [vmem:[%s9387_s1 + $0x104] ss:$16 sps:$4 sm:$0xff]   ;;  %s7205_s12 = scalar_lea.vmem %s7204_s11, 32  ;;  %p7206_p0 = scmp.lt.s32.totalorder %s9346_s18, %s7204_s11 }
  0x31   : > { %p7201_p12 = pnand %p7200_p11, %p7337_p5  ;;  %p7207_p1 = scmp.lt.s32.totalorder %s7205_s12, %s7199_s10 }
  0x33   : > { %732 = vmatpush1.bf16.msra.mxu0 %v6374_v38  ;;  %773 = vmatpush1.bf16.msra.mxu1 %v6375_v39  ;;  %v6467_v38 = vld [vmem:[%s9387_s1 + $0x10c] ss:$16 sps:$4 sm:$0xff]   ;;  %v6462_v39 = vld [vmem:[%s9387_s1 + $0x100] ss:$16 sps:$4 sm:$0xff]   ;;  %p7202_p13 = pneg %p7201_p12  ;;  %p7208_p2 = por %p7207_p1, %p7206_p0 }
  0x34   : > { %733 = vmatprep.subr.bf16.mxu0 %v6376_v40  ;;  %774 = vmatprep.subr.bf16.mxu1 %v6378_v41  ;;  %v6465_v40 = vld [vmem:[%s9387_s1 + $0x108] ss:$16 sps:$4 sm:$0xff]   ;;  %v6470_v41 = vld [vmem:[%s9387_s1 + $0x124] ss:$16 sps:$4 sm:$0xff]  }
  0x35   : > { %p7209_p3 = pnand %p7208_p2, %p7202_p13 }
  0x37   : > { %734 = vmatpush1.bf16.msra.mxu0 %v6380_v42  ;;  %775 = vmatpush1.bf16.msra.mxu1 %v6381_v43  ;;  %v6473_v42 = vld [vmem:[%s9387_s1 + $0x12c] ss:$16 sps:$4 sm:$0xff]   ;;  %v6468_v43 = vld [vmem:[%s9387_s1 + $0x120] ss:$16 sps:$4 sm:$0xff]  }
  0x38   : > { %735 = vmatprep.subr.bf16.mxu0 %v6382_v44  ;;  %776 = vmatprep.subr.bf16.mxu1 %v6384_v45  ;;  %v6471_v44 = vld [vmem:[%s9387_s1 + $0x128] ss:$16 sps:$4 sm:$0xff]   ;;  %v6476_v45 = vld [vmem:[%s9387_s1 + $0x144] ss:$16 sps:$4 sm:$0xff]  }
  0x3b   : > { %736 = vmatpush1.bf16.msra.mxu0 %v6386_v47  ;;  %777 = vmatpush1.bf16.msra.mxu1 %v6387_v49  ;;  %v6474_v47 = vld [vmem:[%s9387_s1 + $0x140] ss:$16 sps:$4 sm:$0xff]   ;;  %v6482_v49 = vld [vmem:[%s9387_s1 + $0x164] ss:$16 sps:$4 sm:$0xff]  }
  0x3c   : > { %737 = vmatprep.subr.bf16.mxu0 %v6388_v50  ;;  %778 = vmatprep.subr.bf16.mxu1 %v6390_v51  ;;  %v6485_v50 = vld [vmem:[%s9387_s1 + $0x16c] ss:$16 sps:$4 sm:$0xff]   ;;  %v6480_v51 = vld [vmem:[%s9387_s1 + $0x160] ss:$16 sps:$4 sm:$0xff]  }
  0x3f   : > { %738 = vmatpush1.bf16.msra.mxu0 %v6392_v52  ;;  %779 = vmatpush1.bf16.msra.mxu1 %v6393_v53  ;;  %v6483_v52 = vld [vmem:[%s9387_s1 + $0x168] ss:$16 sps:$4 sm:$0xff]   ;;  %v6488_v53 = vld [vmem:[%s9387_s1 + $0x184] ss:$16 sps:$4 sm:$0xff]  }
  0x40   : > { %739 = vmatprep.subr.bf16.mxu0 %v6394_v54  ;;  %780 = vmatprep.subr.bf16.mxu1 %v6396_v55  ;;  %v6491_v54 = vld [vmem:[%s9387_s1 + $0x18c] ss:$16 sps:$4 sm:$0xff]   ;;  %v6486_v55 = vld [vmem:[%s9387_s1 + $0x180] ss:$16 sps:$4 sm:$0xff]  }
  0x43   : > { %740 = vmatpush1.bf16.msra.mxu0 %v6398_v56  ;;  %781 = vmatpush1.bf16.msra.mxu1 %v6399_v57  ;;  %v6489_v56 = vld [vmem:[%s9387_s1 + $0x188] ss:$16 sps:$4 sm:$0xff]   ;;  %v6494_v57 = vld [vmem:[%s9387_s1 + $0x1a4] ss:$16 sps:$4 sm:$0xff]  }
  0x44   : > { %741 = vmatprep.subr.bf16.mxu0 %v6400_v58  ;;  %782 = vmatprep.subr.bf16.mxu1 %v6402_v59  ;;  %v6497_v58 = vld [vmem:[%s9387_s1 + $0x1ac] ss:$16 sps:$4 sm:$0xff]   ;;  %v6492_v59 = vld [vmem:[%s9387_s1 + $0x1a0] ss:$16 sps:$4 sm:$0xff]  }
  0x47   : > { %742 = vmatpush1.bf16.msra.mxu0 %v6404_v60  ;;  %783 = vmatpush1.bf16.msra.mxu1 %v6405_v61  ;;  %v6495_v60 = vld [vmem:[%s9387_s1 + $0x1a8] ss:$16 sps:$4 sm:$0xff]   ;;  %v6500_v61 = vld [vmem:[%s9387_s1 + $0x1c4] ss:$16 sps:$4 sm:$0xff]  }
  0x48   : > { %743 = vmatprep.subr.bf16.mxu0 %v6406_v62  ;;  %784 = vmatprep.subr.bf16.mxu1 %v6408_v63  ;;  %v6503_v62 = vld [vmem:[%s9387_s1 + $0x1cc] ss:$16 sps:$4 sm:$0xff]   ;;  %v6498_v63 = vld [vmem:[%s9387_s1 + $0x1c0] ss:$16 sps:$4 sm:$0xff]  }
  0x4b   : > { %744 = vmatpush1.bf16.msra.mxu0 %v6410_v0  ;;  %785 = vmatpush1.bf16.msra.mxu1 %v6411_v1  ;;  %v6501_v0 = vld [vmem:[%s9387_s1 + $0x1c8] ss:$16 sps:$4 sm:$0xff]   ;;  %v6506_v1 = vld [vmem:[%s9387_s1 + $0x1e4] ss:$16 sps:$4 sm:$0xff]  }
  0x4c   : > { %1122 = vmatprep.subr.bf16.mxu0 %v6416_v2  ;;  %1163 = vmatprep.subr.bf16.mxu1 %v6419_v3  ;;  %v6509_v2 = vld [vmem:[%s9387_s1 + $0x1ec] ss:$16 sps:$4 sm:$0xff]   ;;  %v6504_v3 = vld [vmem:[%s9387_s1 + $0x1e0] ss:$16 sps:$4 sm:$0xff]  }
  0x4e   : > { %746 = vmatmul.mubr.bf16.vlgmr.msra.gmra.mrb[0].mxu0 %v5025_v4  ;;  %787 = vmatmul.mubr.bf16.vlgmr.msra.gmra.mrb[0].mxu1 %v5025_v4  ;;  %v6507_v4 = vld [vmem:[%s9387_s1 + $0x1e8] ss:$16 sps:$4 sm:$0xff]  }
  0x4f   : > { %1123 = vmatpush1.bf16.msra.mxu0 %v6414_v5  ;;  %1164 = vmatpush1.bf16.msra.mxu1 %v6417_v6  ;;  %v6514_v5 = vld [vmem:[%s9387_s1 + $0x404] ss:$16 sps:$4 sm:$0xff]   ;;  %v6517_v6 = vld [vmem:[%s9387_s1 + $0x40c] ss:$16 sps:$4 sm:$0xff]  }
  0x50   : > { %1124 = vmatprep.subr.bf16.mxu0 %v6422_v7  ;;  %1165 = vmatprep.subr.bf16.mxu1 %v6425_v8  ;;  %v5091_v7 = vcombine.low %v7625_v29, %v7625_v29  ;;  %v6512_v8 = vld [vmem:[%s9387_s1 + $0x400] ss:$16 sps:$4 sm:$0xff]  }
  0x51   : > { %1154 = vmatprep.mubr.bf16.mxu0 %v5092_v30  ;;  %1195 = vmatprep.mubr.bf16.mxu1 %v5092_v30  ;;  %v6541_v30 = vld [vmem:[%s9387_s1 + $0x48c] ss:$16 sps:$4 sm:$0xff]  }
  0x53   : > { %1125 = vmatpush1.bf16.msra.mxu0 %v6420_v9  ;;  %1166 = vmatpush1.bf16.msra.mxu1 %v6423_v10  ;;  %v6515_v9 = vld [vmem:[%s9387_s1 + $0x408] ss:$16 sps:$4 sm:$0xff]   ;;  %v6520_v10 = vld [vmem:[%s9387_s1 + $0x424] ss:$16 sps:$4 sm:$0xff]  }
  0x54   : > { %1126 = vmatprep.subr.bf16.mxu0 %v6428_v11  ;;  %1167 = vmatprep.subr.bf16.mxu1 %v6431_v12  ;;  %v7761_v11 = vld [vmem:[%s7483_s13 + $0x8] sm:$0x11] }
  0x55   : > { %v6523_v12 = vld [vmem:[%s9387_s1 + $0x42c] ss:$16 sps:$4 sm:$0xff]  }
  0x57   : > { %1127 = vmatpush1.bf16.msra.mxu0 %v6426_v13  ;;  %1168 = vmatpush1.bf16.msra.mxu1 %v6429_v14  ;;  %v5222_v13 = vcombine.high %v7625_v29, %v7761_v11  ;;  %v6518_v14 = vld [vmem:[%s9387_s1 + $0x420] ss:$16 sps:$4 sm:$0xff]  }
  0x58   : > { %1128 = vmatprep.subr.bf16.mxu0 %v6434_v15  ;;  %1169 = vmatprep.subr.bf16.mxu1 %v6437_v16  ;;  %v6521_v15 = vld [vmem:[%s9387_s1 + $0x428] ss:$16 sps:$4 sm:$0xff]  }
  0x59   : > { %v1287_v16 = vshrl.u32 %v5222_v13, 16 }
  0x5b   : > { %1129 = vmatpush1.bf16.msra.mxu0 %v6432_v17  ;;  %1170 = vmatpush1.bf16.msra.mxu1 %v6435_v18  ;;  %v1289_v17 = vshll.u32 %v5222_v13, 16  ;;  %v6526_v18 = vld [vmem:[%s9387_s1 + $0x444] ss:$16 sps:$4 sm:$0xff]  }
  0x5c   : > { %1130 = vmatprep.subr.bf16.mxu0 %v6440_v19  ;;  %1171 = vmatprep.subr.bf16.mxu1 %v6443_v20  ;;  %v6529_v19 = vld [vmem:[%s9387_s1 + $0x44c] ss:$16 sps:$4 sm:$0xff]  }
  0x5d   : > { %v1291_v20 = vrot.slane %v1289_v17, 1  ;;  %v6615_v17 = vld [vmem:[%s9387_s1 + $0x60c] ss:$16 sps:$4 sm:$0xff]  }
  0x5f   : > { %1131 = vmatpush1.bf16.msra.mxu0 %v6438_v21  ;;  %1172 = vmatpush1.bf16.msra.mxu1 %v6441_v22  ;;  %v6524_v21 = vld [vmem:[%s9387_s1 + $0x440] ss:$16 sps:$4 sm:$0xff]   ;;  %v6527_v22 = vld [vmem:[%s9387_s1 + $0x448] ss:$16 sps:$4 sm:$0xff]  }
  0x60   : > { %1132 = vmatprep.subr.bf16.mxu0 %v6446_v23  ;;  %1173 = vmatprep.subr.bf16.mxu1 %v6449_v24  ;;  %v1292_v23 = vor.u32 %v1291_v20, %v1287_v16  ;;  %v6532_v24 = vld [vmem:[%s9387_s1 + $0x464] ss:$16 sps:$4 sm:$0xff]  }
  0x61   : > { %v6612_v16 = vld [vmem:[%s9387_s1 + $0x604] ss:$16 sps:$4 sm:$0xff]  }
  0x62   : > { %v7954_v20 = vld [vmem:[%s7483_s13 + $0x40] sm:$0xff] }
  0x63   : > { %1133 = vmatpush1.bf16.msra.mxu0 %v6444_v25  ;;  %1174 = vmatpush1.bf16.msra.mxu1 %v6447_v26  ;;  %v6535_v25 = vld [vmem:[%s9387_s1 + $0x46c] ss:$16 sps:$4 sm:$0xff]   ;;  %v6530_v26 = vld [vmem:[%s9387_s1 + $0x460] ss:$16 sps:$4 sm:$0xff]  }
  0x64   : > { %1134 = vmatprep.subr.bf16.mxu0 %v6452_v27  ;;  %1175 = vmatprep.subr.bf16.mxu1 %v6455_v28  ;;  %v6533_v27 = vld [vmem:[%s9387_s1 + $0x468] ss:$16 sps:$4 sm:$0xff]   ;;  %v6538_v28 = vld [vmem:[%s9387_s1 + $0x484] ss:$16 sps:$4 sm:$0xff]  }
  0x67   : > { %1135 = vmatpush1.bf16.msra.mxu0 %v6450_v31  ;;  %1176 = vmatpush1.bf16.msra.mxu1 %v6453_v32  ;;  %v6536_v31 = vld [vmem:[%s9387_s1 + $0x480] ss:$16 sps:$4 sm:$0xff]   ;;  %v6539_v32 = vld [vmem:[%s9387_s1 + $0x488] ss:$16 sps:$4 sm:$0xff]  }
  0x68   : > { %1136 = vmatprep.subr.bf16.mxu0 %v6458_v33  ;;  %1177 = vmatprep.subr.bf16.mxu1 %v6461_v34  ;;  %v6544_v33 = vld [vmem:[%s9387_s1 + $0x4a4] ss:$16 sps:$4 sm:$0xff]   ;;  %v6547_v34 = vld [vmem:[%s9387_s1 + $0x4ac] ss:$16 sps:$4 sm:$0xff]  }
  0x6b   : > { %1137 = vmatpush1.bf16.msra.mxu0 %v6456_v35  ;;  %1178 = vmatpush1.bf16.msra.mxu1 %v6459_v36  ;;  %v6542_v35 = vld [vmem:[%s9387_s1 + $0x4a0] ss:$16 sps:$4 sm:$0xff]   ;;  %v6545_v36 = vld [vmem:[%s9387_s1 + $0x4a8] ss:$16 sps:$4 sm:$0xff]  }
  0x6c   : > { %1138 = vmatprep.subr.bf16.mxu0 %v6464_v37  ;;  %1179 = vmatprep.subr.bf16.mxu1 %v6467_v38  ;;  %v6550_v37 = vld [vmem:[%s9387_s1 + $0x4c4] ss:$16 sps:$4 sm:$0xff]   ;;  %v6553_v38 = vld [vmem:[%s9387_s1 + $0x4cc] ss:$16 sps:$4 sm:$0xff]  }
  0x6f   : > { %1139 = vmatpush1.bf16.msra.mxu0 %v6462_v39  ;;  %1180 = vmatpush1.bf16.msra.mxu1 %v6465_v40  ;;  %v6548_v39 = vld [vmem:[%s9387_s1 + $0x4c0] ss:$16 sps:$4 sm:$0xff]   ;;  %v6551_v40 = vld [vmem:[%s9387_s1 + $0x4c8] ss:$16 sps:$4 sm:$0xff]  }
  0x70   : > { %1140 = vmatprep.subr.bf16.mxu0 %v6470_v41  ;;  %1181 = vmatprep.subr.bf16.mxu1 %v6473_v42  ;;  %v6556_v41 = vld [vmem:[%s9387_s1 + $0x4e4] ss:$16 sps:$4 sm:$0xff]   ;;  %v6559_v42 = vld [vmem:[%s9387_s1 + $0x4ec] ss:$16 sps:$4 sm:$0xff]  }
  0x73   : > { %1141 = vmatpush1.bf16.msra.mxu0 %v6468_v43  ;;  %1182 = vmatpush1.bf16.msra.mxu1 %v6471_v44  ;;  %v6554_v43 = vld [vmem:[%s9387_s1 + $0x4e0] ss:$16 sps:$4 sm:$0xff]   ;;  %v6557_v44 = vld [vmem:[%s9387_s1 + $0x4e8] ss:$16 sps:$4 sm:$0xff]  }
  0x74   : > { %1142 = vmatprep.subr.bf16.mxu0 %v6476_v45  ;;  %1183 = vmatprep.subr.bf16.mxu1 %v6479_v46  ;;  %v6562_v45 = vld [vmem:[%s9387_s1 + $0x504] ss:$16 sps:$4 sm:$0xff]   ;;  %v6565_v46 = vld [vmem:[%s9387_s1 + $0x50c] ss:$16 sps:$4 sm:$0xff]  }
  0x77   : > { %1143 = vmatpush1.bf16.msra.mxu0 %v6474_v47  ;;  %1184 = vmatpush1.bf16.msra.mxu1 %v6477_v48  ;;  %v6560_v47 = vld [vmem:[%s9387_s1 + $0x500] ss:$16 sps:$4 sm:$0xff]   ;;  %v6563_v48 = vld [vmem:[%s9387_s1 + $0x508] ss:$16 sps:$4 sm:$0xff]  }
  0x78   : > { %1144 = vmatprep.subr.bf16.mxu0 %v6482_v49  ;;  %1185 = vmatprep.subr.bf16.mxu1 %v6485_v50  ;;  %v6568_v49 = vld [vmem:[%s9387_s1 + $0x524] ss:$16 sps:$4 sm:$0xff]   ;;  %v6571_v50 = vld [vmem:[%s9387_s1 + $0x52c] ss:$16 sps:$4 sm:$0xff]  }
  0x7b   : > { %1145 = vmatpush1.bf16.msra.mxu0 %v6480_v51  ;;  %1186 = vmatpush1.bf16.msra.mxu1 %v6483_v52  ;;  %v6566_v51 = vld [vmem:[%s9387_s1 + $0x520] ss:$16 sps:$4 sm:$0xff]   ;;  %v6569_v52 = vld [vmem:[%s9387_s1 + $0x528] ss:$16 sps:$4 sm:$0xff]  }
  0x7c   : > { %1146 = vmatprep.subr.bf16.mxu0 %v6488_v53  ;;  %1187 = vmatprep.subr.bf16.mxu1 %v6491_v54  ;;  %v6574_v53 = vld [vmem:[%s9387_s1 + $0x544] ss:$16 sps:$4 sm:$0xff]   ;;  %v6577_v54 = vld [vmem:[%s9387_s1 + $0x54c] ss:$16 sps:$4 sm:$0xff]  }
  0x7f   : > { %1147 = vmatpush1.bf16.msra.mxu0 %v6486_v55  ;;  %1188 = vmatpush1.bf16.msra.mxu1 %v6489_v56  ;;  %v6572_v55 = vld [vmem:[%s9387_s1 + $0x540] ss:$16 sps:$4 sm:$0xff]   ;;  %v6575_v56 = vld [vmem:[%s9387_s1 + $0x548] ss:$16 sps:$4 sm:$0xff]  }
  0x80   : > { %1148 = vmatprep.subr.bf16.mxu0 %v6494_v57  ;;  %1189 = vmatprep.subr.bf16.mxu1 %v6497_v58  ;;  %v6580_v57 = vld [vmem:[%s9387_s1 + $0x564] ss:$16 sps:$4 sm:$0xff]   ;;  %v6583_v58 = vld [vmem:[%s9387_s1 + $0x56c] ss:$16 sps:$4 sm:$0xff]  }
  0x83   : > { %1149 = vmatpush1.bf16.msra.mxu0 %v6492_v59  ;;  %1190 = vmatpush1.bf16.msra.mxu1 %v6495_v60  ;;  %v6578_v59 = vld [vmem:[%s9387_s1 + $0x560] ss:$16 sps:$4 sm:$0xff]   ;;  %v6581_v60 = vld [vmem:[%s9387_s1 + $0x568] ss:$16 sps:$4 sm:$0xff]  }
  0x84   : > { %1150 = vmatprep.subr.bf16.mxu0 %v6500_v61  ;;  %1191 = vmatprep.subr.bf16.mxu1 %v6503_v62  ;;  %v6586_v61 = vld [vmem:[%s9387_s1 + $0x584] ss:$16 sps:$4 sm:$0xff]   ;;  %v6589_v62 = vld [vmem:[%s9387_s1 + $0x58c] ss:$16 sps:$4 sm:$0xff]  }
  0x87   : > { %1151 = vmatpush1.bf16.msra.mxu0 %v6498_v63  ;;  %1192 = vmatpush1.bf16.msra.mxu1 %v6501_v0  ;;  %v6584_v63 = vld [vmem:[%s9387_s1 + $0x580] ss:$16 sps:$4 sm:$0xff]   ;;  %v6587_v0 = vld [vmem:[%s9387_s1 + $0x588] ss:$16 sps:$4 sm:$0xff]  }
  0x88   : > { %1152 = vmatprep.subr.bf16.mxu0 %v6506_v1  ;;  %1193 = vmatprep.subr.bf16.mxu1 %v6509_v2  ;;  %v6592_v1 = vld [vmem:[%s9387_s1 + $0x5a4] ss:$16 sps:$4 sm:$0xff]   ;;  %v6595_v2 = vld [vmem:[%s9387_s1 + $0x5ac] ss:$16 sps:$4 sm:$0xff]  }
  0x8b   : > { %1153 = vmatpush1.bf16.msra.mxu0 %v6504_v3  ;;  %1194 = vmatpush1.bf16.msra.mxu1 %v6507_v4  ;;  %v6590_v3 = vld [vmem:[%s9387_s1 + $0x5a0] ss:$16 sps:$4 sm:$0xff]   ;;  %v5221_v4 = vcombine.low %v7625_v29, %v7761_v11  ;;  %v6607_v11 = vld [vmem:[%s9387_s1 + $0x5ec] ss:$16 sps:$4 sm:$0xff]  }
  0x8c   : > { %1615 = vmatprep.subr.bf16.mxu0 %v6514_v5  ;;  %1656 = vmatprep.subr.bf16.mxu1 %v6517_v6  ;;  %v6593_v5 = vld [vmem:[%s9387_s1 + $0x5a8] ss:$16 sps:$4 sm:$0xff]   ;;  %v6598_v6 = vld [vmem:[%s9387_s1 + $0x5c4] ss:$16 sps:$4 sm:$0xff]   ;;  %v6596_v29 = vld [vmem:[%s9387_s1 + $0x5c0] ss:$16 sps:$4 sm:$0xff]  }
  0x8d   : > { %v1280_v13 = vshrl.u32 %v5221_v4, 16 }
  0x8e   : > { %1155 = vmatmul.mubr.bf16.vlgmr.msra.gmra.mrb[0].mxu0 %v5091_v7  ;;  %1196 = vmatmul.mubr.bf16.vlgmr.msra.gmra.mrb[0].mxu1 %v5091_v7  ;;  %v6601_v7 = vld [vmem:[%s9387_s1 + $0x5cc] ss:$16 sps:$4 sm:$0xff]  }
  0x8f   : > { %1616 = vmatpush1.bf16.msra.mxu0 %v6512_v8  ;;  %1657 = vmatpush1.bf16.msra.mxu1 %v6515_v9  ;;  %v1282_v8 = vshll.u32 %v5221_v4, 16  ;;  %v6599_v9 = vld [vmem:[%s9387_s1 + $0x5c8] ss:$16 sps:$4 sm:$0xff]   ;;  %v6684_v4 = vld [vmem:[%s9387_s1 + $0x784] ss:$16 sps:$4 sm:$0xff]  }
  0x90   : > { %1617 = vmatprep.subr.bf16.mxu0 %v6520_v10  ;;  %1658 = vmatprep.subr.bf16.mxu1 %v6523_v12  ;;  %v6604_v10 = vld [vmem:[%s9387_s1 + $0x5e4] ss:$16 sps:$4 sm:$0xff]   ;;  %v6602_v12 = vld [vmem:[%s9387_s1 + $0x5e0] ss:$16 sps:$4 sm:$0xff]  }
  0x91   : > { %1647 = vmatprep.mubr.bf16.mxu0 %v1292_v23  ;;  %1688 = vmatprep.mubr.bf16.mxu1 %v1292_v23  ;;  %v6621_v23 = vld [vmem:[%s9387_s1 + $0x62c] ss:$16 sps:$4 sm:$0xff]  }
  0x93   : > { %1618 = vmatpush1.bf16.msra.mxu0 %v6518_v14  ;;  %1659 = vmatpush1.bf16.msra.mxu1 %v6521_v15  ;;  %v1284_v14 = vrot.slane %v1282_v8, 1  ;;  %v6605_v15 = vld [vmem:[%s9387_s1 + $0x5e8] ss:$16 sps:$4 sm:$0xff]   ;;  %v6693_v8 = vld [vmem:[%s9387_s1 + $0x7ac] ss:$16 sps:$4 sm:$0xff]  }
  0x94   : > { %1619 = vmatprep.subr.bf16.mxu0 %v6526_v18  ;;  %1660 = vmatprep.subr.bf16.mxu1 %v6529_v19  ;;  %v6610_v18 = vld [vmem:[%s9387_s1 + $0x600] ss:$16 sps:$4 sm:$0xff]  }
  0x95   : > { %v1285_v19 = vor.u32 %v1284_v14, %v1280_v13  ;;  %v6694_v13 = vld [vmem:[%s9387_s1 + $0x7c0] ss:$16 sps:$4 sm:$0xff]   ;;  %v6697_v14 = vld [vmem:[%s9387_s1 + $0x7c8] ss:$16 sps:$4 sm:$0xff]  }
  0x97   : > { %1620 = vmatpush1.bf16.msra.mxu0 %v6524_v21  ;;  %1661 = vmatpush1.bf16.msra.mxu1 %v6527_v22  ;;  %v6613_v21 = vld [vmem:[%s9387_s1 + $0x608] ss:$16 sps:$4 sm:$0xff]   ;;  %v6618_v22 = vld [vmem:[%s9387_s1 + $0x624] ss:$16 sps:$4 sm:$0xff]  }
  0x98   : > { %1621 = vmatprep.subr.bf16.mxu0 %v6532_v24  ;;  %1662 = vmatprep.subr.bf16.mxu1 %v6535_v25  ;;  %v5353_v24 = vcombine.high %v7954_v20, %v7954_v20  ;;  %v6616_v25 = vld [vmem:[%s9387_s1 + $0x620] ss:$16 sps:$4 sm:$0xff]  }
  0x9b   : > { %1622 = vmatpush1.bf16.msra.mxu0 %v6530_v26  ;;  %1663 = vmatpush1.bf16.msra.mxu1 %v6533_v27  ;;  %v6619_v26 = vld [vmem:[%s9387_s1 + $0x628] ss:$16 sps:$4 sm:$0xff]   ;;  %v6624_v27 = vld [vmem:[%s9387_s1 + $0x644] ss:$16 sps:$4 sm:$0xff]  }
  0x9c   : > { %1623 = vmatprep.subr.bf16.mxu0 %v6538_v28  ;;  %1664 = vmatprep.subr.bf16.mxu1 %v6541_v30  ;;  %v6627_v28 = vld [vmem:[%s9387_s1 + $0x64c] ss:$16 sps:$4 sm:$0xff]   ;;  %v6622_v30 = vld [vmem:[%s9387_s1 + $0x640] ss:$16 sps:$4 sm:$0xff]  }
  0x9f   : > { %1624 = vmatpush1.bf16.msra.mxu0 %v6536_v31  ;;  %1665 = vmatpush1.bf16.msra.mxu1 %v6539_v32  ;;  %v6625_v31 = vld [vmem:[%s9387_s1 + $0x648] ss:$16 sps:$4 sm:$0xff]   ;;  %v6630_v32 = vld [vmem:[%s9387_s1 + $0x664] ss:$16 sps:$4 sm:$0xff]  }
  0xa0   : > { %1625 = vmatprep.subr.bf16.mxu0 %v6544_v33  ;;  %1666 = vmatprep.subr.bf16.mxu1 %v6547_v34  ;;  %v6633_v33 = vld [vmem:[%s9387_s1 + $0x66c] ss:$16 sps:$4 sm:$0xff]   ;;  %v6628_v34 = vld [vmem:[%s9387_s1 + $0x660] ss:$16 sps:$4 sm:$0xff]  }
  0xa3   : > { %1626 = vmatpush1.bf16.msra.mxu0 %v6542_v35  ;;  %1667 = vmatpush1.bf16.msra.mxu1 %v6545_v36  ;;  %v6631_v35 = vld [vmem:[%s9387_s1 + $0x668] ss:$16 sps:$4 sm:$0xff]   ;;  %v6636_v36 = vld [vmem:[%s9387_s1 + $0x684] ss:$16 sps:$4 sm:$0xff]  }
  0xa4   : > { %1627 = vmatprep.subr.bf16.mxu0 %v6550_v37  ;;  %1668 = vmatprep.subr.bf16.mxu1 %v6553_v38  ;;  %v6639_v37 = vld [vmem:[%s9387_s1 + $0x68c] ss:$16 sps:$4 sm:$0xff]   ;;  %v6634_v38 = vld [vmem:[%s9387_s1 + $0x680] ss:$16 sps:$4 sm:$0xff]  }
  0xa7   : > { %1628 = vmatpush1.bf16.msra.mxu0 %v6548_v39  ;;  %1669 = vmatpush1.bf16.msra.mxu1 %v6551_v40  ;;  %v6637_v39 = vld [vmem:[%s9387_s1 + $0x688] ss:$16 sps:$4 sm:$0xff]   ;;  %v6642_v40 = vld [vmem:[%s9387_s1 + $0x6a4] ss:$16 sps:$4 sm:$0xff]  }
  0xa8   : > { %1629 = vmatprep.subr.bf16.mxu0 %v6556_v41  ;;  %1670 = vmatprep.subr.bf16.mxu1 %v6559_v42  ;;  %v6645_v41 = vld [vmem:[%s9387_s1 + $0x6ac] ss:$16 sps:$4 sm:$0xff]   ;;  %v6640_v42 = vld [vmem:[%s9387_s1 + $0x6a0] ss:$16 sps:$4 sm:$0xff]  }
  0xab   : > { %1630 = vmatpush1.bf16.msra.mxu0 %v6554_v43  ;;  %1671 = vmatpush1.bf16.msra.mxu1 %v6557_v44  ;;  %v6643_v43 = vld [vmem:[%s9387_s1 + $0x6a8] ss:$16 sps:$4 sm:$0xff]   ;;  %v6648_v44 = vld [vmem:[%s9387_s1 + $0x6c4] ss:$16 sps:$4 sm:$0xff]  }
  0xac   : > { %1631 = vmatprep.subr.bf16.mxu0 %v6562_v45  ;;  %1672 = vmatprep.subr.bf16.mxu1 %v6565_v46  ;;  %v6651_v45 = vld [vmem:[%s9387_s1 + $0x6cc] ss:$16 sps:$4 sm:$0xff]   ;;  %v6646_v46 = vld [vmem:[%s9387_s1 + $0x6c0] ss:$16 sps:$4 sm:$0xff]  }
  0xaf   : > { %1632 = vmatpush1.bf16.msra.mxu0 %v6560_v47  ;;  %1673 = vmatpush1.bf16.msra.mxu1 %v6563_v48  ;;  %v6649_v47 = vld [vmem:[%s9387_s1 + $0x6c8] ss:$16 sps:$4 sm:$0xff]   ;;  %v6654_v48 = vld [vmem:[%s9387_s1 + $0x6e4] ss:$16 sps:$4 sm:$0xff]  }
  0xb0   : > { %1633 = vmatprep.subr.bf16.mxu0 %v6568_v49  ;;  %1674 = vmatprep.subr.bf16.mxu1 %v6571_v50  ;;  %v6657_v49 = vld [vmem:[%s9387_s1 + $0x6ec] ss:$16 sps:$4 sm:$0xff]   ;;  %v6652_v50 = vld [vmem:[%s9387_s1 + $0x6e0] ss:$16 sps:$4 sm:$0xff]  }
  0xb3   : > { %1634 = vmatpush1.bf16.msra.mxu0 %v6566_v51  ;;  %1675 = vmatpush1.bf16.msra.mxu1 %v6569_v52  ;;  %v6655_v51 = vld [vmem:[%s9387_s1 + $0x6e8] ss:$16 sps:$4 sm:$0xff]   ;;  %v6660_v52 = vld [vmem:[%s9387_s1 + $0x704] ss:$16 sps:$4 sm:$0xff]  }
  0xb4   : > { %1635 = vmatprep.subr.bf16.mxu0 %v6574_v53  ;;  %1676 = vmatprep.subr.bf16.mxu1 %v6577_v54  ;;  %v6663_v53 = vld [vmem:[%s9387_s1 + $0x70c] ss:$16 sps:$4 sm:$0xff]   ;;  %v6658_v54 = vld [vmem:[%s9387_s1 + $0x700] ss:$16 sps:$4 sm:$0xff]  }
  0xb7   : > { %1636 = vmatpush1.bf16.msra.mxu0 %v6572_v55  ;;  %1677 = vmatpush1.bf16.msra.mxu1 %v6575_v56  ;;  %v6661_v55 = vld [vmem:[%s9387_s1 + $0x708] ss:$16 sps:$4 sm:$0xff]   ;;  %v6666_v56 = vld [vmem:[%s9387_s1 + $0x724] ss:$16 sps:$4 sm:$0xff]  }
  0xb8   : > { %1637 = vmatprep.subr.bf16.mxu0 %v6580_v57  ;;  %1678 = vmatprep.subr.bf16.mxu1 %v6583_v58  ;;  %v6669_v57 = vld [vmem:[%s9387_s1 + $0x72c] ss:$16 sps:$4 sm:$0xff]   ;;  %v6664_v58 = vld [vmem:[%s9387_s1 + $0x720] ss:$16 sps:$4 sm:$0xff]  }
  0xbb   : > { %1638 = vmatpush1.bf16.msra.mxu0 %v6578_v59  ;;  %1679 = vmatpush1.bf16.msra.mxu1 %v6581_v60  ;;  %v6667_v59 = vld [vmem:[%s9387_s1 + $0x728] ss:$16 sps:$4 sm:$0xff]   ;;  %v6672_v60 = vld [vmem:[%s9387_s1 + $0x744] ss:$16 sps:$4 sm:$0xff]  }
  0xbc   : > { %1639 = vmatprep.subr.bf16.mxu0 %v6586_v61  ;;  %1680 = vmatprep.subr.bf16.mxu1 %v6589_v62  ;;  %v6675_v61 = vld [vmem:[%s9387_s1 + $0x74c] ss:$16 sps:$4 sm:$0xff]   ;;  %v6670_v62 = vld [vmem:[%s9387_s1 + $0x740] ss:$16 sps:$4 sm:$0xff]  }
  0xbf   : > { %1640 = vmatpush1.bf16.msra.mxu0 %v6584_v63  ;;  %1681 = vmatpush1.bf16.msra.mxu1 %v6587_v0  ;;  %v6673_v63 = vld [vmem:[%s9387_s1 + $0x748] ss:$16 sps:$4 sm:$0xff]   ;;  %v6678_v0 = vld [vmem:[%s9387_s1 + $0x764] ss:$16 sps:$4 sm:$0xff]  }
  0xc0   : > { %1641 = vmatprep.subr.bf16.mxu0 %v6592_v1  ;;  %1682 = vmatprep.subr.bf16.mxu1 %v6595_v2  ;;  %v6681_v1 = vld [vmem:[%s9387_s1 + $0x76c] ss:$16 sps:$4 sm:$0xff]   ;;  %v6676_v2 = vld [vmem:[%s9387_s1 + $0x760] ss:$16 sps:$4 sm:$0xff]  }
  0xc3   : > { %1642 = vmatpush1.bf16.msra.mxu0 %v6590_v3  ;;  %1683 = vmatpush1.bf16.msra.mxu1 %v6593_v5  ;;  %v6679_v3 = vld [vmem:[%s9387_s1 + $0x768] ss:$16 sps:$4 sm:$0xff]   ;;  %v6687_v5 = vld [vmem:[%s9387_s1 + $0x78c] ss:$16 sps:$4 sm:$0xff]  }
  0xc4   : > { %1643 = vmatprep.subr.bf16.mxu0 %v6598_v6  ;;  %1684 = vmatprep.subr.bf16.mxu1 %v6601_v7  ;;  %v6682_v6 = vld [vmem:[%s9387_s1 + $0x780] ss:$16 sps:$4 sm:$0xff]   ;;  %v6685_v7 = vld [vmem:[%s9387_s1 + $0x788] ss:$16 sps:$4 sm:$0xff]  }
  0xc7   : > { %1644 = vmatpush1.bf16.msra.mxu0 %v6596_v29  ;;  %1685 = vmatpush1.bf16.msra.mxu1 %v6599_v9  ;;  %v6690_v29 = vld [vmem:[%s9387_s1 + $0x7a4] ss:$16 sps:$4 sm:$0xff]   ;;  %v6688_v9 = vld [vmem:[%s9387_s1 + $0x7a0] ss:$16 sps:$4 sm:$0xff]  }
  0xc8   : > { %1645 = vmatprep.subr.bf16.mxu0 %v6604_v10  ;;  %1686 = vmatprep.subr.bf16.mxu1 %v6607_v11  ;;  %v6691_v10 = vld [vmem:[%s9387_s1 + $0x7a8] ss:$16 sps:$4 sm:$0xff]   ;;  %v6696_v11 = vld [vmem:[%s9387_s1 + $0x7c4] ss:$16 sps:$4 sm:$0xff]  }
  0xcb   : > { %1646 = vmatpush1.bf16.msra.mxu0 %v6602_v12  ;;  %1687 = vmatpush1.bf16.msra.mxu1 %v6605_v15  ;;  %v6699_v12 = vld [vmem:[%s9387_s1 + $0x7cc] ss:$16 sps:$4 sm:$0xff]   ;;  %v6702_v15 = vld [vmem:[%s9387_s1 + $0x7e4] ss:$16 sps:$4 sm:$0xff]  }
  0xcc   : > { %2095 = vmatprep.subr.bf16.mxu0 %v6612_v16  ;;  %2136 = vmatprep.subr.bf16.mxu1 %v6615_v17  ;;  %v6705_v16 = vld [vmem:[%s9387_s1 + $0x7ec] ss:$16 sps:$4 sm:$0xff]   ;;  %v6700_v17 = vld [vmem:[%s9387_s1 + $0x7e0] ss:$16 sps:$4 sm:$0xff]  }
  0xce   : > { %1648 = vmatmul.mubr.bf16.vlgmr.msra.gmra.mrb[0].mxu0 %v1285_v19  ;;  %1689 = vmatmul.mubr.bf16.vlgmr.msra.gmra.mrb[0].mxu1 %v1285_v19  ;;  %v6710_v19 = vld [vmem:[%s9387_s1 + $0x804] ss:$16 sps:$4 sm:$0xff]  }
  0xcf   : > { %2096 = vmatpush1.bf16.msra.mxu0 %v6610_v18  ;;  %2137 = vmatpush1.bf16.msra.mxu1 %v6613_v21  ;;  %v6703_v18 = vld [vmem:[%s9387_s1 + $0x7e8] ss:$16 sps:$4 sm:$0xff]   ;;  %v6713_v21 = vld [vmem:[%s9387_s1 + $0x80c] ss:$16 sps:$4 sm:$0xff]  }
  0xd0   : > { %2097 = vmatprep.subr.bf16.mxu0 %v6618_v22  ;;  %2138 = vmatprep.subr.bf16.mxu1 %v6621_v23  ;;  %v5352_v22 = vcombine.low %v7954_v20, %v7954_v20  ;;  %v8150_v23 = vld [vmem:[%s7483_s13 + $0x60] sm:$0xff] }
  0xd1   : > { %2127 = vmatprep.mubr.bf16.mxu0 %v5353_v24  ;;  %2168 = vmatprep.mubr.bf16.mxu1 %v5353_v24  ;;  %v6708_v24 = vld [vmem:[%s9387_s1 + $0x800] ss:$16 sps:$4 sm:$0xff]  }
  0xd3   : > { %2098 = vmatpush1.bf16.msra.mxu0 %v6616_v25  ;;  %2139 = vmatpush1.bf16.msra.mxu1 %v6619_v26  ;;  %v6711_v25 = vld [vmem:[%s9387_s1 + $0x808] ss:$16 sps:$4 sm:$0xff]   ;;  %v6716_v26 = vld [vmem:[%s9387_s1 + $0x824] ss:$16 sps:$4 sm:$0xff]  }
  0xd4   : > { %2099 = vmatprep.subr.bf16.mxu0 %v6624_v27  ;;  %2140 = vmatprep.subr.bf16.mxu1 %v6627_v28  ;;  %v6719_v27 = vld [vmem:[%s9387_s1 + $0x82c] ss:$16 sps:$4 sm:$0xff]   ;;  %v5484_v28 = vcombine.high %v8150_v23, %v8150_v23 }
  0xd7   : > { %2100 = vmatpush1.bf16.msra.mxu0 %v6622_v30  ;;  %2141 = vmatpush1.bf16.msra.mxu1 %v6625_v31  ;;  %v6714_v30 = vld [vmem:[%s9387_s1 + $0x820] ss:$16 sps:$4 sm:$0xff]   ;;  %v6717_v31 = vld [vmem:[%s9387_s1 + $0x828] ss:$16 sps:$4 sm:$0xff]  }
  0xd8   : > { %2101 = vmatprep.subr.bf16.mxu0 %v6630_v32  ;;  %2142 = vmatprep.subr.bf16.mxu1 %v6633_v33  ;;  %v6722_v32 = vld [vmem:[%s9387_s1 + $0x844] ss:$16 sps:$4 sm:$0xff]   ;;  %v6725_v33 = vld [vmem:[%s9387_s1 + $0x84c] ss:$16 sps:$4 sm:$0xff]  }
  0xdb   : > { %2102 = vmatpush1.bf16.msra.mxu0 %v6628_v34  ;;  %2143 = vmatpush1.bf16.msra.mxu1 %v6631_v35  ;;  %v6720_v34 = vld [vmem:[%s9387_s1 + $0x840] ss:$16 sps:$4 sm:$0xff]   ;;  %v6723_v35 = vld [vmem:[%s9387_s1 + $0x848] ss:$16 sps:$4 sm:$0xff]  }
  0xdc   : > { %2103 = vmatprep.subr.bf16.mxu0 %v6636_v36  ;;  %2144 = vmatprep.subr.bf16.mxu1 %v6639_v37  ;;  %v6728_v36 = vld [vmem:[%s9387_s1 + $0x864] ss:$16 sps:$4 sm:$0xff]   ;;  %v6731_v37 = vld [vmem:[%s9387_s1 + $0x86c] ss:$16 sps:$4 sm:$0xff]  }
  0xdf   : > { %2104 = vmatpush1.bf16.msra.mxu0 %v6634_v38  ;;  %2145 = vmatpush1.bf16.msra.mxu1 %v6637_v39  ;;  %v6726_v38 = vld [vmem:[%s9387_s1 + $0x860] ss:$16 sps:$4 sm:$0xff]   ;;  %v6729_v39 = vld [vmem:[%s9387_s1 + $0x868] ss:$16 sps:$4 sm:$0xff]  }
  0xe0   : > { %2105 = vmatprep.subr.bf16.mxu0 %v6642_v40  ;;  %2146 = vmatprep.subr.bf16.mxu1 %v6645_v41  ;;  %v6734_v40 = vld [vmem:[%s9387_s1 + $0x884] ss:$16 sps:$4 sm:$0xff]   ;;  %v6737_v41 = vld [vmem:[%s9387_s1 + $0x88c] ss:$16 sps:$4 sm:$0xff]  }
  0xe3   : > { %2106 = vmatpush1.bf16.msra.mxu0 %v6640_v42  ;;  %2147 = vmatpush1.bf16.msra.mxu1 %v6643_v43  ;;  %v6732_v42 = vld [vmem:[%s9387_s1 + $0x880] ss:$16 sps:$4 sm:$0xff]   ;;  %v6735_v43 = vld [vmem:[%s9387_s1 + $0x888] ss:$16 sps:$4 sm:$0xff]  }
  0xe4   : > { %2107 = vmatprep.subr.bf16.mxu0 %v6648_v44  ;;  %2148 = vmatprep.subr.bf16.mxu1 %v6651_v45  ;;  %v6740_v44 = vld [vmem:[%s9387_s1 + $0x8a4] ss:$16 sps:$4 sm:$0xff]   ;;  %v6743_v45 = vld [vmem:[%s9387_s1 + $0x8ac] ss:$16 sps:$4 sm:$0xff]  }
  0xe7   : > { %2108 = vmatpush1.bf16.msra.mxu0 %v6646_v46  ;;  %2149 = vmatpush1.bf16.msra.mxu1 %v6649_v47  ;;  %v6738_v46 = vld [vmem:[%s9387_s1 + $0x8a0] ss:$16 sps:$4 sm:$0xff]   ;;  %v6741_v47 = vld [vmem:[%s9387_s1 + $0x8a8] ss:$16 sps:$4 sm:$0xff]  }
  0xe8   : > { %2109 = vmatprep.subr.bf16.mxu0 %v6654_v48  ;;  %2150 = vmatprep.subr.bf16.mxu1 %v6657_v49  ;;  %v6746_v48 = vld [vmem:[%s9387_s1 + $0x8c4] ss:$16 sps:$4 sm:$0xff]   ;;  %v6749_v49 = vld [vmem:[%s9387_s1 + $0x8cc] ss:$16 sps:$4 sm:$0xff]  }
  0xeb   : > { %2110 = vmatpush1.bf16.msra.mxu0 %v6652_v50  ;;  %2151 = vmatpush1.bf16.msra.mxu1 %v6655_v51  ;;  %v6744_v50 = vld [vmem:[%s9387_s1 + $0x8c0] ss:$16 sps:$4 sm:$0xff]   ;;  %v6747_v51 = vld [vmem:[%s9387_s1 + $0x8c8] ss:$16 sps:$4 sm:$0xff]  }
  0xec   : > { %2111 = vmatprep.subr.bf16.mxu0 %v6660_v52  ;;  %2152 = vmatprep.subr.bf16.mxu1 %v6663_v53  ;;  %v6752_v52 = vld [vmem:[%s9387_s1 + $0x8e4] ss:$16 sps:$4 sm:$0xff]   ;;  %v6755_v53 = vld [vmem:[%s9387_s1 + $0x8ec] ss:$16 sps:$4 sm:$0xff]  }
  0xef   : > { %2112 = vmatpush1.bf16.msra.mxu0 %v6658_v54  ;;  %2153 = vmatpush1.bf16.msra.mxu1 %v6661_v55  ;;  %v6750_v54 = vld [vmem:[%s9387_s1 + $0x8e0] ss:$16 sps:$4 sm:$0xff]   ;;  %v6753_v55 = vld [vmem:[%s9387_s1 + $0x8e8] ss:$16 sps:$4 sm:$0xff]  }
  0xf0   : > { %2113 = vmatprep.subr.bf16.mxu0 %v6666_v56  ;;  %2154 = vmatprep.subr.bf16.mxu1 %v6669_v57  ;;  %v6758_v56 = vld [vmem:[%s9387_s1 + $0x904] ss:$16 sps:$4 sm:$0xff]   ;;  %v6761_v57 = vld [vmem:[%s9387_s1 + $0x90c] ss:$16 sps:$4 sm:$0xff]  }
  0xf3   : > { %2114 = vmatpush1.bf16.msra.mxu0 %v6664_v58  ;;  %2155 = vmatpush1.bf16.msra.mxu1 %v6667_v59  ;;  %v6756_v58 = vld [vmem:[%s9387_s1 + $0x900] ss:$16 sps:$4 sm:$0xff]   ;;  %v6759_v59 = vld [vmem:[%s9387_s1 + $0x908] ss:$16 sps:$4 sm:$0xff]  }
  0xf4   : > { %2115 = vmatprep.subr.bf16.mxu0 %v6672_v60  ;;  %2156 = vmatprep.subr.bf16.mxu1 %v6675_v61  ;;  %v6764_v60 = vld [vmem:[%s9387_s1 + $0x924] ss:$16 sps:$4 sm:$0xff]   ;;  %v6767_v61 = vld [vmem:[%s9387_s1 + $0x92c] ss:$16 sps:$4 sm:$0xff]  }
  0xf7   : > { %2116 = vmatpush1.bf16.msra.mxu0 %v6670_v62  ;;  %2157 = vmatpush1.bf16.msra.mxu1 %v6673_v63  ;;  %v6762_v62 = vld [vmem:[%s9387_s1 + $0x920] ss:$16 sps:$4 sm:$0xff]   ;;  %v6765_v63 = vld [vmem:[%s9387_s1 + $0x928] ss:$16 sps:$4 sm:$0xff]  }
  0xf8   : > { %2117 = vmatprep.subr.bf16.mxu0 %v6678_v0  ;;  %2158 = vmatprep.subr.bf16.mxu1 %v6681_v1  ;;  %v6770_v0 = vld [vmem:[%s9387_s1 + $0x944] ss:$16 sps:$4 sm:$0xff]   ;;  %v6773_v1 = vld [vmem:[%s9387_s1 + $0x94c] ss:$16 sps:$4 sm:$0xff]  }
  0xfb   : > { %2118 = vmatpush1.bf16.msra.mxu0 %v6676_v2  ;;  %2159 = vmatpush1.bf16.msra.mxu1 %v6679_v3  ;;  %v6768_v2 = vld [vmem:[%s9387_s1 + $0x940] ss:$16 sps:$4 sm:$0xff]   ;;  %v6771_v3 = vld [vmem:[%s9387_s1 + $0x948] ss:$16 sps:$4 sm:$0xff]  }
  0xfc   : > { %2119 = vmatprep.subr.bf16.mxu0 %v6684_v4  ;;  %2160 = vmatprep.subr.bf16.mxu1 %v6687_v5  ;;  %v6776_v4 = vld [vmem:[%s9387_s1 + $0x964] ss:$16 sps:$4 sm:$0xff]   ;;  %v6779_v5 = vld [vmem:[%s9387_s1 + $0x96c] ss:$16 sps:$4 sm:$0xff]  }
  0xff   : > { %2120 = vmatpush1.bf16.msra.mxu0 %v6682_v6  ;;  %2161 = vmatpush1.bf16.msra.mxu1 %v6685_v7  ;;  %v6774_v6 = vld [vmem:[%s9387_s1 + $0x960] ss:$16 sps:$4 sm:$0xff]   ;;  %v6777_v7 = vld [vmem:[%s9387_s1 + $0x968] ss:$16 sps:$4 sm:$0xff]  }
 0x100   : > { %2121 = vmatprep.subr.bf16.mxu0 %v6690_v29  ;;  %2162 = vmatprep.subr.bf16.mxu1 %v6693_v8  ;;  %v6782_v29 = vld [vmem:[%s9387_s1 + $0x984] ss:$16 sps:$4 sm:$0xff]   ;;  %v6785_v8 = vld [vmem:[%s9387_s1 + $0x98c] ss:$16 sps:$4 sm:$0xff]  }
 0x103   : > { %2122 = vmatpush1.bf16.msra.mxu0 %v6688_v9  ;;  %2163 = vmatpush1.bf16.msra.mxu1 %v6691_v10  ;;  %v6780_v9 = vld [vmem:[%s9387_s1 + $0x980] ss:$16 sps:$4 sm:$0xff]   ;;  %v6783_v10 = vld [vmem:[%s9387_s1 + $0x988] ss:$16 sps:$4 sm:$0xff]  }
 0x104   : > { %2123 = vmatprep.subr.bf16.mxu0 %v6696_v11  ;;  %2164 = vmatprep.subr.bf16.mxu1 %v6699_v12  ;;  %v6788_v11 = vld [vmem:[%s9387_s1 + $0x9a4] ss:$16 sps:$4 sm:$0xff]   ;;  %v6791_v12 = vld [vmem:[%s9387_s1 + $0x9ac] ss:$16 sps:$4 sm:$0xff]  }
 0x107   : > { %2124 = vmatpush1.bf16.msra.mxu0 %v6694_v13  ;;  %2165 = vmatpush1.bf16.msra.mxu1 %v6697_v14  ;;  %v8311_v13 = vld [vmem:[%s7483_s13 + $0x48] sm:$0x11]  ;;  %v6786_v14 = vld [vmem:[%s9387_s1 + $0x9a0] ss:$16 sps:$4 sm:$0xff]  }
 0x108   : > { %2125 = vmatprep.subr.bf16.mxu0 %v6702_v15  ;;  %2166 = vmatprep.subr.bf16.mxu1 %v6705_v16  ;;  %v6789_v15 = vld [vmem:[%s9387_s1 + $0x9a8] ss:$16 sps:$4 sm:$0xff]   ;;  %v6794_v16 = vld [vmem:[%s9387_s1 + $0x9c4] ss:$16 sps:$4 sm:$0xff]  }
 0x10b   : > { %2126 = vmatpush1.bf16.msra.mxu0 %v6700_v17  ;;  %2167 = vmatpush1.bf16.msra.mxu1 %v6703_v18  ;;  %v6797_v17 = vld [vmem:[%s9387_s1 + $0x9cc] ss:$16 sps:$4 sm:$0xff]   ;;  %v5616_v18 = vcombine.high %v7954_v20, %v8311_v13 }
 0x10c   : > { %2575 = vmatprep.subr.bf16.mxu0 %v6710_v19  ;;  %2616 = vmatprep.subr.bf16.mxu1 %v6713_v21  ;;  %v6792_v19 = vld [vmem:[%s9387_s1 + $0x9c0] ss:$16 sps:$4 sm:$0xff]   ;;  %v6795_v21 = vld [vmem:[%s9387_s1 + $0x9c8] ss:$16 sps:$4 sm:$0xff]   ;;  %v6803_v20 = vld [vmem:[%s9387_s1 + $0x9ec] ss:$16 sps:$4 sm:$0xff]  }
 0x10e   : > { %2128 = vmatmul.mubr.bf16.vlgmr.msra.gmra.mrb[0].mxu0 %v5352_v22  ;;  %2169 = vmatmul.mubr.bf16.vlgmr.msra.gmra.mrb[0].mxu1 %v5352_v22  ;;  %v6800_v22 = vld [vmem:[%s9387_s1 + $0x9e4] ss:$16 sps:$4 sm:$0xff]  }
 0x10f   : > { %2576 = vmatpush1.bf16.msra.mxu0 %v6708_v24  ;;  %2617 = vmatpush1.bf16.msra.mxu1 %v6711_v25  ;;  %v2746_v24 = vshll.u32 %v5616_v18, 16  ;;  %v6798_v25 = vld [vmem:[%s9387_s1 + $0x9e0] ss:$16 sps:$4 sm:$0xff]  }
 0x110   : > { %2577 = vmatprep.subr.bf16.mxu0 %v6716_v26  ;;  %2618 = vmatprep.subr.bf16.mxu1 %v6719_v27  ;;  %v6801_v26 = vld [vmem:[%s9387_s1 + $0x9e8] ss:$16 sps:$4 sm:$0xff]   ;;  %v6808_v27 = vld [vmem:[%s9387_s1 + $0xa04] ss:$16 sps:$4 sm:$0xff]  }
 0x111   : > { %2607 = vmatprep.mubr.bf16.mxu0 %v5484_v28  ;;  %2648 = vmatprep.mubr.bf16.mxu1 %v5484_v28  ;;  %v6811_v28 = vld [vmem:[%s9387_s1 + $0xa0c] ss:$16 sps:$4 sm:$0xff]  }
 0x113   : > { %2578 = vmatpush1.bf16.msra.mxu0 %v6714_v30  ;;  %2619 = vmatpush1.bf16.msra.mxu1 %v6717_v31  ;;  %v2744_v30 = vshrl.u32 %v5616_v18, 16  ;;  %v2748_v31 = vrot.slane %v2746_v24, 1  ;;  %v6881_v18 = vld [vmem:[%s9387_s1 + $0xb88] ss:$16 sps:$4 sm:$0xff]   ;;  %v6884_v24 = vld [vmem:[%s9387_s1 + $0xba0] ss:$16 sps:$4 sm:$0xff]  }
 0x114   : > { %2579 = vmatprep.subr.bf16.mxu0 %v6722_v32  ;;  %2620 = vmatprep.subr.bf16.mxu1 %v6725_v33  ;;  %v5483_v32 = vcombine.low %v8150_v23, %v8150_v23  ;;  %v6806_v33 = vld [vmem:[%s9387_s1 + $0xa00] ss:$16 sps:$4 sm:$0xff]   ;;  %v6817_v23 = vld [vmem:[%s9387_s1 + $0xa2c] ss:$16 sps:$4 sm:$0xff]  }
 0x117   : > { %2580 = vmatpush1.bf16.msra.mxu0 %v6720_v34  ;;  %2621 = vmatpush1.bf16.msra.mxu1 %v6723_v35  ;;  %v6809_v34 = vld [vmem:[%s9387_s1 + $0xa08] ss:$16 sps:$4 sm:$0xff]   ;;  %v6814_v35 = vld [vmem:[%s9387_s1 + $0xa24] ss:$16 sps:$4 sm:$0xff]  }
 0x118   : > { %2581 = vmatprep.subr.bf16.mxu0 %v6728_v36  ;;  %2622 = vmatprep.subr.bf16.mxu1 %v6731_v37  ;;  %v2749_v36 = vor.u32 %v2748_v31, %v2744_v30  ;;  %v6812_v37 = vld [vmem:[%s9387_s1 + $0xa20] ss:$16 sps:$4 sm:$0xff]   ;;  %v6893_v30 = vld [vmem:[%s9387_s1 + $0xbc8] ss:$16 sps:$4 sm:$0xff]   ;;  %v6898_v31 = vld [vmem:[%s9387_s1 + $0xbe4] ss:$16 sps:$4 sm:$0xff]  }
 0x11b   : > { %2582 = vmatpush1.bf16.msra.mxu0 %v6726_v38  ;;  %2623 = vmatpush1.bf16.msra.mxu1 %v6729_v39  ;;  %v6815_v38 = vld [vmem:[%s9387_s1 + $0xa28] ss:$16 sps:$4 sm:$0xff]   ;;  %v6820_v39 = vld [vmem:[%s9387_s1 + $0xa44] ss:$16 sps:$4 sm:$0xff]  }
 0x11c   : > { %2583 = vmatprep.subr.bf16.mxu0 %v6734_v40  ;;  %2624 = vmatprep.subr.bf16.mxu1 %v6737_v41  ;;  %v6823_v40 = vld [vmem:[%s9387_s1 + $0xa4c] ss:$16 sps:$4 sm:$0xff]   ;;  %v6818_v41 = vld [vmem:[%s9387_s1 + $0xa40] ss:$16 sps:$4 sm:$0xff]  }
 0x11f   : > { %2584 = vmatpush1.bf16.msra.mxu0 %v6732_v42  ;;  %2625 = vmatpush1.bf16.msra.mxu1 %v6735_v43  ;;  %v6821_v42 = vld [vmem:[%s9387_s1 + $0xa48] ss:$16 sps:$4 sm:$0xff]   ;;  %v6826_v43 = vld [vmem:[%s9387_s1 + $0xa64] ss:$16 sps:$4 sm:$0xff]  }
 0x120   : > { %2585 = vmatprep.subr.bf16.mxu0 %v6740_v44  ;;  %2626 = vmatprep.subr.bf16.mxu1 %v6743_v45  ;;  %v6829_v44 = vld [vmem:[%s9387_s1 + $0xa6c] ss:$16 sps:$4 sm:$0xff]   ;;  %v6824_v45 = vld [vmem:[%s9387_s1 + $0xa60] ss:$16 sps:$4 sm:$0xff]  }
 0x123   : > { %2586 = vmatpush1.bf16.msra.mxu0 %v6738_v46  ;;  %2627 = vmatpush1.bf16.msra.mxu1 %v6741_v47  ;;  %v6827_v46 = vld [vmem:[%s9387_s1 + $0xa68] ss:$16 sps:$4 sm:$0xff]   ;;  %v6832_v47 = vld [vmem:[%s9387_s1 + $0xa84] ss:$16 sps:$4 sm:$0xff]  }
 0x124   : > { %2587 = vmatprep.subr.bf16.mxu0 %v6746_v48  ;;  %2628 = vmatprep.subr.bf16.mxu1 %v6749_v49  ;;  %v6835_v48 = vld [vmem:[%s9387_s1 + $0xa8c] ss:$16 sps:$4 sm:$0xff]   ;;  %v6830_v49 = vld [vmem:[%s9387_s1 + $0xa80] ss:$16 sps:$4 sm:$0xff]  }
 0x127   : > { %2588 = vmatpush1.bf16.msra.mxu0 %v6744_v50  ;;  %2629 = vmatpush1.bf16.msra.mxu1 %v6747_v51  ;;  %v6833_v50 = vld [vmem:[%s9387_s1 + $0xa88] ss:$16 sps:$4 sm:$0xff]   ;;  %v6838_v51 = vld [vmem:[%s9387_s1 + $0xaa4] ss:$16 sps:$4 sm:$0xff]  }
 0x128   : > { %2589 = vmatprep.subr.bf16.mxu0 %v6752_v52  ;;  %2630 = vmatprep.subr.bf16.mxu1 %v6755_v53  ;;  %v6841_v52 = vld [vmem:[%s9387_s1 + $0xaac] ss:$16 sps:$4 sm:$0xff]   ;;  %v6836_v53 = vld [vmem:[%s9387_s1 + $0xaa0] ss:$16 sps:$4 sm:$0xff]  }
 0x12b   : > { %2590 = vmatpush1.bf16.msra.mxu0 %v6750_v54  ;;  %2631 = vmatpush1.bf16.msra.mxu1 %v6753_v55  ;;  %v6839_v54 = vld [vmem:[%s9387_s1 + $0xaa8] ss:$16 sps:$4 sm:$0xff]   ;;  %v6844_v55 = vld [vmem:[%s9387_s1 + $0xac4] ss:$16 sps:$4 sm:$0xff]  }
 0x12c   : > { %2591 = vmatprep.subr.bf16.mxu0 %v6758_v56  ;;  %2632 = vmatprep.subr.bf16.mxu1 %v6761_v57  ;;  %v6847_v56 = vld [vmem:[%s9387_s1 + $0xacc] ss:$16 sps:$4 sm:$0xff]   ;;  %v6842_v57 = vld [vmem:[%s9387_s1 + $0xac0] ss:$16 sps:$4 sm:$0xff]  }
 0x12f   : > { %2592 = vmatpush1.bf16.msra.mxu0 %v6756_v58  ;;  %2633 = vmatpush1.bf16.msra.mxu1 %v6759_v59  ;;  %v6845_v58 = vld [vmem:[%s9387_s1 + $0xac8] ss:$16 sps:$4 sm:$0xff]   ;;  %v6850_v59 = vld [vmem:[%s9387_s1 + $0xae4] ss:$16 sps:$4 sm:$0xff]  }
 0x130   : > { %2593 = vmatprep.subr.bf16.mxu0 %v6764_v60  ;;  %2634 = vmatprep.subr.bf16.mxu1 %v6767_v61  ;;  %v6853_v60 = vld [vmem:[%s9387_s1 + $0xaec] ss:$16 sps:$4 sm:$0xff]   ;;  %v6848_v61 = vld [vmem:[%s9387_s1 + $0xae0] ss:$16 sps:$4 sm:$0xff]  }
 0x133   : > { %2594 = vmatpush1.bf16.msra.mxu0 %v6762_v62  ;;  %2635 = vmatpush1.bf16.msra.mxu1 %v6765_v63  ;;  %v6851_v62 = vld [vmem:[%s9387_s1 + $0xae8] ss:$16 sps:$4 sm:$0xff]   ;;  %v6856_v63 = vld [vmem:[%s9387_s1 + $0xb04] ss:$16 sps:$4 sm:$0xff]  }
 0x134   : > { %2595 = vmatprep.subr.bf16.mxu0 %v6770_v0  ;;  %2636 = vmatprep.subr.bf16.mxu1 %v6773_v1  ;;  %v6859_v0 = vld [vmem:[%s9387_s1 + $0xb0c] ss:$16 sps:$4 sm:$0xff]   ;;  %v6854_v1 = vld [vmem:[%s9387_s1 + $0xb00] ss:$16 sps:$4 sm:$0xff]  }
 0x137   : > { %2596 = vmatpush1.bf16.msra.mxu0 %v6768_v2  ;;  %2637 = vmatpush1.bf16.msra.mxu1 %v6771_v3  ;;  %v6857_v2 = vld [vmem:[%s9387_s1 + $0xb08] ss:$16 sps:$4 sm:$0xff]   ;;  %v6862_v3 = vld [vmem:[%s9387_s1 + $0xb24] ss:$16 sps:$4 sm:$0xff]  }
 0x138   : > { %2597 = vmatprep.subr.bf16.mxu0 %v6776_v4  ;;  %2638 = vmatprep.subr.bf16.mxu1 %v6779_v5  ;;  %v6865_v4 = vld [vmem:[%s9387_s1 + $0xb2c] ss:$16 sps:$4 sm:$0xff]   ;;  %v6860_v5 = vld [vmem:[%s9387_s1 + $0xb20] ss:$16 sps:$4 sm:$0xff]  }
 0x13b   : > { %2598 = vmatpush1.bf16.msra.mxu0 %v6774_v6  ;;  %2639 = vmatpush1.bf16.msra.mxu1 %v6777_v7  ;;  %v6863_v6 = vld [vmem:[%s9387_s1 + $0xb28] ss:$16 sps:$4 sm:$0xff]   ;;  %v6868_v7 = vld [vmem:[%s9387_s1 + $0xb44] ss:$16 sps:$4 sm:$0xff]  }
 0x13c   : > { %2599 = vmatprep.subr.bf16.mxu0 %v6782_v29  ;;  %2640 = vmatprep.subr.bf16.mxu1 %v6785_v8  ;;  %v6871_v29 = vld [vmem:[%s9387_s1 + $0xb4c] ss:$16 sps:$4 sm:$0xff]   ;;  %v6866_v8 = vld [vmem:[%s9387_s1 + $0xb40] ss:$16 sps:$4 sm:$0xff]  }
 0x13f   : > { %2600 = vmatpush1.bf16.msra.mxu0 %v6780_v9  ;;  %2641 = vmatpush1.bf16.msra.mxu1 %v6783_v10  ;;  %v6869_v9 = vld [vmem:[%s9387_s1 + $0xb48] ss:$16 sps:$4 sm:$0xff]   ;;  %v6874_v10 = vld [vmem:[%s9387_s1 + $0xb64] ss:$16 sps:$4 sm:$0xff]  }
 0x140   : > { %2601 = vmatprep.subr.bf16.mxu0 %v6788_v11  ;;  %2642 = vmatprep.subr.bf16.mxu1 %v6791_v12  ;;  %v6877_v11 = vld [vmem:[%s9387_s1 + $0xb6c] ss:$16 sps:$4 sm:$0xff]   ;;  %v6872_v12 = vld [vmem:[%s9387_s1 + $0xb60] ss:$16 sps:$4 sm:$0xff]  }
 0x143   : > { %2602 = vmatpush1.bf16.msra.mxu0 %v6786_v14  ;;  %2643 = vmatpush1.bf16.msra.mxu1 %v6789_v15  ;;  %v6875_v14 = vld [vmem:[%s9387_s1 + $0xb68] ss:$16 sps:$4 sm:$0xff]   ;;  %v6880_v15 = vld [vmem:[%s9387_s1 + $0xb84] ss:$16 sps:$4 sm:$0xff]  }
 0x144   : > { %2603 = vmatprep.subr.bf16.mxu0 %v6794_v16  ;;  %2644 = vmatprep.subr.bf16.mxu1 %v6797_v17  ;;  %v6883_v16 = vld [vmem:[%s9387_s1 + $0xb8c] ss:$16 sps:$4 sm:$0xff]   ;;  %v6878_v17 = vld [vmem:[%s9387_s1 + $0xb80] ss:$16 sps:$4 sm:$0xff]  }
 0x147   : > { %2604 = vmatpush1.bf16.msra.mxu0 %v6792_v19  ;;  %2645 = vmatpush1.bf16.msra.mxu1 %v6795_v21  ;;  %v6886_v19 = vld [vmem:[%s9387_s1 + $0xba4] ss:$16 sps:$4 sm:$0xff]   ;;  %v6889_v21 = vld [vmem:[%s9387_s1 + $0xbac] ss:$16 sps:$4 sm:$0xff]  }
 0x148   : > { %2605 = vmatprep.subr.bf16.mxu0 %v6800_v22  ;;  %2646 = vmatprep.subr.bf16.mxu1 %v6803_v20  ;;  %v7198_v22 = vld [vmem:[%s7483_s13 + $0x40] sm:$0xff] }
 0x149   : > { %v5615_v20 = vcombine.low %v7198_v22, %v8311_v13  ;;  %v6895_v13 = vld [vmem:[%s9387_s1 + $0xbcc] ss:$16 sps:$4 sm:$0xff]   ;;  %v6970_v22 = vld [vmem:[%s9387_s1 + $0xd60] ss:$16 sps:$4 sm:$0xff]  }
 0x14b   : > { %2606 = vmatpush1.bf16.msra.mxu0 %v6798_v25  ;;  %2647 = vmatpush1.bf16.msra.mxu1 %v6801_v26  ;;  %v6887_v25 = vld [vmem:[%s9387_s1 + $0xba8] ss:$16 sps:$4 sm:$0xff]   ;;  %v6892_v26 = vld [vmem:[%s9387_s1 + $0xbc4] ss:$16 sps:$4 sm:$0xff]  }
 0x14c   : > { %3072 = vmatprep.subr.bf16.mxu0 %v6808_v27  ;;  %3113 = vmatprep.subr.bf16.mxu1 %v6811_v28  ;;  %v2739_v27 = vshll.u32 %v5615_v20, 16  ;;  %v6890_v28 = vld [vmem:[%s9387_s1 + $0xbc0] ss:$16 sps:$4 sm:$0xff]  }
 0x14e   : > { %2608 = vmatmul.mubr.bf16.vlgmr.msra.gmra.mrb[0].mxu0 %v5483_v32  ;;  %2649 = vmatmul.mubr.bf16.vlgmr.msra.gmra.mrb[0].mxu1 %v5483_v32  ;;  %v6901_v32 = vld [vmem:[%s9387_s1 + $0xbec] ss:$16 sps:$4 sm:$0xff]  }
 0x14f   : > { %3073 = vmatpush1.bf16.msra.mxu0 %v6806_v33  ;;  %3114 = vmatpush1.bf16.msra.mxu1 %v6809_v34  ;;  %v2737_v33 = vshrl.u32 %v5615_v20, 16  ;;  %v2741_v34 = vrot.slane %v2739_v27, 1  ;;  %v6973_v20 = vld [vmem:[%s9387_s1 + $0xd68] ss:$16 sps:$4 sm:$0xff]   ;;  %v6984_v27 = vld [vmem:[%s9387_s1 + $0xda4] ss:$16 sps:$4 sm:$0xff]  }
 0x150   : > { %3074 = vmatprep.subr.bf16.mxu0 %v6814_v35  ;;  %3115 = vmatprep.subr.bf16.mxu1 %v6817_v23  ;;  %v6896_v35 = vld [vmem:[%s9387_s1 + $0xbe0] ss:$16 sps:$4 sm:$0xff]   ;;  %v6899_v23 = vld [vmem:[%s9387_s1 + $0xbe8] ss:$16 sps:$4 sm:$0xff]  }
 0x151   : > { %3104 = vmatprep.mubr.bf16.mxu0 %v2749_v36  ;;  %3145 = vmatprep.mubr.bf16.mxu1 %v2749_v36  ;;  %v6906_v36 = vld [vmem:[%s9387_s1 + $0xc04] ss:$16 sps:$4 sm:$0xff]  }
 0x153   : > { %3075 = vmatpush1.bf16.msra.mxu0 %v6812_v37  ;;  %3116 = vmatpush1.bf16.msra.mxu1 %v6815_v38  ;;  %v6909_v37 = vld [vmem:[%s9387_s1 + $0xc0c] ss:$16 sps:$4 sm:$0xff]   ;;  %v2742_v38 = vor.u32 %v2741_v34, %v2737_v33  ;;  %v6988_v34 = vld [vmem:[%s9387_s1 + $0xdc0] ss:$16 sps:$4 sm:$0xff]  }
 0x154   : > { %3076 = vmatprep.subr.bf16.mxu0 %v6820_v39  ;;  %3117 = vmatprep.subr.bf16.mxu1 %v6823_v40  ;;  %v8548_v39 = vld [vmem:[%s7483_s13 + $0x10] sm:$0xff]  ;;  %v6993_v33 = vld [vmem:[%s9387_s1 + $0xdcc] ss:$16 sps:$4 sm:$0xff]  }
 0x155   : > { %v6904_v40 = vld [vmem:[%s9387_s1 + $0xc00] ss:$16 sps:$4 sm:$0xff]  }
 0x157   : > { %3077 = vmatpush1.bf16.msra.mxu0 %v6818_v41  ;;  %3118 = vmatpush1.bf16.msra.mxu1 %v6821_v42  ;;  %v6907_v41 = vld [vmem:[%s9387_s1 + $0xc08] ss:$16 sps:$4 sm:$0xff]   ;;  %v6912_v42 = vld [vmem:[%s9387_s1 + $0xc24] ss:$16 sps:$4 sm:$0xff]  }
 0x158   : > { %3078 = vmatprep.subr.bf16.mxu0 %v6826_v43  ;;  %3119 = vmatprep.subr.bf16.mxu1 %v6829_v44  ;;  %v6915_v43 = vld [vmem:[%s9387_s1 + $0xc2c] ss:$16 sps:$4 sm:$0xff]   ;;  %v5747_v44 = vcombine.high %v8548_v39, %v8548_v39 }
 0x15b   : > { %3079 = vmatpush1.bf16.msra.mxu0 %v6824_v45  ;;  %3120 = vmatpush1.bf16.msra.mxu1 %v6827_v46  ;;  %v6910_v45 = vld [vmem:[%s9387_s1 + $0xc20] ss:$16 sps:$4 sm:$0xff]   ;;  %v6913_v46 = vld [vmem:[%s9387_s1 + $0xc28] ss:$16 sps:$4 sm:$0xff]  }
 0x15c   : > { %3080 = vmatprep.subr.bf16.mxu0 %v6832_v47  ;;  %3121 = vmatprep.subr.bf16.mxu1 %v6835_v48  ;;  %v6918_v47 = vld [vmem:[%s9387_s1 + $0xc44] ss:$16 sps:$4 sm:$0xff]   ;;  %v6921_v48 = vld [vmem:[%s9387_s1 + $0xc4c] ss:$16 sps:$4 sm:$0xff]  }
 0x15f   : > { %3081 = vmatpush1.bf16.msra.mxu0 %v6830_v49  ;;  %3122 = vmatpush1.bf16.msra.mxu1 %v6833_v50  ;;  %v6916_v49 = vld [vmem:[%s9387_s1 + $0xc40] ss:$16 sps:$4 sm:$0xff]   ;;  %v6919_v50 = vld [vmem:[%s9387_s1 + $0xc48] ss:$16 sps:$4 sm:$0xff]  }
 0x160   : > { %3082 = vmatprep.subr.bf16.mxu0 %v6838_v51  ;;  %3123 = vmatprep.subr.bf16.mxu1 %v6841_v52  ;;  %v6924_v51 = vld [vmem:[%s9387_s1 + $0xc64] ss:$16 sps:$4 sm:$0xff]   ;;  %v6927_v52 = vld [vmem:[%s9387_s1 + $0xc6c] ss:$16 sps:$4 sm:$0xff]  }
 0x163   : > { %3083 = vmatpush1.bf16.msra.mxu0 %v6836_v53  ;;  %3124 = vmatpush1.bf16.msra.mxu1 %v6839_v54  ;;  %v6922_v53 = vld [vmem:[%s9387_s1 + $0xc60] ss:$16 sps:$4 sm:$0xff]   ;;  %v6925_v54 = vld [vmem:[%s9387_s1 + $0xc68] ss:$16 sps:$4 sm:$0xff]  }
 0x164   : > { %3084 = vmatprep.subr.bf16.mxu0 %v6844_v55  ;;  %3125 = vmatprep.subr.bf16.mxu1 %v6847_v56  ;;  %v6930_v55 = vld [vmem:[%s9387_s1 + $0xc84] ss:$16 sps:$4 sm:$0xff]   ;;  %v6933_v56 = vld [vmem:[%s9387_s1 + $0xc8c] ss:$16 sps:$4 sm:$0xff]  }
 0x167   : > { %3085 = vmatpush1.bf16.msra.mxu0 %v6842_v57  ;;  %3126 = vmatpush1.bf16.msra.mxu1 %v6845_v58  ;;  %v6928_v57 = vld [vmem:[%s9387_s1 + $0xc80] ss:$16 sps:$4 sm:$0xff]   ;;  %v6931_v58 = vld [vmem:[%s9387_s1 + $0xc88] ss:$16 sps:$4 sm:$0xff]  }
 0x168   : > { %3086 = vmatprep.subr.bf16.mxu0 %v6850_v59  ;;  %3127 = vmatprep.subr.bf16.mxu1 %v6853_v60  ;;  %v6936_v59 = vld [vmem:[%s9387_s1 + $0xca4] ss:$16 sps:$4 sm:$0xff]   ;;  %v6939_v60 = vld [vmem:[%s9387_s1 + $0xcac] ss:$16 sps:$4 sm:$0xff]  }
 0x16b   : > { %3087 = vmatpush1.bf16.msra.mxu0 %v6848_v61  ;;  %3128 = vmatpush1.bf16.msra.mxu1 %v6851_v62  ;;  %v6934_v61 = vld [vmem:[%s9387_s1 + $0xca0] ss:$16 sps:$4 sm:$0xff]   ;;  %v6937_v62 = vld [vmem:[%s9387_s1 + $0xca8] ss:$16 sps:$4 sm:$0xff]  }
 0x16c   : > { %3088 = vmatprep.subr.bf16.mxu0 %v6856_v63  ;;  %3129 = vmatprep.subr.bf16.mxu1 %v6859_v0  ;;  %v6942_v63 = vld [vmem:[%s9387_s1 + $0xcc4] ss:$16 sps:$4 sm:$0xff]   ;;  %v6945_v0 = vld [vmem:[%s9387_s1 + $0xccc] ss:$16 sps:$4 sm:$0xff]  }
 0x16f   : > { %3089 = vmatpush1.bf16.msra.mxu0 %v6854_v1  ;;  %3130 = vmatpush1.bf16.msra.mxu1 %v6857_v2  ;;  %v6940_v1 = vld [vmem:[%s9387_s1 + $0xcc0] ss:$16 sps:$4 sm:$0xff]   ;;  %v6943_v2 = vld [vmem:[%s9387_s1 + $0xcc8] ss:$16 sps:$4 sm:$0xff]  }
 0x170   : > { %3090 = vmatprep.subr.bf16.mxu0 %v6862_v3  ;;  %3131 = vmatprep.subr.bf16.mxu1 %v6865_v4  ;;  %v6948_v3 = vld [vmem:[%s9387_s1 + $0xce4] ss:$16 sps:$4 sm:$0xff]   ;;  %v6951_v4 = vld [vmem:[%s9387_s1 + $0xcec] ss:$16 sps:$4 sm:$0xff]  }
 0x173   : > { %3091 = vmatpush1.bf16.msra.mxu0 %v6860_v5  ;;  %3132 = vmatpush1.bf16.msra.mxu1 %v6863_v6  ;;  %v6946_v5 = vld [vmem:[%s9387_s1 + $0xce0] ss:$16 sps:$4 sm:$0xff]   ;;  %v6949_v6 = vld [vmem:[%s9387_s1 + $0xce8] ss:$16 sps:$4 sm:$0xff]  }
 0x174   : > { %3092 = vmatprep.subr.bf16.mxu0 %v6868_v7  ;;  %3133 = vmatprep.subr.bf16.mxu1 %v6871_v29  ;;  %v6954_v7 = vld [vmem:[%s9387_s1 + $0xd04] ss:$16 sps:$4 sm:$0xff]   ;;  %v6957_v29 = vld [vmem:[%s9387_s1 + $0xd0c] ss:$16 sps:$4 sm:$0xff]  }
 0x177   : > { %3093 = vmatpush1.bf16.msra.mxu0 %v6866_v8  ;;  %3134 = vmatpush1.bf16.msra.mxu1 %v6869_v9  ;;  %v6952_v8 = vld [vmem:[%s9387_s1 + $0xd00] ss:$16 sps:$4 sm:$0xff]   ;;  %v6955_v9 = vld [vmem:[%s9387_s1 + $0xd08] ss:$16 sps:$4 sm:$0xff]  }
 0x178   : > { %3094 = vmatprep.subr.bf16.mxu0 %v6874_v10  ;;  %3135 = vmatprep.subr.bf16.mxu1 %v6877_v11  ;;  %v6960_v10 = vld [vmem:[%s9387_s1 + $0xd24] ss:$16 sps:$4 sm:$0xff]   ;;  %v6963_v11 = vld [vmem:[%s9387_s1 + $0xd2c] ss:$16 sps:$4 sm:$0xff]  }
 0x17b   : > { %3095 = vmatpush1.bf16.msra.mxu0 %v6872_v12  ;;  %3136 = vmatpush1.bf16.msra.mxu1 %v6875_v14  ;;  %v6958_v12 = vld [vmem:[%s9387_s1 + $0xd20] ss:$16 sps:$4 sm:$0xff]   ;;  %v6961_v14 = vld [vmem:[%s9387_s1 + $0xd28] ss:$16 sps:$4 sm:$0xff]  }
 0x17c   : > { %3096 = vmatprep.subr.bf16.mxu0 %v6880_v15  ;;  %3137 = vmatprep.subr.bf16.mxu1 %v6883_v16  ;;  %v6966_v15 = vld [vmem:[%s9387_s1 + $0xd44] ss:$16 sps:$4 sm:$0xff]   ;;  %v6969_v16 = vld [vmem:[%s9387_s1 + $0xd4c] ss:$16 sps:$4 sm:$0xff]  }
 0x17f   : > { %3097 = vmatpush1.bf16.msra.mxu0 %v6878_v17  ;;  %3138 = vmatpush1.bf16.msra.mxu1 %v6881_v18  ;;  %v6964_v17 = vld [vmem:[%s9387_s1 + $0xd40] ss:$16 sps:$4 sm:$0xff]   ;;  %v6967_v18 = vld [vmem:[%s9387_s1 + $0xd48] ss:$16 sps:$4 sm:$0xff]  }
 0x180   : > { %3098 = vmatprep.subr.bf16.mxu0 %v6886_v19  ;;  %3139 = vmatprep.subr.bf16.mxu1 %v6889_v21  ;;  %v6972_v19 = vld [vmem:[%s9387_s1 + $0xd64] ss:$16 sps:$4 sm:$0xff]   ;;  %v6975_v21 = vld [vmem:[%s9387_s1 + $0xd6c] ss:$16 sps:$4 sm:$0xff]  }
 0x183   : > { %3099 = vmatpush1.bf16.msra.mxu0 %v6884_v24  ;;  %3140 = vmatpush1.bf16.msra.mxu1 %v6887_v25  ;;  %v6978_v24 = vld [vmem:[%s9387_s1 + $0xd84] ss:$16 sps:$4 sm:$0xff]   ;;  %v6981_v25 = vld [vmem:[%s9387_s1 + $0xd8c] ss:$16 sps:$4 sm:$0xff]  }
 0x184   : > { %3100 = vmatprep.subr.bf16.mxu0 %v6892_v26  ;;  %3141 = vmatprep.subr.bf16.mxu1 %v6895_v13  ;;  %v6976_v26 = vld [vmem:[%s9387_s1 + $0xd80] ss:$16 sps:$4 sm:$0xff]   ;;  %v6979_v13 = vld [vmem:[%s9387_s1 + $0xd88] ss:$16 sps:$4 sm:$0xff]  }
 0x187   : > { %3101 = vmatpush1.bf16.msra.mxu0 %v6890_v28  ;;  %3142 = vmatpush1.bf16.msra.mxu1 %v6893_v30  ;;  %v6987_v28 = vld [vmem:[%s9387_s1 + $0xdac] ss:$16 sps:$4 sm:$0xff]   ;;  %v6982_v30 = vld [vmem:[%s9387_s1 + $0xda0] ss:$16 sps:$4 sm:$0xff]  }
 0x188   : > { %3102 = vmatprep.subr.bf16.mxu0 %v6898_v31  ;;  %3143 = vmatprep.subr.bf16.mxu1 %v6901_v32  ;;  %v6985_v31 = vld [vmem:[%s9387_s1 + $0xda8] ss:$16 sps:$4 sm:$0xff]   ;;  %v6990_v32 = vld [vmem:[%s9387_s1 + $0xdc4] ss:$16 sps:$4 sm:$0xff]  }
 0x18b   : > { %3103 = vmatpush1.bf16.msra.mxu0 %v6896_v35  ;;  %3144 = vmatpush1.bf16.msra.mxu1 %v6899_v23  ;;  %v6991_v35 = vld [vmem:[%s9387_s1 + $0xdc8] ss:$16 sps:$4 sm:$0xff]   ;;  %v6996_v23 = vld [vmem:[%s9387_s1 + $0xde4] ss:$16 sps:$4 sm:$0xff]  }
 0x18c   : > { %3552 = vmatprep.subr.bf16.mxu0 %v6906_v36  ;;  %3593 = vmatprep.subr.bf16.mxu1 %v6909_v37  ;;  %v6999_v36 = vld [vmem:[%s9387_s1 + $0xdec] ss:$16 sps:$4 sm:$0xff]   ;;  %v6994_v37 = vld [vmem:[%s9387_s1 + $0xde0] ss:$16 sps:$4 sm:$0xff]  }
 0x18e   : > { %3105 = vmatmul.mubr.bf16.vlgmr.msra.gmra.mrb[0].mxu0 %v2742_v38  ;;  %3146 = vmatmul.mubr.bf16.vlgmr.msra.gmra.mrb[0].mxu1 %v2742_v38  ;;  %v6997_v38 = vld [vmem:[%s9387_s1 + $0xde8] ss:$16 sps:$4 sm:$0xff]  }
 0x18f   : > { %3553 = vmatpush1.bf16.msra.mxu0 %v6904_v40  ;;  %3594 = vmatpush1.bf16.msra.mxu1 %v6907_v41  ;;  %v7004_v40 = vld [vmem:[%s9387_s1 + $0xe04] ss:$16 sps:$4 sm:$0xff]   ;;  %v7007_v41 = vld [vmem:[%s9387_s1 + $0xe0c] ss:$16 sps:$4 sm:$0xff]  }
 0x190   : > { %3554 = vmatprep.subr.bf16.mxu0 %v6912_v42  ;;  %3595 = vmatprep.subr.bf16.mxu1 %v6915_v43  ;;  %v5746_v42 = vcombine.low %v8548_v39, %v8548_v39  ;;  %v8747_v43 = vld [vmem:[%s7483_s13 + $0x30] sm:$0xff] }
 0x191   : > { %3584 = vmatprep.mubr.bf16.mxu0 %v5747_v44  ;;  %3625 = vmatprep.mubr.bf16.mxu1 %v5747_v44  ;;  %v7002_v44 = vld [vmem:[%s9387_s1 + $0xe00] ss:$16 sps:$4 sm:$0xff]  }
 0x193   : > { %3555 = vmatpush1.bf16.msra.mxu0 %v6910_v45  ;;  %3596 = vmatpush1.bf16.msra.mxu1 %v6913_v46  ;;  %v7005_v45 = vld [vmem:[%s9387_s1 + $0xe08] ss:$16 sps:$4 sm:$0xff]   ;;  %v7010_v46 = vld [vmem:[%s9387_s1 + $0xe24] ss:$16 sps:$4 sm:$0xff]  }
 0x194   : > { %3556 = vmatprep.subr.bf16.mxu0 %v6918_v47  ;;  %3597 = vmatprep.subr.bf16.mxu1 %v6921_v48  ;;  %v7013_v47 = vld [vmem:[%s9387_s1 + $0xe2c] ss:$16 sps:$4 sm:$0xff]   ;;  %v5878_v48 = vcombine.high %v8747_v43, %v8747_v43 }
 0x197   : > { %3557 = vmatpush1.bf16.msra.mxu0 %v6916_v49  ;;  %3598 = vmatpush1.bf16.msra.mxu1 %v6919_v50  ;;  %v7008_v49 = vld [vmem:[%s9387_s1 + $0xe20] ss:$16 sps:$4 sm:$0xff]   ;;  %v7011_v50 = vld [vmem:[%s9387_s1 + $0xe28] ss:$16 sps:$4 sm:$0xff]  }
 0x198   : > { %3558 = vmatprep.subr.bf16.mxu0 %v6924_v51  ;;  %3599 = vmatprep.subr.bf16.mxu1 %v6927_v52  ;;  %v7016_v51 = vld [vmem:[%s9387_s1 + $0xe44] ss:$16 sps:$4 sm:$0xff]   ;;  %v7019_v52 = vld [vmem:[%s9387_s1 + $0xe4c] ss:$16 sps:$4 sm:$0xff]  }
 0x19b   : > { %3559 = vmatpush1.bf16.msra.mxu0 %v6922_v53  ;;  %3600 = vmatpush1.bf16.msra.mxu1 %v6925_v54  ;;  %v7014_v53 = vld [vmem:[%s9387_s1 + $0xe40] ss:$16 sps:$4 sm:$0xff]   ;;  %v7017_v54 = vld [vmem:[%s9387_s1 + $0xe48] ss:$16 sps:$4 sm:$0xff]  }
 0x19c   : > { %3560 = vmatprep.subr.bf16.mxu0 %v6930_v55  ;;  %3601 = vmatprep.subr.bf16.mxu1 %v6933_v56  ;;  %v7022_v55 = vld [vmem:[%s9387_s1 + $0xe64] ss:$16 sps:$4 sm:$0xff]   ;;  %v7025_v56 = vld [vmem:[%s9387_s1 + $0xe6c] ss:$16 sps:$4 sm:$0xff]  }
 0x19f   : > { %3561 = vmatpush1.bf16.msra.mxu0 %v6928_v57  ;;  %3602 = vmatpush1.bf16.msra.mxu1 %v6931_v58  ;;  %v7020_v57 = vld [vmem:[%s9387_s1 + $0xe60] ss:$16 sps:$4 sm:$0xff]   ;;  %v7023_v58 = vld [vmem:[%s9387_s1 + $0xe68] ss:$16 sps:$4 sm:$0xff]  }
 0x1a0   : > { %3562 = vmatprep.subr.bf16.mxu0 %v6936_v59  ;;  %3603 = vmatprep.subr.bf16.mxu1 %v6939_v60  ;;  %v7028_v59 = vld [vmem:[%s9387_s1 + $0xe84] ss:$16 sps:$4 sm:$0xff]   ;;  %v7031_v60 = vld [vmem:[%s9387_s1 + $0xe8c] ss:$16 sps:$4 sm:$0xff]  }
 0x1a3   : > { %3563 = vmatpush1.bf16.msra.mxu0 %v6934_v61  ;;  %3604 = vmatpush1.bf16.msra.mxu1 %v6937_v62  ;;  %v7026_v61 = vld [vmem:[%s9387_s1 + $0xe80] ss:$16 sps:$4 sm:$0xff]   ;;  %v7029_v62 = vld [vmem:[%s9387_s1 + $0xe88] ss:$16 sps:$4 sm:$0xff]  }
 0x1a4   : > { %3564 = vmatprep.subr.bf16.mxu0 %v6942_v63  ;;  %3605 = vmatprep.subr.bf16.mxu1 %v6945_v0  ;;  %v7034_v63 = vld [vmem:[%s9387_s1 + $0xea4] ss:$16 sps:$4 sm:$0xff]   ;;  %v7037_v0 = vld [vmem:[%s9387_s1 + $0xeac] ss:$16 sps:$4 sm:$0xff]  }
 0x1a7   : > { %3565 = vmatpush1.bf16.msra.mxu0 %v6940_v1  ;;  %3606 = vmatpush1.bf16.msra.mxu1 %v6943_v2  ;;  %v7032_v1 = vld [vmem:[%s9387_s1 + $0xea0] ss:$16 sps:$4 sm:$0xff]   ;;  %v7035_v2 = vld [vmem:[%s9387_s1 + $0xea8] ss:$16 sps:$4 sm:$0xff]  }
 0x1a8   : > { %3566 = vmatprep.subr.bf16.mxu0 %v6948_v3  ;;  %3607 = vmatprep.subr.bf16.mxu1 %v6951_v4  ;;  %v7040_v3 = vld [vmem:[%s9387_s1 + $0xec4] ss:$16 sps:$4 sm:$0xff]   ;;  %v7043_v4 = vld [vmem:[%s9387_s1 + $0xecc] ss:$16 sps:$4 sm:$0xff]  }
 0x1ab   : > { %3567 = vmatpush1.bf16.msra.mxu0 %v6946_v5  ;;  %3608 = vmatpush1.bf16.msra.mxu1 %v6949_v6  ;;  %v7038_v5 = vld [vmem:[%s9387_s1 + $0xec0] ss:$16 sps:$4 sm:$0xff]   ;;  %v7041_v6 = vld [vmem:[%s9387_s1 + $0xec8] ss:$16 sps:$4 sm:$0xff]  }
 0x1ac   : > { %3568 = vmatprep.subr.bf16.mxu0 %v6954_v7  ;;  %3609 = vmatprep.subr.bf16.mxu1 %v6957_v29  ;;  %v7046_v7 = vld [vmem:[%s9387_s1 + $0xee4] ss:$16 sps:$4 sm:$0xff]   ;;  %v7049_v29 = vld [vmem:[%s9387_s1 + $0xeec] ss:$16 sps:$4 sm:$0xff]  }
 0x1af   : > { %3569 = vmatpush1.bf16.msra.mxu0 %v6952_v8  ;;  %3610 = vmatpush1.bf16.msra.mxu1 %v6955_v9  ;;  %v7044_v8 = vld [vmem:[%s9387_s1 + $0xee0] ss:$16 sps:$4 sm:$0xff]   ;;  %v7047_v9 = vld [vmem:[%s9387_s1 + $0xee8] ss:$16 sps:$4 sm:$0xff]  }
 0x1b0   : > { %3570 = vmatprep.subr.bf16.mxu0 %v6960_v10  ;;  %3611 = vmatprep.subr.bf16.mxu1 %v6963_v11  ;;  %v7052_v10 = vld [vmem:[%s9387_s1 + $0xf04] ss:$16 sps:$4 sm:$0xff]   ;;  %v7055_v11 = vld [vmem:[%s9387_s1 + $0xf0c] ss:$16 sps:$4 sm:$0xff]  }
 0x1b3   : > { %3571 = vmatpush1.bf16.msra.mxu0 %v6958_v12  ;;  %3612 = vmatpush1.bf16.msra.mxu1 %v6961_v14  ;;  %v7050_v12 = vld [vmem:[%s9387_s1 + $0xf00] ss:$16 sps:$4 sm:$0xff]   ;;  %v7053_v14 = vld [vmem:[%s9387_s1 + $0xf08] ss:$16 sps:$4 sm:$0xff]  }
 0x1b4   : > { %3572 = vmatprep.subr.bf16.mxu0 %v6966_v15  ;;  %3613 = vmatprep.subr.bf16.mxu1 %v6969_v16  ;;  %v7058_v15 = vld [vmem:[%s9387_s1 + $0xf24] ss:$16 sps:$4 sm:$0xff]   ;;  %v7061_v16 = vld [vmem:[%s9387_s1 + $0xf2c] ss:$16 sps:$4 sm:$0xff]  }
 0x1b7   : > { %3573 = vmatpush1.bf16.msra.mxu0 %v6964_v17  ;;  %3614 = vmatpush1.bf16.msra.mxu1 %v6967_v18  ;;  %v7056_v17 = vld [vmem:[%s9387_s1 + $0xf20] ss:$16 sps:$4 sm:$0xff]   ;;  %v7059_v18 = vld [vmem:[%s9387_s1 + $0xf28] ss:$16 sps:$4 sm:$0xff]  }
 0x1b8   : > { %3574 = vmatprep.subr.bf16.mxu0 %v6972_v19  ;;  %3615 = vmatprep.subr.bf16.mxu1 %v6975_v21  ;;  %v7064_v19 = vld [vmem:[%s9387_s1 + $0xf44] ss:$16 sps:$4 sm:$0xff]   ;;  %v7067_v21 = vld [vmem:[%s9387_s1 + $0xf4c] ss:$16 sps:$4 sm:$0xff]  }
 0x1bb   : > { %3575 = vmatpush1.bf16.msra.mxu0 %v6970_v22  ;;  %3616 = vmatpush1.bf16.msra.mxu1 %v6973_v20  ;;  %v7062_v22 = vld [vmem:[%s9387_s1 + $0xf40] ss:$16 sps:$4 sm:$0xff]   ;;  %v7065_v20 = vld [vmem:[%s9387_s1 + $0xf48] ss:$16 sps:$4 sm:$0xff]  }
 0x1bc   : > { %3576 = vmatprep.subr.bf16.mxu0 %v6978_v24  ;;  %3617 = vmatprep.subr.bf16.mxu1 %v6981_v25  ;;  %v7070_v24 = vld [vmem:[%s9387_s1 + $0xf64] ss:$16 sps:$4 sm:$0xff]   ;;  %v7073_v25 = vld [vmem:[%s9387_s1 + $0xf6c] ss:$16 sps:$4 sm:$0xff]  }
 0x1bf   : > { %3577 = vmatpush1.bf16.msra.mxu0 %v6976_v26  ;;  %3618 = vmatpush1.bf16.msra.mxu1 %v6979_v13  ;;  %v7068_v26 = vld [vmem:[%s9387_s1 + $0xf60] ss:$16 sps:$4 sm:$0xff]   ;;  %v7071_v13 = vld [vmem:[%s9387_s1 + $0xf68] ss:$16 sps:$4 sm:$0xff]  }
 0x1c0   : > { %3578 = vmatprep.subr.bf16.mxu0 %v6984_v27  ;;  %3619 = vmatprep.subr.bf16.mxu1 %v6987_v28  ;;  %v7076_v27 = vld [vmem:[%s9387_s1 + $0xf84] ss:$16 sps:$4 sm:$0xff]   ;;  %v7079_v28 = vld [vmem:[%s9387_s1 + $0xf8c] ss:$16 sps:$4 sm:$0xff]  }
 0x1c3   : > { %3579 = vmatpush1.bf16.msra.mxu0 %v6982_v30  ;;  %3620 = vmatpush1.bf16.msra.mxu1 %v6985_v31  ;;  %v7074_v30 = vld [vmem:[%s9387_s1 + $0xf80] ss:$16 sps:$4 sm:$0xff]   ;;  %v7077_v31 = vld [vmem:[%s9387_s1 + $0xf88] ss:$16 sps:$4 sm:$0xff]  }
 0x1c4   : > { %3580 = vmatprep.subr.bf16.mxu0 %v6990_v32  ;;  %3621 = vmatprep.subr.bf16.mxu1 %v6993_v33  ;;  %v7082_v32 = vld [vmem:[%s9387_s1 + $0xfa4] ss:$16 sps:$4 sm:$0xff]   ;;  %v7085_v33 = vld [vmem:[%s9387_s1 + $0xfac] ss:$16 sps:$4 sm:$0xff]  }
 0x1c7   : > { %3581 = vmatpush1.bf16.msra.mxu0 %v6988_v34  ;;  %3622 = vmatpush1.bf16.msra.mxu1 %v6991_v35  ;;  %v8908_v34 = vld [vmem:[%s7483_s13 + $0x18] sm:$0x11]  ;;  %v7080_v35 = vld [vmem:[%s9387_s1 + $0xfa0] ss:$16 sps:$4 sm:$0xff]  }
 0x1c8   : > { %3582 = vmatprep.subr.bf16.mxu0 %v6996_v23  ;;  %3623 = vmatprep.subr.bf16.mxu1 %v6999_v36  ;;  %v7083_v23 = vld [vmem:[%s9387_s1 + $0xfa8] ss:$16 sps:$4 sm:$0xff]   ;;  %v7088_v36 = vld [vmem:[%s9387_s1 + $0xfc4] ss:$16 sps:$4 sm:$0xff]  }
 0x1cb   : > { %3583 = vmatpush1.bf16.msra.mxu0 %v6994_v37  ;;  %3624 = vmatpush1.bf16.msra.mxu1 %v6997_v38  ;;  %v7091_v37 = vld [vmem:[%s9387_s1 + $0xfcc] ss:$16 sps:$4 sm:$0xff]   ;;  %v6010_v38 = vcombine.high %v8548_v39, %v8908_v34 }
 0x1cc   : > { %4032 = vmatprep.subr.bf16.mxu0 %v7004_v40  ;;  %4073 = vmatprep.subr.bf16.mxu1 %v7007_v41  ;;  %v7086_v40 = vld [vmem:[%s9387_s1 + $0xfc0] ss:$16 sps:$4 sm:$0xff]   ;;  %v7089_v41 = vld [vmem:[%s9387_s1 + $0xfc8] ss:$16 sps:$4 sm:$0xff]  }
 0x1ce   : > { %3585 = vmatmul.mubr.bf16.vlgmr.msra.gmra.mrb[0].mxu0 %v5746_v42  ;;  %3626 = vmatmul.mubr.bf16.vlgmr.msra.gmra.mrb[0].mxu1 %v5746_v42  ;;  %v7094_v42 = vld [vmem:[%s9387_s1 + $0xfe4] ss:$16 sps:$4 sm:$0xff]  }
 0x1cf   : > { %4033 = vmatpush1.bf16.msra.mxu0 %v7002_v44  ;;  %4074 = vmatpush1.bf16.msra.mxu1 %v7005_v45  ;;  %v7097_v44 = vld [vmem:[%s9387_s1 + $0xfec] ss:$16 sps:$4 sm:$0xff]   ;;  %v4203_v45 = vshll.u32 %v6010_v38, 16 }
 0x1d0   : > { %4034 = vmatprep.subr.bf16.mxu0 %v7010_v46  ;;  %4075 = vmatprep.subr.bf16.mxu1 %v7013_v47  ;;  %v7092_v46 = vld [vmem:[%s9387_s1 + $0xfe0] ss:$16 sps:$4 sm:$0xff]   ;;  %v7095_v47 = vld [vmem:[%s9387_s1 + $0xfe8] ss:$16 sps:$4 sm:$0xff]  }
 0x1d1   : > { %4064 = vmatprep.mubr.bf16.mxu0 %v5878_v48  ;;  %4105 = vmatprep.mubr.bf16.mxu1 %v5878_v48  ;;  %v7102_v48 = vld [vmem:[%s9387_s1 + $0x1004] ss:$16 sps:$4 sm:$0xff]  }
 0x1d3   : > { %4035 = vmatpush1.bf16.msra.mxu0 %v7008_v49  ;;  %4076 = vmatpush1.bf16.msra.mxu1 %v7011_v50  ;;  %v7105_v49 = vld [vmem:[%s9387_s1 + $0x100c] ss:$16 sps:$4 sm:$0xff]   ;;  %v4201_v50 = vshrl.u32 %v6010_v38, 16  ;;  %v7172_v38 = vld [vmem:[%s9387_s1 + $0x1180] ss:$16 sps:$4 sm:$0xff]  }
 0x1d4   : > { %4036 = vmatprep.subr.bf16.mxu0 %v7016_v51  ;;  %4077 = vmatprep.subr.bf16.mxu1 %v7019_v52  ;;  %v4205_v51 = vrot.slane %v4203_v45, 1  ;;  %v5877_v52 = vcombine.low %v8747_v43, %v8747_v43  ;;  %v7111_v43 = vld [vmem:[%s9387_s1 + $0x102c] ss:$16 sps:$4 sm:$0xff]   ;;  %v7178_v45 = vld [vmem:[%s9387_s1 + $0x11a0] ss:$16 sps:$4 sm:$0xff]  }
 0x1d7   : > { %4037 = vmatpush1.bf16.msra.mxu0 %v7014_v53  ;;  %4078 = vmatpush1.bf16.msra.mxu1 %v7017_v54  ;;  %v7100_v53 = vld [vmem:[%s9387_s1 + $0x1000] ss:$16 sps:$4 sm:$0xff]   ;;  %v7103_v54 = vld [vmem:[%s9387_s1 + $0x1008] ss:$16 sps:$4 sm:$0xff]  }
 0x1d8   : > { %4038 = vmatprep.subr.bf16.mxu0 %v7022_v55  ;;  %4079 = vmatprep.subr.bf16.mxu1 %v7025_v56  ;;  %v7108_v55 = vld [vmem:[%s9387_s1 + $0x1024] ss:$16 sps:$4 sm:$0xff]   ;;  %v4206_v56 = vor.u32 %v4205_v51, %v4201_v50  ;;  %v7195_v51 = vld [vmem:[%s9387_s1 + $0x11ec] ss:$16 sps:$4 sm:$0xff]  }
 0x1d9   : > { %v7192_v50 = vld [vmem:[%s9387_s1 + $0x11e4] ss:$16 sps:$4 sm:$0xff]  }
 0x1db   : > { %4039 = vmatpush1.bf16.msra.mxu0 %v7020_v57  ;;  %4080 = vmatpush1.bf16.msra.mxu1 %v7023_v58  ;;  %v7106_v57 = vld [vmem:[%s9387_s1 + $0x1020] ss:$16 sps:$4 sm:$0xff]   ;;  %v7109_v58 = vld [vmem:[%s9387_s1 + $0x1028] ss:$16 sps:$4 sm:$0xff]  }
 0x1dc   : > { %4040 = vmatprep.subr.bf16.mxu0 %v7028_v59  ;;  %4081 = vmatprep.subr.bf16.mxu1 %v7031_v60  ;;  %v7114_v59 = vld [vmem:[%s9387_s1 + $0x1044] ss:$16 sps:$4 sm:$0xff]   ;;  %v7117_v60 = vld [vmem:[%s9387_s1 + $0x104c] ss:$16 sps:$4 sm:$0xff]  }
 0x1df   : > { %4041 = vmatpush1.bf16.msra.mxu0 %v7026_v61  ;;  %4082 = vmatpush1.bf16.msra.mxu1 %v7029_v62  ;;  %v7112_v61 = vld [vmem:[%s9387_s1 + $0x1040] ss:$16 sps:$4 sm:$0xff]   ;;  %v7115_v62 = vld [vmem:[%s9387_s1 + $0x1048] ss:$16 sps:$4 sm:$0xff]  }
 0x1e0   : > { %4042 = vmatprep.subr.bf16.mxu0 %v7034_v63  ;;  %4083 = vmatprep.subr.bf16.mxu1 %v7037_v0  ;;  %v7120_v63 = vld [vmem:[%s9387_s1 + $0x1064] ss:$16 sps:$4 sm:$0xff]   ;;  %v7123_v0 = vld [vmem:[%s9387_s1 + $0x106c] ss:$16 sps:$4 sm:$0xff]  }
 0x1e3   : > { %4043 = vmatpush1.bf16.msra.mxu0 %v7032_v1  ;;  %4084 = vmatpush1.bf16.msra.mxu1 %v7035_v2  ;;  %v7118_v1 = vld [vmem:[%s9387_s1 + $0x1060] ss:$16 sps:$4 sm:$0xff]   ;;  %v7121_v2 = vld [vmem:[%s9387_s1 + $0x1068] ss:$16 sps:$4 sm:$0xff]  }
 0x1e4   : > { %4044 = vmatprep.subr.bf16.mxu0 %v7040_v3  ;;  %4085 = vmatprep.subr.bf16.mxu1 %v7043_v4  ;;  %v7126_v3 = vld [vmem:[%s9387_s1 + $0x1084] ss:$16 sps:$4 sm:$0xff]   ;;  %v7129_v4 = vld [vmem:[%s9387_s1 + $0x108c] ss:$16 sps:$4 sm:$0xff]  }
 0x1e7   : > { %4045 = vmatpush1.bf16.msra.mxu0 %v7038_v5  ;;  %4086 = vmatpush1.bf16.msra.mxu1 %v7041_v6  ;;  %v7124_v5 = vld [vmem:[%s9387_s1 + $0x1080] ss:$16 sps:$4 sm:$0xff]   ;;  %v7127_v6 = vld [vmem:[%s9387_s1 + $0x1088] ss:$16 sps:$4 sm:$0xff]  }
 0x1e8   : > { %4046 = vmatprep.subr.bf16.mxu0 %v7046_v7  ;;  %4087 = vmatprep.subr.bf16.mxu1 %v7049_v29  ;;  %v7132_v7 = vld [vmem:[%s9387_s1 + $0x10a4] ss:$16 sps:$4 sm:$0xff]   ;;  %v7135_v29 = vld [vmem:[%s9387_s1 + $0x10ac] ss:$16 sps:$4 sm:$0xff]  }
 0x1eb   : > { %4047 = vmatpush1.bf16.msra.mxu0 %v7044_v8  ;;  %4088 = vmatpush1.bf16.msra.mxu1 %v7047_v9  ;;  %v7130_v8 = vld [vmem:[%s9387_s1 + $0x10a0] ss:$16 sps:$4 sm:$0xff]   ;;  %v7133_v9 = vld [vmem:[%s9387_s1 + $0x10a8] ss:$16 sps:$4 sm:$0xff]  }
 0x1ec   : > { %4048 = vmatprep.subr.bf16.mxu0 %v7052_v10  ;;  %4089 = vmatprep.subr.bf16.mxu1 %v7055_v11  ;;  %v7138_v10 = vld [vmem:[%s9387_s1 + $0x10c4] ss:$16 sps:$4 sm:$0xff]   ;;  %v7141_v11 = vld [vmem:[%s9387_s1 + $0x10cc] ss:$16 sps:$4 sm:$0xff]  }
 0x1ef   : > { %4049 = vmatpush1.bf16.msra.mxu0 %v7050_v12  ;;  %4090 = vmatpush1.bf16.msra.mxu1 %v7053_v14  ;;  %v7136_v12 = vld [vmem:[%s9387_s1 + $0x10c0] ss:$16 sps:$4 sm:$0xff]   ;;  %v7139_v14 = vld [vmem:[%s9387_s1 + $0x10c8] ss:$16 sps:$4 sm:$0xff]  }
 0x1f0   : > { %4050 = vmatprep.subr.bf16.mxu0 %v7058_v15  ;;  %4091 = vmatprep.subr.bf16.mxu1 %v7061_v16  ;;  %v7144_v15 = vld [vmem:[%s9387_s1 + $0x10e4] ss:$16 sps:$4 sm:$0xff]   ;;  %v7147_v16 = vld [vmem:[%s9387_s1 + $0x10ec] ss:$16 sps:$4 sm:$0xff]  }
 0x1f3   : > { %4051 = vmatpush1.bf16.msra.mxu0 %v7056_v17  ;;  %4092 = vmatpush1.bf16.msra.mxu1 %v7059_v18  ;;  %v7142_v17 = vld [vmem:[%s9387_s1 + $0x10e0] ss:$16 sps:$4 sm:$0xff]   ;;  %v7145_v18 = vld [vmem:[%s9387_s1 + $0x10e8] ss:$16 sps:$4 sm:$0xff]  }
 0x1f4   : > { %4052 = vmatprep.subr.bf16.mxu0 %v7064_v19  ;;  %4093 = vmatprep.subr.bf16.mxu1 %v7067_v21  ;;  %v7150_v19 = vld [vmem:[%s9387_s1 + $0x1104] ss:$16 sps:$4 sm:$0xff]   ;;  %v7153_v21 = vld [vmem:[%s9387_s1 + $0x110c] ss:$16 sps:$4 sm:$0xff]  }
 0x1f7   : > { %4053 = vmatpush1.bf16.msra.mxu0 %v7062_v22  ;;  %4094 = vmatpush1.bf16.msra.mxu1 %v7065_v20  ;;  %v7148_v22 = vld [vmem:[%s9387_s1 + $0x1100] ss:$16 sps:$4 sm:$0xff]   ;;  %v7151_v20 = vld [vmem:[%s9387_s1 + $0x1108] ss:$16 sps:$4 sm:$0xff]  }
 0x1f8   : > { %4054 = vmatprep.subr.bf16.mxu0 %v7070_v24  ;;  %4095 = vmatprep.subr.bf16.mxu1 %v7073_v25  ;;  %v7156_v24 = vld [vmem:[%s9387_s1 + $0x1124] ss:$16 sps:$4 sm:$0xff]   ;;  %v7159_v25 = vld [vmem:[%s9387_s1 + $0x112c] ss:$16 sps:$4 sm:$0xff]  }
 0x1fb   : > { %4055 = vmatpush1.bf16.msra.mxu0 %v7068_v26  ;;  %4096 = vmatpush1.bf16.msra.mxu1 %v7071_v13  ;;  %v7154_v26 = vld [vmem:[%s9387_s1 + $0x1120] ss:$16 sps:$4 sm:$0xff]   ;;  %v7157_v13 = vld [vmem:[%s9387_s1 + $0x1128] ss:$16 sps:$4 sm:$0xff]  }
 0x1fc   : > { %4056 = vmatprep.subr.bf16.mxu0 %v7076_v27  ;;  %4097 = vmatprep.subr.bf16.mxu1 %v7079_v28  ;;  %v7162_v27 = vld [vmem:[%s9387_s1 + $0x1144] ss:$16 sps:$4 sm:$0xff]   ;;  %v7165_v28 = vld [vmem:[%s9387_s1 + $0x114c] ss:$16 sps:$4 sm:$0xff]  }
 0x1ff   : > { %4057 = vmatpush1.bf16.msra.mxu0 %v7074_v30  ;;  %4098 = vmatpush1.bf16.msra.mxu1 %v7077_v31  ;;  %v7160_v30 = vld [vmem:[%s9387_s1 + $0x1140] ss:$16 sps:$4 sm:$0xff]   ;;  %v7163_v31 = vld [vmem:[%s9387_s1 + $0x1148] ss:$16 sps:$4 sm:$0xff]  }
 0x200   : > { %4058 = vmatprep.subr.bf16.mxu0 %v7082_v32  ;;  %4099 = vmatprep.subr.bf16.mxu1 %v7085_v33  ;;  %v7168_v32 = vld [vmem:[%s9387_s1 + $0x1164] ss:$16 sps:$4 sm:$0xff]   ;;  %v7171_v33 = vld [vmem:[%s9387_s1 + $0x116c] ss:$16 sps:$4 sm:$0xff]  }
 0x203   : > { %4059 = vmatpush1.bf16.msra.mxu0 %v7080_v35  ;;  %4100 = vmatpush1.bf16.msra.mxu1 %v7083_v23  ;;  %v7166_v35 = vld [vmem:[%s9387_s1 + $0x1160] ss:$16 sps:$4 sm:$0xff]   ;;  %v7169_v23 = vld [vmem:[%s9387_s1 + $0x1168] ss:$16 sps:$4 sm:$0xff]  }
 0x204   : > { %4060 = vmatprep.subr.bf16.mxu0 %v7088_v36  ;;  %4101 = vmatprep.subr.bf16.mxu1 %v7091_v37  ;;  %v7174_v36 = vld [vmem:[%s9387_s1 + $0x1184] ss:$16 sps:$4 sm:$0xff]   ;;  %v7177_v37 = vld [vmem:[%s9387_s1 + $0x118c] ss:$16 sps:$4 sm:$0xff]  }
 0x207   : > { %4061 = vmatpush1.bf16.msra.mxu0 %v7086_v40  ;;  %4102 = vmatpush1.bf16.msra.mxu1 %v7089_v41  ;;  %v7175_v40 = vld [vmem:[%s9387_s1 + $0x1188] ss:$16 sps:$4 sm:$0xff]   ;;  %v7180_v41 = vld [vmem:[%s9387_s1 + $0x11a4] ss:$16 sps:$4 sm:$0xff]  }
 0x208   : > { %4062 = vmatprep.subr.bf16.mxu0 %v7094_v42  ;;  %4103 = vmatprep.subr.bf16.mxu1 %v7097_v44  ;;  %v7183_v42 = vld [vmem:[%s9387_s1 + $0x11ac] ss:$16 sps:$4 sm:$0xff]   ;;  %v6009_v44 = vcombine.low %v8548_v39, %v8908_v34 }
 0x209   : > { %v7189_v39 = vld [vmem:[%s9387_s1 + $0x11cc] ss:$16 sps:$4 sm:$0xff]  }
 0x20a   : > { %v4196_v34 = vshll.u32 %v6009_v44, 16 }
 0x20b   : > { %4063 = vmatpush1.bf16.msra.mxu0 %v7092_v46  ;;  %4104 = vmatpush1.bf16.msra.mxu1 %v7095_v47  ;;  %v7181_v46 = vld [vmem:[%s9387_s1 + $0x11a8] ss:$16 sps:$4 sm:$0xff]   ;;  %v7186_v47 = vld [vmem:[%s9387_s1 + $0x11c4] ss:$16 sps:$4 sm:$0xff]  }
 0x20c   : > { %4529 = vmatprep.subr.bf16.mxu0 %v7102_v48  ;;  %4570 = vmatprep.subr.bf16.mxu1 %v7105_v49  ;;  %v7184_v48 = vld [vmem:[%s9387_s1 + $0x11c0] ss:$16 sps:$4 sm:$0xff]   ;;  %v7187_v49 = vld [vmem:[%s9387_s1 + $0x11c8] ss:$16 sps:$4 sm:$0xff]  }
 0x20e   : > { %4065 = vmatmul.mubr.bf16.vlgmr.msra.gmra.mrb[0].mxu0 %v5877_v52  ;;  %4106 = vmatmul.mubr.bf16.vlgmr.msra.gmra.mrb[0].mxu1 %v5877_v52  ;;  %v4695_v52 = vld [vmem:[%s9390_s4 + $0x80] sm:$0xff] }
 0x20f   : > { %4530 = vmatpush1.bf16.msra.mxu0 %v7100_v53  ;;  %4571 = vmatpush1.bf16.msra.mxu1 %v7103_v54  ;;  %v4696_v53 = vld [vmem:[%s9390_s4 + $0x88] sm:$0xff]  ;;  %v4727_v54 = vld [vmem:[%s9390_s4 + $0x180] sm:$0xff] }
 0x210   : > { %4531 = vmatprep.subr.bf16.mxu0 %v7108_v55  ;;  %4572 = vmatprep.subr.bf16.mxu1 %v7111_v43  ;;  %v4728_v55 = vld [vmem:[%s9390_s4 + $0x188] sm:$0xff]  ;;  %v7190_v43 = vld [vmem:[%s9387_s1 + $0x11e0] ss:$16 sps:$4 sm:$0xff]  }
 0x211   : > { %4561 = vmatprep.mubr.bf16.mxu0 %v4206_v56  ;;  %4602 = vmatprep.mubr.bf16.mxu1 %v4206_v56  ;;  %v4194_v56 = vshrl.u32 %v6009_v44, 16  ;;  %v4736_v44 = vld [vmem:[%s9390_s4 + $0x1c8] sm:$0xff] }
 0x213   : > { %4532 = vmatpush1.bf16.msra.mxu0 %v7106_v57  ;;  %4573 = vmatpush1.bf16.msra.mxu1 %v7109_v58  ;;  %v4198_v57 = vrot.slane %v4196_v34, 1  ;;  %v7193_v58 = vld [vmem:[%s9387_s1 + $0x11e8] ss:$16 sps:$4 sm:$0xff]  }
 0x214   : > { %4533 = vmatprep.subr.bf16.mxu0 %v7114_v59  ;;  %4574 = vmatprep.subr.bf16.mxu1 %v7117_v60  ;;  %v4679_v59 = vld [vmem:[%s9390_s4] sm:$0xff]  ;;  %v4680_v60 = vld [vmem:[%s9390_s4 + $0x8] sm:$0xff] }
 0x217   : > { %4534 = vmatpush1.bf16.msra.mxu0 %v7112_v61  ;;  %4575 = vmatpush1.bf16.msra.mxu1 %v7115_v62  ;;  %v6149_v61 = vpack.c.bf16 %v4696_v53, %v4695_v52  ;;  %v6181_v62 = vpack.c.bf16 %v4728_v55, %v4727_v54  ;;  %v4706_v52 = vld [vmem:[%s9390_s4 + $0xd8] sm:$0xff]  ;;  %v4737_v53 = vld [vmem:[%s9390_s4 + $0x1d0] sm:$0xff] }
 0x218   : > { %4535 = vmatprep.subr.bf16.mxu0 %v7120_v63  ;;  %4576 = vmatprep.subr.bf16.mxu1 %v7123_v0  ;;  %v4711_v63 = vld [vmem:[%s9390_s4 + $0x100] sm:$0xff]  ;;  %v4712_v0 = vld [vmem:[%s9390_s4 + $0x108] sm:$0xff]  ;;  %v4738_v54 = vld [vmem:[%s9390_s4 + $0x1d8] sm:$0xff] }
 0x21b   : > { %4536 = vmatpush1.bf16.msra.mxu0 %v7118_v1  ;;  %4577 = vmatpush1.bf16.msra.mxu1 %v7121_v2  ;;  %v4697_v1 = vld [vmem:[%s9390_s4 + $0x90] sm:$0xff]  ;;  %v4698_v2 = vld [vmem:[%s9390_s4 + $0x98] sm:$0xff] }
 0x21c   : > { %4537 = vmatprep.subr.bf16.mxu0 %v7126_v3  ;;  %4578 = vmatprep.subr.bf16.mxu1 %v7129_v4  ;;  %v4729_v3 = vld [vmem:[%s9390_s4 + $0x190] sm:$0xff]  ;;  %v4730_v4 = vld [vmem:[%s9390_s4 + $0x198] sm:$0xff] }
 0x21f   : > { %4538 = vmatpush1.bf16.msra.mxu0 %v7124_v5  ;;  %4579 = vmatpush1.bf16.msra.mxu1 %v7127_v6  ;;  %v4199_v5 = vor.u32 %v4198_v57, %v4194_v56  ;;  %v6151_v6 = vpack.c.bf16 %v4680_v60, %v4679_v59  ;;  %v4689_v56 = vld [vmem:[%s9390_s4 + $0x50] sm:$0xff]  ;;  %v4690_v59 = vld [vmem:[%s9390_s4 + $0x58] sm:$0xff] }
 0x220   : > { %4539 = vmatprep.subr.bf16.mxu0 %v7132_v7  ;;  %4580 = vmatprep.subr.bf16.mxu1 %v7135_v29  ;;  %v6183_v7 = vpack.c.bf16 %v4712_v0, %v4711_v63  ;;  %v4681_v29 = vld [vmem:[%s9390_s4 + $0x10] sm:$0xff]  ;;  %v4707_v0 = vld [vmem:[%s9390_s4 + $0xe0] sm:$0xff] }
 0x221   : > { %v4721_v60 = vld [vmem:[%s9390_s4 + $0x150] sm:$0xff] }
 0x223   : > { %4540 = vmatpush1.bf16.msra.mxu0 %v7130_v8  ;;  %4581 = vmatpush1.bf16.msra.mxu1 %v7133_v9  ;;  %v4682_v8 = vld [vmem:[%s9390_s4 + $0x18] sm:$0xff]  ;;  %v6153_v9 = vpack.c.bf16 %v4698_v2, %v4697_v1  ;;  %v4708_v1 = vld [vmem:[%s9390_s4 + $0xe8] sm:$0xff] }
 0x224   : > { %4541 = vmatprep.subr.bf16.mxu0 %v7138_v10  ;;  %4582 = vmatprep.subr.bf16.mxu1 %v7141_v11  ;;  %v6185_v10 = vpack.c.bf16 %v4730_v4, %v4729_v3  ;;  %v4713_v11 = vld [vmem:[%s9390_s4 + $0x110] sm:$0xff]  ;;  %v6173_v2 = vpack.c.bf16 %v4708_v1, %v4707_v0  ;;  %v4739_v3 = vld [vmem:[%s9390_s4 + $0x1e0] sm:$0xff]  ;;  %v4740_v4 = vld [vmem:[%s9390_s4 + $0x1e8] sm:$0xff] }
 0x227   : > { %4542 = vmatpush1.bf16.msra.mxu0 %v7136_v12  ;;  %4583 = vmatpush1.bf16.msra.mxu1 %v7139_v14  ;;  %v4714_v12 = vld [vmem:[%s9390_s4 + $0x118] sm:$0xff]  ;;  %v4699_v14 = vld [vmem:[%s9390_s4 + $0xa0] sm:$0xff] }
 0x228   : > { %4543 = vmatprep.subr.bf16.mxu0 %v7144_v15  ;;  %4584 = vmatprep.subr.bf16.mxu1 %v7147_v16  ;;  %v4700_v15 = vld [vmem:[%s9390_s4 + $0xa8] sm:$0xff]  ;;  %v4731_v16 = vld [vmem:[%s9390_s4 + $0x1a0] sm:$0xff] }
 0x22b   : > { %4544 = vmatpush1.bf16.msra.mxu0 %v7142_v17  ;;  %4585 = vmatpush1.bf16.msra.mxu1 %v7145_v18  ;;  %v4732_v17 = vld [vmem:[%s9390_s4 + $0x1a8] sm:$0xff]  ;;  %v6155_v18 = vpack.c.bf16 %v4682_v8, %v4681_v29  ;;  %v4723_v29 = vld [vmem:[%s9390_s4 + $0x160] sm:$0xff] }
 0x22c   : > { %4545 = vmatprep.subr.bf16.mxu0 %v7150_v19  ;;  %4586 = vmatprep.subr.bf16.mxu1 %v7153_v21  ;;  %v6187_v19 = vpack.c.bf16 %v4714_v12, %v4713_v11  ;;  %v4683_v21 = vld [vmem:[%s9390_s4 + $0x20] sm:$0xff]  ;;  %v4709_v11 = vld [vmem:[%s9390_s4 + $0xf0] sm:$0xff]  ;;  %v4710_v12 = vld [vmem:[%s9390_s4 + $0xf8] sm:$0xff] }
 0x22f   : > { %4546 = vmatpush1.bf16.msra.mxu0 %v7148_v22  ;;  %4587 = vmatpush1.bf16.msra.mxu1 %v7151_v20  ;;  %v4684_v22 = vld [vmem:[%s9390_s4 + $0x28] sm:$0xff]  ;;  %v6157_v20 = vpack.c.bf16 %v4700_v15, %v4699_v14  ;;  %v4741_v14 = vld [vmem:[%s9390_s4 + $0x1f0] sm:$0xff]  ;;  %v6177_v15 = vpack.c.bf16 %v4710_v12, %v4709_v11 }
 0x230   : > { %4547 = vmatprep.subr.bf16.mxu0 %v7156_v24  ;;  %4588 = vmatprep.subr.bf16.mxu1 %v7159_v25  ;;  %v6189_v24 = vpack.c.bf16 %v4732_v17, %v4731_v16  ;;  %v4715_v25 = vld [vmem:[%s9390_s4 + $0x120] sm:$0xff]  ;;  %v4742_v16 = vld [vmem:[%s9390_s4 + $0x1f8] sm:$0xff]  ;;  %v4693_v17 = vld [vmem:[%s9390_s4 + $0x70] sm:$0xff] }
 0x233   : > { %4548 = vmatpush1.bf16.msra.mxu0 %v7154_v26  ;;  %4589 = vmatpush1.bf16.msra.mxu1 %v7157_v13  ;;  %v4716_v26 = vld [vmem:[%s9390_s4 + $0x128] sm:$0xff]  ;;  %v4701_v13 = vld [vmem:[%s9390_s4 + $0xb0] sm:$0xff] }
 0x234   : > { %4549 = vmatprep.subr.bf16.mxu0 %v7162_v27  ;;  %4590 = vmatprep.subr.bf16.mxu1 %v7165_v28  ;;  %v4702_v27 = vld [vmem:[%s9390_s4 + $0xb8] sm:$0xff]  ;;  %v4733_v28 = vld [vmem:[%s9390_s4 + $0x1b0] sm:$0xff] }
 0x237   : > { %4550 = vmatpush1.bf16.msra.mxu0 %v7160_v30  ;;  %4591 = vmatpush1.bf16.msra.mxu1 %v7163_v31  ;;  %v4734_v30 = vld [vmem:[%s9390_s4 + $0x1b8] sm:$0xff]  ;;  %v6159_v31 = vpack.c.bf16 %v4684_v22, %v4683_v21  ;;  %v4725_v22 = vld [vmem:[%s9390_s4 + $0x170] sm:$0xff] }
 0x238   : > { %4551 = vmatprep.subr.bf16.mxu0 %v7168_v32  ;;  %4592 = vmatprep.subr.bf16.mxu1 %v7171_v33  ;;  %v6191_v32 = vpack.c.bf16 %v4716_v26, %v4715_v25  ;;  %v4685_v33 = vld [vmem:[%s9390_s4 + $0x30] sm:$0xff]  ;;  %v4617_v25 = vlaneseq }
 0x23a   : > { %v4618_v26 = vshrl.u32 %v4617_v25, 7 }
 0x23b   : > { %4552 = vmatpush1.bf16.msra.mxu0 %v7166_v35  ;;  %4593 = vmatpush1.bf16.msra.mxu1 %v7169_v23  ;;  %v4686_v35 = vld [vmem:[%s9390_s4 + $0x38] sm:$0xff]  ;;  %v6161_v23 = vpack.c.bf16 %v4702_v27, %v4701_v13 }
 0x23c   : > { %4553 = vmatprep.subr.bf16.mxu0 %v7174_v36  ;;  %4594 = vmatprep.subr.bf16.mxu1 %v7177_v37  ;;  %v6193_v36 = vpack.c.bf16 %v4734_v30, %v4733_v28  ;;  %v4717_v37 = vld [vmem:[%s9390_s4 + $0x130] sm:$0xff]  ;;  %v4619_v13 = vsub.s32 0, %v4618_v26  ;;  %v4627_v27 = vsub.s32 2, %v4618_v26  ;;  %v4615_v28 = vld [vmem:[%s9388_s2] sm:$0xf]  ;;  %v4623_v30 = vsub.s32 1, %v4618_v26 }
 0x23f   : > { %4554 = vmatpush1.bf16.msra.mxu0 %v7172_v38  ;;  %4595 = vmatpush1.bf16.msra.mxu1 %v7175_v40  ;;  %v4718_v38 = vld [vmem:[%s9390_s4 + $0x138] sm:$0xff]  ;;  %v4703_v40 = vld [vmem:[%s9390_s4 + $0xc0] sm:$0xff] }
 0x240   : > { %4555 = vmatprep.subr.bf16.mxu0 %v7180_v41  ;;  %4596 = vmatprep.subr.bf16.mxu1 %v7183_v42  ;;  %v4704_v41 = vld [vmem:[%s9390_s4 + $0xc8] sm:$0xff]  ;;  %v4735_v42 = vld [vmem:[%s9390_s4 + $0x1c0] sm:$0xff] }
 0x241   : > { %v6165_v34 = vpack.c.bf16 %v4704_v41, %v4703_v40 }
 0x243   : > { %4556 = vmatpush1.bf16.msra.mxu0 %v7178_v45  ;;  %4597 = vmatpush1.bf16.msra.mxu1 %v7181_v46  ;;  %v6163_v45 = vpack.c.bf16 %v4686_v35, %v4685_v33  ;;  %v6195_v46 = vpack.c.bf16 %v4718_v38, %v4717_v37  ;;  %v4620_v33 = vrot.slane %v4615_v28, %v4619_v13 }
 0x244   : > { %4557 = vmatprep.subr.bf16.mxu0 %v7186_v47  ;;  %4598 = vmatprep.subr.bf16.mxu1 %v7189_v39  ;;  %v4687_v47 = vld [vmem:[%s9390_s4 + $0x40] sm:$0xff]  ;;  %v4688_v39 = vld [vmem:[%s9390_s4 + $0x48] sm:$0xff]  ;;  %v4628_v35 = vrot.slane %v4615_v28, %v4627_v27 }
 0x245   : > { %v6167_v55 = vpack.c.bf16 %v4688_v39, %v4687_v47 }
 0x247   : > { %4558 = vmatpush1.bf16.msra.mxu0 %v7184_v48  ;;  %4599 = vmatpush1.bf16.msra.mxu1 %v7187_v49  ;;  %v6197_v48 = vpack.c.bf16 %v4736_v44, %v4735_v42  ;;  %v4719_v49 = vld [vmem:[%s9390_s4 + $0x140] sm:$0xff] }
 0x248   : > { %4559 = vmatprep.subr.bf16.mxu0 %v7192_v50  ;;  %4600 = vmatprep.subr.bf16.mxu1 %v7195_v51  ;;  %v4720_v50 = vld [vmem:[%s9390_s4 + $0x148] sm:$0xff]  ;;  %v4705_v51 = vld [vmem:[%s9390_s4 + $0xd0] sm:$0xff] }
 0x249   : > { %v6169_v57 = vpack.c.bf16 %v4706_v52, %v4705_v51 }
 0x24b   : > { %4560 = vmatpush1.bf16.msra.mxu0 %v7190_v43  ;;  %4601 = vmatpush1.bf16.msra.mxu1 %v7193_v58  ;;  %v6199_v43 = vpack.c.bf16 %v4720_v50, %v4719_v49  ;;  %v6201_v58 = vpack.c.bf16 %v4738_v54, %v4737_v53 }
 0x24c   : > { %6150 = vmatprep.subr.bf16.mxu0 %v6149_v61  ;;  %6182 = vmatprep.subr.bf16.mxu1 %v6181_v62  ;;  %v4722_v61 = vld [vmem:[%s9390_s4 + $0x158] sm:$0xff]  ;;  %v6171_v62 = vpack.c.bf16 %v4690_v59, %v4689_v56 }
 0x24d   : > { %v6203_v63 = vpack.c.bf16 %v4722_v61, %v4721_v60 }
 0x24e   : > { %4562 = vmatmul.mubr.bf16.vlgmr.msra.gmra.mrb[0].mxu0 %v4199_v5  ;;  %4603 = vmatmul.mubr.bf16.vlgmr.msra.gmra.mrb[0].mxu1 %v4199_v5  ;;  %v4691_v5 = vld [vmem:[%s9390_s4 + $0x60] sm:$0xff] }
 0x24f   : > { %6152 = vmatpush3.bf16.msra.mxu0 %v6151_v6  ;;  %6184 = vmatpush3.bf16.msra.mxu1 %v6183_v7  ;;  %v6205_v6 = vpack.c.bf16 %v4740_v4, %v4739_v3  ;;  %v4692_v7 = vld [vmem:[%s9390_s4 + $0x68] sm:$0xff] }
 0x250   : > { %6154 = vmatprep.subr.bf16.mxu0 %v6153_v9  ;;  %6186 = vmatprep.subr.bf16.mxu1 %v6185_v10  ;;  %v6175_v8 = vpack.c.bf16 %v4692_v7, %v4691_v5  ;;  %v4724_v9 = vld [vmem:[%s9390_s4 + $0x168] sm:$0xff] }
 0x251   : > { %v6207_v10 = vpack.c.bf16 %v4724_v9, %v4723_v29 }
 0x253   : > { %6156 = vmatpush3.bf16.msra.mxu0 %v6155_v18  ;;  %6188 = vmatpush3.bf16.msra.mxu1 %v6187_v19  ;;  %v4694_v18 = vld [vmem:[%s9390_s4 + $0x78] sm:$0xff]  ;;  %v6209_v19 = vpack.c.bf16 %v4742_v16, %v4741_v14 }
 0x254   : > { %6158 = vmatprep.subr.bf16.mxu0 %v6157_v20  ;;  %6190 = vmatprep.subr.bf16.mxu1 %v6189_v24  ;;  %v6179_v21 = vpack.c.bf16 %v4694_v18, %v4693_v17  ;;  %v4726_v20 = vld [vmem:[%s9390_s4 + $0x178] sm:$0xff] }
 0x255   : > { %v6211_v24 = vpack.c.bf16 %v4726_v20, %v4725_v22 }
 0x257   : > { %6160 = vmatpush3.bf16.msra.mxu0 %v6159_v31  ;;  %6192 = vmatpush3.bf16.msra.mxu1 %v6191_v32  ;;  %v4631_v31 = vsub.s32 3, %v4618_v26  ;;  %v4641_v32 = vld [vmem:[%s9389_s3] sm:$0xf] }
 0x258   : > { %6162 = vmatprep.subr.bf16.mxu0 %v6161_v23  ;;  %6194 = vmatprep.subr.bf16.mxu1 %v6193_v36  ;;  %v4624_v23 = vrot.slane %v4615_v28, %v4623_v30  ;;  %v4646_v37 = vrot.slane %v4641_v32, %v4619_v13  ;;  %v4654_v38 = vrot.slane %v4641_v32, %v4627_v27 }
 0x259   : > { %v4632_v36 = vrot.slane %v4615_v28, %v4631_v31  ;;  %v4650_v42 = vrot.slane %v4641_v32, %v4623_v30  ;;  %v4658_v44 = vrot.slane %v4641_v32, %v4631_v31 }
 0x25b   : > { %6164 = vmatpush3.bf16.msra.mxu0 %v6163_v45  ;;  %6196 = vmatpush3.bf16.msra.mxu1 %v6195_v46 }
 0x25c   : > { %6166 = vmatprep.subr.bf16.mxu0 %v6165_v34  ;;  %6198 = vmatprep.subr.bf16.mxu1 %v6197_v48 }
 0x25f   : > { %6168 = vmatpush3.bf16.msra.mxu0 %v6167_v55  ;;  %6200 = vmatpush3.bf16.msra.mxu1 %v6199_v43 }
 0x260   : > { %6170 = vmatprep.subr.bf16.mxu0 %v6169_v57  ;;  %6202 = vmatprep.subr.bf16.mxu1 %v6201_v58 }
 0x263   : > { %6172 = vmatpush3.bf16.msra.mxu0 %v6171_v62  ;;  %6204 = vmatpush3.bf16.msra.mxu1 %v6203_v63  ;;  %v4743_v62 = vld [vmem:[%s9391_s5] sm:$0x1] }
 0x264   : > { %6174 = vmatprep.subr.bf16.mxu0 %v6173_v2  ;;  %6206 = vmatprep.subr.bf16.mxu1 %v6205_v6 }
 0x267   : > { %6176 = vmatpush3.bf16.msra.mxu0 %v6175_v8  ;;  %6208 = vmatpush3.bf16.msra.mxu1 %v6207_v10 }
 0x268   : > { %6178 = vmatprep.subr.bf16.mxu0 %v6177_v15  ;;  %6210 = vmatprep.subr.bf16.mxu1 %v6209_v19 }
 0x26b   : > { %6180 = vmatpush3.bf16.msra.mxu0 %v6179_v21  ;;  %6212 = vmatpush3.bf16.msra.mxu1 %v6211_v24 }
 0x321   : > { %v4563_v40 = vpop.f32.mrb[0].mxu0  ;;  %v4604_v41 = vpop.f32.mrb[0].mxu1 }
 0x322   : > { %v4637_v45 = vmul.f32 %v4620_v33, %v4563_v40  ;;  %v4639_v46 = vmul.f32 %v4628_v35, %v4604_v41  ;;  %v4565_v47 = vpop.f32.mrb[1].mxu0  ;;  %v4606_v39 = vpop.f32.mrb[1].mxu1 }
 0x323   : > { %v4638_v34 = vmul.f32 %v4624_v23, %v4565_v47  ;;  %v4640_v48 = vmul.f32 %v4632_v36, %v4606_v39  ;;  %v4567_v49 = vpop.f32.mrb[2].mxu0  ;;  %v4608_v50 = vpop.f32.mrb[2].mxu1 }
 0x324   : > { %v4663_v51 = vadd.f32 %v4646_v37, %v4637_v45  ;;  %v4665_v52 = vadd.f32 %v4654_v38, %v4639_v46  ;;  %v4568_v53 = vpop.f32.mrb[3].mxu0  ;;  %v4609_v54 = vpop.f32.mrb[3].mxu1 }
 0x325   : > { %v4664_v55 = vadd.f32 %v4650_v42, %v4638_v34  ;;  %v4666_v43 = vadd.f32 %v4658_v44, %v4640_v48 }
 0x326   : > { %v4667_v58 = vmax.f32 %v4663_v51, 0.0  ;;  %v4669_v59 = vmax.f32 %v4665_v52, 0.0 }
 0x327   : > { %v4668_v56 = vmax.f32 %v4664_v55, 0.0  ;;  %v4670_v57 = vmax.f32 %v4666_v43, 0.0 }
 0x329   : > { %4808 = vmatprep.mubr.f32.mxu0 %v4668_v56  ;;  %4878 = vmatprep.mubr.f32.mxu1 %v4670_v57 }
 0x32a   : > { %4809 = vmatmul.mubr.f32.vlgmr.msra.gmra.mrb[4].mxu0 %v4667_v58  ;;  %4879 = vmatmul.mubr.f32.vlgmr.msra.gmra.mrb[4].mxu1 %v4669_v59 }
 0x3fd   : > { %v6111_v60 = vpop.f32.mrb[4].mxu0  ;;  %v6146_v61 = vpop.f32.mrb[4].mxu1 }
 0x3fe   : > { %v6112_v63 = vpop.f32.mrb[5].mxu0  ;;  %v6147_v0 = vpop.f32.mrb[5].mxu1 }
 0x3ff   : > { %v6113_v1 = vadd.f32 %v6112_v63, %v6111_v60  ;;  %v6148_v2 = vadd.f32 %v6147_v0, %v6146_v61 }
 0x401   : > { %v4811_v3 = vadd.f32 %v6113_v1, %v4743_v62 }
 0x403   : > { %v4881_v4 = vadd.f32 %v6148_v2, %v4811_v3 }
 0x405   : > { %4884 = vst [vmem:[%s246_s19] sm:$0x1] %v4881_v4 }
 0x406   : > { %7212 = shalt.err (!%p7209_p3)
}
 0x407   : > { %s7213_s13 = scalar_lea.hbm %s9344_s28, 16  ;;  %s7217_s15 = scalar_lea.hbm %s9392_s6, 32 }
 0x408   : > { %p7214_p4 = scmp.ne.s32.totalorder %s9344_s28, %s7213_s13  ;;  %p7218_p9 = scmp.lt.u32.totalorder %s9344_s28, %s9392_s6 }
 0x409   : > { %p7219_p10 = scmp.lt.u32.totalorder %s7217_s15, %s7213_s13  ;;  %p7221_p12 = scmp.lt.u32.totalorder %s7213_s13, %s9344_s28 }
 0x40a   : > { %p7215_p7 = pnand %p7214_p4, %p7337_p5 }
 0x40b   : > { %p7220_p11 = por %p7219_p10, %p7218_p9 }
 0x40c   : > { %p7216_p8 = pneg %p7215_p7 }
 0x40d   : > { %p7222_p13 = por %p7221_p12, %p7220_p11 }
 0x40f   : > { %p7223_p0 = pnand %p7222_p13, %p7216_p8 }
 0x411   : > { %7226 = shalt.err (!%p7223_p0)
}
 0x412   : > { %6277 = dma.vmem_to_hbm [thread:$0]  (%p7337_p5), %s9346_s18, 16, %s9344_s28, %s4886_s29  }
 0x413 PF: > { %p6283_p1 = scmp.ge.s32.totalorder %s7261_s24, 2  ;;  %s4910_s19 = sand.u32 1, %s7249_s21  }
 0x414   : > { %s4911_s20 = scalar_lea.sflag [#allocation3], %s4910_s19 }
 0x415   : > { %p6280_p2 = pnand %p6283_p1, %p7341_p6 }
 0x417   : > { %7244 = dma.done.wait (!%p6280_p2), %s4911_s20, 16  }
 0x418   : > { %7246 = vsyncadd (!%p6280_p2), %s4911_s20, 4294967280  ;;  %p16_p3 = scmp.ge.s32.totalorder %s7324_s27, 4   ;;  %s9395_s21 = smov %s7253_s22 }
 0x419   : > { %s9396_s22 = smov %s7257_s23  ;;  %s9397_s23 = smov %s7335_s30 }
 0x41a   : > { %s9398_s24 = smov %s7324_s27  ;;  %18 = sbr.rel (!%p16_p3) target bundleno = 3 (0x3), region = 92 }
 0x421   :  { %4915 = vsyncpa [#allocation3], 1 }
 0x422   :  { %4917 = vsyncpa [#allocation3 + $0x1], 1 }

</bundles_post_ra>
